<compile_context>
chip_gen: v5e
topology: v5e:2x2
jax: 0.10.0
libtpu: 0.0.40
codegen_flags: <defaults>
</compile_context>

<pallas_src>
import functools

import jax
import jax.numpy as jnp
from jax import lax
from jax.experimental import pallas as pl
from jax.experimental.pallas import tpu as pltpu

BN_EPS = 1e-5


def _matmul_bn_relu_kernel(p_ref, w_ref, g_ref, b_ref, o_ref, *, inv_m):
    # p_ref: (M, K) bf16 patches; w_ref: (K, Cout) bf16; g/b: (1, Cout) f32.
    y = jnp.dot(p_ref[...], w_ref[...], preferred_element_type=jnp.float32)
    # one-pass training-mode BatchNorm2d: stats over N*H*W (= axis 0), in f32
    s1 = jnp.sum(y, axis=0, keepdims=True)
    s2 = jnp.sum(y * y, axis=0, keepdims=True)
    mean = s1 * inv_m
    var = jnp.maximum(s2 * inv_m - mean * mean, 0.0)
    scale = g_ref[...] * lax.rsqrt(var + BN_EPS)     # gamma folded into scale (EUP rsqrt)
    shift = b_ref[...] - mean * scale
    o_ref[...] = jnp.maximum(y * scale + shift, 0.0).astype(o_ref.dtype)


def _fused_matmul_bn_relu(patches, wmat, gamma2d, beta2d, out_dtype):
    M, K = patches.shape
    Cout = wmat.shape[1]
    cost = pl.CostEstimate(
        flops=2 * M * K * Cout + 8 * M * Cout,
        transcendentals=Cout,
        bytes_accessed=(M * K * patches.dtype.itemsize
                        + K * Cout * wmat.dtype.itemsize
                        + M * Cout * jnp.dtype(out_dtype).itemsize
                        + 2 * Cout * 4),
    )
    kernel = functools.partial(_matmul_bn_relu_kernel, inv_m=1.0 / M)
    return pl.pallas_call(
        kernel,
        out_shape=jax.ShapeDtypeStruct((M, Cout), out_dtype),
        grid=(1,),
        in_specs=[
            pl.BlockSpec((M, K), lambda i: (0, 0)),
            pl.BlockSpec((K, Cout), lambda i: (0, 0)),
            pl.BlockSpec((1, Cout), lambda i: (0, 0)),
            pl.BlockSpec((1, Cout), lambda i: (0, 0)),
        ],
        out_specs=pl.BlockSpec((M, Cout), lambda i: (0, 0)),
        compiler_params=pltpu.CompilerParams(
            dimension_semantics=("arbitrary",),
            vmem_limit_bytes=32 * 1024 * 1024),
        cost_estimate=cost,
    )(patches, wmat, gamma2d, beta2d)


def conv_transpose_bn_relu_nhwc(x, wmat, gamma2d, beta2d, stride, padding, out_dtype):
    """ConvTranspose2d(k=3, bias=False) + BatchNorm2d(train) + ReLU, NHWC in/out.

    x:    (N, H, W, Cin) bf16
    wmat: (9*Cin, Cout) bf16, tap-major (kh, kw, ci) flattening of the spatially
          flipped ConvTranspose2d weight (precomputed at init).
    """
    N, H, W, Cin = x.shape
    Cout = wmat.shape[1]
    kh = kw = 3
    sh, sw = stride
    ph, pw = padding
    eh, ew = kh - 1 - ph, kw - 1 - pw

    # zero-dilate by stride AND pad by (k-1-p) in a single lax.pad (interior padding)
    xp = lax.pad(x, jnp.zeros((), x.dtype),
                 ((0, 0, 0), (eh, eh, sh - 1), (ew, ew, sw - 1), (0, 0, 0)))
    Hp, Wp = xp.shape[1], xp.shape[2]
    OH, OW = Hp - kh + 1, Wp - kw + 1  # == (H-1)*s - 2*p + k

    # light-weight im2col in NHWC: concat the 9 shifted taps along channels
    taps = [xp[:, i:i + OH, j:j + OW, :] for i in range(kh) for j in range(kw)]
    patches = jnp.concatenate(taps, axis=-1).reshape(N * OH * OW, kh * kw * Cin)

    out = _fused_matmul_bn_relu(patches, wmat, gamma2d, beta2d, out_dtype)
    return out.reshape(N, OH, OW, Cout)


def init_infogen_params(key, t_emb, output_size):
    ks = jax.random.split(key, 4)
    shapes = [(t_emb, 512, 3, 3), (512, 128, 3, 3),
              (128, 64, 3, 3), (64, output_size, 3, 3)]
    params = []
    for k, s in zip(ks, shapes):
        cin, cout = s[0], s[1]
        w = jax.random.normal(k, s, jnp.float32) * 0.05          # PyTorch layout (Cin,Cout,3,3)
        # precompute equivalent forward-conv matmul weight once (not per forward):
        # spatial flip, then (kh, kw, ci) tap-major flatten -> (9*Cin, Cout), bf16
        wf = w[:, :, ::-1, ::-1]
        wmat = wf.transpose(2, 3, 0, 1).reshape(9 * cin, cout).astype(jnp.bfloat16)
        gamma = jnp.ones((1, cout), jnp.float32)                  # BatchNorm default init
        beta = jnp.zeros((1, cout), jnp.float32)
        params.append((wmat, gamma, beta))
    return params


@jax.jit
def infogen_forward(t_embedding, params):
    (w1, g1, b1), (w2, g2, b2), (w3, g3, b3), (w4, g4, b4) = params
    # single NCHW -> NHWC at the top; bf16 activations between layers
    x = jnp.transpose(t_embedding, (0, 2, 3, 1)).astype(jnp.bfloat16)
    x = conv_transpose_bn_relu_nhwc(x, w1, g1, b1, (2, 2), (0, 0), jnp.bfloat16)
    x = conv_transpose_bn_relu_nhwc(x, w2, g2, b2, (2, 2), (0, 0), jnp.bfloat16)
    x = conv_transpose_bn_relu_nhwc(x, w3, g3, b3, (2, 2), (1, 1), jnp.bfloat16)
    x = conv_transpose_bn_relu_nhwc(x, w4, g4, b4, (2, 1), (1, 1), jnp.float32)
    x = jnp.transpose(x, (0, 3, 1, 2))  # single NHWC -> NCHW at the end
    aux = jnp.zeros((x.shape[0], 1024, t_embedding.shape[-1]), x.dtype)
    return x, aux


if __name__ == "__main__":
    key = jax.random.PRNGKey(0)
    k_in, k_par = jax.random.split(key)

    B, T_EMB, OUTPUT_SIZE = 2, 8, 16
    # typical InfoGen input: a (B, t_emb, 1, 1) embedding "pixel"
    t_embedding = jax.random.normal(k_in, (B, T_EMB, 1, 1), jnp.float32)

    params = init_infogen_params(k_par, T_EMB, OUTPUT_SIZE)

    x, aux = infogen_forward(t_embedding, params)
    jax.block_until_ready((x, aux))

    assert x.shape == (B, OUTPUT_SIZE, 25, 13), x.shape
    assert aux.shape == (B, 1024, 1), aux.shape
    assert bool(jnp.all(jnp.isfinite(x)))
    print("KERNEL_OK")
</pallas_src>

<mosaic_0001>
module attributes {stable_mosaic.version = 11 : i64} {
  func.func @_matmul_bn_relu_kernel(%arg0: i32, %arg1: memref<18x72xbf16, #tpu.memory_space<vmem>>, %arg2: memref<72x512xbf16, #tpu.memory_space<vmem>>, %arg3: memref<1x512xf32, #tpu.memory_space<vmem>>, %arg4: memref<1x512xf32, #tpu.memory_space<vmem>>, %arg5: memref<18x512xbf16, #tpu.memory_space<vmem>>) attributes {dimension_semantics = [#tpu.dimension_semantics<arbitrary>], iteration_bounds = array<i64: 1>, scalar_prefetch = 0 : i64, scratch_operands = 0 : i64, tpu.core_type = #tpu.core_type<tc>, window_params = [{pipeline_mode = #tpu.pipeline_mode<synchronous>, transform_indices = @transform_0, window_bounds = array<i64: 18, 72>}, {pipeline_mode = #tpu.pipeline_mode<synchronous>, transform_indices = @transform_1, window_bounds = array<i64: 72, 512>}, {pipeline_mode = #tpu.pipeline_mode<synchronous>, transform_indices = @transform_2, window_bounds = array<i64: 1, 512>}, {pipeline_mode = #tpu.pipeline_mode<synchronous>, transform_indices = @transform_3, window_bounds = array<i64: 1, 512>}, {pipeline_mode = #tpu.pipeline_mode<synchronous>, transform_indices = @transform_4, window_bounds = array<i64: 18, 512>}]} {
    %c0 = arith.constant 0 : index
    %c0_0 = arith.constant 0 : index
    %0 = vector.load %arg1[%c0, %c0_0] : memref<18x72xbf16, #tpu.memory_space<vmem>>, vector<18x72xbf16>
    %c0_1 = arith.constant 0 : index
    %c0_2 = arith.constant 0 : index
    %1 = vector.load %arg2[%c0_1, %c0_2] : memref<72x512xbf16, #tpu.memory_space<vmem>>, vector<72x512xbf16>
    %cst = arith.constant dense<0.000000e+00> : vector<18x512xf32>
    %2 = tpu.matmul %0, %1, %cst {dimension_numbers = #tpu.dot_dimension_numbers<[1], [0], [0], [1], [0, 0, 1, 1], [], []>} : vector<18x72xbf16>, vector<72x512xbf16>, vector<18x512xf32> -> vector<18x512xf32>
    %cst_3 = arith.constant dense<0.000000e+00> : vector<512xf32>
    %3 = vector.multi_reduction <add>, %2, %cst_3 [0] : vector<18x512xf32> to vector<512xf32>
    %4 = vector.shape_cast %3 : vector<512xf32> to vector<1x512xf32>
    %5 = arith.mulf %2, %2 : vector<18x512xf32>
    %cst_4 = arith.constant dense<0.000000e+00> : vector<512xf32>
    %6 = vector.multi_reduction <add>, %5, %cst_4 [0] : vector<18x512xf32> to vector<512xf32>
    %7 = vector.shape_cast %6 : vector<512xf32> to vector<1x512xf32>
    %cst_5 = arith.constant 0.055555556 : f32
    %8 = vector.broadcast %cst_5 : f32 to vector<1x512xf32>
    %9 = arith.mulf %4, %8 : vector<1x512xf32>
    %cst_6 = arith.constant 0.055555556 : f32
    %10 = vector.broadcast %cst_6 : f32 to vector<1x512xf32>
    %11 = arith.mulf %7, %10 : vector<1x512xf32>
    %12 = arith.mulf %9, %9 : vector<1x512xf32>
    %13 = arith.subf %11, %12 : vector<1x512xf32>
    %cst_7 = arith.constant 0.000000e+00 : f32
    %14 = vector.broadcast %cst_7 : f32 to vector<1x512xf32>
    %15 = arith.maximumf %13, %14 : vector<1x512xf32>
    %c0_8 = arith.constant 0 : index
    %c0_9 = arith.constant 0 : index
    %16 = vector.load %arg3[%c0_8, %c0_9] : memref<1x512xf32, #tpu.memory_space<vmem>>, vector<1x512xf32>
    %cst_10 = arith.constant 9.99999974E-6 : f32
    %17 = vector.broadcast %cst_10 : f32 to vector<1x512xf32>
    %18 = arith.addf %15, %17 : vector<1x512xf32>
    %19 = math.rsqrt %18 : vector<1x512xf32>
    %20 = arith.mulf %16, %19 : vector<1x512xf32>
    %c0_11 = arith.constant 0 : index
    %c0_12 = arith.constant 0 : index
    %21 = vector.load %arg4[%c0_11, %c0_12] : memref<1x512xf32, #tpu.memory_space<vmem>>, vector<1x512xf32>
    %22 = arith.mulf %9, %20 : vector<1x512xf32>
    %23 = arith.subf %21, %22 : vector<1x512xf32>
    %24 = vector.broadcast %20 : vector<1x512xf32> to vector<18x512xf32>
    %25 = arith.mulf %2, %24 : vector<18x512xf32>
    %26 = vector.broadcast %23 : vector<1x512xf32> to vector<18x512xf32>
    %27 = arith.addf %25, %26 : vector<18x512xf32>
    %cst_13 = arith.constant 0.000000e+00 : f32
    %28 = vector.broadcast %cst_13 : f32 to vector<18x512xf32>
    %29 = arith.maximumf %27, %28 : vector<18x512xf32>
    %30 = arith.truncf %29 : vector<18x512xf32> to vector<18x512xbf16>
    %c0_14 = arith.constant 0 : index
    %c0_15 = arith.constant 0 : index
    %31 = vector.load %arg5[%c0_14, %c0_15] : memref<18x512xbf16, #tpu.memory_space<vmem>>, vector<18x512xbf16>
    tpu.vector_store %arg5[%c0_14, %c0_15], %30 {strides = array<i32>} : memref<18x512xbf16, #tpu.memory_space<vmem>>, vector<18x512xbf16>,
    return
  }
  func.func @transform_0(%arg0: i32) -> (i32, i32) {
    %c0_i32 = arith.constant 0 : i32
    %c0_i32_0 = arith.constant 0 : i32
    %c0_i32_1 = arith.constant 0 : i32
    return %c0_i32, %c0_i32_0 : i32, i32
  }
  func.func @transform_1(%arg0: i32) -> (i32, i32) {
    %c0_i32 = arith.constant 0 : i32
    %c0_i32_0 = arith.constant 0 : i32
    %c0_i32_1 = arith.constant 0 : i32
    return %c0_i32, %c0_i32_0 : i32, i32
  }
  func.func @transform_2(%arg0: i32) -> (i32, i32) {
    %c0_i32 = arith.constant 0 : i32
    %c0_i32_0 = arith.constant 0 : i32
    %c0_i32_1 = arith.constant 0 : i32
    return %c0_i32, %c0_i32_0 : i32, i32
  }
  func.func @transform_3(%arg0: i32) -> (i32, i32) {
    %c0_i32 = arith.constant 0 : i32
    %c0_i32_0 = arith.constant 0 : i32
    %c0_i32_1 = arith.constant 0 : i32
    return %c0_i32, %c0_i32_0 : i32, i32
  }
  func.func @transform_4(%arg0: i32) -> (i32, i32) {
    %c0_i32 = arith.constant 0 : i32
    %c0_i32_0 = arith.constant 0 : i32
    %c0_i32_1 = arith.constant 0 : i32
    return %c0_i32, %c0_i32_0 : i32, i32
  }
}

module attributes {stable_mosaic.version = 11 : i64} {
  func.func @_matmul_bn_relu_kernel(%arg0: i32, %arg1: memref<98x4608xbf16, #tpu.memory_space<vmem>>, %arg2: memref<4608x128xbf16, #tpu.memory_space<vmem>>, %arg3: memref<1x128xf32, #tpu.memory_space<vmem>>, %arg4: memref<1x128xf32, #tpu.memory_space<vmem>>, %arg5: memref<98x128xbf16, #tpu.memory_space<vmem>>) attributes {dimension_semantics = [#tpu.dimension_semantics<arbitrary>], iteration_bounds = array<i64: 1>, scalar_prefetch = 0 : i64, scratch_operands = 0 : i64, tpu.core_type = #tpu.core_type<tc>, window_params = [{pipeline_mode = #tpu.pipeline_mode<synchronous>, transform_indices = @transform_0, window_bounds = array<i64: 98, 4608>}, {pipeline_mode = #tpu.pipeline_mode<synchronous>, transform_indices = @transform_1, window_bounds = array<i64: 4608, 128>}, {pipeline_mode = #tpu.pipeline_mode<synchronous>, transform_indices = @transform_2, window_bounds = array<i64: 1, 128>}, {pipeline_mode = #tpu.pipeline_mode<synchronous>, transform_indices = @transform_3, window_bounds = array<i64: 1, 128>}, {pipeline_mode = #tpu.pipeline_mode<synchronous>, transform_indices = @transform_4, window_bounds = array<i64: 98, 128>}]} {
    %c0 = arith.constant 0 : index
    %c0_0 = arith.constant 0 : index
    %0 = vector.load %arg1[%c0, %c0_0] : memref<98x4608xbf16, #tpu.memory_space<vmem>>, vector<98x4608xbf16>
    %c0_1 = arith.constant 0 : index
    %c0_2 = arith.constant 0 : index
    %1 = vector.load %arg2[%c0_1, %c0_2] : memref<4608x128xbf16, #tpu.memory_space<vmem>>, vector<4608x128xbf16>
    %cst = arith.constant dense<0.000000e+00> : vector<98x128xf32>
    %2 = tpu.matmul %0, %1, %cst {dimension_numbers = #tpu.dot_dimension_numbers<[1], [0], [0], [1], [0, 0, 1, 1], [], []>} : vector<98x4608xbf16>, vector<4608x128xbf16>, vector<98x128xf32> -> vector<98x128xf32>
    %cst_3 = arith.constant dense<0.000000e+00> : vector<128xf32>
    %3 = vector.multi_reduction <add>, %2, %cst_3 [0] : vector<98x128xf32> to vector<128xf32>
    %4 = vector.shape_cast %3 : vector<128xf32> to vector<1x128xf32>
    %5 = arith.mulf %2, %2 : vector<98x128xf32>
    %cst_4 = arith.constant dense<0.000000e+00> : vector<128xf32>
    %6 = vector.multi_reduction <add>, %5, %cst_4 [0] : vector<98x128xf32> to vector<128xf32>
    %7 = vector.shape_cast %6 : vector<128xf32> to vector<1x128xf32>
    %cst_5 = arith.constant 0.0102040814 : f32
    %8 = vector.broadcast %cst_5 : f32 to vector<1x128xf32>
    %9 = arith.mulf %4, %8 : vector<1x128xf32>
    %cst_6 = arith.constant 0.0102040814 : f32
    %10 = vector.broadcast %cst_6 : f32 to vector<1x128xf32>
    %11 = arith.mulf %7, %10 : vector<1x128xf32>
    %12 = arith.mulf %9, %9 : vector<1x128xf32>
    %13 = arith.subf %11, %12 : vector<1x128xf32>
    %cst_7 = arith.constant 0.000000e+00 : f32
    %14 = vector.broadcast %cst_7 : f32 to vector<1x128xf32>
    %15 = arith.maximumf %13, %14 : vector<1x128xf32>
    %c0_8 = arith.constant 0 : index
    %c0_9 = arith.constant 0 : index
    %16 = vector.load %arg3[%c0_8, %c0_9] : memref<1x128xf32, #tpu.memory_space<vmem>>, vector<1x128xf32>
    %cst_10 = arith.constant 9.99999974E-6 : f32
    %17 = vector.broadcast %cst_10 : f32 to vector<1x128xf32>
    %18 = arith.addf %15, %17 : vector<1x128xf32>
    %19 = math.rsqrt %18 : vector<1x128xf32>
    %20 = arith.mulf %16, %19 : vector<1x128xf32>
    %c0_11 = arith.constant 0 : index
    %c0_12 = arith.constant 0 : index
    %21 = vector.load %arg4[%c0_11, %c0_12] : memref<1x128xf32, #tpu.memory_space<vmem>>, vector<1x128xf32>
    %22 = arith.mulf %9, %20 : vector<1x128xf32>
    %23 = arith.subf %21, %22 : vector<1x128xf32>
    %24 = vector.broadcast %20 : vector<1x128xf32> to vector<98x128xf32>
    %25 = arith.mulf %2, %24 : vector<98x128xf32>
    %26 = vector.broadcast %23 : vector<1x128xf32> to vector<98x128xf32>
    %27 = arith.addf %25, %26 : vector<98x128xf32>
    %cst_13 = arith.constant 0.000000e+00 : f32
    %28 = vector.broadcast %cst_13 : f32 to vector<98x128xf32>
    %29 = arith.maximumf %27, %28 : vector<98x128xf32>
    %30 = arith.truncf %29 : vector<98x128xf32> to vector<98x128xbf16>
    %c0_14 = arith.constant 0 : index
    %c0_15 = arith.constant 0 : index
    %31 = vector.load %arg5[%c0_14, %c0_15] : memref<98x128xbf16, #tpu.memory_space<vmem>>, vector<98x128xbf16>
    tpu.vector_store %arg5[%c0_14, %c0_15], %30 {strides = array<i32>} : memref<98x128xbf16, #tpu.memory_space<vmem>>, vector<98x128xbf16>,
    return
  }
  func.func @transform_0(%arg0: i32) -> (i32, i32) {
    %c0_i32 = arith.constant 0 : i32
    %c0_i32_0 = arith.constant 0 : i32
    %c0_i32_1 = arith.constant 0 : i32
    return %c0_i32, %c0_i32_0 : i32, i32
  }
  func.func @transform_1(%arg0: i32) -> (i32, i32) {
    %c0_i32 = arith.constant 0 : i32
    %c0_i32_0 = arith.constant 0 : i32
    %c0_i32_1 = arith.constant 0 : i32
    return %c0_i32, %c0_i32_0 : i32, i32
  }
  func.func @transform_2(%arg0: i32) -> (i32, i32) {
    %c0_i32 = arith.constant 0 : i32
    %c0_i32_0 = arith.constant 0 : i32
    %c0_i32_1 = arith.constant 0 : i32
    return %c0_i32, %c0_i32_0 : i32, i32
  }
  func.func @transform_3(%arg0: i32) -> (i32, i32) {
    %c0_i32 = arith.constant 0 : i32
    %c0_i32_0 = arith.constant 0 : i32
    %c0_i32_1 = arith.constant 0 : i32
    return %c0_i32, %c0_i32_0 : i32, i32
  }
  func.func @transform_4(%arg0: i32) -> (i32, i32) {
    %c0_i32 = arith.constant 0 : i32
    %c0_i32_0 = arith.constant 0 : i32
    %c0_i32_1 = arith.constant 0 : i32
    return %c0_i32, %c0_i32_0 : i32, i32
  }
}

module attributes {stable_mosaic.version = 11 : i64} {
  func.func @_matmul_bn_relu_kernel(%arg0: i32, %arg1: memref<338x1152xbf16, #tpu.memory_space<vmem>>, %arg2: memref<1152x64xbf16, #tpu.memory_space<vmem>>, %arg3: memref<1x64xf32, #tpu.memory_space<vmem>>, %arg4: memref<1x64xf32, #tpu.memory_space<vmem>>, %arg5: memref<338x64xbf16, #tpu.memory_space<vmem>>) attributes {dimension_semantics = [#tpu.dimension_semantics<arbitrary>], iteration_bounds = array<i64: 1>, scalar_prefetch = 0 : i64, scratch_operands = 0 : i64, tpu.core_type = #tpu.core_type<tc>, window_params = [{pipeline_mode = #tpu.pipeline_mode<synchronous>, transform_indices = @transform_0, window_bounds = array<i64: 338, 1152>}, {pipeline_mode = #tpu.pipeline_mode<synchronous>, transform_indices = @transform_1, window_bounds = array<i64: 1152, 64>}, {pipeline_mode = #tpu.pipeline_mode<synchronous>, transform_indices = @transform_2, window_bounds = array<i64: 1, 64>}, {pipeline_mode = #tpu.pipeline_mode<synchronous>, transform_indices = @transform_3, window_bounds = array<i64: 1, 64>}, {pipeline_mode = #tpu.pipeline_mode<synchronous>, transform_indices = @transform_4, window_bounds = array<i64: 338, 64>}]} {
    %c0 = arith.constant 0 : index
    %c0_0 = arith.constant 0 : index
    %0 = vector.load %arg1[%c0, %c0_0] : memref<338x1152xbf16, #tpu.memory_space<vmem>>, vector<338x1152xbf16>
    %c0_1 = arith.constant 0 : index
    %c0_2 = arith.constant 0 : index
    %1 = vector.load %arg2[%c0_1, %c0_2] : memref<1152x64xbf16, #tpu.memory_space<vmem>>, vector<1152x64xbf16>
    %cst = arith.constant dense<0.000000e+00> : vector<338x64xf32>
    %2 = tpu.matmul %0, %1, %cst {dimension_numbers = #tpu.dot_dimension_numbers<[1], [0], [0], [1], [0, 0, 1, 1], [], []>} : vector<338x1152xbf16>, vector<1152x64xbf16>, vector<338x64xf32> -> vector<338x64xf32>
    %cst_3 = arith.constant dense<0.000000e+00> : vector<64xf32>
    %3 = vector.multi_reduction <add>, %2, %cst_3 [0] : vector<338x64xf32> to vector<64xf32>
    %4 = vector.shape_cast %3 : vector<64xf32> to vector<1x64xf32>
    %5 = arith.mulf %2, %2 : vector<338x64xf32>
    %cst_4 = arith.constant dense<0.000000e+00> : vector<64xf32>
    %6 = vector.multi_reduction <add>, %5, %cst_4 [0] : vector<338x64xf32> to vector<64xf32>
    %7 = vector.shape_cast %6 : vector<64xf32> to vector<1x64xf32>
    %cst_5 = arith.constant 2.958580e-03 : f32
    %8 = vector.broadcast %cst_5 : f32 to vector<1x64xf32>
    %9 = arith.mulf %4, %8 : vector<1x64xf32>
    %cst_6 = arith.constant 2.958580e-03 : f32
    %10 = vector.broadcast %cst_6 : f32 to vector<1x64xf32>
    %11 = arith.mulf %7, %10 : vector<1x64xf32>
    %12 = arith.mulf %9, %9 : vector<1x64xf32>
    %13 = arith.subf %11, %12 : vector<1x64xf32>
    %cst_7 = arith.constant 0.000000e+00 : f32
    %14 = vector.broadcast %cst_7 : f32 to vector<1x64xf32>
    %15 = arith.maximumf %13, %14 : vector<1x64xf32>
    %c0_8 = arith.constant 0 : index
    %c0_9 = arith.constant 0 : index
    %16 = vector.load %arg3[%c0_8, %c0_9] : memref<1x64xf32, #tpu.memory_space<vmem>>, vector<1x64xf32>
    %cst_10 = arith.constant 9.99999974E-6 : f32
    %17 = vector.broadcast %cst_10 : f32 to vector<1x64xf32>
    %18 = arith.addf %15, %17 : vector<1x64xf32>
    %19 = math.rsqrt %18 : vector<1x64xf32>
    %20 = arith.mulf %16, %19 : vector<1x64xf32>
    %c0_11 = arith.constant 0 : index
    %c0_12 = arith.constant 0 : index
    %21 = vector.load %arg4[%c0_11, %c0_12] : memref<1x64xf32, #tpu.memory_space<vmem>>, vector<1x64xf32>
    %22 = arith.mulf %9, %20 : vector<1x64xf32>
    %23 = arith.subf %21, %22 : vector<1x64xf32>
    %24 = vector.broadcast %20 : vector<1x64xf32> to vector<338x64xf32>
    %25 = arith.mulf %2, %24 : vector<338x64xf32>
    %26 = vector.broadcast %23 : vector<1x64xf32> to vector<338x64xf32>
    %27 = arith.addf %25, %26 : vector<338x64xf32>
    %cst_13 = arith.constant 0.000000e+00 : f32
    %28 = vector.broadcast %cst_13 : f32 to vector<338x64xf32>
    %29 = arith.maximumf %27, %28 : vector<338x64xf32>
    %30 = arith.truncf %29 : vector<338x64xf32> to vector<338x64xbf16>
    %c0_14 = arith.constant 0 : index
    %c0_15 = arith.constant 0 : index
    %31 = vector.load %arg5[%c0_14, %c0_15] : memref<338x64xbf16, #tpu.memory_space<vmem>>, vector<338x64xbf16>
    tpu.vector_store %arg5[%c0_14, %c0_15], %30 {strides = array<i32>} : memref<338x64xbf16, #tpu.memory_space<vmem>>, vector<338x64xbf16>,
    return
  }
  func.func @transform_0(%arg0: i32) -> (i32, i32) {
    %c0_i32 = arith.constant 0 : i32
    %c0_i32_0 = arith.constant 0 : i32
    %c0_i32_1 = arith.constant 0 : i32
    return %c0_i32, %c0_i32_0 : i32, i32
  }
  func.func @transform_1(%arg0: i32) -> (i32, i32) {
    %c0_i32 = arith.constant 0 : i32
    %c0_i32_0 = arith.constant 0 : i32
    %c0_i32_1 = arith.constant 0 : i32
    return %c0_i32, %c0_i32_0 : i32, i32
  }
  func.func @transform_2(%arg0: i32) -> (i32, i32) {
    %c0_i32 = arith.constant 0 : i32
    %c0_i32_0 = arith.constant 0 : i32
    %c0_i32_1 = arith.constant 0 : i32
    return %c0_i32, %c0_i32_0 : i32, i32
  }
  func.func @transform_3(%arg0: i32) -> (i32, i32) {
    %c0_i32 = arith.constant 0 : i32
    %c0_i32_0 = arith.constant 0 : i32
    %c0_i32_1 = arith.constant 0 : i32
    return %c0_i32, %c0_i32_0 : i32, i32
  }
  func.func @transform_4(%arg0: i32) -> (i32, i32) {
    %c0_i32 = arith.constant 0 : i32
    %c0_i32_0 = arith.constant 0 : i32
    %c0_i32_1 = arith.constant 0 : i32
    return %c0_i32, %c0_i32_0 : i32, i32
  }
}

module attributes {stable_mosaic.version = 11 : i64} {
  func.func @_matmul_bn_relu_kernel(%arg0: i32, %arg1: memref<650x576xbf16, #tpu.memory_space<vmem>>, %arg2: memref<576x16xbf16, #tpu.memory_space<vmem>>, %arg3: memref<1x16xf32, #tpu.memory_space<vmem>>, %arg4: memref<1x16xf32, #tpu.memory_space<vmem>>, %arg5: memref<650x16xf32, #tpu.memory_space<vmem>>) attributes {dimension_semantics = [#tpu.dimension_semantics<arbitrary>], iteration_bounds = array<i64: 1>, scalar_prefetch = 0 : i64, scratch_operands = 0 : i64, tpu.core_type = #tpu.core_type<tc>, window_params = [{pipeline_mode = #tpu.pipeline_mode<synchronous>, transform_indices = @transform_0, window_bounds = array<i64: 650, 576>}, {pipeline_mode = #tpu.pipeline_mode<synchronous>, transform_indices = @transform_1, window_bounds = array<i64: 576, 16>}, {pipeline_mode = #tpu.pipeline_mode<synchronous>, transform_indices = @transform_2, window_bounds = array<i64: 1, 16>}, {pipeline_mode = #tpu.pipeline_mode<synchronous>, transform_indices = @transform_3, window_bounds = array<i64: 1, 16>}, {pipeline_mode = #tpu.pipeline_mode<synchronous>, transform_indices = @transform_4, window_bounds = array<i64: 650, 16>}]} {
    %c0 = arith.constant 0 : index
    %c0_0 = arith.constant 0 : index
    %0 = vector.load %arg1[%c0, %c0_0] : memref<650x576xbf16, #tpu.memory_space<vmem>>, vector<650x576xbf16>
    %c0_1 = arith.constant 0 : index
    %c0_2 = arith.constant 0 : index
    %1 = vector.load %arg2[%c0_1, %c0_2] : memref<576x16xbf16, #tpu.memory_space<vmem>>, vector<576x16xbf16>
    %cst = arith.constant dense<0.000000e+00> : vector<650x16xf32>
    %2 = tpu.matmul %0, %1, %cst {dimension_numbers = #tpu.dot_dimension_numbers<[1], [0], [0], [1], [0, 0, 1, 1], [], []>} : vector<650x576xbf16>, vector<576x16xbf16>, vector<650x16xf32> -> vector<650x16xf32>
    %cst_3 = arith.constant dense<0.000000e+00> : vector<16xf32>
    %3 = vector.multi_reduction <add>, %2, %cst_3 [0] : vector<650x16xf32> to vector<16xf32>
    %4 = vector.shape_cast %3 : vector<16xf32> to vector<1x16xf32>
    %5 = arith.mulf %2, %2 : vector<650x16xf32>
    %cst_4 = arith.constant dense<0.000000e+00> : vector<16xf32>
    %6 = vector.multi_reduction <add>, %5, %cst_4 [0] : vector<650x16xf32> to vector<16xf32>
    %7 = vector.shape_cast %6 : vector<16xf32> to vector<1x16xf32>
    %cst_5 = arith.constant 0.00153846154 : f32
    %8 = vector.broadcast %cst_5 : f32 to vector<1x16xf32>
    %9 = arith.mulf %4, %8 : vector<1x16xf32>
    %cst_6 = arith.constant 0.00153846154 : f32
    %10 = vector.broadcast %cst_6 : f32 to vector<1x16xf32>
    %11 = arith.mulf %7, %10 : vector<1x16xf32>
    %12 = arith.mulf %9, %9 : vector<1x16xf32>
    %13 = arith.subf %11, %12 : vector<1x16xf32>
    %cst_7 = arith.constant 0.000000e+00 : f32
    %14 = vector.broadcast %cst_7 : f32 to vector<1x16xf32>
    %15 = arith.maximumf %13, %14 : vector<1x16xf32>
    %c0_8 = arith.constant 0 : index
    %c0_9 = arith.constant 0 : index
    %16 = vector.load %arg3[%c0_8, %c0_9] : memref<1x16xf32, #tpu.memory_space<vmem>>, vector<1x16xf32>
    %cst_10 = arith.constant 9.99999974E-6 : f32
    %17 = vector.broadcast %cst_10 : f32 to vector<1x16xf32>
    %18 = arith.addf %15, %17 : vector<1x16xf32>
    %19 = math.rsqrt %18 : vector<1x16xf32>
    %20 = arith.mulf %16, %19 : vector<1x16xf32>
    %c0_11 = arith.constant 0 : index
    %c0_12 = arith.constant 0 : index
    %21 = vector.load %arg4[%c0_11, %c0_12] : memref<1x16xf32, #tpu.memory_space<vmem>>, vector<1x16xf32>
    %22 = arith.mulf %9, %20 : vector<1x16xf32>
    %23 = arith.subf %21, %22 : vector<1x16xf32>
    %24 = vector.broadcast %20 : vector<1x16xf32> to vector<650x16xf32>
    %25 = arith.mulf %2, %24 : vector<650x16xf32>
    %26 = vector.broadcast %23 : vector<1x16xf32> to vector<650x16xf32>
    %27 = arith.addf %25, %26 : vector<650x16xf32>
    %cst_13 = arith.constant 0.000000e+00 : f32
    %28 = vector.broadcast %cst_13 : f32 to vector<650x16xf32>
    %29 = arith.maximumf %27, %28 : vector<650x16xf32>
    %c0_14 = arith.constant 0 : index
    %c0_15 = arith.constant 0 : index
    %30 = vector.load %arg5[%c0_14, %c0_15] : memref<650x16xf32, #tpu.memory_space<vmem>>, vector<650x16xf32>
    tpu.vector_store %arg5[%c0_14, %c0_15], %29 {strides = array<i32>} : memref<650x16xf32, #tpu.memory_space<vmem>>, vector<650x16xf32>,
    return
  }
  func.func @transform_0(%arg0: i32) -> (i32, i32) {
    %c0_i32 = arith.constant 0 : i32
    %c0_i32_0 = arith.constant 0 : i32
    %c0_i32_1 = arith.constant 0 : i32
    return %c0_i32, %c0_i32_0 : i32, i32
  }
  func.func @transform_1(%arg0: i32) -> (i32, i32) {
    %c0_i32 = arith.constant 0 : i32
    %c0_i32_0 = arith.constant 0 : i32
    %c0_i32_1 = arith.constant 0 : i32
    return %c0_i32, %c0_i32_0 : i32, i32
  }
  func.func @transform_2(%arg0: i32) -> (i32, i32) {
    %c0_i32 = arith.constant 0 : i32
    %c0_i32_0 = arith.constant 0 : i32
    %c0_i32_1 = arith.constant 0 : i32
    return %c0_i32, %c0_i32_0 : i32, i32
  }
  func.func @transform_3(%arg0: i32) -> (i32, i32) {
    %c0_i32 = arith.constant 0 : i32
    %c0_i32_0 = arith.constant 0 : i32
    %c0_i32_1 = arith.constant 0 : i32
    return %c0_i32, %c0_i32_0 : i32, i32
  }
  func.func @transform_4(%arg0: i32) -> (i32, i32) {
    %c0_i32 = arith.constant 0 : i32
    %c0_i32_0 = arith.constant 0 : i32
    %c0_i32_1 = arith.constant 0 : i32
    return %c0_i32, %c0_i32_0 : i32, i32
  }
}

</mosaic_0001>

<bundles_post_ra>
// kernel: infogen_forward.4
= control target key start
LH: loop header
LB: loop body
LE: loop exit
PB: predicated region body
PF: predicated region fallthrough
CT: control target
= control target key end

     0   :  { %9 = vsyncpa [#allocation3], 0  ;;  %s880_s0 = inlined_call_operand.vmem [shape: bf16[18,72], index: 0, kind: input, shape index: {}]   ;;  %s881_s1 = inlined_call_operand.hbm [shape: bf16[72,512], index: 1, kind: input, shape index: {}]   ;;  %s882_s2 = inlined_call_operand.hbm [shape: f32[1,512], index: 2, kind: input, shape index: {}]   ;;  %s883_s3 = inlined_call_operand.hbm [shape: f32[1,512], index: 3, kind: input, shape index: {}]   ;;  %s884_s4 = inlined_call_operand.vmem [shape: bf16[18,512], index: 4, kind: output, shape index: {}]  }
   0x1   :  { %10 = vsyncpa [#allocation5], 0  ;;  %s31_s17 = sshll.u32 %s882_s2, 4  ;;  %s707_s18 = smov [#allocation4]   ;;  %s32_s17 = int_to_ptr.hbm [resolvable:$true] %s31_s17 }
   0x2   :  { %s33_s19 = sshll.u32 %s707_s18, 4  ;;  %s17_s22 = sshll.u32 %s881_s1, 4  ;;  %s34_s19 = int_to_ptr.vmem [resolvable:$true] %s33_s19  ;;  %s18_s22 = int_to_ptr.hbm [resolvable:$true] %s17_s22 }
   0x3   :  { %36 = dma.hbm_to_vmem [thread:$0]  %s32_s17, 64, %s34_s19, [#allocation5]  }
   0x4   :  { %s708_s23 = smov [#allocation2]   ;;  %s709_s25 = smov 256  }
   0x5   :  { %s19_s24 = sshll.u32 %s708_s23, 4  ;;  %s710_s26 = smov 16   ;;  %s20_s24 = int_to_ptr.vmem [resolvable:$true] %s19_s24 }
   0x6   :  { %25 = dma.hbm_to_vmem [thread:$0]  %s18_s22, 2304, %s20_s24, [#allocation3], %s709_s25, %s709_s25, %s710_s26  }
   0x7   :  { %s42_s2 = sshll.u32 %s883_s3, 4  ;;  %s711_s29 = smov [#allocation6]   ;;  %s43_s2 = int_to_ptr.hbm [resolvable:$true] %s42_s2 }
   0x8   :  { %s44_s30 = sshll.u32 %s711_s29, 4  ;;  %s45_s30 = int_to_ptr.vmem [resolvable:$true] %s44_s30 }
   0x9   :  { %47 = dma.hbm_to_vmem [thread:$0]  %s43_s2, 64, %s45_s30, [#allocation5]  }
   0xa   :  { %703 = dma.done.wait [#allocation3], 2304  }
   0xb   :  { %704 = vsyncadd [#allocation3], 4294964992 }
   0xc   :  { %705 = dma.done.wait [#allocation5], 128  }
   0xd   :  { %706 = vsyncadd [#allocation5], 4294967168  ;;  %v80_v0 = vld [vmem:[#allocation2 + $0x80] sm:$0xff]  ;;  %v81_v1 = vld [vmem:[#allocation2 + $0x88] sm:$0xff]  ;;  %vm187_vm0 = vcmask 1043456   ;;  %vm180_vm1 = vcmask 588800  }
   0xe   :  { %v140_v2 = vunpack.c.l.b16 %v80_v0  ;;  %v141_v3 = vunpack.c.h.b16 %v80_v0  ;;  %v142_v4 = vunpack.c.l.b16 %v81_v1  ;;  %v143_v5 = vunpack.c.h.b16 %v81_v1  ;;  %v579_v6 = vld [vmem:[#allocation2 + $0x60] sm:$0xf]  ;;  %v616_v7 = vld [vmem:[#allocation2 + $0x6c] sm:$0xf0]  ;;  %v614_v12 = vld [vmem:[#allocation2 + $0x64] sm:$0xf] }
   0xf   :  { %v581_v13 = vld [vmem:[#allocation2 + $0x70] sm:$0xf0]  ;;  %v587_v14 = vld [vmem:[#allocation2 + $0x68] sm:$0xf]  ;;  %v617_v15 = vld [vmem:[#allocation2 + $0x74] sm:$0xf0]  ;;  %v580_v22 = vor.u32 %v616_v7, %v579_v6 }
  0x10   :  { %v160_v8 = vpack.c.b16 %v140_v2, %v140_v2  ;;  %v161_v9 = vpack.c.b16 %v141_v3, %v141_v3  ;;  %v162_v10 = vpack.c.b16 %v142_v4, %v142_v4  ;;  %v163_v11 = vpack.c.b16 %v143_v5, %v143_v5  ;;  %v615_v16 = vld [vmem:[#allocation2 + $0x6c] sm:$0xf]  ;;  %v589_v17 = vld [vmem:[#allocation2 + $0x78] sm:$0xf0]  ;;  %v563_v24 = vld [vmem:[#allocation2 + $0x40] sm:$0xf] }
  0x11   :  { %v584_v23 = vor.u32 %v614_v12, %v581_v13  ;;  %v612_v25 = vld [vmem:[#allocation2 + $0x4c] sm:$0xf0]  ;;  %v588_v26 = vor.u32 %v617_v15, %v587_v14  ;;  %v592_v27 = vor.u32 %v615_v16, %v589_v17  ;;  %v610_v28 = vld [vmem:[#allocation2 + $0x44] sm:$0xf]  ;;  %v565_v29 = vld [vmem:[#allocation2 + $0x50] sm:$0xf0] }
  0x12   :  { %v189_v18 = vsel %vm187_vm0, %v160_v8, 0  ;;  %v192_v19 = vsel %vm187_vm0, %v161_v9, 0  ;;  %v195_v20 = vsel %vm187_vm0, %v162_v10, 0  ;;  %v198_v21 = vsel %vm187_vm0, %v163_v11, 0  ;;  %v571_v30 = vld [vmem:[#allocation2 + $0x48] sm:$0xf] }
  0x13   :  { %203 = vmatpush.bf16.msra.mxu0 %v189_v18  ;;  %221 = vmatpush.bf16.msra.mxu1 %v192_v19  ;;  %v613_v31 = vld [vmem:[#allocation2 + $0x54] sm:$0xf0]  ;;  %v611_v32 = vld [vmem:[#allocation2 + $0x4c] sm:$0xf]  ;;  %v573_v33 = vld [vmem:[#allocation2 + $0x58] sm:$0xf0]  ;;  %v564_v34 = vor.u32 %v612_v25, %v563_v24  ;;  %v568_v35 = vor.u32 %v610_v28, %v565_v29 }
  0x14   :  { %239 = vmatpush.bf16.msra.mxu2 %v195_v20  ;;  %257 = vmatpush.bf16.msra.mxu3 %v198_v21  ;;  %v547_v36 = vld [vmem:[#allocation2 + $0x20] sm:$0xf]  ;;  %v608_v37 = vld [vmem:[#allocation2 + $0x2c] sm:$0xf0]  ;;  %v572_v38 = vor.u32 %v613_v31, %v571_v30  ;;  %v576_v39 = vor.u32 %v611_v32, %v573_v33  ;;  %v606_v40 = vld [vmem:[#allocation2 + $0x24] sm:$0xf] }
  0x15   :  { %v549_v41 = vld [vmem:[#allocation2 + $0x30] sm:$0xf0]  ;;  %v555_v42 = vld [vmem:[#allocation2 + $0x28] sm:$0xf]  ;;  %v609_v43 = vld [vmem:[#allocation2 + $0x34] sm:$0xf0]  ;;  %v548_v46 = vor.u32 %v608_v37, %v547_v36 }
  0x16   :  { %v607_v44 = vld [vmem:[#allocation2 + $0x2c] sm:$0xf]  ;;  %v557_v45 = vld [vmem:[#allocation2 + $0x38] sm:$0xf0]  ;;  %v552_v47 = vor.u32 %v606_v40, %v549_v41  ;;  %v531_v48 = vld [vmem:[#allocation2] sm:$0xf]  ;;  %v556_v50 = vor.u32 %v609_v43, %v555_v42 }
  0x17   :  { %204 = vmatpush.bf16.msra.mxu0 %v580_v22  ;;  %222 = vmatpush.bf16.msra.mxu1 %v584_v23  ;;  %v604_v49 = vld [vmem:[#allocation2 + $0xc] sm:$0xf0]  ;;  %v560_v51 = vor.u32 %v607_v44, %v557_v45  ;;  %v602_v52 = vld [vmem:[#allocation2 + $0x4] sm:$0xf]  ;;  %v533_v53 = vld [vmem:[#allocation2 + $0x10] sm:$0xf0] }
  0x18   :  { %240 = vmatpush.bf16.msra.mxu2 %v588_v26  ;;  %258 = vmatpush.bf16.msra.mxu3 %v592_v27  ;;  %v539_v54 = vld [vmem:[#allocation2 + $0x8] sm:$0xf]  ;;  %v605_v55 = vld [vmem:[#allocation2 + $0x14] sm:$0xf0]  ;;  %v603_v56 = vld [vmem:[#allocation2 + $0xc] sm:$0xf]  ;;  %v532_v58 = vor.u32 %v604_v49, %v531_v48  ;;  %v536_v59 = vor.u32 %v602_v52, %v533_v53 }
  0x19   :  { %v541_v57 = vld [vmem:[#allocation2 + $0x18] sm:$0xf0]  ;;  %v540_v60 = vor.u32 %v605_v55, %v539_v54  ;;  %v601_v62 = vld [vmem:[%s880_s0] sm:$0xff]  ;;  %v63_v63 = vld [vmem:[%s880_s0 + $0x8] sm:$0x1]  ;;  %vm273_vm2 = vcmask 1041408  }
  0x1a   :  { %v544_v61 = vor.u32 %v603_v56, %v541_v57  ;;  %v87_v0 = vunpack.c.l.b16 %v63_v63  ;;  %vm429_vm13 = vcmask 1040384   ;;  %vm431_vm15 = vcmask 1042434  }
  0x1b   :  { %205 = vmatpush.bf16.msra.mxu0 %v564_v34  ;;  %223 = vmatpush.bf16.msra.mxu1 %v568_v35 }
  0x1c   :  { %241 = vmatpush.bf16.msra.mxu2 %v572_v38  ;;  %259 = vmatpush.bf16.msra.mxu3 %v576_v39  ;;  %v89_v1 = vpack.c.b16 %v87_v0, %v87_v0 }
  0x1f   :  { %206 = vmatpush.bf16.msra.mxu0 %v548_v46  ;;  %224 = vmatpush.bf16.msra.mxu1 %v552_v47 }
  0x20   :  { %242 = vmatpush.bf16.msra.mxu2 %v556_v50  ;;  %260 = vmatpush.bf16.msra.mxu3 %v560_v51 }
  0x23   :  { %207 = vmatpush.bf16.msra.mxu0 %v532_v58  ;;  %225 = vmatpush.bf16.msra.mxu1 %v536_v59 }
  0x24   :  { %243 = vmatpush.bf16.msra.mxu2 %v540_v60  ;;  %261 = vmatpush.bf16.msra.mxu3 %v544_v61 }
  0x26   :  { %593 = vmatmul.msk.bf16.vlgmr.msra.gmra.mxu0 %vm180_vm1, %v601_v62  ;;  %595 = vmatmul.msk.bf16.vlgmr.msra.gmra.mxu1 %vm180_vm1, %v601_v62 }
  0x27   :  { %597 = vmatmul.msk.bf16.vlgmr.msra.gmra.mxu2 %vm180_vm1, %v601_v62  ;;  %599 = vmatmul.msk.bf16.vlgmr.msra.gmra.mxu3 %vm180_vm1, %v601_v62 }
  0x36   :  { %594 = vmatmul.msk.bf16.gmra.mxu0 %vm180_vm1, %v89_v1  ;;  %596 = vmatmul.msk.bf16.gmra.mxu1 %vm180_vm1, %v89_v1 }
  0x37   :  { %598 = vmatmul.msk.bf16.gmra.mxu2 %vm180_vm1, %v89_v1  ;;  %600 = vmatmul.msk.bf16.gmra.mxu3 %vm180_vm1, %v89_v1 }
  0xa3   :  { %v756_v2 = vpop.f32.mrf.mxu0  ;;  %v758_v3 = vpop.f32.mrf.mxu1 }
  0xa4   :  { %v309_v8 = vmul.f32 %v756_v2, %v756_v2  ;;  %v310_v13 = vmul.f32 %v758_v3, %v758_v3 }
  0xaa   :  { %v760_v4 = vpop.f32.mrf.mxu2  ;;  %v762_v5 = vpop.f32.mrf.mxu3 }
  0xab   :  { %v764_v6 = vpop.f32.mrf.mxu0  ;;  %v766_v7 = vpop.f32.mrf.mxu1  ;;  %v311_v34 = vmul.f32 %v760_v4, %v760_v4  ;;  %v312_v35 = vmul.f32 %v762_v5, %v762_v5 }
  0xac   :  { %v313_v9 = vmul.f32 %v764_v6, %v764_v6  ;;  %v314_v10 = vmul.f32 %v766_v7, %v766_v7  ;;  %v272_v14 = vadd.f32 %v764_v6, %v756_v2  ;;  %v282_v15 = vadd.f32 %v766_v7, %v758_v3 }
  0xae   :  { %v321_v22 = vadd.f32 %v313_v9, %v309_v8  ;;  %v330_v23 = vadd.f32 %v314_v10, %v310_v13 }
  0xb2   :  { %v774_v11 = vpop.f32.mrf.mxu2  ;;  %v776_v12 = vpop.f32.mrf.mxu3 }
  0xb3   :  { %v784_v16 = vpop.f32.mrf.mxu0  ;;  %v786_v17 = vpop.f32.mrf.mxu1  ;;  %v315_v26 = vmul.f32 %v774_v11, %v774_v11  ;;  %v316_v27 = vmul.f32 %v776_v12, %v776_v12  ;;  %v291_v40 = vadd.f32 %v774_v11, %v760_v4  ;;  %v300_v42 = vadd.f32 %v776_v12, %v762_v5 }
  0xb4   :  { %v274_v18 = vsel %vm273_vm2, %v784_v16, 0.0  ;;  %v317_v19 = vmul.f32 %v784_v16, %v784_v16  ;;  %v283_v20 = vsel %vm273_vm2, %v786_v17, 0.0  ;;  %v318_v21 = vmul.f32 %v786_v17, %v786_v17 }
  0xb5   :  { %v275_v24 = vadd.f32 %v274_v18, %v272_v14  ;;  %v284_v25 = vadd.f32 %v283_v20, %v282_v15  ;;  %v339_v41 = vadd.f32 %v315_v26, %v311_v34  ;;  %v348_v43 = vadd.f32 %v316_v27, %v312_v35 }
  0xb6   :  { %v322_v28 = vsel %vm273_vm2, %v317_v19, 0.0  ;;  %v331_v29 = vsel %vm273_vm2, %v318_v21, 0.0 }
  0xb7   :  { %v276_v30 = vrot.slane %v275_v24, 4  ;;  %v323_v31 = vadd.f32 %v322_v28, %v321_v22  ;;  %v285_v32 = vrot.slane %v284_v25, 4  ;;  %v332_v33 = vadd.f32 %v331_v29, %v330_v23 }
  0xb9   :  { %v277_v36 = vadd.f32 %v276_v30, %v275_v24  ;;  %v324_v37 = vrot.slane %v323_v31, 4  ;;  %v286_v38 = vadd.f32 %v285_v32, %v284_v25  ;;  %v333_v39 = vrot.slane %v332_v33, 4 }
  0xba   :  { %v810_v44 = vpop.f32.mrf.mxu2  ;;  %v812_v45 = vpop.f32.mrf.mxu3 }
  0xbb   :  { %v278_v46 = vrot.slane %v277_v36, 2  ;;  %v325_v47 = vadd.f32 %v324_v37, %v323_v31  ;;  %v287_v48 = vrot.slane %v286_v38, 2  ;;  %v334_v49 = vadd.f32 %v333_v39, %v332_v33  ;;  %v216_v50 = vpop.f32.mrf.mxu0  ;;  %v234_v51 = vpop.f32.mrf.mxu1 }
  0xbc   :  { %v292_v52 = vsel %vm273_vm2, %v810_v44, 0.0  ;;  %v319_v53 = vmul.f32 %v810_v44, %v810_v44  ;;  %v301_v54 = vsel %vm273_vm2, %v812_v45, 0.0  ;;  %v320_v55 = vmul.f32 %v812_v45, %v812_v45 }
  0xbd   :  { %v279_v56 = vadd.f32 %v278_v46, %v277_v36  ;;  %v326_v57 = vrot.slane %v325_v47, 2  ;;  %v288_v58 = vadd.f32 %v287_v48, %v286_v38  ;;  %v335_v59 = vrot.slane %v334_v49, 2 }
  0xbe   :  { %v293_v60 = vadd.f32 %v292_v52, %v291_v40  ;;  %v340_v61 = vsel %vm273_vm2, %v319_v53, 0.0  ;;  %v302_v62 = vadd.f32 %v301_v54, %v300_v42  ;;  %v349_v63 = vsel %vm273_vm2, %v320_v55, 0.0 }
  0xbf   :  { %v280_v0 = vrot.slane %v279_v56, 1  ;;  %v327_v1 = vadd.f32 %v326_v57, %v325_v47  ;;  %v289_v8 = vrot.slane %v288_v58, 1  ;;  %v336_v9 = vadd.f32 %v335_v59, %v334_v49 }
  0xc0   :  { %v294_v10 = vrot.slane %v293_v60, 4  ;;  %v341_v13 = vadd.f32 %v340_v61, %v339_v41  ;;  %v303_v14 = vrot.slane %v302_v62, 4  ;;  %v350_v15 = vadd.f32 %v349_v63, %v348_v43 }
  0xc1   :  { %v281_v18 = vadd.f32 %v280_v0, %v279_v56  ;;  %v328_v19 = vrot.slane %v327_v1, 1  ;;  %v290_v20 = vadd.f32 %v289_v8, %v288_v58  ;;  %v337_v21 = vrot.slane %v336_v9, 1 }
  0xc2   :  { %v295_v22 = vadd.f32 %v294_v10, %v293_v60  ;;  %v342_v23 = vrot.slane %v341_v13, 4  ;;  %v304_v24 = vadd.f32 %v303_v14, %v302_v62  ;;  %v351_v25 = vrot.slane %v350_v15, 4  ;;  %v252_v26 = vpop.f32.mrf.mxu2  ;;  %v270_v27 = vpop.f32.mrf.mxu3 }
  0xc3   :  { %v329_v28 = vadd.f32 %v328_v19, %v327_v1  ;;  %v824_v29 = vmul.f32 0.055555556, %v281_v18  ;;  %v338_v30 = vadd.f32 %v337_v21, %v336_v9  ;;  %v826_v31 = vmul.f32 0.055555556, %v290_v20 }
  0xc4   :  { %v296_v32 = vrot.slane %v295_v22, 2  ;;  %v343_v33 = vadd.f32 %v342_v23, %v341_v13  ;;  %v305_v34 = vrot.slane %v304_v24, 2  ;;  %v352_v35 = vadd.f32 %v351_v25, %v350_v15 }
  0xc5   :  { %v361_v36 = vmul.f32 0.055555556, %v329_v28  ;;  %v365_v37 = vmul.f32 %v824_v29, %v824_v29  ;;  %v362_v38 = vmul.f32 0.055555556, %v338_v30  ;;  %v366_v39 = vmul.f32 %v826_v31, %v826_v31 }
  0xc6   :  { %v297_v40 = vadd.f32 %v296_v32, %v295_v22  ;;  %v344_v41 = vrot.slane %v343_v33, 2  ;;  %v306_v42 = vadd.f32 %v305_v34, %v304_v24  ;;  %v353_v43 = vrot.slane %v352_v35, 2 }
  0xc7   :  { %v369_v46 = vsub.f32 %v361_v36, %v365_v37  ;;  %v370_v47 = vsub.f32 %v362_v38, %v366_v39 }
  0xc8   :  { %v298_v48 = vrot.slane %v297_v40, 1  ;;  %v345_v49 = vadd.f32 %v344_v41, %v343_v33  ;;  %v307_v50 = vrot.slane %v306_v42, 1  ;;  %v354_v51 = vadd.f32 %v353_v43, %v352_v35 }
  0xc9   :  { %v373_v52 = vmax.f32 %v369_v46, 0.0  ;;  %v374_v53 = vmax.f32 %v370_v47, 0.0 }
  0xca   :  { %v299_v54 = vadd.f32 %v298_v48, %v297_v40  ;;  %v346_v55 = vrot.slane %v345_v49, 1  ;;  %v308_v56 = vadd.f32 %v307_v50, %v306_v42  ;;  %v355_v57 = vrot.slane %v354_v51, 1 }
  0xcb   :  { %v378_v58 = vadd.f32 1e-05, %v373_v52  ;;  %v379_v59 = vadd.f32 1e-05, %v374_v53 }
  0xcc   :  { %v347_v60 = vadd.f32 %v346_v55, %v345_v49  ;;  %v832_v61 = vmul.f32 0.055555556, %v299_v54  ;;  %v356_v62 = vadd.f32 %v355_v57, %v354_v51  ;;  %v834_v63 = vmul.f32 0.055555556, %v308_v56  ;;  %v377_v55 = vld [vmem:[#allocation4] sm:$0xf] }
  0xcd   :  { %623 = vrsqrt.f32 %v378_v58  ;;  %vm398_vm4 = vweird.f32 %v379_v59  ;;  %vm388_vm14 = vweird.f32 %v378_v58 }
  0xce   :  { %625 = vrsqrt.f32 %v379_v59  ;;  %v363_v0 = vmul.f32 0.055555556, %v347_v60  ;;  %v367_v1 = vmul.f32 %v832_v61, %v832_v61  ;;  %v364_v8 = vmul.f32 0.055555556, %v356_v62 }
  0xcf   :  { %v368_v9 = vmul.f32 %v834_v63, %v834_v63 }
  0xd0   :  { %v371_v10 = vsub.f32 %v363_v0, %v367_v1 }
  0xd1   :  { %v372_v13 = vsub.f32 %v364_v8, %v368_v9 }
  0xd2   :  { %v375_v14 = vmax.f32 %v371_v10, 0.0 }
  0xd3   :  { %v624_v15 = vpop.eup %623  ;;  %v376_v18 = vmax.f32 %v372_v13, 0.0 }
  0xd4   :  { %v626_v19 = vpop.eup %625  ;;  %v380_v20 = vadd.f32 1e-05, %v375_v14  ;;  %v383_v23 = vmul.f32 %v624_v15, %v378_v58  ;;  %vm389_vm9 = vweird.f32 %v624_v15 }
  0xd5   :  { %v393_v21 = vmul.f32 %v626_v19, %v379_v59  ;;  %v381_v22 = vadd.f32 1e-05, %v376_v18  ;;  %vm399_vm3 = vweird.f32 %v626_v19  ;;  %vm390_vm0 = vmor %vm388_vm14, %vm389_vm9 }
  0xd6   :  { %627 = vrsqrt.f32 %v380_v20  ;;  %v384_v26 = vmul.f32 %v624_v15, %v383_v23  ;;  %vm400_vm5 = vmor %vm398_vm4, %vm399_vm3  ;;  %vm408_vm8 = vweird.f32 %v380_v20 }
  0xd7   :  { %v394_v24 = vmul.f32 %v626_v19, %v393_v21  ;;  %629 = vrsqrt.f32 %v381_v22  ;;  %vm418_vm11 = vweird.f32 %v381_v22 }
  0xd8   :  { %v385_v33 = vmul.f32 0.5, %v384_v26 }
  0xd9   :  { %v395_v25 = vmul.f32 0.5, %v394_v24 }
  0xda   :  { %v386_v39 = vsub.f32 1.5, %v385_v33 }
  0xdb   :  { %v396_v28 = vsub.f32 1.5, %v395_v25 }
  0xdc   :  { %v628_v27 = vpop.eup %627  ;;  %v387_v47 = vmul.f32 %v624_v15, %v386_v39 }
  0xdd   :  { %v630_v30 = vpop.eup %629  ;;  %v403_v32 = vmul.f32 %v628_v27, %v380_v20  ;;  %v397_v36 = vmul.f32 %v626_v19, %v396_v28  ;;  %vm409_vm6 = vweird.f32 %v628_v27 }
  0xde   :  { %v413_v34 = vmul.f32 %v630_v30, %v381_v22  ;;  %vm419_vm7 = vweird.f32 %v630_v30  ;;  %vm410_vm10 = vmor %vm408_vm8, %vm409_vm6  ;;  %v391_v54 = vsel %vm390_vm0, %v624_v15, %v387_v47 }
  0xdf   :  { %v404_v35 = vmul.f32 %v628_v27, %v403_v32  ;;  %v401_v42 = vsel %vm400_vm5, %v626_v19, %v397_v36  ;;  %vm420_vm12 = vmor %vm418_vm11, %vm419_vm7  ;;  %v436_v19 = vld [vmem:[#allocation6] sm:$0xf] }
  0xe0   :  { %v414_v37 = vmul.f32 %v630_v30, %v413_v34  ;;  %v426_v49 = vrot.slane %v401_v42, 7 }
  0xe1   :  { %v405_v38 = vmul.f32 0.5, %v404_v35 }
  0xe2   :  { %v415_v40 = vmul.f32 0.5, %v414_v37  ;;  %v430_v56 = vsel %vm429_vm13, %v391_v54, %v426_v49 }
  0xe3   :  { %v406_v41 = vsub.f32 1.5, %v405_v38 }
  0xe4   :  { %v416_v43 = vsub.f32 1.5, %v415_v40 }
  0xe5   :  { %v407_v46 = vmul.f32 %v628_v27, %v406_v41 }
  0xe6   :  { %v417_v48 = vmul.f32 %v630_v30, %v416_v43 }
  0xe7   :  { %v411_v50 = vsel %vm410_vm10, %v628_v27, %v407_v46 }
  0xe8   :  { %v427_v51 = vrot.slane %v411_v50, 6  ;;  %v421_v52 = vsel %vm420_vm12, %v630_v30, %v417_v48 }
  0xe9   :  { %v428_v53 = vrot.slane %v421_v52, 5 }
  0xeb   :  { %v432_v57 = vsel %vm431_vm15, %v427_v51, %v428_v53 }
  0xec   :  { %v433_v59 = vsel %vm273_vm2, %v430_v56, %v432_v57 }
  0xed   :  { %v435_v60 = vmul.f32 %v433_v59, %v377_v55 }
  0xef   :  { %v438_v62 = vperm.slane %v435_v60, 0  ;;  %v439_v0 = vperm.slane %v435_v60, 1  ;;  %v440_v1 = vperm.slane %v435_v60, 2  ;;  %v441_v8 = vperm.slane %v435_v60, 3 }
  0xf1   :  { %v447_v58 = vmul.f32 %v439_v0, %v826_v31  ;;  %v448_v9 = vmul.f32 %v440_v1, %v832_v61  ;;  %v449_v10 = vmul.f32 %v441_v8, %v834_v63  ;;  %v446_v13 = vmul.f32 %v438_v62, %v824_v29 }
  0xf2   :  { %v462_v23 = vmul.f32 %v438_v62, %v756_v2  ;;  %v463_v31 = vmul.f32 %v439_v0, %v758_v3  ;;  %v464_v61 = vmul.f32 %v440_v1, %v760_v4  ;;  %v465_v63 = vmul.f32 %v441_v8, %v762_v5 }
  0xf3   :  { %v454_v14 = vrot.slane %v447_v58, 7  ;;  %v455_v15 = vrot.slane %v448_v9, 6  ;;  %v456_v18 = vrot.slane %v449_v10, 5  ;;  %v466_v29 = vmul.f32 %v438_v62, %v764_v6 }
  0xf4   :  { %v467_v25 = vmul.f32 %v439_v0, %v766_v7  ;;  %v468_v26 = vmul.f32 %v440_v1, %v774_v11  ;;  %v469_v27 = vmul.f32 %v441_v8, %v776_v12  ;;  %v470_v2 = vmul.f32 %v438_v62, %v784_v16 }
  0xf5   :  { %v457_v20 = vsel %vm429_vm13, %v446_v13, %v454_v14  ;;  %v458_v21 = vsel %vm431_vm15, %v455_v15, %v456_v18  ;;  %v471_v3 = vmul.f32 %v439_v0, %v786_v17  ;;  %v472_v4 = vmul.f32 %v440_v1, %v810_v44 }
  0xf6   :  { %v459_v22 = vsel %vm273_vm2, %v457_v20, %v458_v21  ;;  %v473_v5 = vmul.f32 %v441_v8, %v812_v45 }
  0xf7   :  { %v461_v24 = vsub.f32 %v436_v19, %v459_v22 }
  0xf9   :  { %v475_v28 = vperm.slane %v461_v24, 0  ;;  %v476_v30 = vperm.slane %v461_v24, 1  ;;  %v477_v32 = vperm.slane %v461_v24, 2  ;;  %v478_v33 = vperm.slane %v461_v24, 3 }
  0xfb   :  { %v483_v34 = vadd.f32 %v475_v28, %v462_v23  ;;  %v484_v6 = vadd.f32 %v476_v30, %v463_v31  ;;  %v485_v35 = vadd.f32 %v477_v32, %v464_v61  ;;  %v486_v7 = vadd.f32 %v478_v33, %v465_v63 }
  0xfc   :  { %v487_v36 = vadd.f32 %v475_v28, %v466_v29  ;;  %v488_v11 = vadd.f32 %v476_v30, %v467_v25  ;;  %v489_v37 = vadd.f32 %v477_v32, %v468_v26  ;;  %v490_v12 = vadd.f32 %v478_v33, %v469_v27 }
  0xfd   :  { %v491_v38 = vadd.f32 %v475_v28, %v470_v2  ;;  %v492_v39 = vadd.f32 %v476_v30, %v471_v3  ;;  %v493_v40 = vadd.f32 %v477_v32, %v472_v4  ;;  %v494_v41 = vadd.f32 %v478_v33, %v473_v5 }
  0xfe   :  { %v495_v42 = vmax.f32 %v483_v34, 0.0  ;;  %v496_v16 = vmax.f32 %v484_v6, 0.0  ;;  %v497_v43 = vmax.f32 %v485_v35, 0.0  ;;  %v498_v17 = vmax.f32 %v486_v7, 0.0 }
  0xff   :  { %v499_v46 = vmax.f32 %v487_v36, 0.0  ;;  %v500_v44 = vmax.f32 %v488_v11, 0.0  ;;  %v501_v47 = vmax.f32 %v489_v37, 0.0  ;;  %v502_v45 = vmax.f32 %v490_v12, 0.0 }
 0x100   :  { %v503_v48 = vmax.f32 %v491_v38, 0.0  ;;  %v504_v49 = vmax.f32 %v492_v39, 0.0  ;;  %v505_v50 = vmax.f32 %v493_v40, 0.0  ;;  %v506_v51 = vmax.f32 %v494_v41, 0.0 }
 0x101   :  { %v507_v52 = vpack.c.bf16 %v496_v16, %v495_v42  ;;  %v508_v53 = vpack.c.bf16 %v498_v17, %v497_v43  ;;  %v509_v54 = vpack.c.bf16 %v500_v44, %v499_v46  ;;  %v510_v55 = vpack.c.bf16 %v502_v45, %v501_v47 }
 0x102   :  { %v512_v56 = vpack.c.bf16 %v506_v51, %v505_v50  ;;  %v511_v57 = vpack.c.bf16 %v504_v49, %v503_v48 }
 0x103   :  { %513 = vst [vmem:[%s884_s4] sm:$0xff] %v507_v52 }
 0x104   :  { %514 = vst [vmem:[%s884_s4 + $0x8] sm:$0xff] %v508_v53 }
 0x105   :  { %515 = vst [vmem:[%s884_s4 + $0x10] sm:$0xff] %v509_v54 }
 0x106   :  { %516 = vst [vmem:[%s884_s4 + $0x18] sm:$0xff] %v510_v55 }
 0x107   :  { %517 = vst [vmem:[%s884_s4 + $0x20] sm:$0x11] %v511_v57 }
 0x108   :  { %518 = vst [vmem:[%s884_s4 + $0x28] sm:$0x11] %v512_v56 }
 0x109   :  { %523 = vsyncpa [#allocation3], 1 }
 0x10a   :  { %524 = vsyncpa [#allocation5], 1 }

// kernel: infogen_forward.5
= control target key start
LH: loop header
LB: loop body
LE: loop exit
PB: predicated region body
PF: predicated region fallthrough
CT: control target
= control target key end

     0   :  { %vm5320_vm0 = vcmask 1041408   ;;  %s10664_s1 = inlined_call_operand.vmem [shape: bf16[4608,128], index: 1, kind: input, shape index: {}]   ;;  %s10665_s0 = inlined_call_operand.vmem [shape: bf16[98,4608], index: 0, kind: input, shape index: {}]   ;;  %s10666_s2 = inlined_call_operand.vmem [shape: f32[1,128], index: 2, kind: input, shape index: {}]   ;;  %s10667_s3 = inlined_call_operand.vmem [shape: f32[1,128], index: 3, kind: input, shape index: {}]   ;;  %s10668_s4 = inlined_call_operand.vmem [shape: bf16[98,128], index: 4, kind: output, shape index: {}]  }
   0x1   :  { %v7696_v0 = vld [vmem:[%s10664_s1 + $0x38] sm:$0xff]  ;;  %v7695_v4 = vld [vmem:[%s10664_s1 + $0x30] sm:$0xff]  ;;  %v7694_v8 = vld [vmem:[%s10664_s1 + $0x28] sm:$0xff] }
   0x2   :  { %v7704_v1 = vld [vmem:[%s10664_s1 + $0x78] sm:$0xff]  ;;  %3761 = vmatpush.bf16.msra.mxu0 %v7696_v0  ;;  %v7703_v5 = vld [vmem:[%s10664_s1 + $0x70] sm:$0xff]  ;;  %v7702_v9 = vld [vmem:[%s10664_s1 + $0x68] sm:$0xff] }
   0x3   :  { %v7712_v2 = vld [vmem:[%s10664_s1 + $0xb8] sm:$0xff]  ;;  %3804 = vmatpush.bf16.msra.mxu1 %v7704_v1  ;;  %v7711_v6 = vld [vmem:[%s10664_s1 + $0xb0] sm:$0xff]  ;;  %v7710_v10 = vld [vmem:[%s10664_s1 + $0xa8] sm:$0xff] }
   0x4   :  { %v7720_v3 = vld [vmem:[%s10664_s1 + $0xf8] sm:$0xff]  ;;  %3847 = vmatpush.bf16.msra.mxu2 %v7712_v2  ;;  %v7719_v7 = vld [vmem:[%s10664_s1 + $0xf0] sm:$0xff]  ;;  %v7718_v11 = vld [vmem:[%s10664_s1 + $0xe8] sm:$0xff] }
   0x5   :  { %3890 = vmatpush.bf16.msra.mxu3 %v7720_v3  ;;  %v7693_v12 = vld [vmem:[%s10664_s1 + $0x20] sm:$0xff]  ;;  %v7692_v16 = vld [vmem:[%s10664_s1 + $0x18] sm:$0xff]  ;;  %v7691_v20 = vld [vmem:[%s10664_s1 + $0x10] sm:$0xff] }
   0x6   :  { %3762 = vmatpush.bf16.msra.mxu0 %v7695_v4  ;;  %v7701_v13 = vld [vmem:[%s10664_s1 + $0x60] sm:$0xff]  ;;  %v7700_v17 = vld [vmem:[%s10664_s1 + $0x58] sm:$0xff]  ;;  %v7699_v21 = vld [vmem:[%s10664_s1 + $0x50] sm:$0xff] }
   0x7   :  { %3805 = vmatpush.bf16.msra.mxu1 %v7703_v5  ;;  %v7709_v14 = vld [vmem:[%s10664_s1 + $0xa0] sm:$0xff]  ;;  %v7708_v18 = vld [vmem:[%s10664_s1 + $0x98] sm:$0xff]  ;;  %v7707_v22 = vld [vmem:[%s10664_s1 + $0x90] sm:$0xff] }
   0x8   :  { %3848 = vmatpush.bf16.msra.mxu2 %v7711_v6  ;;  %v7717_v15 = vld [vmem:[%s10664_s1 + $0xe0] sm:$0xff]  ;;  %v7716_v19 = vld [vmem:[%s10664_s1 + $0xd8] sm:$0xff]  ;;  %v7715_v23 = vld [vmem:[%s10664_s1 + $0xd0] sm:$0xff] }
   0x9   :  { %3891 = vmatpush.bf16.msra.mxu3 %v7719_v7  ;;  %v7690_v24 = vld [vmem:[%s10664_s1 + $0x8] sm:$0xff]  ;;  %v7689_v28 = vld [vmem:[%s10664_s1] sm:$0xff]  ;;  %v7491_v33 = vld [vmem:[%s10665_s0 + $0x8c] sm:$0xf0] }
   0xa   :  { %3763 = vmatpush.bf16.msra.mxu0 %v7694_v8  ;;  %v7698_v25 = vld [vmem:[%s10664_s1 + $0x48] sm:$0xff]  ;;  %v7697_v29 = vld [vmem:[%s10664_s1 + $0x40] sm:$0xff]  ;;  %v5461_v35 = vld [vmem:[%s10665_s0 + $0x90] sm:$0xf0] }
   0xb   :  { %3806 = vmatpush.bf16.msra.mxu1 %v7702_v9  ;;  %v7706_v26 = vld [vmem:[%s10664_s1 + $0x88] sm:$0xff]  ;;  %v7705_v30 = vld [vmem:[%s10664_s1 + $0x80] sm:$0xff]  ;;  %v7492_v37 = vld [vmem:[%s10665_s0 + $0x94] sm:$0xf0] }
   0xc   :  { %3849 = vmatpush.bf16.msra.mxu2 %v7710_v10  ;;  %v7714_v27 = vld [vmem:[%s10664_s1 + $0xc8] sm:$0xff]  ;;  %v7713_v31 = vld [vmem:[%s10664_s1 + $0xc0] sm:$0xff]  ;;  %v5469_v39 = vld [vmem:[%s10665_s0 + $0x98] sm:$0xf0] }
   0xd   :  { %3892 = vmatpush.bf16.msra.mxu3 %v7718_v11  ;;  %v5459_v32 = vld [vmem:[%s10665_s0] sm:$0xf]  ;;  %v7473_v34 = vld [vmem:[%s10665_s0 + $0x4] sm:$0xf]  ;;  %v5467_v36 = vld [vmem:[%s10665_s0 + $0x8] sm:$0xf] }
   0xe   :  { %3764 = vmatpush.bf16.msra.mxu0 %v7693_v12  ;;  %v7474_v38 = vld [vmem:[%s10665_s0 + $0xc] sm:$0xf]  ;;  %v7744_v40 = vld [vmem:[%s10664_s1 + $0x1b8] sm:$0xff]  ;;  %v5460_v42 = vor.u32 %v7491_v33, %v5459_v32  ;;  %v5464_v43 = vor.u32 %v7473_v34, %v5461_v35  ;;  %v5468_v44 = vor.u32 %v7492_v37, %v5467_v36  ;;  %v7743_v48 = vld [vmem:[%s10664_s1 + $0x1b0] sm:$0xff] }
   0xf   :  { %3807 = vmatpush.bf16.msra.mxu1 %v7701_v13  ;;  %v7728_v41 = vld [vmem:[%s10664_s1 + $0x138] sm:$0xff]  ;;  %v5472_v45 = vor.u32 %v7474_v38, %v5469_v39  ;;  %v7727_v49 = vld [vmem:[%s10664_s1 + $0x130] sm:$0xff]  ;;  %v7742_v52 = vld [vmem:[%s10664_s1 + $0x1a8] sm:$0xff] }
  0x10   :  { %3850 = vmatpush.bf16.msra.mxu2 %v7709_v14  ;;  %v7752_v46 = vld [vmem:[%s10664_s1 + $0x1f8] sm:$0xff]  ;;  %v7751_v50 = vld [vmem:[%s10664_s1 + $0x1f0] sm:$0xff]  ;;  %v7726_v53 = vld [vmem:[%s10664_s1 + $0x128] sm:$0xff] }
  0x11   :  { %3893 = vmatpush.bf16.msra.mxu3 %v7717_v15  ;;  %v7736_v47 = vld [vmem:[%s10664_s1 + $0x178] sm:$0xff]  ;;  %v7735_v51 = vld [vmem:[%s10664_s1 + $0x170] sm:$0xff]  ;;  %v7750_v54 = vld [vmem:[%s10664_s1 + $0x1e8] sm:$0xff] }
  0x12   :  { %3765 = vmatpush.bf16.msra.mxu0 %v7692_v16  ;;  %v7734_v55 = vld [vmem:[%s10664_s1 + $0x168] sm:$0xff]  ;;  %v5603_v56 = vld [vmem:[%s10665_s0 + $0x120] sm:$0xf]  ;;  %v7527_v59 = vld [vmem:[%s10665_s0 + $0x1ac] sm:$0xf0] }
  0x13   :  { %3808 = vmatpush.bf16.msra.mxu1 %v7700_v17  ;;  %v7741_v57 = vld [vmem:[%s10664_s1 + $0x1a0] sm:$0xff]  ;;  %v5605_v61 = vld [vmem:[%s10665_s0 + $0x1b0] sm:$0xf0]  ;;  %v5611_v62 = vld [vmem:[%s10665_s0 + $0x128] sm:$0xf]  ;;  %v5604_v4 = vor.u32 %v7527_v59, %v5603_v56 }
  0x14   :  { %3851 = vmatpush.bf16.msra.mxu2 %v7708_v18  ;;  %v7725_v58 = vld [vmem:[%s10664_s1 + $0x120] sm:$0xff]  ;;  %v7528_v63 = vld [vmem:[%s10665_s0 + $0x1b4] sm:$0xf0]  ;;  %v7510_v0 = vld [vmem:[%s10665_s0 + $0x12c] sm:$0xf] }
  0x15   :  { %3894 = vmatpush.bf16.msra.mxu3 %v7716_v19  ;;  %v7509_v60 = vld [vmem:[%s10665_s0 + $0x124] sm:$0xf]  ;;  %v5613_v1 = vld [vmem:[%s10665_s0 + $0x1b8] sm:$0xf0]  ;;  %v5612_v6 = vor.u32 %v7528_v63, %v5611_v62  ;;  %v5747_v12 = vld [vmem:[%s10665_s0 + $0x240] sm:$0xf] }
  0x16   :  { %3766 = vmatpush.bf16.msra.mxu0 %v7691_v20  ;;  %v7749_v2 = vld [vmem:[%s10664_s1 + $0x1e0] sm:$0xff]  ;;  %v5608_v5 = vor.u32 %v7509_v60, %v5605_v61  ;;  %v5616_v7 = vor.u32 %v7510_v0, %v5613_v1  ;;  %v7740_v8 = vld [vmem:[%s10664_s1 + $0x198] sm:$0xff]  ;;  %v7563_v13 = vld [vmem:[%s10665_s0 + $0x2cc] sm:$0xf0] }
  0x17   :  { %3809 = vmatpush.bf16.msra.mxu1 %v7699_v21  ;;  %v7733_v3 = vld [vmem:[%s10664_s1 + $0x160] sm:$0xff]  ;;  %v7724_v9 = vld [vmem:[%s10664_s1 + $0x118] sm:$0xff]  ;;  %v5749_v15 = vld [vmem:[%s10665_s0 + $0x2d0] sm:$0xf0]  ;;  %v5748_v20 = vor.u32 %v7563_v13, %v5747_v12 }
  0x18   :  { %3852 = vmatpush.bf16.msra.mxu2 %v7707_v22  ;;  %v7748_v10 = vld [vmem:[%s10664_s1 + $0x1d8] sm:$0xff]  ;;  %v7545_v14 = vld [vmem:[%s10665_s0 + $0x244] sm:$0xf]  ;;  %v5755_v16 = vld [vmem:[%s10665_s0 + $0x248] sm:$0xf] }
  0x19   :  { %3895 = vmatpush.bf16.msra.mxu3 %v7715_v23  ;;  %v7732_v11 = vld [vmem:[%s10664_s1 + $0x158] sm:$0xff]  ;;  %v7546_v18 = vld [vmem:[%s10665_s0 + $0x24c] sm:$0xf]  ;;  %v5752_v21 = vor.u32 %v7545_v14, %v5749_v15  ;;  %v5899_v32 = vld [vmem:[%s10665_s0 + $0x368] sm:$0xf] }
  0x1a   :  { %3767 = vmatpush.bf16.msra.mxu0 %v7690_v24  ;;  %v7564_v17 = vld [vmem:[%s10665_s0 + $0x2d4] sm:$0xf0]  ;;  %v5757_v19 = vld [vmem:[%s10665_s0 + $0x2d8] sm:$0xf0]  ;;  %v7739_v24 = vld [vmem:[%s10664_s1 + $0x190] sm:$0xff] }
  0x1b   :  { %3810 = vmatpush.bf16.msra.mxu1 %v7698_v25  ;;  %v5756_v22 = vor.u32 %v7564_v17, %v5755_v16  ;;  %v5760_v23 = vor.u32 %v7546_v18, %v5757_v19  ;;  %v7723_v25 = vld [vmem:[%s10664_s1 + $0x110] sm:$0xff]  ;;  %v7600_v33 = vld [vmem:[%s10665_s0 + $0x3f4] sm:$0xf0]  ;;  %v7582_v34 = vld [vmem:[%s10665_s0 + $0x36c] sm:$0xf] }
  0x1c   :  { %3853 = vmatpush.bf16.msra.mxu2 %v7706_v26  ;;  %v7747_v26 = vld [vmem:[%s10664_s1 + $0x1d0] sm:$0xff]  ;;  %v5901_v35 = vld [vmem:[%s10665_s0 + $0x3f8] sm:$0xf0]  ;;  %v5900_v38 = vor.u32 %v7600_v33, %v5899_v32  ;;  %v7737_v56 = vld [vmem:[%s10664_s1 + $0x180] sm:$0xff] }
  0x1d   :  { %3896 = vmatpush.bf16.msra.mxu3 %v7714_v27  ;;  %v7731_v27 = vld [vmem:[%s10664_s1 + $0x150] sm:$0xff]  ;;  %v5904_v39 = vor.u32 %v7582_v34, %v5901_v35  ;;  %v7729_v59 = vld [vmem:[%s10664_s1 + $0x140] sm:$0xff]  ;;  %v6187_v0 = vld [vmem:[%s10665_s0 + $0x5a8] sm:$0xf] }
  0x1e   :  { %3768 = vmatpush.bf16.msra.mxu0 %v7689_v28  ;;  %v5891_v28 = vld [vmem:[%s10665_s0 + $0x360] sm:$0xf]  ;;  %v7671_v61 = vld [vmem:[%s10665_s0 + $0x62c] sm:$0xf0]  ;;  %v7653_v62 = vld [vmem:[%s10665_s0 + $0x5a4] sm:$0xf] }
  0x1f   :  { %3811 = vmatpush.bf16.msra.mxu1 %v7697_v29  ;;  %v7599_v29 = vld [vmem:[%s10665_s0 + $0x3ec] sm:$0xf0]  ;;  %v6179_v60 = vld [vmem:[%s10665_s0 + $0x5a0] sm:$0xf]  ;;  %v6181_v63 = vld [vmem:[%s10665_s0 + $0x630] sm:$0xf0] }
  0x20   :  { %3854 = vmatpush.bf16.msra.mxu2 %v7705_v30  ;;  %v7581_v30 = vld [vmem:[%s10665_s0 + $0x364] sm:$0xf]  ;;  %v5892_v36 = vor.u32 %v7599_v29, %v5891_v28  ;;  %v7672_v1 = vld [vmem:[%s10665_s0 + $0x634] sm:$0xf0]  ;;  %v234_v13 = vld [vmem:[%s10665_s0 + $0x6c8] sm:$0x11] }
  0x21   :  { %3897 = vmatpush.bf16.msra.mxu3 %v7713_v31  ;;  %3769 = vmatmul.bf16.vlgmr.msra.gmra.mxu0 %v5460_v42  ;;  %v5893_v31 = vld [vmem:[%s10665_s0 + $0x3f0] sm:$0xf0]  ;;  %v7746_v42 = vld [vmem:[%s10664_s1 + $0x1c8] sm:$0xff]  ;;  %v233_v12 = vld [vmem:[%s10665_s0 + $0x6c0] sm:$0x11]  ;;  %v1495_v16 = vunpack.c.l.b16 %v234_v13  ;;  %v1496_v17 = vunpack.c.h.b16 %v234_v13 }
  0x22   :  { %3933 = vmatpush.bf16.msrb.mxu0 %v7728_v41  ;;  %3812 = vmatmul.bf16.vlgmr.msra.gmra.mxu1 %v5464_v43  ;;  %v5896_v37 = vor.u32 %v7581_v30, %v5893_v31  ;;  %v7722_v41 = vld [vmem:[%s10664_s1 + $0x108] sm:$0xff]  ;;  %v1493_v14 = vunpack.c.l.b16 %v233_v12  ;;  %v1494_v15 = vunpack.c.h.b16 %v233_v12  ;;  %v7475_v28 = vld [vmem:[%s10665_s0 + $0x14] sm:$0xf]  ;;  %v5477_v29 = vld [vmem:[%s10665_s0 + $0xa0] sm:$0xf0] }
  0x23   :  { %3855 = vmatmul.bf16.vlgmr.msra.gmra.mxu2 %v5468_v44  ;;  %3976 = vmatpush.bf16.msrb.mxu1 %v7736_v47  ;;  %v7730_v43 = vld [vmem:[%s10664_s1 + $0x148] sm:$0xff]  ;;  %v6035_v44 = vld [vmem:[%s10665_s0 + $0x480] sm:$0xf]  ;;  %v6037_v47 = vld [vmem:[%s10665_s0 + $0x510] sm:$0xf0]  ;;  %v5480_v35 = vor.u32 %v7475_v28, %v5477_v29 }
  0x24   :  { %4019 = vmatpush.bf16.msrb.mxu2 %v7744_v40  ;;  %3898 = vmatmul.bf16.vlgmr.msra.gmra.mxu3 %v5472_v45  ;;  %v7738_v40 = vld [vmem:[%s10664_s1 + $0x188] sm:$0xff]  ;;  %v7635_v45 = vld [vmem:[%s10665_s0 + $0x50c] sm:$0xf0]  ;;  %v1745_v18 = vpack.c.b16 %v1493_v14, %v1493_v14  ;;  %v1746_v19 = vpack.c.b16 %v1494_v15, %v1494_v15  ;;  %v5483_v30 = vld [vmem:[%s10665_s0 + $0x18] sm:$0xf] }
  0x25   :  { %4062 = vmatpush.bf16.msrb.mxu3 %v7752_v46  ;;  %v7617_v46 = vld [vmem:[%s10665_s0 + $0x484] sm:$0xf]  ;;  %v7494_v31 = vld [vmem:[%s10665_s0 + $0xa4] sm:$0xf0]  ;;  %v7476_v32 = vld [vmem:[%s10665_s0 + $0x1c] sm:$0xf] }
  0x26   :  { %3934 = vmatpush.bf16.msrb.mxu0 %v7727_v49  ;;  %v7636_v49 = vld [vmem:[%s10665_s0 + $0x514] sm:$0xf0]  ;;  %v5485_v33 = vld [vmem:[%s10665_s0 + $0xa8] sm:$0xf0]  ;;  %v7566_v12 = vld [vmem:[%s10665_s0 + $0x2e4] sm:$0xf0] }
  0x27   :  { %3977 = vmatpush.bf16.msrb.mxu1 %v7735_v51  ;;  %v6045_v51 = vld [vmem:[%s10665_s0 + $0x518] sm:$0xf0]  ;;  %v5773_v14 = vld [vmem:[%s10665_s0 + $0x2e8] sm:$0xf0] }
  0x28   :  { %4020 = vmatpush.bf16.msrb.mxu2 %v7743_v48  ;;  %v6043_v48 = vld [vmem:[%s10665_s0 + $0x488] sm:$0xf]  ;;  %v7548_v13 = vld [vmem:[%s10665_s0 + $0x25c] sm:$0xf] }
  0x29   :  { %4063 = vmatpush.bf16.msrb.mxu3 %v7751_v50  ;;  %v7618_v50 = vld [vmem:[%s10665_s0 + $0x48c] sm:$0xf] }
  0x2a   :  { %3935 = vmatpush.bf16.msrb.mxu0 %v7726_v53  ;;  %v6040_v53 = vor.u32 %v7617_v46, %v6037_v47  ;;  %v5621_v46 = vld [vmem:[%s10665_s0 + $0x1c0] sm:$0xf0]  ;;  %v5627_v47 = vld [vmem:[%s10665_s0 + $0x138] sm:$0xf] }
  0x2b   :  { %3978 = vmatpush.bf16.msrb.mxu1 %v7734_v55  ;;  %v6048_v55 = vor.u32 %v7618_v50, %v6045_v51  ;;  %v5629_v50 = vld [vmem:[%s10665_s0 + $0x1c8] sm:$0xf0] }
  0x2c   :  { %4021 = vmatpush.bf16.msrb.mxu2 %v7742_v52  ;;  %v6036_v52 = vor.u32 %v7635_v45, %v6035_v44  ;;  %v7529_v44 = vld [vmem:[%s10665_s0 + $0x1bc] sm:$0xf0]  ;;  %v7511_v45 = vld [vmem:[%s10665_s0 + $0x134] sm:$0xf] }
  0x2d   :  { %4064 = vmatpush.bf16.msrb.mxu3 %v7750_v54  ;;  %v6044_v54 = vor.u32 %v7636_v49, %v6043_v48  ;;  %v7530_v48 = vld [vmem:[%s10665_s0 + $0x1c4] sm:$0xf0]  ;;  %v7512_v49 = vld [vmem:[%s10665_s0 + $0x13c] sm:$0xf] }
  0x2e   :  { %3936 = vmatpush.bf16.msrb.mxu0 %v7725_v58  ;;  %v7745_v58 = vld [vmem:[%s10664_s1 + $0x1c0] sm:$0xff] }
  0x2f   :  { %3979 = vmatpush.bf16.msrb.mxu1 %v7733_v3  ;;  %v6189_v3 = vld [vmem:[%s10665_s0 + $0x638] sm:$0xf0] }
  0x30   :  { %4022 = vmatpush.bf16.msrb.mxu2 %v7741_v57  ;;  %v7721_v57 = vld [vmem:[%s10664_s1 + $0x100] sm:$0xff] }
  0x31   :  { %4065 = vmatpush.bf16.msrb.mxu3 %v7749_v2  ;;  %3774 = vmatmul.bf16.gmra.mxu0 %v5604_v4  ;;  %v7654_v2 = vld [vmem:[%s10665_s0 + $0x5ac] sm:$0xf]  ;;  %v6180_v4 = vor.u32 %v7671_v61, %v6179_v60  ;;  %v7765_v60 = vld [vmem:[%s10664_s1 + $0x260] sm:$0xff] }
  0x32   :  { %3817 = vmatmul.bf16.gmra.mxu1 %v5608_v5  ;;  %3937 = vmatpush.bf16.msrb.mxu0 %v7724_v9  ;;  %v6184_v5 = vor.u32 %v7653_v62, %v6181_v63  ;;  %v7760_v9 = vld [vmem:[%s10664_s1 + $0x238] sm:$0xff] }
  0x33   :  { %3860 = vmatmul.bf16.gmra.mxu2 %v5612_v6  ;;  %3980 = vmatpush.bf16.msrb.mxu1 %v7732_v11  ;;  %v6188_v6 = vor.u32 %v7672_v1, %v6187_v0  ;;  %v7768_v11 = vld [vmem:[%s10664_s1 + $0x278] sm:$0xff] }
  0x34   :  { %3903 = vmatmul.bf16.gmra.mxu3 %v5616_v7  ;;  %4023 = vmatpush.bf16.msrb.mxu2 %v7740_v8  ;;  %v6192_v7 = vor.u32 %v7654_v2, %v6189_v3  ;;  %v7776_v8 = vld [vmem:[%s10664_s1 + $0x2b8] sm:$0xff] }
  0x35   :  { %4066 = vmatpush.bf16.msrb.mxu3 %v7748_v10  ;;  %v7784_v10 = vld [vmem:[%s10664_s1 + $0x2f8] sm:$0xff] }
  0x36   :  { %3938 = vmatpush.bf16.msrb.mxu0 %v7723_v25  ;;  %v7767_v25 = vld [vmem:[%s10664_s1 + $0x270] sm:$0xff] }
  0x37   :  { %3981 = vmatpush.bf16.msrb.mxu1 %v7731_v27  ;;  %v7493_v27 = vld [vmem:[%s10665_s0 + $0x9c] sm:$0xf0] }
  0x38   :  { %4024 = vmatpush.bf16.msrb.mxu2 %v7739_v24  ;;  %v7783_v24 = vld [vmem:[%s10664_s1 + $0x2f0] sm:$0xff] }
  0x39   :  { %4067 = vmatpush.bf16.msrb.mxu3 %v7747_v26  ;;  %v5475_v26 = vld [vmem:[%s10665_s0 + $0x10] sm:$0xf] }
  0x3a   :  { %3939 = vmatpush.bf16.msrb.mxu0 %v7722_v41  ;;  %v5476_v34 = vor.u32 %v7493_v27, %v5475_v26  ;;  %v7766_v41 = vld [vmem:[%s10664_s1 + $0x268] sm:$0xff]  ;;  %v7764_v26 = vld [vmem:[%s10664_s1 + $0x258] sm:$0xff] }
  0x3b   :  { %3982 = vmatpush.bf16.msrb.mxu1 %v7730_v43  ;;  %v5619_v43 = vld [vmem:[%s10665_s0 + $0x130] sm:$0xf] }
  0x3c   :  { %4025 = vmatpush.bf16.msrb.mxu2 %v7738_v40  ;;  %v7782_v40 = vld [vmem:[%s10664_s1 + $0x2e8] sm:$0xff]  ;;  %v5620_v51 = vor.u32 %v7529_v44, %v5619_v43  ;;  %v7584_v44 = vld [vmem:[%s10665_s0 + $0x37c] sm:$0xf] }
  0x3d   :  { %4068 = vmatpush.bf16.msrb.mxu3 %v7746_v42  ;;  %v7773_v42 = vld [vmem:[%s10664_s1 + $0x2a0] sm:$0xff]  ;;  %v7602_v43 = vld [vmem:[%s10665_s0 + $0x404] sm:$0xf0] }
  0x3e   :  { %3940 = vmatpush.bf16.msrb.mxu0 %v7721_v57 }
  0x3f   :  { %3983 = vmatpush.bf16.msrb.mxu1 %v7729_v59  ;;  %v7781_v59 = vld [vmem:[%s10664_s1 + $0x2e0] sm:$0xff] }
  0x40   :  { %4026 = vmatpush.bf16.msrb.mxu2 %v7737_v56  ;;  %v5632_v56 = vor.u32 %v7512_v49, %v5629_v50 }
  0x41   :  { %3779 = vmatmul.bf16.gmra.mxu0 %v5748_v20  ;;  %4069 = vmatpush.bf16.msrb.mxu3 %v7745_v58  ;;  %v1747_v20 = vpack.c.b16 %v1495_v16, %v1495_v16  ;;  %v7757_v58 = vld [vmem:[%s10664_s1 + $0x220] sm:$0xff] }
  0x42   :  { %3822 = vmatmul.bf16.gmra.mxu1 %v5752_v21  ;;  %4105 = vmatpush.bf16.msra.mxu0 %v7760_v9  ;;  %v1748_v21 = vpack.c.b16 %v1496_v17, %v1496_v17  ;;  %v7547_v9 = vld [vmem:[%s10665_s0 + $0x254] sm:$0xf] }
  0x43   :  { %3865 = vmatmul.bf16.gmra.mxu2 %v5756_v22  ;;  %4148 = vmatpush.bf16.msra.mxu1 %v7768_v11  ;;  %v7775_v22 = vld [vmem:[%s10664_s1 + $0x2b0] sm:$0xff]  ;;  %v5771_v11 = vld [vmem:[%s10665_s0 + $0x258] sm:$0xf] }
  0x44   :  { %3908 = vmatmul.bf16.gmra.mxu3 %v5760_v23  ;;  %4191 = vmatpush.bf16.msra.mxu2 %v7776_v8  ;;  %v7759_v23 = vld [vmem:[%s10664_s1 + $0x230] sm:$0xff]  ;;  %v7565_v8 = vld [vmem:[%s10665_s0 + $0x2dc] sm:$0xf0] }
  0x45   :  { %4234 = vmatpush.bf16.msra.mxu3 %v7784_v10  ;;  %v5765_v10 = vld [vmem:[%s10665_s0 + $0x2e0] sm:$0xf0] }
  0x46   :  { %4106 = vmatpush.bf16.msra.mxu0 %v7759_v23  ;;  %v5776_v23 = vor.u32 %v7548_v13, %v5773_v14 }
  0x47   :  { %4149 = vmatpush.bf16.msra.mxu1 %v7767_v25 }
  0x48   :  { %4192 = vmatpush.bf16.msra.mxu2 %v7775_v22  ;;  %v5772_v22 = vor.u32 %v7566_v12, %v5771_v11  ;;  %v7620_v11 = vld [vmem:[%s10665_s0 + $0x49c] sm:$0xf]  ;;  %v6061_v12 = vld [vmem:[%s10665_s0 + $0x528] sm:$0xf0] }
  0x49   :  { %4235 = vmatpush.bf16.msra.mxu3 %v7783_v24 }
  0x4b   :  { %4150 = vmatpush.bf16.msra.mxu1 %v7766_v41  ;;  %v5909_v41 = vld [vmem:[%s10665_s0 + $0x400] sm:$0xf0] }
  0x4d   :  { %4236 = vmatpush.bf16.msra.mxu3 %v7782_v40  ;;  %v7583_v40 = vld [vmem:[%s10665_s0 + $0x374] sm:$0xf] }
  0x4e   :  { %v5912_v49 = vor.u32 %v7583_v40, %v5909_v41  ;;  %v6197_v40 = vld [vmem:[%s10665_s0 + $0x640] sm:$0xf0]  ;;  %v6203_v41 = vld [vmem:[%s10665_s0 + $0x5b8] sm:$0xf] }
  0x4f   :  { %4151 = vmatpush.bf16.msra.mxu1 %v7765_v60 }
  0x51   :  { %3784 = vmatmul.bf16.gmra.mxu0 %v5892_v36  ;;  %v5484_v36 = vor.u32 %v7494_v31, %v5483_v30  ;;  %4237 = vmatpush.bf16.msra.mxu3 %v7781_v59 }
  0x52   :  { %3827 = vmatmul.bf16.gmra.mxu1 %v5896_v37  ;;  %v5488_v37 = vor.u32 %v7476_v32, %v5485_v33 }
  0x53   :  { %3870 = vmatmul.bf16.gmra.mxu2 %v5900_v38  ;;  %v7774_v38 = vld [vmem:[%s10664_s1 + $0x2a8] sm:$0xff]  ;;  %4152 = vmatpush.bf16.msra.mxu1 %v7764_v26 }
  0x54   :  { %3913 = vmatmul.bf16.gmra.mxu3 %v5904_v39  ;;  %v7758_v39 = vld [vmem:[%s10664_s1 + $0x228] sm:$0xff]  ;;  %4193 = vmatpush.bf16.msra.mxu2 %v7774_v38  ;;  %v7601_v38 = vld [vmem:[%s10665_s0 + $0x3fc] sm:$0xf0] }
  0x55   :  { %4107 = vmatpush.bf16.msra.mxu0 %v7758_v39  ;;  %v7763_v39 = vld [vmem:[%s10664_s1 + $0x250] sm:$0xff] }
  0x57   :  { %4153 = vmatpush.bf16.msra.mxu1 %v7763_v39  ;;  %v7655_v39 = vld [vmem:[%s10665_s0 + $0x5b4] sm:$0xf] }
  0x58   :  { %4194 = vmatpush.bf16.msra.mxu2 %v7773_v42  ;;  %v5915_v42 = vld [vmem:[%s10665_s0 + $0x378] sm:$0xf] }
  0x59   :  { %4108 = vmatpush.bf16.msra.mxu0 %v7757_v58 }
  0x61   :  { %3789 = vmatmul.bf16.gmra.mxu0 %v6036_v52  ;;  %v5624_v52 = vor.u32 %v7511_v45, %v5621_v46  ;;  %v5917_v45 = vld [vmem:[%s10665_s0 + $0x408] sm:$0xf0] }
  0x62   :  { %3832 = vmatmul.bf16.gmra.mxu1 %v6040_v53 }
  0x63   :  { %3875 = vmatmul.bf16.gmra.mxu2 %v6044_v54 }
  0x64   :  { %3918 = vmatmul.bf16.gmra.mxu3 %v6048_v55  ;;  %v5628_v55 = vor.u32 %v7530_v48, %v5627_v47 }
  0x71   :  { %3794 = vmatmul.bf16.gmra.mxu0 %v6180_v4  ;;  %v7772_v4 = vld [vmem:[%s10664_s1 + $0x298] sm:$0xff] }
  0x72   :  { %3837 = vmatmul.bf16.gmra.mxu1 %v6184_v5  ;;  %v7756_v5 = vld [vmem:[%s10664_s1 + $0x218] sm:$0xff]  ;;  %4195 = vmatpush.bf16.msra.mxu2 %v7772_v4  ;;  %v6051_v4 = vld [vmem:[%s10665_s0 + $0x490] sm:$0xf] }
  0x73   :  { %3880 = vmatmul.bf16.gmra.mxu2 %v6188_v6  ;;  %v7780_v6 = vld [vmem:[%s10664_s1 + $0x2d8] sm:$0xff]  ;;  %4109 = vmatpush.bf16.msra.mxu0 %v7756_v5  ;;  %v7637_v5 = vld [vmem:[%s10665_s0 + $0x51c] sm:$0xf0] }
  0x74   :  { %3923 = vmatmul.bf16.gmra.mxu3 %v6192_v7  ;;  %v5763_v7 = vld [vmem:[%s10665_s0 + $0x250] sm:$0xf] }
  0x75   :  { %4238 = vmatpush.bf16.msra.mxu3 %v7780_v6  ;;  %v5764_v17 = vor.u32 %v7565_v8, %v5763_v7  ;;  %v7762_v6 = vld [vmem:[%s10664_s1 + $0x248] sm:$0xff]  ;;  %v7619_v7 = vld [vmem:[%s10665_s0 + $0x494] sm:$0xf]  ;;  %v6053_v8 = vld [vmem:[%s10665_s0 + $0x520] sm:$0xf0] }
  0x76   :  { %4154 = vmatpush.bf16.msra.mxu1 %v7762_v6 }
  0x81   :  { %3799 = vmatmul.bf16.gmra.mxu0 %v1745_v18  ;;  %v5768_v18 = vor.u32 %v7547_v9, %v5765_v10  ;;  %v6059_v9 = vld [vmem:[%s10665_s0 + $0x498] sm:$0xf]  ;;  %v7638_v10 = vld [vmem:[%s10665_s0 + $0x524] sm:$0xf0] }
  0x82   :  { %3842 = vmatmul.bf16.gmra.mxu1 %v1746_v19 }
  0x83   :  { %3885 = vmatmul.bf16.gmra.mxu2 %v1747_v20 }
  0x84   :  { %3928 = vmatmul.bf16.gmra.mxu3 %v1748_v21 }
  0x91   :  { %3941 = vmatmul.bf16.vlgmr.msrb.gmra.mxu0 %v5476_v34  ;;  %v7771_v34 = vld [vmem:[%s10664_s1 + $0x290] sm:$0xff] }
  0x92   :  { %3984 = vmatmul.bf16.vlgmr.msrb.gmra.mxu1 %v5480_v35  ;;  %v7755_v35 = vld [vmem:[%s10664_s1 + $0x210] sm:$0xff]  ;;  %4196 = vmatpush.bf16.msra.mxu2 %v7771_v34  ;;  %v7753_v34 = vld [vmem:[%s10664_s1 + $0x200] sm:$0xff] }
  0x93   :  { %4027 = vmatmul.bf16.vlgmr.msrb.gmra.mxu2 %v5484_v36  ;;  %v7779_v36 = vld [vmem:[%s10664_s1 + $0x2d0] sm:$0xff]  ;;  %4110 = vmatpush.bf16.msra.mxu0 %v7755_v35  ;;  %v7777_v35 = vld [vmem:[%s10664_s1 + $0x2c0] sm:$0xff] }
  0x94   :  { %4070 = vmatmul.bf16.vlgmr.msrb.gmra.mxu3 %v5488_v37  ;;  %v5907_v37 = vld [vmem:[%s10665_s0 + $0x370] sm:$0xf] }
  0x95   :  { %4239 = vmatpush.bf16.msra.mxu3 %v7779_v36  ;;  %v5908_v48 = vor.u32 %v7601_v38, %v5907_v37  ;;  %v7761_v36 = vld [vmem:[%s10664_s1 + $0x240] sm:$0xff]  ;;  %v6195_v37 = vld [vmem:[%s10665_s0 + $0x5b0] sm:$0xf] }
  0x96   :  { %v7673_v38 = vld [vmem:[%s10665_s0 + $0x63c] sm:$0xf0]  ;;  %4155 = vmatpush.bf16.msra.mxu1 %v7761_v36 }
  0x9e   :  { %v3770_v53 = vpop.f32.mrf.mxu0 }
  0x9f   :  { %v3813_v54 = vpop.f32.mrf.mxu1 }
  0xa0   :  { %v3814_v57 = vadd.f32 %v3813_v54, %v3770_v53  ;;  %v5916_v53 = vor.u32 %v7602_v43, %v5915_v42  ;;  %v5920_v54 = vor.u32 %v7584_v44, %v5917_v45  ;;  %v7674_v42 = vld [vmem:[%s10665_s0 + $0x644] sm:$0xf0]  ;;  %v7656_v43 = vld [vmem:[%s10665_s0 + $0x5bc] sm:$0xf]  ;;  %v6205_v44 = vld [vmem:[%s10665_s0 + $0x648] sm:$0xf0] }
  0xa1   :  { %3946 = vmatmul.bf16.gmra.mxu0 %v5620_v51 }
  0xa2   :  { %3989 = vmatmul.bf16.gmra.mxu1 %v5624_v52 }
  0xa3   :  { %4032 = vmatmul.bf16.gmra.mxu2 %v5628_v55 }
  0xa4   :  { %4075 = vmatmul.bf16.gmra.mxu3 %v5632_v56 }
  0xa6   :  { %v3856_v61 = vpop.f32.mrf.mxu2  ;;  %v3772_v0 = vpop.f32.mrf.mxu0 }
  0xa7   :  { %v3899_v62 = vpop.f32.mrf.mxu3  ;;  %v3857_v63 = vadd.f32 %v3856_v61, %v3814_v57  ;;  %v3815_v1 = vpop.f32.mrf.mxu1 }
  0xa8   :  { %v3816_v2 = vadd.f32 %v3815_v1, %v3772_v0  ;;  %v7770_v0 = vld [vmem:[%s10664_s1 + $0x288] sm:$0xff] }
  0xa9   :  { %v8477_v3 = vadd.f32 %v3899_v62, %v3857_v63  ;;  %v7754_v1 = vld [vmem:[%s10664_s1 + $0x208] sm:$0xff]  ;;  %4197 = vmatpush.bf16.msra.mxu2 %v7770_v0 }
  0xaa   :  { %4111 = vmatpush.bf16.msra.mxu0 %v7754_v1 }
  0xae   :  { %v3858_v15 = vpop.f32.mrf.mxu2  ;;  %v3775_v20 = vpop.f32.mrf.mxu0  ;;  %4112 = vmatpush.bf16.msra.mxu0 %v7753_v34 }
  0xaf   :  { %v3901_v16 = vpop.f32.mrf.mxu3  ;;  %v3859_v19 = vadd.f32 %v3858_v15, %v3816_v2  ;;  %v3818_v21 = vpop.f32.mrf.mxu1  ;;  %v7778_v2 = vld [vmem:[%s10664_s1 + $0x2c8] sm:$0xff]  ;;  %v6052_v15 = vor.u32 %v7637_v5, %v6051_v4  ;;  %v236_v5 = vld [vmem:[%s10665_s0 + $0x6d8] sm:$0x11] }
  0xb0   :  { %v3819_v24 = vadd.f32 %v3818_v21, %v3775_v20  ;;  %4240 = vmatpush.bf16.msra.mxu3 %v7778_v2  ;;  %v6060_v20 = vor.u32 %v7638_v10, %v6059_v9  ;;  %v6064_v21 = vor.u32 %v7620_v11, %v6061_v12  ;;  %v235_v2 = vld [vmem:[%s10665_s0 + $0x6d0] sm:$0x11]  ;;  %v1499_v10 = vunpack.c.l.b16 %v236_v5 }
  0xb1   :  { %v8512_v25 = vadd.f32 %v3901_v16, %v3859_v19  ;;  %3951 = vmatmul.bf16.gmra.mxu0 %v5764_v17  ;;  %v6056_v16 = vor.u32 %v7619_v7, %v6053_v8  ;;  %v7800_v7 = vld [vmem:[%s10664_s1 + $0x378] sm:$0xff]  ;;  %v1497_v8 = vunpack.c.l.b16 %v235_v2  ;;  %v1498_v9 = vunpack.c.h.b16 %v235_v2 }
  0xb2   :  { %3994 = vmatmul.bf16.gmra.mxu1 %v5768_v18  ;;  %v1500_v11 = vunpack.c.h.b16 %v236_v5 }
  0xb3   :  { %4037 = vmatmul.bf16.gmra.mxu2 %v5772_v22  ;;  %4320 = vmatpush.bf16.msrb.mxu1 %v7800_v7 }
  0xb4   :  { %4080 = vmatmul.bf16.gmra.mxu3 %v5776_v23 }
  0xb5   :  { %4241 = vmatpush.bf16.msra.mxu3 %v7777_v35 }
  0xb6   :  { %v3861_v27 = vpop.f32.mrf.mxu2  ;;  %v3777_v30 = vpop.f32.mrf.mxu0 }
  0xb7   :  { %v3904_v28 = vpop.f32.mrf.mxu3  ;;  %v3862_v29 = vadd.f32 %v3861_v27, %v3819_v24  ;;  %v3820_v31 = vpop.f32.mrf.mxu1  ;;  %v7769_v24 = vld [vmem:[%s10664_s1 + $0x280] sm:$0xff] }
  0xb8   :  { %v3821_v32 = vadd.f32 %v3820_v31, %v3777_v30  ;;  %4198 = vmatpush.bf16.msra.mxu2 %v7769_v24  ;;  %v7807_v24 = vld [vmem:[%s10664_s1 + $0x3b0] sm:$0xff] }
  0xb9   :  { %v8517_v33 = vadd.f32 %v3904_v28, %v3862_v29 }
  0xbe   :  { %v3863_v46 = vpop.f32.mrf.mxu2  ;;  %v3780_v51 = vpop.f32.mrf.mxu0 }
  0xbf   :  { %v3906_v47 = vpop.f32.mrf.mxu3  ;;  %v3864_v50 = vadd.f32 %v3863_v46, %v3821_v32  ;;  %v3823_v52 = vpop.f32.mrf.mxu1 }
  0xc0   :  { %v3824_v55 = vadd.f32 %v3823_v52, %v3780_v51  ;;  %v6204_v52 = vor.u32 %v7674_v42, %v6203_v41  ;;  %v5493_v41 = vld [vmem:[%s10665_s0 + $0xb0] sm:$0xf0]  ;;  %v5499_v42 = vld [vmem:[%s10665_s0 + $0x28] sm:$0xf] }
  0xc1   :  { %v8555_v56 = vadd.f32 %v3906_v47, %v3864_v50  ;;  %3956 = vmatmul.bf16.gmra.mxu0 %v5908_v48  ;;  %v6196_v47 = vor.u32 %v7673_v38, %v6195_v37  ;;  %v6200_v48 = vor.u32 %v7655_v39, %v6197_v40  ;;  %v5491_v38 = vld [vmem:[%s10665_s0 + $0x20] sm:$0xf]  ;;  %v7495_v39 = vld [vmem:[%s10665_s0 + $0xac] sm:$0xf0]  ;;  %v7477_v40 = vld [vmem:[%s10665_s0 + $0x24] sm:$0xf] }
  0xc2   :  { %3999 = vmatmul.bf16.gmra.mxu1 %v5912_v49 }
  0xc3   :  { %4042 = vmatmul.bf16.gmra.mxu2 %v5916_v53  ;;  %v6208_v53 = vor.u32 %v7656_v43, %v6205_v44  ;;  %v7496_v43 = vld [vmem:[%s10665_s0 + $0xb4] sm:$0xf0]  ;;  %v7478_v44 = vld [vmem:[%s10665_s0 + $0x2c] sm:$0xf] }
  0xc4   :  { %4085 = vmatmul.bf16.gmra.mxu3 %v5920_v54 }
  0xc6   :  { %v3866_v57 = vpop.f32.mrf.mxu2  ;;  %v3782_v60 = vpop.f32.mrf.mxu0 }
  0xc7   :  { %v3909_v58 = vpop.f32.mrf.mxu3  ;;  %v3867_v59 = vadd.f32 %v3866_v57, %v3824_v55  ;;  %v3825_v61 = vpop.f32.mrf.mxu1  ;;  %v7808_v57 = vld [vmem:[%s10664_s1 + $0x3b8] sm:$0xff] }
  0xc8   :  { %v3826_v62 = vadd.f32 %v3825_v61, %v3782_v60  ;;  %4363 = vmatpush.bf16.msrb.mxu2 %v7808_v57 }
  0xc9   :  { %v8557_v63 = vadd.f32 %v3909_v58, %v3867_v59  ;;  %v7792_v58 = vld [vmem:[%s10664_s1 + $0x338] sm:$0xff] }
  0xca   :  { %v7816_v59 = vld [vmem:[%s10664_s1 + $0x3f8] sm:$0xff]  ;;  %4277 = vmatpush.bf16.msrb.mxu0 %v7792_v58 }
  0xcb   :  { %4406 = vmatpush.bf16.msrb.mxu3 %v7816_v59  ;;  %v7806_v59 = vld [vmem:[%s10664_s1 + $0x3a8] sm:$0xff] }
  0xcc   :  { %4364 = vmatpush.bf16.msrb.mxu2 %v7807_v24 }
  0xce   :  { %v3868_v13 = vpop.f32.mrf.mxu2  ;;  %v3785_v18 = vpop.f32.mrf.mxu0 }
  0xcf   :  { %v3911_v14 = vpop.f32.mrf.mxu3  ;;  %v3869_v17 = vadd.f32 %v3868_v13, %v3826_v62  ;;  %v3828_v19 = vpop.f32.mrf.mxu1 }
  0xd0   :  { %v3829_v22 = vadd.f32 %v3828_v19, %v3785_v18  ;;  %v1751_v19 = vpack.c.b16 %v1499_v10, %v1499_v10  ;;  %4365 = vmatpush.bf16.msrb.mxu2 %v7806_v59  ;;  %v7805_v10 = vld [vmem:[%s10664_s1 + $0x3a0] sm:$0xff] }
  0xd1   :  { %v8595_v23 = vadd.f32 %v3911_v14, %v3869_v17  ;;  %3961 = vmatmul.bf16.gmra.mxu0 %v6052_v15  ;;  %v1749_v14 = vpack.c.b16 %v1497_v8, %v1497_v8  ;;  %v1750_v15 = vpack.c.b16 %v1498_v9, %v1498_v9  ;;  %v5635_v8 = vld [vmem:[%s10665_s0 + $0x140] sm:$0xf]  ;;  %v7531_v9 = vld [vmem:[%s10665_s0 + $0x1cc] sm:$0xf0] }
  0xd2   :  { %4004 = vmatmul.bf16.gmra.mxu1 %v6056_v16 }
  0xd3   :  { %4047 = vmatmul.bf16.gmra.mxu2 %v6060_v20  ;;  %v1752_v20 = vpack.c.b16 %v1500_v11, %v1500_v11  ;;  %v7513_v11 = vld [vmem:[%s10665_s0 + $0x144] sm:$0xf] }
  0xd4   :  { %4090 = vmatmul.bf16.gmra.mxu3 %v6064_v21  ;;  %4366 = vmatpush.bf16.msrb.mxu2 %v7805_v10 }
  0xd6   :  { %v3871_v26 = vpop.f32.mrf.mxu2  ;;  %v3787_v29 = vpop.f32.mrf.mxu0 }
  0xd7   :  { %v3914_v27 = vpop.f32.mrf.mxu3  ;;  %v3872_v28 = vadd.f32 %v3871_v26, %v3829_v22  ;;  %v3830_v30 = vpop.f32.mrf.mxu1  ;;  %v7791_v26 = vld [vmem:[%s10664_s1 + $0x330] sm:$0xff] }
  0xd8   :  { %v3831_v31 = vadd.f32 %v3830_v30, %v3787_v29  ;;  %4278 = vmatpush.bf16.msrb.mxu0 %v7791_v26 }
  0xd9   :  { %v8600_v32 = vadd.f32 %v3914_v27, %v3872_v28  ;;  %v7815_v27 = vld [vmem:[%s10664_s1 + $0x3f0] sm:$0xff] }
  0xda   :  { %v7799_v28 = vld [vmem:[%s10664_s1 + $0x370] sm:$0xff]  ;;  %4407 = vmatpush.bf16.msrb.mxu3 %v7815_v27 }
  0xdb   :  { %4321 = vmatpush.bf16.msrb.mxu1 %v7799_v28 }
  0xde   :  { %v3873_v45 = vpop.f32.mrf.mxu2  ;;  %v3790_v50 = vpop.f32.mrf.mxu0 }
  0xdf   :  { %v3916_v46 = vpop.f32.mrf.mxu3  ;;  %v3874_v49 = vadd.f32 %v3873_v45, %v3831_v31  ;;  %v3833_v51 = vpop.f32.mrf.mxu1  ;;  %v5501_v45 = vld [vmem:[%s10665_s0 + $0xb8] sm:$0xf0] }
  0xe0   :  { %v3834_v54 = vadd.f32 %v3833_v51, %v3790_v50 }
  0xe1   :  { %v8635_v55 = vadd.f32 %v3916_v46, %v3874_v49  ;;  %3966 = vmatmul.bf16.gmra.mxu0 %v6196_v47  ;;  %v5496_v49 = vor.u32 %v7477_v40, %v5493_v41 }
  0xe2   :  { %4009 = vmatmul.bf16.gmra.mxu1 %v6200_v48  ;;  %v5492_v48 = vor.u32 %v7495_v39, %v5491_v38 }
  0xe3   :  { %4052 = vmatmul.bf16.gmra.mxu2 %v6204_v52 }
  0xe4   :  { %4095 = vmatmul.bf16.gmra.mxu3 %v6208_v53  ;;  %v5500_v53 = vor.u32 %v7496_v43, %v5499_v42  ;;  %v5779_v42 = vld [vmem:[%s10665_s0 + $0x260] sm:$0xf]  ;;  %v7567_v43 = vld [vmem:[%s10665_s0 + $0x2ec] sm:$0xf0] }
  0xe6   :  { %v3876_v60 = vpop.f32.mrf.mxu2  ;;  %v3792_v0 = vpop.f32.mrf.mxu0 }
  0xe7   :  { %v3919_v61 = vpop.f32.mrf.mxu3  ;;  %v3877_v62 = vadd.f32 %v3876_v60, %v3834_v54  ;;  %v3835_v1 = vpop.f32.mrf.mxu1  ;;  %v5504_v54 = vor.u32 %v7478_v44, %v5501_v45  ;;  %v7790_v60 = vld [vmem:[%s10664_s1 + $0x328] sm:$0xff]  ;;  %v7804_v45 = vld [vmem:[%s10664_s1 + $0x398] sm:$0xff] }
  0xe8   :  { %v3836_v4 = vadd.f32 %v3835_v1, %v3792_v0  ;;  %4279 = vmatpush.bf16.msrb.mxu0 %v7790_v60  ;;  %4367 = vmatpush.bf16.msrb.mxu2 %v7804_v45 }
  0xe9   :  { %v8652_v6 = vadd.f32 %v3919_v61, %v3877_v62  ;;  %v7814_v61 = vld [vmem:[%s10664_s1 + $0x3e8] sm:$0xff] }
  0xea   :  { %v7798_v62 = vld [vmem:[%s10664_s1 + $0x368] sm:$0xff]  ;;  %4408 = vmatpush.bf16.msrb.mxu3 %v7814_v61 }
  0xeb   :  { %4322 = vmatpush.bf16.msrb.mxu1 %v7798_v62 }
  0xee   :  { %v3878_v12 = vpop.f32.mrf.mxu2  ;;  %v3795_v17 = vpop.f32.mrf.mxu0 }
  0xef   :  { %v3921_v13 = vpop.f32.mrf.mxu3  ;;  %v3879_v16 = vadd.f32 %v3878_v12, %v3836_v4  ;;  %v3838_v18 = vpop.f32.mrf.mxu1  ;;  %v5637_v12 = vld [vmem:[%s10665_s0 + $0x1d0] sm:$0xf0] }
  0xf0   :  { %v3839_v21 = vadd.f32 %v3838_v18, %v3795_v17 }
  0xf1   :  { %v8657_v22 = vadd.f32 %v3921_v13, %v3879_v16  ;;  %3971 = vmatmul.bf16.gmra.mxu0 %v1749_v14  ;;  %v5643_v13 = vld [vmem:[%s10665_s0 + $0x148] sm:$0xf]  ;;  %v7532_v14 = vld [vmem:[%s10665_s0 + $0x1d4] sm:$0xf0]  ;;  %v5645_v16 = vld [vmem:[%s10665_s0 + $0x1d8] sm:$0xf0] }
  0xf2   :  { %4014 = vmatmul.bf16.gmra.mxu1 %v1750_v15  ;;  %v7514_v15 = vld [vmem:[%s10665_s0 + $0x14c] sm:$0xf]  ;;  %v5644_v26 = vor.u32 %v7532_v14, %v5643_v13 }
  0xf3   :  { %4057 = vmatmul.bf16.gmra.mxu2 %v1751_v19  ;;  %v5636_v19 = vor.u32 %v7531_v9, %v5635_v8  ;;  %v5648_v27 = vor.u32 %v7514_v15, %v5645_v16  ;;  %v5923_v15 = vld [vmem:[%s10665_s0 + $0x380] sm:$0xf]  ;;  %v7603_v16 = vld [vmem:[%s10665_s0 + $0x40c] sm:$0xf0] }
  0xf4   :  { %4100 = vmatmul.bf16.gmra.mxu3 %v1752_v20  ;;  %v5640_v20 = vor.u32 %v7513_v11, %v5637_v12 }
  0xf6   :  { %v3881_v29 = vpop.f32.mrf.mxu2  ;;  %v3797_v34 = vpop.f32.mrf.mxu0 }
  0xf7   :  { %v3924_v30 = vpop.f32.mrf.mxu3  ;;  %v3882_v31 = vadd.f32 %v3881_v29, %v3839_v21  ;;  %v3840_v35 = vpop.f32.mrf.mxu1  ;;  %v7789_v29 = vld [vmem:[%s10664_s1 + $0x320] sm:$0xff] }
  0xf8   :  { %v3841_v36 = vadd.f32 %v3840_v35, %v3797_v34  ;;  %v7797_v34 = vld [vmem:[%s10664_s1 + $0x360] sm:$0xff]  ;;  %4280 = vmatpush.bf16.msrb.mxu0 %v7789_v29  ;;  %v5933_v29 = vld [vmem:[%s10665_s0 + $0x418] sm:$0xf0] }
  0xf9   :  { %v8671_v37 = vadd.f32 %v3924_v30, %v3882_v31  ;;  %v7813_v30 = vld [vmem:[%s10664_s1 + $0x3e0] sm:$0xff]  ;;  %4323 = vmatpush.bf16.msrb.mxu1 %v7797_v34  ;;  %v5924_v34 = vor.u32 %v7603_v16, %v5923_v15 }
  0xfa   :  { %4409 = vmatpush.bf16.msrb.mxu3 %v7813_v30 }
  0xfe   :  { %v3883_v46 = vpop.f32.mrf.mxu2  ;;  %v3800_v51 = vpop.f32.mrf.mxu0 }
  0xff   :  { %v3926_v47 = vpop.f32.mrf.mxu3  ;;  %v3884_v50 = vadd.f32 %v3883_v46, %v3841_v36  ;;  %v3843_v52 = vpop.f32.mrf.mxu1  ;;  %v7788_v46 = vld [vmem:[%s10664_s1 + $0x318] sm:$0xff] }
 0x100   :  { %v3844_v57 = vadd.f32 %v3843_v52, %v3800_v51  ;;  %v7550_v51 = vld [vmem:[%s10665_s0 + $0x26c] sm:$0xf]  ;;  %v5789_v52 = vld [vmem:[%s10665_s0 + $0x2f8] sm:$0xf0]  ;;  %4281 = vmatpush.bf16.msrb.mxu0 %v7788_v46 }
 0x101   :  { %v8697_v58 = vadd.f32 %v3926_v47, %v3884_v50  ;;  %4113 = vmatmul.bf16.vlgmr.msra.gmra.mxu0 %v5492_v48  ;;  %v7549_v47 = vld [vmem:[%s10665_s0 + $0x264] sm:$0xf]  ;;  %v5781_v48 = vld [vmem:[%s10665_s0 + $0x2f0] sm:$0xf0]  ;;  %v7568_v50 = vld [vmem:[%s10665_s0 + $0x2f4] sm:$0xf0] }
 0x102   :  { %4156 = vmatmul.bf16.vlgmr.msra.gmra.mxu1 %v5496_v49  ;;  %v5787_v49 = vld [vmem:[%s10665_s0 + $0x268] sm:$0xf]  ;;  %v5784_v59 = vor.u32 %v7549_v47, %v5781_v48 }
 0x103   :  { %4199 = vmatmul.bf16.vlgmr.msra.gmra.mxu2 %v5500_v53 }
 0x104   :  { %4242 = vmatmul.bf16.vlgmr.msra.gmra.mxu3 %v5504_v54 }
 0x106   :  { %v3886_v0 = vpop.f32.mrf.mxu2  ;;  %v3802_v4 = vpop.f32.mrf.mxu0 }
 0x107   :  { %v3929_v1 = vpop.f32.mrf.mxu3  ;;  %v3887_v2 = vadd.f32 %v3886_v0, %v3844_v57  ;;  %v3845_v5 = vpop.f32.mrf.mxu1  ;;  %v5780_v57 = vor.u32 %v7567_v43, %v5779_v42  ;;  %v5788_v0 = vor.u32 %v7568_v50, %v5787_v49 }
 0x108   :  { %v7796_v5 = vld [vmem:[%s10664_s1 + $0x358] sm:$0xff] }
 0x109   :  { %v8711_v7 = vadd.f32 %v3929_v1, %v3887_v2  ;;  %v5792_v1 = vor.u32 %v7550_v51, %v5789_v52  ;;  %4324 = vmatpush.bf16.msrb.mxu1 %v7796_v5  ;;  %v7639_v51 = vld [vmem:[%s10665_s0 + $0x52c] sm:$0xf0]  ;;  %v7802_v52 = vld [vmem:[%s10664_s1 + $0x388] sm:$0xff] }
 0x10e   :  { %v3888_v17 = vpop.f32.mrf.mxu2  ;;  %v3942_v21 = vpop.f32.mrf.mxu0 }
 0x10f   :  { %v3931_v18 = vpop.f32.mrf.mxu3  ;;  %v3985_v24 = vpop.f32.mrf.mxu1  ;;  %v3943_v28 = vadd.f32 %v3942_v21, %v8477_v3  ;;  %v7585_v17 = vld [vmem:[%s10665_s0 + $0x384] sm:$0xf]  ;;  %v5925_v21 = vld [vmem:[%s10665_s0 + $0x410] sm:$0xf0] }
 0x111   :  { %v3986_v31 = vadd.f32 %v3985_v24, %v3943_v28  ;;  %4118 = vmatmul.bf16.gmra.mxu0 %v5636_v19  ;;  %v7803_v19 = vld [vmem:[%s10664_s1 + $0x390] sm:$0xff]  ;;  %v5931_v24 = vld [vmem:[%s10665_s0 + $0x388] sm:$0xf]  ;;  %v7586_v28 = vld [vmem:[%s10665_s0 + $0x38c] sm:$0xf] }
 0x112   :  { %4161 = vmatmul.bf16.gmra.mxu1 %v5640_v20  ;;  %v7811_v20 = vld [vmem:[%s10664_s1 + $0x3d0] sm:$0xff]  ;;  %4368 = vmatpush.bf16.msrb.mxu2 %v7803_v19 }
 0x113   :  { %4204 = vmatmul.bf16.gmra.mxu2 %v5644_v26  ;;  %v7795_v26 = vld [vmem:[%s10664_s1 + $0x350] sm:$0xff] }
 0x114   :  { %4247 = vmatmul.bf16.gmra.mxu3 %v5648_v27  ;;  %v7604_v27 = vld [vmem:[%s10665_s0 + $0x414] sm:$0xf0]  ;;  %4325 = vmatpush.bf16.msrb.mxu1 %v7795_v26 }
 0x116   :  { %v4028_v3 = vpop.f32.mrf.mxu2  ;;  %v3944_v38 = vpop.f32.mrf.mxu0  ;;  %4369 = vmatpush.bf16.msrb.mxu2 %v7802_v52 }
 0x117   :  { %v4071_v35 = vpop.f32.mrf.mxu3  ;;  %v4029_v36 = vadd.f32 %v4028_v3, %v3986_v31  ;;  %v3987_v39 = vpop.f32.mrf.mxu1  ;;  %v3945_v40 = vadd.f32 %v3944_v38, %v8512_v25  ;;  %v7812_v25 = vld [vmem:[%s10664_s1 + $0x3d8] sm:$0xff]  ;;  %v5928_v3 = vor.u32 %v7585_v17, %v5925_v21 }
 0x118   :  { %4410 = vmatpush.bf16.msrb.mxu3 %v7812_v25 }
 0x119   :  { %v8751_v41 = vadd.f32 %v4071_v35, %v4029_v36  ;;  %v3988_v44 = vadd.f32 %v3987_v39, %v3945_v40  ;;  %v5932_v39 = vor.u32 %v7604_v27, %v5931_v24  ;;  %v5936_v40 = vor.u32 %v7586_v28, %v5933_v29  ;;  %v7785_v27 = vld [vmem:[%s10664_s1 + $0x300] sm:$0xff] }
 0x11a   :  { %v7809_v28 = vld [vmem:[%s10664_s1 + $0x3c0] sm:$0xff] }
 0x11c   :  { %4411 = vmatpush.bf16.msrb.mxu3 %v7811_v20 }
 0x11e   :  { %v4030_v53 = vpop.f32.mrf.mxu2  ;;  %v3947_v61 = vpop.f32.mrf.mxu0 }
 0x11f   :  { %v4073_v54 = vpop.f32.mrf.mxu3  ;;  %v4031_v60 = vadd.f32 %v4030_v53, %v3988_v44  ;;  %v3990_v62 = vpop.f32.mrf.mxu1  ;;  %v3948_v2 = vadd.f32 %v3947_v61, %v8517_v33  ;;  %v6075_v61 = vld [vmem:[%s10665_s0 + $0x4a8] sm:$0xf] }
 0x121   :  { %v8787_v4 = vadd.f32 %v4073_v54, %v4031_v60  ;;  %v3991_v8 = vadd.f32 %v3990_v62, %v3948_v2  ;;  %4123 = vmatmul.bf16.gmra.mxu0 %v5780_v57  ;;  %v7786_v54 = vld [vmem:[%s10664_s1 + $0x308] sm:$0xff]  ;;  %v6069_v60 = vld [vmem:[%s10665_s0 + $0x530] sm:$0xf0]  ;;  %v7640_v62 = vld [vmem:[%s10665_s0 + $0x534] sm:$0xf0] }
 0x122   :  { %4166 = vmatmul.bf16.gmra.mxu1 %v5784_v59  ;;  %v7794_v57 = vld [vmem:[%s10664_s1 + $0x348] sm:$0xff]  ;;  %v7621_v59 = vld [vmem:[%s10665_s0 + $0x4a4] sm:$0xf] }
 0x123   :  { %4209 = vmatmul.bf16.gmra.mxu2 %v5788_v0  ;;  %v7622_v0 = vld [vmem:[%s10665_s0 + $0x4ac] sm:$0xf]  ;;  %4326 = vmatpush.bf16.msrb.mxu1 %v7794_v57 }
 0x124   :  { %4252 = vmatmul.bf16.gmra.mxu3 %v5792_v1  ;;  %v6077_v1 = vld [vmem:[%s10665_s0 + $0x538] sm:$0xf0] }
 0x126   :  { %v4033_v9 = vpop.f32.mrf.mxu2  ;;  %v3949_v12 = vpop.f32.mrf.mxu0 }
 0x127   :  { %v4076_v10 = vpop.f32.mrf.mxu3  ;;  %v4034_v11 = vadd.f32 %v4033_v9, %v3991_v8  ;;  %v3992_v13 = vpop.f32.mrf.mxu1  ;;  %v3950_v14 = vadd.f32 %v3949_v12, %v8555_v56  ;;  %v7787_v56 = vld [vmem:[%s10664_s1 + $0x310] sm:$0xff]  ;;  %v6072_v9 = vor.u32 %v7621_v59, %v6069_v60 }
 0x128   :  { %4282 = vmatpush.bf16.msrb.mxu0 %v7787_v56 }
 0x129   :  { %v8793_v33 = vadd.f32 %v4076_v10, %v4034_v11  ;;  %v3993_v18 = vadd.f32 %v3992_v13, %v3950_v14  ;;  %v6076_v13 = vor.u32 %v7640_v62, %v6075_v61  ;;  %v6080_v14 = vor.u32 %v7622_v0, %v6077_v1  ;;  %v237_v62 = vld [vmem:[%s10665_s0 + $0x6e0] sm:$0x11]  ;;  %v238_v1 = vld [vmem:[%s10665_s0 + $0x6e8] sm:$0x11] }
 0x12c   :  { %4283 = vmatpush.bf16.msrb.mxu0 %v7786_v54  ;;  %v7824_v54 = vld [vmem:[%s10664_s1 + $0x438] sm:$0xff] }
 0x12e   :  { %v4035_v30 = vpop.f32.mrf.mxu2  ;;  %v3952_v36 = vpop.f32.mrf.mxu0 }
 0x12f   :  { %v4078_v31 = vpop.f32.mrf.mxu3  ;;  %v4036_v35 = vadd.f32 %v4035_v30, %v3993_v18  ;;  %v3995_v38 = vpop.f32.mrf.mxu1  ;;  %v3953_v42 = vadd.f32 %v3952_v36, %v8557_v63  ;;  %v6067_v63 = vld [vmem:[%s10665_s0 + $0x4a0] sm:$0xf]  ;;  %v7676_v36 = vld [vmem:[%s10665_s0 + $0x654] sm:$0xf0] }
 0x130   :  { %v6068_v8 = vor.u32 %v7639_v51, %v6067_v63  ;;  %v7801_v18 = vld [vmem:[%s10664_s1 + $0x380] sm:$0xff]  ;;  %4284 = vmatpush.bf16.msrb.mxu0 %v7785_v27  ;;  %v7839_v27 = vld [vmem:[%s10664_s1 + $0x4b0] sm:$0xff] }
 0x131   :  { %v8832_v43 = vadd.f32 %v4078_v31, %v4036_v35  ;;  %v3996_v44 = vadd.f32 %v3995_v38, %v3953_v42  ;;  %4128 = vmatmul.bf16.gmra.mxu0 %v5924_v34  ;;  %4370 = vmatpush.bf16.msrb.mxu2 %v7801_v18  ;;  %v6211_v30 = vld [vmem:[%s10665_s0 + $0x5c0] sm:$0xf]  ;;  %v7675_v31 = vld [vmem:[%s10665_s0 + $0x64c] sm:$0xf0]  ;;  %v7657_v34 = vld [vmem:[%s10665_s0 + $0x5c4] sm:$0xf] }
 0x132   :  { %4171 = vmatmul.bf16.gmra.mxu1 %v5928_v3  ;;  %v6213_v3 = vld [vmem:[%s10665_s0 + $0x650] sm:$0xf0]  ;;  %v6219_v35 = vld [vmem:[%s10665_s0 + $0x5c8] sm:$0xf]  ;;  %v7658_v38 = vld [vmem:[%s10665_s0 + $0x5cc] sm:$0xf] }
 0x133   :  { %4214 = vmatmul.bf16.gmra.mxu2 %v5932_v39  ;;  %v6221_v39 = vld [vmem:[%s10665_s0 + $0x658] sm:$0xf0] }
 0x134   :  { %4257 = vmatmul.bf16.gmra.mxu3 %v5936_v40  ;;  %4449 = vmatpush.bf16.msra.mxu0 %v7824_v54 }
 0x136   :  { %v4038_v45 = vpop.f32.mrf.mxu2  ;;  %v3954_v47 = vpop.f32.mrf.mxu0 }
 0x137   :  { %v4081_v46 = vpop.f32.mrf.mxu3  ;;  %v4039_v25 = vadd.f32 %v4038_v45, %v3996_v44  ;;  %v3997_v48 = vpop.f32.mrf.mxu1  ;;  %v3955_v49 = vadd.f32 %v3954_v47, %v8595_v23  ;;  %v7810_v23 = vld [vmem:[%s10664_s1 + $0x3c8] sm:$0xff]  ;;  %v6212_v44 = vor.u32 %v7675_v31, %v6211_v30  ;;  %v6216_v45 = vor.u32 %v7657_v34, %v6213_v3 }
 0x138   :  { %4412 = vmatpush.bf16.msrb.mxu3 %v7810_v23  ;;  %v7848_v23 = vld [vmem:[%s10664_s1 + $0x4f8] sm:$0xff] }
 0x139   :  { %v8835_v50 = vadd.f32 %v4081_v46, %v4039_v25  ;;  %v3998_v53 = vadd.f32 %v3997_v48, %v3955_v49  ;;  %v6220_v48 = vor.u32 %v7676_v36, %v6219_v35  ;;  %v6224_v49 = vor.u32 %v7658_v38, %v6221_v39  ;;  %v5507_v39 = vld [vmem:[%s10665_s0 + $0x30] sm:$0xf] }
 0x13c   :  { %4413 = vmatpush.bf16.msrb.mxu3 %v7809_v28  ;;  %v7823_v28 = vld [vmem:[%s10664_s1 + $0x430] sm:$0xff] }
 0x13d   :  { %4450 = vmatpush.bf16.msra.mxu0 %v7823_v28 }
 0x13e   :  { %v4040_v2 = vpop.f32.mrf.mxu2  ;;  %v3957_v11 = vpop.f32.mrf.mxu0 }
 0x13f   :  { %v4083_v5 = vpop.f32.mrf.mxu3  ;;  %v4041_v10 = vadd.f32 %v4040_v2, %v3998_v53  ;;  %v4000_v12 = vpop.f32.mrf.mxu1  ;;  %v3958_v15 = vadd.f32 %v3957_v11, %v8600_v32  ;;  %v7840_v53 = vld [vmem:[%s10664_s1 + $0x4b8] sm:$0xff]  ;;  %v1503_v11 = vunpack.c.l.b16 %v238_v1 }
 0x140   :  { %4535 = vmatpush.bf16.msra.mxu2 %v7840_v53  ;;  %4578 = vmatpush.bf16.msra.mxu3 %v7848_v23 }
 0x141   :  { %v8874_v16 = vadd.f32 %v4083_v5, %v4041_v10  ;;  %v4001_v17 = vadd.f32 %v4000_v12, %v3958_v15  ;;  %4133 = vmatmul.bf16.gmra.mxu0 %v6068_v8  ;;  %v7832_v5 = vld [vmem:[%s10664_s1 + $0x478] sm:$0xff]  ;;  %v1502_v10 = vunpack.c.h.b16 %v237_v62  ;;  %v1504_v12 = vunpack.c.h.b16 %v238_v1 }
 0x142   :  { %4176 = vmatmul.bf16.gmra.mxu1 %v6072_v9  ;;  %v1501_v9 = vunpack.c.l.b16 %v237_v62  ;;  %v7822_v62 = vld [vmem:[%s10664_s1 + $0x428] sm:$0xff] }
 0x143   :  { %4219 = vmatmul.bf16.gmra.mxu2 %v6076_v13  ;;  %4451 = vmatpush.bf16.msra.mxu0 %v7822_v62 }
 0x144   :  { %4262 = vmatmul.bf16.gmra.mxu3 %v6080_v14  ;;  %v1753_v15 = vpack.c.b16 %v1501_v9, %v1501_v9  ;;  %4536 = vmatpush.bf16.msra.mxu2 %v7839_v27 }
 0x146   :  { %v4043_v19 = vpop.f32.mrf.mxu2  ;;  %v3959_v21 = vpop.f32.mrf.mxu0 }
 0x147   :  { %v4086_v56 = vpop.f32.mrf.mxu3  ;;  %v4044_v20 = vadd.f32 %v4043_v19, %v4001_v17  ;;  %v4002_v24 = vpop.f32.mrf.mxu1  ;;  %v3960_v26 = vadd.f32 %v3959_v21, %v8635_v55  ;;  %v7793_v55 = vld [vmem:[%s10664_s1 + $0x340] sm:$0xff] }
 0x148   :  { %4327 = vmatpush.bf16.msrb.mxu1 %v7793_v55 }
 0x149   :  { %v8880_v32 = vadd.f32 %v4086_v56, %v4044_v20  ;;  %v4003_v29 = vadd.f32 %v4002_v24, %v3960_v26  ;;  %v1755_v56 = vpack.c.b16 %v1503_v11, %v1503_v11  ;;  %v1756_v20 = vpack.c.b16 %v1504_v12, %v1504_v12  ;;  %v5651_v12 = vld [vmem:[%s10665_s0 + $0x150] sm:$0xf] }
 0x14c   :  { %4492 = vmatpush.bf16.msra.mxu1 %v7832_v5 }
 0x14e   :  { %v4045_v40 = vpop.f32.mrf.mxu2  ;;  %v3962_v25 = vpop.f32.mrf.mxu0 }
 0x14f   :  { %v4088_v42 = vpop.f32.mrf.mxu3  ;;  %v4046_v46 = vadd.f32 %v4045_v40, %v4003_v29  ;;  %v4005_v47 = vpop.f32.mrf.mxu1  ;;  %v3963_v63 = vadd.f32 %v3962_v25, %v8652_v6  ;;  %v7847_v29 = vld [vmem:[%s10664_s1 + $0x4f0] sm:$0xff]  ;;  %v7497_v40 = vld [vmem:[%s10665_s0 + $0xbc] sm:$0xf0]  ;;  %v5517_v25 = vld [vmem:[%s10665_s0 + $0xc8] sm:$0xf0] }
 0x150   :  { %4579 = vmatpush.bf16.msra.mxu3 %v7847_v29 }
 0x151   :  { %v8916_v51 = vadd.f32 %v4088_v42, %v4046_v46  ;;  %v4006_v52 = vadd.f32 %v4005_v47, %v3963_v63  ;;  %4138 = vmatmul.bf16.gmra.mxu0 %v6212_v44  ;;  %v7479_v42 = vld [vmem:[%s10665_s0 + $0x34] sm:$0xf]  ;;  %v5509_v44 = vld [vmem:[%s10665_s0 + $0xc0] sm:$0xf0]  ;;  %v7480_v46 = vld [vmem:[%s10665_s0 + $0x3c] sm:$0xf] }
 0x152   :  { %4181 = vmatmul.bf16.gmra.mxu1 %v6216_v45  ;;  %v7498_v45 = vld [vmem:[%s10665_s0 + $0xc4] sm:$0xf0]  ;;  %v5512_v63 = vor.u32 %v7479_v42, %v5509_v44 }
 0x153   :  { %4224 = vmatmul.bf16.gmra.mxu2 %v6220_v48 }
 0x154   :  { %4267 = vmatmul.bf16.gmra.mxu3 %v6224_v49  ;;  %v5508_v49 = vor.u32 %v7497_v40, %v5507_v39 }
 0x156   :  { %v4048_v6 = vpop.f32.mrf.mxu2  ;;  %v3964_v60 = vpop.f32.mrf.mxu0 }
 0x157   :  { %v4091_v57 = vpop.f32.mrf.mxu3  ;;  %v4049_v59 = vadd.f32 %v4048_v6, %v4006_v52  ;;  %v4007_v61 = vpop.f32.mrf.mxu1  ;;  %v3965_v0 = vadd.f32 %v3964_v60, %v8657_v22  ;;  %v1754_v22 = vpack.c.b16 %v1502_v10, %v1502_v10  ;;  %v5520_v6 = vor.u32 %v7480_v46, %v5517_v25  ;;  %v7838_v60 = vld [vmem:[%s10664_s1 + $0x4a8] sm:$0xff]  ;;  %v7569_v46 = vld [vmem:[%s10665_s0 + $0x2fc] sm:$0xf0] }
 0x158   :  { %4537 = vmatpush.bf16.msra.mxu2 %v7838_v60 }
 0x159   :  { %v8934_v2 = vadd.f32 %v4091_v57, %v4049_v59  ;;  %v4008_v8 = vadd.f32 %v4007_v61, %v3965_v0  ;;  %v7846_v0 = vld [vmem:[%s10664_s1 + $0x4e8] sm:$0xff] }
 0x15a   :  { %4580 = vmatpush.bf16.msra.mxu3 %v7846_v0 }
 0x15e   :  { %v4050_v13 = vpop.f32.mrf.mxu2  ;;  %v3967_v18 = vpop.f32.mrf.mxu0 }
 0x15f   :  { %v4093_v14 = vpop.f32.mrf.mxu3  ;;  %v4051_v17 = vadd.f32 %v4050_v13, %v4008_v8  ;;  %v4010_v19 = vpop.f32.mrf.mxu1  ;;  %v3968_v21 = vadd.f32 %v3967_v18, %v8671_v37  ;;  %v7831_v37 = vld [vmem:[%s10664_s1 + $0x470] sm:$0xff]  ;;  %v7533_v13 = vld [vmem:[%s10665_s0 + $0x1dc] sm:$0xf0]  ;;  %v7534_v18 = vld [vmem:[%s10665_s0 + $0x1e4] sm:$0xf0] }
 0x160   :  { %4493 = vmatpush.bf16.msra.mxu1 %v7831_v37 }
 0x161   :  { %v8940_v24 = vadd.f32 %v4093_v14, %v4051_v17  ;;  %v4011_v26 = vadd.f32 %v4010_v19, %v3968_v21  ;;  %4143 = vmatmul.bf16.gmra.mxu0 %v1753_v15  ;;  %v7837_v14 = vld [vmem:[%s10664_s1 + $0x4a0] sm:$0xff]  ;;  %v7515_v15 = vld [vmem:[%s10665_s0 + $0x154] sm:$0xf]  ;;  %v5659_v17 = vld [vmem:[%s10665_s0 + $0x158] sm:$0xf] }
 0x162   :  { %4186 = vmatmul.bf16.gmra.mxu1 %v1754_v22  ;;  %v5653_v22 = vld [vmem:[%s10665_s0 + $0x1e0] sm:$0xf0]  ;;  %v7516_v19 = vld [vmem:[%s10665_s0 + $0x15c] sm:$0xf]  ;;  %4538 = vmatpush.bf16.msra.mxu2 %v7837_v14  ;;  %v5660_v37 = vor.u32 %v7534_v18, %v5659_v17 }
 0x163   :  { %4229 = vmatmul.bf16.gmra.mxu2 %v1755_v56  ;;  %v5661_v56 = vld [vmem:[%s10665_s0 + $0x1e8] sm:$0xf0]  ;;  %v5656_v27 = vor.u32 %v7515_v15, %v5653_v22 }
 0x164   :  { %4272 = vmatmul.bf16.gmra.mxu3 %v1756_v20 }
 0x166   :  { %v4053_v30 = vpop.f32.mrf.mxu2  ;;  %v3969_v34 = vpop.f32.mrf.mxu0 }
 0x167   :  { %v4096_v31 = vpop.f32.mrf.mxu3  ;;  %v4054_v55 = vadd.f32 %v4053_v30, %v4011_v26  ;;  %v4012_v3 = vpop.f32.mrf.mxu1  ;;  %v3970_v35 = vadd.f32 %v3969_v34, %v8697_v58  ;;  %v5515_v58 = vld [vmem:[%s10665_s0 + $0x38] sm:$0xf]  ;;  %v5652_v26 = vor.u32 %v7533_v13, %v5651_v12  ;;  %v5664_v30 = vor.u32 %v7516_v19, %v5661_v56  ;;  %v7845_v34 = vld [vmem:[%s10664_s1 + $0x4e0] sm:$0xff]  ;;  %v5939_v19 = vld [vmem:[%s10665_s0 + $0x390] sm:$0xf] }
 0x168   :  { %v5516_v23 = vor.u32 %v7498_v45, %v5515_v58  ;;  %4581 = vmatpush.bf16.msra.mxu3 %v7845_v34  ;;  %v5795_v45 = vld [vmem:[%s10665_s0 + $0x270] sm:$0xf]  ;;  %v7605_v56 = vld [vmem:[%s10665_s0 + $0x41c] sm:$0xf0] }
 0x169   :  { %v8955_v36 = vadd.f32 %v4096_v31, %v4054_v55  ;;  %v4013_v38 = vadd.f32 %v4012_v3, %v3970_v35  ;;  %v7821_v55 = vld [vmem:[%s10664_s1 + $0x420] sm:$0xff]  ;;  %v5796_v60 = vor.u32 %v7569_v46, %v5795_v45 }
 0x16a   :  { %v7829_v35 = vld [vmem:[%s10664_s1 + $0x460] sm:$0xff]  ;;  %4452 = vmatpush.bf16.msra.mxu0 %v7821_v55  ;;  %v5949_v55 = vld [vmem:[%s10665_s0 + $0x428] sm:$0xf0] }
 0x16e   :  { %v4055_v47 = vpop.f32.mrf.mxu2  ;;  %v3972_v53 = vpop.f32.mrf.mxu0 }
 0x16f   :  { %v4098_v48 = vpop.f32.mrf.mxu3  ;;  %v4056_v52 = vadd.f32 %v4055_v47, %v4013_v38  ;;  %v4015_v54 = vpop.f32.mrf.mxu1  ;;  %v3973_v57 = vadd.f32 %v3972_v53, %v8711_v7  ;;  %v7830_v7 = vld [vmem:[%s10664_s1 + $0x468] sm:$0xff]  ;;  %v7836_v47 = vld [vmem:[%s10664_s1 + $0x498] sm:$0xff] }
 0x170   :  { %4494 = vmatpush.bf16.msra.mxu1 %v7830_v7  ;;  %v7570_v53 = vld [vmem:[%s10665_s0 + $0x304] sm:$0xf0]  ;;  %4539 = vmatpush.bf16.msra.mxu2 %v7836_v47 }
 0x171   :  { %v8982_v59 = vadd.f32 %v4098_v48, %v4056_v52  ;;  %v4016_v61 = vadd.f32 %v4015_v54, %v3973_v57  ;;  %4285 = vmatmul.bf16.vlgmr.msrb.gmra.mxu0 %v5508_v49  ;;  %v7820_v48 = vld [vmem:[%s10664_s1 + $0x418] sm:$0xff]  ;;  %v7551_v49 = vld [vmem:[%s10665_s0 + $0x274] sm:$0xf] }
 0x172   :  { %4328 = vmatmul.bf16.vlgmr.msrb.gmra.mxu1 %v5512_v63  ;;  %v5797_v63 = vld [vmem:[%s10665_s0 + $0x300] sm:$0xf0]  ;;  %v5803_v52 = vld [vmem:[%s10665_s0 + $0x278] sm:$0xf]  ;;  %v7552_v54 = vld [vmem:[%s10665_s0 + $0x27c] sm:$0xf]  ;;  %4453 = vmatpush.bf16.msra.mxu0 %v7820_v48 }
 0x173   :  { %4371 = vmatmul.bf16.vlgmr.msrb.gmra.mxu2 %v5516_v23  ;;  %v5805_v23 = vld [vmem:[%s10665_s0 + $0x308] sm:$0xf0] }
 0x174   :  { %4414 = vmatmul.bf16.vlgmr.msrb.gmra.mxu3 %v5520_v6  ;;  %4495 = vmatpush.bf16.msra.mxu1 %v7829_v35  ;;  %v5940_v35 = vor.u32 %v7605_v56, %v5939_v19 }
 0x176   :  { %v4058_v1 = vpop.f32.mrf.mxu2  ;;  %v3974_v9 = vpop.f32.mrf.mxu0 }
 0x177   :  { %v4101_v5 = vpop.f32.mrf.mxu3  ;;  %v4059_v8 = vadd.f32 %v4058_v1, %v4016_v61  ;;  %v4017_v10 = vpop.f32.mrf.mxu1  ;;  %v5800_v61 = vor.u32 %v7551_v49, %v5797_v63  ;;  %v5804_v1 = vor.u32 %v7570_v53, %v5803_v52 }
 0x178   :  { %v7828_v10 = vld [vmem:[%s10664_s1 + $0x458] sm:$0xff] }
 0x179   :  { %v8996_v11 = vadd.f32 %v4101_v5, %v4059_v8  ;;  %v5808_v5 = vor.u32 %v7552_v54, %v5805_v23  ;;  %4496 = vmatpush.bf16.msra.mxu1 %v7828_v10  ;;  %v7641_v54 = vld [vmem:[%s10665_s0 + $0x53c] sm:$0xf0]  ;;  %v7834_v23 = vld [vmem:[%s10664_s1 + $0x488] sm:$0xff] }
 0x17e   :  { %v4060_v20 = vpop.f32.mrf.mxu2  ;;  %v4114_v28 = vpop.f32.mrf.mxu0 }
 0x17f   :  { %v4103_v21 = vpop.f32.mrf.mxu3  ;;  %v4157_v29 = vpop.f32.mrf.mxu1  ;;  %v4115_v31 = vadd.f32 %v4114_v28, %v8751_v41  ;;  %v7587_v20 = vld [vmem:[%s10665_s0 + $0x394] sm:$0xf]  ;;  %v5941_v28 = vld [vmem:[%s10665_s0 + $0x420] sm:$0xf0] }
 0x181   :  { %v4158_v3 = vadd.f32 %v4157_v29, %v4115_v31  ;;  %4290 = vmatmul.bf16.gmra.mxu0 %v5652_v26  ;;  %v7835_v26 = vld [vmem:[%s10664_s1 + $0x490] sm:$0xff]  ;;  %v5947_v29 = vld [vmem:[%s10665_s0 + $0x398] sm:$0xf]  ;;  %v7588_v31 = vld [vmem:[%s10665_s0 + $0x39c] sm:$0xf] }
 0x182   :  { %4333 = vmatmul.bf16.gmra.mxu1 %v5656_v27  ;;  %v7843_v27 = vld [vmem:[%s10664_s1 + $0x4d0] sm:$0xff]  ;;  %4540 = vmatpush.bf16.msra.mxu2 %v7835_v26 }
 0x183   :  { %4376 = vmatmul.bf16.gmra.mxu2 %v5660_v37  ;;  %v7827_v37 = vld [vmem:[%s10664_s1 + $0x450] sm:$0xff] }
 0x184   :  { %4419 = vmatmul.bf16.gmra.mxu3 %v5664_v30  ;;  %v7606_v30 = vld [vmem:[%s10665_s0 + $0x424] sm:$0xf0]  ;;  %4497 = vmatpush.bf16.msra.mxu1 %v7827_v37 }
 0x186   :  { %v4200_v41 = vpop.f32.mrf.mxu2  ;;  %v4116_v40 = vpop.f32.mrf.mxu0  ;;  %4541 = vmatpush.bf16.msra.mxu2 %v7834_v23 }
 0x187   :  { %v4243_v38 = vpop.f32.mrf.mxu3  ;;  %v4201_v39 = vadd.f32 %v4200_v41, %v4158_v3  ;;  %v4159_v42 = vpop.f32.mrf.mxu1  ;;  %v4117_v44 = vadd.f32 %v4116_v40, %v8787_v4  ;;  %v7844_v4 = vld [vmem:[%s10664_s1 + $0x4d8] sm:$0xff]  ;;  %v5944_v41 = vor.u32 %v7587_v20, %v5941_v28 }
 0x188   :  { %4582 = vmatpush.bf16.msra.mxu3 %v7844_v4 }
 0x189   :  { %v9036_v58 = vadd.f32 %v4243_v38, %v4201_v39  ;;  %v4160_v25 = vadd.f32 %v4159_v42, %v4117_v44  ;;  %v5948_v42 = vor.u32 %v7606_v30, %v5947_v29  ;;  %v5952_v44 = vor.u32 %v7588_v31, %v5949_v55  ;;  %v7817_v30 = vld [vmem:[%s10664_s1 + $0x400] sm:$0xff] }
 0x18a   :  { %v7841_v31 = vld [vmem:[%s10664_s1 + $0x4c0] sm:$0xff] }
 0x18c   :  { %4583 = vmatpush.bf16.msra.mxu3 %v7843_v27 }
 0x18e   :  { %v4202_v6 = vpop.f32.mrf.mxu2  ;;  %v4119_v0 = vpop.f32.mrf.mxu0 }
 0x18f   :  { %v4245_v57 = vpop.f32.mrf.mxu3  ;;  %v4203_v62 = vadd.f32 %v4202_v6, %v4160_v25  ;;  %v4162_v7 = vpop.f32.mrf.mxu1  ;;  %v4120_v8 = vadd.f32 %v4119_v0, %v8793_v33  ;;  %v6091_v0 = vld [vmem:[%s10665_s0 + $0x4b8] sm:$0xf] }
 0x191   :  { %v9072_v9 = vadd.f32 %v4245_v57, %v4203_v62  ;;  %v4163_v12 = vadd.f32 %v4162_v7, %v4120_v8  ;;  %4295 = vmatmul.bf16.gmra.mxu0 %v5796_v60  ;;  %v7818_v57 = vld [vmem:[%s10664_s1 + $0x408] sm:$0xff]  ;;  %v6085_v62 = vld [vmem:[%s10665_s0 + $0x540] sm:$0xf0] }
 0x192   :  { %4338 = vmatmul.bf16.gmra.mxu1 %v5800_v61  ;;  %v7826_v60 = vld [vmem:[%s10664_s1 + $0x448] sm:$0xff]  ;;  %v7623_v61 = vld [vmem:[%s10665_s0 + $0x4b4] sm:$0xf] }
 0x193   :  { %4381 = vmatmul.bf16.gmra.mxu2 %v5804_v1  ;;  %v7642_v7 = vld [vmem:[%s10665_s0 + $0x544] sm:$0xf0]  ;;  %v7624_v1 = vld [vmem:[%s10665_s0 + $0x4bc] sm:$0xf]  ;;  %4498 = vmatpush.bf16.msra.mxu1 %v7826_v60 }
 0x194   :  { %4424 = vmatmul.bf16.gmra.mxu3 %v5808_v5  ;;  %v6093_v5 = vld [vmem:[%s10665_s0 + $0x548] sm:$0xf0] }
 0x196   :  { %v4205_v13 = vpop.f32.mrf.mxu2  ;;  %v4121_v22 = vpop.f32.mrf.mxu0 }
 0x197   :  { %v4248_v14 = vpop.f32.mrf.mxu3  ;;  %v4206_v15 = vadd.f32 %v4205_v13, %v4163_v12  ;;  %v4164_v17 = vpop.f32.mrf.mxu1  ;;  %v4122_v18 = vadd.f32 %v4121_v22, %v8832_v43  ;;  %v7819_v43 = vld [vmem:[%s10664_s1 + $0x410] sm:$0xff]  ;;  %v6088_v13 = vor.u32 %v7623_v61, %v6085_v62 }
 0x198   :  { %4454 = vmatpush.bf16.msra.mxu0 %v7819_v43 }
 0x199   :  { %v9078_v33 = vadd.f32 %v4248_v14, %v4206_v15  ;;  %v4165_v21 = vadd.f32 %v4164_v17, %v4122_v18  ;;  %v6092_v17 = vor.u32 %v7642_v7, %v6091_v0  ;;  %v6096_v18 = vor.u32 %v7624_v1, %v6093_v5  ;;  %v239_v7 = vld [vmem:[%s10665_s0 + $0x6f0] sm:$0x11]  ;;  %v240_v5 = vld [vmem:[%s10665_s0 + $0x6f8] sm:$0x11] }
 0x19c   :  { %4455 = vmatpush.bf16.msra.mxu0 %v7818_v57  ;;  %v7856_v57 = vld [vmem:[%s10664_s1 + $0x538] sm:$0xff] }
 0x19e   :  { %v4207_v34 = vpop.f32.mrf.mxu2  ;;  %v4124_v39 = vpop.f32.mrf.mxu0 }
 0x19f   :  { %v4250_v3 = vpop.f32.mrf.mxu3  ;;  %v4208_v38 = vadd.f32 %v4207_v34, %v4165_v21  ;;  %v4167_v40 = vpop.f32.mrf.mxu1  ;;  %v4125_v45 = vadd.f32 %v4124_v39, %v8835_v50  ;;  %v6083_v50 = vld [vmem:[%s10665_s0 + $0x4b0] sm:$0xf]  ;;  %v7833_v21 = vld [vmem:[%s10664_s1 + $0x480] sm:$0xff]  ;;  %v7678_v39 = vld [vmem:[%s10665_s0 + $0x664] sm:$0xf0] }
 0x1a0   :  { %v6084_v12 = vor.u32 %v7641_v54, %v6083_v50  ;;  %4542 = vmatpush.bf16.msra.mxu2 %v7833_v21  ;;  %v6227_v34 = vld [vmem:[%s10665_s0 + $0x5d0] sm:$0xf]  ;;  %4456 = vmatpush.bf16.msra.mxu0 %v7817_v30 }
 0x1a1   :  { %v9117_v46 = vadd.f32 %v4250_v3, %v4208_v38  ;;  %v4168_v25 = vadd.f32 %v4167_v40, %v4125_v45  ;;  %4300 = vmatmul.bf16.gmra.mxu0 %v5940_v35  ;;  %v7677_v3 = vld [vmem:[%s10665_s0 + $0x65c] sm:$0xf0]  ;;  %v7659_v35 = vld [vmem:[%s10665_s0 + $0x5d4] sm:$0xf]  ;;  %v6235_v38 = vld [vmem:[%s10665_s0 + $0x5d8] sm:$0xf] }
 0x1a2   :  { %4343 = vmatmul.bf16.gmra.mxu1 %v5944_v41  ;;  %v6229_v41 = vld [vmem:[%s10665_s0 + $0x660] sm:$0xf0]  ;;  %v7660_v40 = vld [vmem:[%s10665_s0 + $0x5dc] sm:$0xf]  ;;  %v7871_v30 = vld [vmem:[%s10664_s1 + $0x5b0] sm:$0xff] }
 0x1a3   :  { %4386 = vmatmul.bf16.gmra.mxu2 %v5948_v42  ;;  %v6237_v42 = vld [vmem:[%s10665_s0 + $0x668] sm:$0xf0] }
 0x1a4   :  { %4429 = vmatmul.bf16.gmra.mxu3 %v5952_v44  ;;  %4621 = vmatpush.bf16.msrb.mxu0 %v7856_v57 }
 0x1a6   :  { %v4210_v47 = vpop.f32.mrf.mxu2  ;;  %v4126_v49 = vpop.f32.mrf.mxu0 }
 0x1a7   :  { %v4253_v48 = vpop.f32.mrf.mxu3  ;;  %v4211_v4 = vadd.f32 %v4210_v47, %v4168_v25  ;;  %v4169_v63 = vpop.f32.mrf.mxu1  ;;  %v4127_v52 = vadd.f32 %v4126_v49, %v8874_v16  ;;  %v7842_v16 = vld [vmem:[%s10664_s1 + $0x4c8] sm:$0xff]  ;;  %v6228_v25 = vor.u32 %v7677_v3, %v6227_v34  ;;  %v6232_v47 = vor.u32 %v7659_v35, %v6229_v41 }
 0x1a8   :  { %4584 = vmatpush.bf16.msra.mxu3 %v7842_v16  ;;  %v7880_v16 = vld [vmem:[%s10664_s1 + $0x5f8] sm:$0xff] }
 0x1a9   :  { %v9120_v53 = vadd.f32 %v4253_v48, %v4211_v4  ;;  %v4170_v6 = vadd.f32 %v4169_v63, %v4127_v52  ;;  %v6236_v63 = vor.u32 %v7678_v39, %v6235_v38  ;;  %v6240_v52 = vor.u32 %v7660_v40, %v6237_v42  ;;  %v5523_v42 = vld [vmem:[%s10665_s0 + $0x40] sm:$0xf] }
 0x1ac   :  { %4585 = vmatpush.bf16.msra.mxu3 %v7841_v31  ;;  %v7855_v31 = vld [vmem:[%s10664_s1 + $0x530] sm:$0xff] }
 0x1ad   :  { %4622 = vmatpush.bf16.msrb.mxu0 %v7855_v31 }
 0x1ae   :  { %v4212_v8 = vpop.f32.mrf.mxu2  ;;  %v4129_v15 = vpop.f32.mrf.mxu0 }
 0x1af   :  { %v4255_v10 = vpop.f32.mrf.mxu3  ;;  %v4213_v14 = vadd.f32 %v4212_v8, %v4170_v6  ;;  %v4172_v22 = vpop.f32.mrf.mxu1  ;;  %v4130_v19 = vadd.f32 %v4129_v15, %v8880_v32  ;;  %v7872_v6 = vld [vmem:[%s10664_s1 + $0x5b8] sm:$0xff]  ;;  %v1507_v15 = vunpack.c.l.b16 %v240_v5 }
 0x1b0   :  { %4707 = vmatpush.bf16.msrb.mxu2 %v7872_v6  ;;  %4750 = vmatpush.bf16.msrb.mxu3 %v7880_v16 }
 0x1b1   :  { %v9159_v56 = vadd.f32 %v4255_v10, %v4213_v14  ;;  %v4173_v20 = vadd.f32 %v4172_v22, %v4130_v19  ;;  %4305 = vmatmul.bf16.gmra.mxu0 %v6084_v12  ;;  %v7864_v10 = vld [vmem:[%s10664_s1 + $0x578] sm:$0xff]  ;;  %v1506_v14 = vunpack.c.h.b16 %v239_v7  ;;  %v1508_v22 = vunpack.c.h.b16 %v240_v5 }
 0x1b2   :  { %4348 = vmatmul.bf16.gmra.mxu1 %v6088_v13  ;;  %v1505_v13 = vunpack.c.l.b16 %v239_v7  ;;  %v7854_v7 = vld [vmem:[%s10664_s1 + $0x528] sm:$0xff] }
 0x1b3   :  { %4391 = vmatmul.bf16.gmra.mxu2 %v6092_v17  ;;  %4623 = vmatpush.bf16.msrb.mxu0 %v7854_v7 }
 0x1b4   :  { %4434 = vmatmul.bf16.gmra.mxu3 %v6096_v18  ;;  %v1757_v19 = vpack.c.b16 %v1505_v13, %v1505_v13  ;;  %4708 = vmatpush.bf16.msrb.mxu2 %v7871_v30 }
 0x1b6   :  { %v4215_v26 = vpop.f32.mrf.mxu2  ;;  %v4131_v28 = vpop.f32.mrf.mxu0 }
 0x1b7   :  { %v4258_v43 = vpop.f32.mrf.mxu3  ;;  %v4216_v27 = vadd.f32 %v4215_v26, %v4173_v20  ;;  %v4174_v29 = vpop.f32.mrf.mxu1  ;;  %v4132_v37 = vadd.f32 %v4131_v28, %v8916_v51  ;;  %v7825_v51 = vld [vmem:[%s10664_s1 + $0x440] sm:$0xff] }
 0x1b8   :  { %4499 = vmatpush.bf16.msra.mxu1 %v7825_v51 }
 0x1b9   :  { %v9165_v32 = vadd.f32 %v4258_v43, %v4216_v27  ;;  %v4175_v55 = vadd.f32 %v4174_v29, %v4132_v37  ;;  %v1759_v43 = vpack.c.b16 %v1507_v15, %v1507_v15  ;;  %v1760_v27 = vpack.c.b16 %v1508_v22, %v1508_v22  ;;  %v5667_v22 = vld [vmem:[%s10665_s0 + $0x160] sm:$0xf] }
 0x1bc   :  { %4664 = vmatpush.bf16.msrb.mxu1 %v7864_v10 }
 0x1be   :  { %v4217_v44 = vpop.f32.mrf.mxu2  ;;  %v4134_v4 = vpop.f32.mrf.mxu0 }
 0x1bf   :  { %v4260_v45 = vpop.f32.mrf.mxu3  ;;  %v4218_v48 = vadd.f32 %v4217_v44, %v4175_v55  ;;  %v4177_v49 = vpop.f32.mrf.mxu1  ;;  %v4135_v50 = vadd.f32 %v4134_v4, %v8934_v2  ;;  %v7879_v55 = vld [vmem:[%s10664_s1 + $0x5f0] sm:$0xff]  ;;  %v5533_v4 = vld [vmem:[%s10665_s0 + $0xd8] sm:$0xf0] }
 0x1c0   :  { %4751 = vmatpush.bf16.msrb.mxu3 %v7879_v55  ;;  %v7499_v44 = vld [vmem:[%s10665_s0 + $0xcc] sm:$0xf0] }
 0x1c1   :  { %v9201_v54 = vadd.f32 %v4260_v45, %v4218_v48  ;;  %v4178_v23 = vadd.f32 %v4177_v49, %v4135_v50  ;;  %4310 = vmatmul.bf16.gmra.mxu0 %v6228_v25  ;;  %v7481_v45 = vld [vmem:[%s10665_s0 + $0x44] sm:$0xf]  ;;  %v5525_v25 = vld [vmem:[%s10665_s0 + $0xd0] sm:$0xf0]  ;;  %v7482_v48 = vld [vmem:[%s10665_s0 + $0x4c] sm:$0xf] }
 0x1c2   :  { %4353 = vmatmul.bf16.gmra.mxu1 %v6232_v47  ;;  %v7500_v47 = vld [vmem:[%s10665_s0 + $0xd4] sm:$0xf0]  ;;  %v5528_v50 = vor.u32 %v7481_v45, %v5525_v25 }
 0x1c3   :  { %4396 = vmatmul.bf16.gmra.mxu2 %v6236_v63 }
 0x1c4   :  { %4439 = vmatmul.bf16.gmra.mxu3 %v6240_v52  ;;  %v5524_v52 = vor.u32 %v7499_v44, %v5523_v42 }
 0x1c6   :  { %v4220_v2 = vpop.f32.mrf.mxu2  ;;  %v4136_v62 = vpop.f32.mrf.mxu0 }
 0x1c7   :  { %v4263_v60 = vpop.f32.mrf.mxu3  ;;  %v4221_v61 = vadd.f32 %v4220_v2, %v4178_v23  ;;  %v4179_v0 = vpop.f32.mrf.mxu1  ;;  %v4137_v1 = vadd.f32 %v4136_v62, %v8940_v24  ;;  %v1758_v24 = vpack.c.b16 %v1506_v14, %v1506_v14  ;;  %v5536_v2 = vor.u32 %v7482_v48, %v5533_v4  ;;  %v7870_v62 = vld [vmem:[%s10664_s1 + $0x5a8] sm:$0xff]  ;;  %v7571_v48 = vld [vmem:[%s10665_s0 + $0x30c] sm:$0xf0] }
 0x1c8   :  { %4709 = vmatpush.bf16.msrb.mxu2 %v7870_v62 }
 0x1c9   :  { %v9219_v8 = vadd.f32 %v4263_v60, %v4221_v61  ;;  %v4180_v12 = vadd.f32 %v4179_v0, %v4137_v1  ;;  %v7878_v1 = vld [vmem:[%s10664_s1 + $0x5e8] sm:$0xff] }
 0x1ca   :  { %4752 = vmatpush.bf16.msrb.mxu3 %v7878_v1 }
 0x1ce   :  { %v4222_v17 = vpop.f32.mrf.mxu2  ;;  %v4139_v21 = vpop.f32.mrf.mxu0 }
 0x1cf   :  { %v4265_v18 = vpop.f32.mrf.mxu3  ;;  %v4223_v20 = vadd.f32 %v4222_v17, %v4180_v12  ;;  %v4182_v26 = vpop.f32.mrf.mxu1  ;;  %v4140_v28 = vadd.f32 %v4139_v21, %v8955_v36  ;;  %v7863_v36 = vld [vmem:[%s10664_s1 + $0x570] sm:$0xff]  ;;  %v7536_v21 = vld [vmem:[%s10665_s0 + $0x1f4] sm:$0xf0] }
 0x1d0   :  { %4665 = vmatpush.bf16.msrb.mxu1 %v7863_v36  ;;  %v7535_v17 = vld [vmem:[%s10665_s0 + $0x1ec] sm:$0xf0] }
 0x1d1   :  { %v9225_v29 = vadd.f32 %v4265_v18, %v4223_v20  ;;  %v4183_v37 = vadd.f32 %v4182_v26, %v4140_v28  ;;  %4315 = vmatmul.bf16.gmra.mxu0 %v1757_v19  ;;  %v7869_v18 = vld [vmem:[%s10664_s1 + $0x5a0] sm:$0xff]  ;;  %v5675_v20 = vld [vmem:[%s10665_s0 + $0x168] sm:$0xf]  ;;  %v7518_v26 = vld [vmem:[%s10665_s0 + $0x16c] sm:$0xf] }
 0x1d2   :  { %4358 = vmatmul.bf16.gmra.mxu1 %v1758_v24  ;;  %v7517_v19 = vld [vmem:[%s10665_s0 + $0x164] sm:$0xf]  ;;  %v5669_v24 = vld [vmem:[%s10665_s0 + $0x1f0] sm:$0xf0]  ;;  %4710 = vmatpush.bf16.msrb.mxu2 %v7869_v18  ;;  %v5676_v36 = vor.u32 %v7536_v21, %v5675_v20 }
 0x1d3   :  { %4401 = vmatmul.bf16.gmra.mxu2 %v1759_v43  ;;  %v5677_v43 = vld [vmem:[%s10665_s0 + $0x1f8] sm:$0xf0]  ;;  %v5672_v30 = vor.u32 %v7517_v19, %v5669_v24 }
 0x1d4   :  { %4444 = vmatmul.bf16.gmra.mxu3 %v1760_v27 }
 0x1d6   :  { %v4225_v34 = vpop.f32.mrf.mxu2  ;;  %v4141_v35 = vpop.f32.mrf.mxu0 }
 0x1d7   :  { %v4268_v3 = vpop.f32.mrf.mxu3  ;;  %v4226_v51 = vadd.f32 %v4225_v34, %v4183_v37  ;;  %v4184_v41 = vpop.f32.mrf.mxu1  ;;  %v4142_v38 = vadd.f32 %v4141_v35, %v8982_v59  ;;  %v5531_v59 = vld [vmem:[%s10665_s0 + $0x48] sm:$0xf]  ;;  %v5668_v37 = vor.u32 %v7535_v17, %v5667_v22  ;;  %v5680_v34 = vor.u32 %v7518_v26, %v5677_v43  ;;  %v7877_v35 = vld [vmem:[%s10664_s1 + $0x5e0] sm:$0xff]  ;;  %v7607_v43 = vld [vmem:[%s10665_s0 + $0x42c] sm:$0xf0] }
 0x1d8   :  { %v5532_v16 = vor.u32 %v7500_v47, %v5531_v59  ;;  %4753 = vmatpush.bf16.msrb.mxu3 %v7877_v35  ;;  %v5811_v47 = vld [vmem:[%s10665_s0 + $0x280] sm:$0xf] }
 0x1d9   :  { %v9240_v39 = vadd.f32 %v4268_v3, %v4226_v51  ;;  %v4185_v40 = vadd.f32 %v4184_v41, %v4142_v38  ;;  %v7853_v51 = vld [vmem:[%s10664_s1 + $0x520] sm:$0xff]  ;;  %v5812_v62 = vor.u32 %v7571_v48, %v5811_v47 }
 0x1da   :  { %v7861_v38 = vld [vmem:[%s10664_s1 + $0x560] sm:$0xff]  ;;  %4624 = vmatpush.bf16.msrb.mxu0 %v7853_v51  ;;  %v5965_v51 = vld [vmem:[%s10665_s0 + $0x438] sm:$0xf0] }
 0x1db   :  { %v5955_v26 = vld [vmem:[%s10665_s0 + $0x3a0] sm:$0xf] }
 0x1de   :  { %v4227_v49 = vpop.f32.mrf.mxu2  ;;  %v4144_v6 = vpop.f32.mrf.mxu0 }
 0x1df   :  { %v4270_v63 = vpop.f32.mrf.mxu3  ;;  %v4228_v23 = vadd.f32 %v4227_v49, %v4185_v40  ;;  %v4187_v57 = vpop.f32.mrf.mxu1  ;;  %v4145_v60 = vadd.f32 %v4144_v6, %v8996_v11  ;;  %v7862_v11 = vld [vmem:[%s10664_s1 + $0x568] sm:$0xff]  ;;  %v7868_v49 = vld [vmem:[%s10664_s1 + $0x598] sm:$0xff] }
 0x1e0   :  { %4666 = vmatpush.bf16.msrb.mxu1 %v7862_v11  ;;  %v7572_v6 = vld [vmem:[%s10665_s0 + $0x314] sm:$0xf0]  ;;  %4711 = vmatpush.bf16.msrb.mxu2 %v7868_v49 }
 0x1e1   :  { %v9267_v61 = vadd.f32 %v4270_v63, %v4228_v23  ;;  %v4188_v0 = vadd.f32 %v4187_v57, %v4145_v60  ;;  %4457 = vmatmul.bf16.vlgmr.msra.gmra.mxu0 %v5524_v52  ;;  %v7852_v63 = vld [vmem:[%s10664_s1 + $0x518] sm:$0xff]  ;;  %v7553_v52 = vld [vmem:[%s10665_s0 + $0x284] sm:$0xf]  ;;  %v5819_v23 = vld [vmem:[%s10665_s0 + $0x288] sm:$0xf] }
 0x1e2   :  { %4500 = vmatmul.bf16.vlgmr.msra.gmra.mxu1 %v5528_v50  ;;  %v5813_v50 = vld [vmem:[%s10665_s0 + $0x310] sm:$0xf0]  ;;  %v7554_v57 = vld [vmem:[%s10665_s0 + $0x28c] sm:$0xf]  ;;  %4625 = vmatpush.bf16.msrb.mxu0 %v7852_v63 }
 0x1e3   :  { %4543 = vmatmul.bf16.vlgmr.msra.gmra.mxu2 %v5532_v16  ;;  %v5821_v16 = vld [vmem:[%s10665_s0 + $0x318] sm:$0xf0] }
 0x1e4   :  { %4586 = vmatmul.bf16.vlgmr.msra.gmra.mxu3 %v5536_v2  ;;  %4667 = vmatpush.bf16.msrb.mxu1 %v7861_v38  ;;  %v5956_v38 = vor.u32 %v7607_v43, %v5955_v26 }
 0x1e6   :  { %v4230_v5 = vpop.f32.mrf.mxu2  ;;  %v4146_v13 = vpop.f32.mrf.mxu0 }
 0x1e7   :  { %v4273_v10 = vpop.f32.mrf.mxu3  ;;  %v4231_v12 = vadd.f32 %v4230_v5, %v4188_v0  ;;  %v4189_v14 = vpop.f32.mrf.mxu1  ;;  %v5816_v0 = vor.u32 %v7553_v52, %v5813_v50  ;;  %v5820_v5 = vor.u32 %v7572_v6, %v5819_v23 }
 0x1e8   :  { %v7860_v14 = vld [vmem:[%s10664_s1 + $0x558] sm:$0xff] }
 0x1e9   :  { %v9281_v15 = vadd.f32 %v4273_v10, %v4231_v12  ;;  %v5824_v10 = vor.u32 %v7554_v57, %v5821_v16  ;;  %4668 = vmatpush.bf16.msrb.mxu1 %v7860_v14  ;;  %v7643_v57 = vld [vmem:[%s10665_s0 + $0x54c] sm:$0xf0]  ;;  %v7866_v16 = vld [vmem:[%s10664_s1 + $0x588] sm:$0xff] }
 0x1ee   :  { %v4232_v27 = vpop.f32.mrf.mxu2  ;;  %v4286_v31 = vpop.f32.mrf.mxu0 }
 0x1ef   :  { %v4275_v28 = vpop.f32.mrf.mxu3  ;;  %v4329_v55 = vpop.f32.mrf.mxu1  ;;  %v4287_v3 = vadd.f32 %v4286_v31, %v9036_v58  ;;  %v7589_v27 = vld [vmem:[%s10665_s0 + $0x3a4] sm:$0xf]  ;;  %v5957_v31 = vld [vmem:[%s10665_s0 + $0x430] sm:$0xf0] }
 0x1f1   :  { %v4330_v41 = vadd.f32 %v4329_v55, %v4287_v3  ;;  %4462 = vmatmul.bf16.gmra.mxu0 %v5668_v37  ;;  %v7867_v37 = vld [vmem:[%s10664_s1 + $0x590] sm:$0xff]  ;;  %v5963_v55 = vld [vmem:[%s10665_s0 + $0x3a8] sm:$0xf]  ;;  %v7590_v3 = vld [vmem:[%s10665_s0 + $0x3ac] sm:$0xf] }
 0x1f2   :  { %4505 = vmatmul.bf16.gmra.mxu1 %v5672_v30  ;;  %v7875_v30 = vld [vmem:[%s10664_s1 + $0x5d0] sm:$0xff]  ;;  %4712 = vmatpush.bf16.msrb.mxu2 %v7867_v37 }
 0x1f3   :  { %4548 = vmatmul.bf16.gmra.mxu2 %v5676_v36  ;;  %v7859_v36 = vld [vmem:[%s10664_s1 + $0x550] sm:$0xff] }
 0x1f4   :  { %4591 = vmatmul.bf16.gmra.mxu3 %v5680_v34  ;;  %v7608_v34 = vld [vmem:[%s10665_s0 + $0x434] sm:$0xf0]  ;;  %4669 = vmatpush.bf16.msrb.mxu1 %v7859_v36 }
 0x1f6   :  { %v4372_v58 = vpop.f32.mrf.mxu2  ;;  %v4288_v44 = vpop.f32.mrf.mxu0  ;;  %4713 = vmatpush.bf16.msrb.mxu2 %v7866_v16 }
 0x1f7   :  { %v4415_v40 = vpop.f32.mrf.mxu3  ;;  %v4373_v42 = vadd.f32 %v4372_v58, %v4330_v41  ;;  %v4331_v45 = vpop.f32.mrf.mxu1  ;;  %v4289_v25 = vadd.f32 %v4288_v44, %v9072_v9  ;;  %v7876_v9 = vld [vmem:[%s10664_s1 + $0x5d8] sm:$0xff]  ;;  %v5960_v58 = vor.u32 %v7589_v27, %v5957_v31 }
 0x1f8   :  { %4754 = vmatpush.bf16.msrb.mxu3 %v7876_v9 }
 0x1f9   :  { %v9321_v59 = vadd.f32 %v4415_v40, %v4373_v42  ;;  %v4332_v4 = vadd.f32 %v4331_v45, %v4289_v25  ;;  %v5964_v45 = vor.u32 %v7608_v34, %v5963_v55  ;;  %v5968_v25 = vor.u32 %v7590_v3, %v5965_v51  ;;  %v7849_v34 = vld [vmem:[%s10664_s1 + $0x500] sm:$0xff] }
 0x1fa   :  { %v7873_v3 = vld [vmem:[%s10664_s1 + $0x5c0] sm:$0xff] }
 0x1fc   :  { %4755 = vmatpush.bf16.msrb.mxu3 %v7875_v30 }
 0x1fe   :  { %v4374_v2 = vpop.f32.mrf.mxu2  ;;  %v4291_v1 = vpop.f32.mrf.mxu0 }
 0x1ff   :  { %v4417_v60 = vpop.f32.mrf.mxu3  ;;  %v4375_v7 = vadd.f32 %v4374_v2, %v4332_v4  ;;  %v4334_v11 = vpop.f32.mrf.mxu1  ;;  %v4292_v12 = vadd.f32 %v4291_v1, %v9078_v33  ;;  %v6107_v1 = vld [vmem:[%s10665_s0 + $0x4c8] sm:$0xf] }
 0x201   :  { %v9357_v13 = vadd.f32 %v4417_v60, %v4375_v7  ;;  %v4335_v22 = vadd.f32 %v4334_v11, %v4292_v12  ;;  %4467 = vmatmul.bf16.gmra.mxu0 %v5812_v62  ;;  %v7850_v60 = vld [vmem:[%s10664_s1 + $0x508] sm:$0xff]  ;;  %v6101_v7 = vld [vmem:[%s10665_s0 + $0x550] sm:$0xf0]  ;;  %v7644_v11 = vld [vmem:[%s10665_s0 + $0x554] sm:$0xf0] }
 0x202   :  { %4510 = vmatmul.bf16.gmra.mxu1 %v5816_v0  ;;  %v7858_v62 = vld [vmem:[%s10664_s1 + $0x548] sm:$0xff]  ;;  %v7625_v0 = vld [vmem:[%s10665_s0 + $0x4c4] sm:$0xf] }
 0x203   :  { %4553 = vmatmul.bf16.gmra.mxu2 %v5820_v5  ;;  %v7626_v5 = vld [vmem:[%s10665_s0 + $0x4cc] sm:$0xf]  ;;  %4670 = vmatpush.bf16.msrb.mxu1 %v7858_v62 }
 0x204   :  { %4596 = vmatmul.bf16.gmra.mxu3 %v5824_v10  ;;  %v6109_v10 = vld [vmem:[%s10665_s0 + $0x558] sm:$0xf0] }
 0x206   :  { %v4377_v17 = vpop.f32.mrf.mxu2  ;;  %v4293_v24 = vpop.f32.mrf.mxu0 }
 0x207   :  { %v4420_v18 = vpop.f32.mrf.mxu3  ;;  %v4378_v19 = vadd.f32 %v4377_v17, %v4335_v22  ;;  %v4336_v20 = vpop.f32.mrf.mxu1  ;;  %v4294_v21 = vadd.f32 %v4293_v24, %v9117_v46  ;;  %v7851_v46 = vld [vmem:[%s10664_s1 + $0x510] sm:$0xff]  ;;  %v6104_v17 = vor.u32 %v7625_v0, %v6101_v7 }
 0x208   :  { %4626 = vmatpush.bf16.msrb.mxu0 %v7851_v46 }
 0x209   :  { %v9363_v33 = vadd.f32 %v4420_v18, %v4378_v19  ;;  %v4337_v28 = vadd.f32 %v4336_v20, %v4294_v21  ;;  %v6108_v20 = vor.u32 %v7644_v11, %v6107_v1  ;;  %v6112_v21 = vor.u32 %v7626_v5, %v6109_v10  ;;  %v241_v11 = vld [vmem:[%s10665_s0 + $0x700] sm:$0x11]  ;;  %v242_v10 = vld [vmem:[%s10665_s0 + $0x708] sm:$0x11] }
 0x20c   :  { %4627 = vmatpush.bf16.msrb.mxu0 %v7850_v60  ;;  %v7888_v60 = vld [vmem:[%s10664_s1 + $0x638] sm:$0xff] }
 0x20e   :  { %v4379_v35 = vpop.f32.mrf.mxu2  ;;  %v4296_v42 = vpop.f32.mrf.mxu0 }
 0x20f   :  { %v4422_v41 = vpop.f32.mrf.mxu3  ;;  %v4380_v40 = vadd.f32 %v4379_v35, %v4337_v28  ;;  %v4339_v44 = vpop.f32.mrf.mxu1  ;;  %v4297_v47 = vadd.f32 %v4296_v42, %v9120_v53  ;;  %v6099_v53 = vld [vmem:[%s10665_s0 + $0x4c0] sm:$0xf]  ;;  %v7680_v42 = vld [vmem:[%s10665_s0 + $0x674] sm:$0xf0] }
 0x210   :  { %v6100_v22 = vor.u32 %v7643_v57, %v6099_v53  ;;  %v7865_v28 = vld [vmem:[%s10664_s1 + $0x580] sm:$0xff]  ;;  %4628 = vmatpush.bf16.msrb.mxu0 %v7849_v34  ;;  %v7903_v34 = vld [vmem:[%s10664_s1 + $0x6b0] sm:$0xff] }
 0x211   :  { %v9402_v48 = vadd.f32 %v4422_v41, %v4380_v40  ;;  %v4340_v4 = vadd.f32 %v4339_v44, %v4297_v47  ;;  %4472 = vmatmul.bf16.gmra.mxu0 %v5956_v38  ;;  %4714 = vmatpush.bf16.msrb.mxu2 %v7865_v28  ;;  %v6243_v35 = vld [vmem:[%s10665_s0 + $0x5e0] sm:$0xf]  ;;  %v7679_v41 = vld [vmem:[%s10665_s0 + $0x66c] sm:$0xf0]  ;;  %v7661_v38 = vld [vmem:[%s10665_s0 + $0x5e4] sm:$0xf] }
 0x212   :  { %4515 = vmatmul.bf16.gmra.mxu1 %v5960_v58  ;;  %v6245_v58 = vld [vmem:[%s10665_s0 + $0x670] sm:$0xf0]  ;;  %v6251_v40 = vld [vmem:[%s10665_s0 + $0x5e8] sm:$0xf]  ;;  %v7662_v44 = vld [vmem:[%s10665_s0 + $0x5ec] sm:$0xf] }
 0x213   :  { %4558 = vmatmul.bf16.gmra.mxu2 %v5964_v45  ;;  %v6253_v45 = vld [vmem:[%s10665_s0 + $0x678] sm:$0xf0] }
 0x214   :  { %4601 = vmatmul.bf16.gmra.mxu3 %v5968_v25  ;;  %4793 = vmatpush.bf16.msra.mxu0 %v7888_v60 }
 0x216   :  { %v4382_v49 = vpop.f32.mrf.mxu2  ;;  %v4298_v52 = vpop.f32.mrf.mxu0 }
 0x217   :  { %v4425_v63 = vpop.f32.mrf.mxu3  ;;  %v4383_v9 = vadd.f32 %v4382_v49, %v4340_v4  ;;  %v4341_v50 = vpop.f32.mrf.mxu1  ;;  %v4299_v23 = vadd.f32 %v4298_v52, %v9159_v56  ;;  %v7874_v56 = vld [vmem:[%s10664_s1 + $0x5c8] sm:$0xff]  ;;  %v6244_v4 = vor.u32 %v7679_v41, %v6243_v35  ;;  %v6248_v49 = vor.u32 %v7661_v38, %v6245_v58 }
 0x218   :  { %4756 = vmatpush.bf16.msrb.mxu3 %v7874_v56  ;;  %v7912_v56 = vld [vmem:[%s10664_s1 + $0x6f8] sm:$0xff] }
 0x219   :  { %v9405_v6 = vadd.f32 %v4425_v63, %v4383_v9  ;;  %v4342_v2 = vadd.f32 %v4341_v50, %v4299_v23  ;;  %v6252_v50 = vor.u32 %v7680_v42, %v6251_v40  ;;  %v6256_v23 = vor.u32 %v7662_v44, %v6253_v45  ;;  %v5539_v45 = vld [vmem:[%s10665_s0 + $0x50] sm:$0xf] }
 0x21c   :  { %4757 = vmatpush.bf16.msrb.mxu3 %v7873_v3  ;;  %v7887_v3 = vld [vmem:[%s10664_s1 + $0x630] sm:$0xff] }
 0x21d   :  { %4794 = vmatpush.bf16.msra.mxu0 %v7887_v3 }
 0x21e   :  { %v4384_v12 = vpop.f32.mrf.mxu2  ;;  %v4301_v19 = vpop.f32.mrf.mxu0 }
 0x21f   :  { %v4427_v14 = vpop.f32.mrf.mxu3  ;;  %v4385_v18 = vadd.f32 %v4384_v12, %v4342_v2  ;;  %v4344_v24 = vpop.f32.mrf.mxu1  ;;  %v4302_v26 = vadd.f32 %v4301_v19, %v9165_v32  ;;  %v7904_v2 = vld [vmem:[%s10664_s1 + $0x6b8] sm:$0xff]  ;;  %v1511_v19 = vunpack.c.l.b16 %v242_v10 }
 0x220   :  { %4879 = vmatpush.bf16.msra.mxu2 %v7904_v2  ;;  %4922 = vmatpush.bf16.msra.mxu3 %v7912_v56 }
 0x221   :  { %v9444_v43 = vadd.f32 %v4427_v14, %v4385_v18  ;;  %v4345_v27 = vadd.f32 %v4344_v24, %v4302_v26  ;;  %4477 = vmatmul.bf16.gmra.mxu0 %v6100_v22  ;;  %v7896_v14 = vld [vmem:[%s10664_s1 + $0x678] sm:$0xff]  ;;  %v1510_v18 = vunpack.c.h.b16 %v241_v11  ;;  %v1512_v24 = vunpack.c.h.b16 %v242_v10 }
 0x222   :  { %4520 = vmatmul.bf16.gmra.mxu1 %v6104_v17  ;;  %v1509_v17 = vunpack.c.l.b16 %v241_v11  ;;  %v7886_v11 = vld [vmem:[%s10664_s1 + $0x628] sm:$0xff] }
 0x223   :  { %4563 = vmatmul.bf16.gmra.mxu2 %v6108_v20  ;;  %4795 = vmatpush.bf16.msra.mxu0 %v7886_v11 }
 0x224   :  { %4606 = vmatmul.bf16.gmra.mxu3 %v6112_v21  ;;  %v1761_v26 = vpack.c.b16 %v1509_v17, %v1509_v17  ;;  %4880 = vmatpush.bf16.msra.mxu2 %v7903_v34 }
 0x226   :  { %v4387_v37 = vpop.f32.mrf.mxu2  ;;  %v4303_v31 = vpop.f32.mrf.mxu0 }
 0x227   :  { %v4430_v46 = vpop.f32.mrf.mxu3  ;;  %v4388_v30 = vadd.f32 %v4387_v37, %v4345_v27  ;;  %v4346_v55 = vpop.f32.mrf.mxu1  ;;  %v4304_v36 = vadd.f32 %v4303_v31, %v9201_v54  ;;  %v7857_v54 = vld [vmem:[%s10664_s1 + $0x540] sm:$0xff] }
 0x228   :  { %4671 = vmatpush.bf16.msrb.mxu1 %v7857_v54 }
 0x229   :  { %v9450_v32 = vadd.f32 %v4430_v46, %v4388_v30  ;;  %v4347_v51 = vadd.f32 %v4346_v55, %v4304_v36  ;;  %v1763_v46 = vpack.c.b16 %v1511_v19, %v1511_v19  ;;  %v1764_v30 = vpack.c.b16 %v1512_v24, %v1512_v24  ;;  %v5683_v24 = vld [vmem:[%s10665_s0 + $0x170] sm:$0xf] }
 0x22c   :  { %4836 = vmatpush.bf16.msra.mxu1 %v7896_v14 }
 0x22e   :  { %v4389_v25 = vpop.f32.mrf.mxu2  ;;  %v4306_v9 = vpop.f32.mrf.mxu0 }
 0x22f   :  { %v4432_v47 = vpop.f32.mrf.mxu3  ;;  %v4390_v63 = vadd.f32 %v4389_v25, %v4347_v51  ;;  %v4349_v52 = vpop.f32.mrf.mxu1  ;;  %v4307_v53 = vadd.f32 %v4306_v9, %v9219_v8  ;;  %v7911_v51 = vld [vmem:[%s10664_s1 + $0x6f0] sm:$0xff]  ;;  %v7501_v25 = vld [vmem:[%s10665_s0 + $0xdc] sm:$0xf0]  ;;  %v5549_v9 = vld [vmem:[%s10665_s0 + $0xe8] sm:$0xf0] }
 0x230   :  { %4923 = vmatpush.bf16.msra.mxu3 %v7911_v51 }
 0x231   :  { %v9486_v57 = vadd.f32 %v4432_v47, %v4390_v63  ;;  %v4350_v16 = vadd.f32 %v4349_v52, %v4307_v53  ;;  %4482 = vmatmul.bf16.gmra.mxu0 %v6244_v4  ;;  %v7483_v47 = vld [vmem:[%s10665_s0 + $0x54] sm:$0xf]  ;;  %v5541_v4 = vld [vmem:[%s10665_s0 + $0xe0] sm:$0xf0]  ;;  %v7484_v63 = vld [vmem:[%s10665_s0 + $0x5c] sm:$0xf] }
 0x232   :  { %4525 = vmatmul.bf16.gmra.mxu1 %v6248_v49  ;;  %v7502_v49 = vld [vmem:[%s10665_s0 + $0xe4] sm:$0xf0]  ;;  %v5544_v53 = vor.u32 %v7483_v47, %v5541_v4 }
 0x233   :  { %4568 = vmatmul.bf16.gmra.mxu2 %v6252_v50 }
 0x234   :  { %4611 = vmatmul.bf16.gmra.mxu3 %v6256_v23  ;;  %v5540_v23 = vor.u32 %v7501_v25, %v5539_v45 }
 0x236   :  { %v4392_v8 = vpop.f32.mrf.mxu2  ;;  %v4308_v7 = vpop.f32.mrf.mxu0 }
 0x237   :  { %v4435_v62 = vpop.f32.mrf.mxu3  ;;  %v4393_v0 = vadd.f32 %v4392_v8, %v4350_v16  ;;  %v4351_v1 = vpop.f32.mrf.mxu1  ;;  %v4309_v5 = vadd.f32 %v4308_v7, %v9225_v29  ;;  %v1762_v29 = vpack.c.b16 %v1510_v18, %v1510_v18  ;;  %v5552_v8 = vor.u32 %v7484_v63, %v5549_v9  ;;  %v7902_v7 = vld [vmem:[%s10664_s1 + $0x6a8] sm:$0xff]  ;;  %v7573_v63 = vld [vmem:[%s10665_s0 + $0x31c] sm:$0xf0] }
 0x238   :  { %4881 = vmatpush.bf16.msra.mxu2 %v7902_v7 }
 0x239   :  { %v9504_v12 = vadd.f32 %v4435_v62, %v4393_v0  ;;  %v4352_v22 = vadd.f32 %v4351_v1, %v4309_v5  ;;  %v7910_v5 = vld [vmem:[%s10664_s1 + $0x6e8] sm:$0xff] }
 0x23a   :  { %4924 = vmatpush.bf16.msra.mxu3 %v7910_v5 }
 0x23e   :  { %v4394_v20 = vpop.f32.mrf.mxu2  ;;  %v4311_v28 = vpop.f32.mrf.mxu0 }
 0x23f   :  { %v4437_v21 = vpop.f32.mrf.mxu3  ;;  %v4395_v27 = vadd.f32 %v4394_v20, %v4352_v22  ;;  %v4354_v37 = vpop.f32.mrf.mxu1  ;;  %v4312_v31 = vadd.f32 %v4311_v28, %v9240_v39  ;;  %v7895_v39 = vld [vmem:[%s10664_s1 + $0x670] sm:$0xff]  ;;  %v7537_v20 = vld [vmem:[%s10665_s0 + $0x1fc] sm:$0xf0]  ;;  %v7538_v28 = vld [vmem:[%s10665_s0 + $0x204] sm:$0xf0] }
 0x240   :  { %4837 = vmatpush.bf16.msra.mxu1 %v7895_v39 }
 0x241   :  { %v9510_v55 = vadd.f32 %v4437_v21, %v4395_v27  ;;  %v4355_v36 = vadd.f32 %v4354_v37, %v4312_v31  ;;  %4487 = vmatmul.bf16.gmra.mxu0 %v1761_v26  ;;  %v7901_v21 = vld [vmem:[%s10664_s1 + $0x6a0] sm:$0xff]  ;;  %v7519_v26 = vld [vmem:[%s10665_s0 + $0x174] sm:$0xf]  ;;  %v5691_v27 = vld [vmem:[%s10665_s0 + $0x178] sm:$0xf] }
 0x242   :  { %4530 = vmatmul.bf16.gmra.mxu1 %v1762_v29  ;;  %v5685_v29 = vld [vmem:[%s10665_s0 + $0x200] sm:$0xf0]  ;;  %v7520_v37 = vld [vmem:[%s10665_s0 + $0x17c] sm:$0xf]  ;;  %4882 = vmatpush.bf16.msra.mxu2 %v7901_v21  ;;  %v5692_v39 = vor.u32 %v7538_v28, %v5691_v27 }
 0x243   :  { %4573 = vmatmul.bf16.gmra.mxu2 %v1763_v46  ;;  %v5693_v46 = vld [vmem:[%s10665_s0 + $0x208] sm:$0xf0]  ;;  %v5688_v34 = vor.u32 %v7519_v26, %v5685_v29 }
 0x244   :  { %4616 = vmatmul.bf16.gmra.mxu3 %v1764_v30 }
 0x246   :  { %v4397_v35 = vpop.f32.mrf.mxu2  ;;  %v4313_v38 = vpop.f32.mrf.mxu0 }
 0x247   :  { %v4440_v41 = vpop.f32.mrf.mxu3  ;;  %v4398_v54 = vadd.f32 %v4397_v35, %v4355_v36  ;;  %v4356_v58 = vpop.f32.mrf.mxu1  ;;  %v4314_v40 = vadd.f32 %v4313_v38, %v9267_v61  ;;  %v5547_v61 = vld [vmem:[%s10665_s0 + $0x58] sm:$0xf]  ;;  %v5684_v36 = vor.u32 %v7537_v20, %v5683_v24  ;;  %v5696_v35 = vor.u32 %v7520_v37, %v5693_v46  ;;  %v7909_v38 = vld [vmem:[%s10664_s1 + $0x6e0] sm:$0xff]  ;;  %v5971_v37 = vld [vmem:[%s10665_s0 + $0x3b0] sm:$0xf] }
 0x248   :  { %v5548_v56 = vor.u32 %v7502_v49, %v5547_v61  ;;  %4925 = vmatpush.bf16.msra.mxu3 %v7909_v38  ;;  %v5827_v49 = vld [vmem:[%s10665_s0 + $0x290] sm:$0xf]  ;;  %v7609_v46 = vld [vmem:[%s10665_s0 + $0x43c] sm:$0xf0] }
 0x249   :  { %v9525_v42 = vadd.f32 %v4440_v41, %v4398_v54  ;;  %v4357_v44 = vadd.f32 %v4356_v58, %v4314_v40  ;;  %v7885_v54 = vld [vmem:[%s10664_s1 + $0x620] sm:$0xff]  ;;  %v5828_v7 = vor.u32 %v7573_v63, %v5827_v49 }
 0x24a   :  { %v7893_v40 = vld [vmem:[%s10664_s1 + $0x660] sm:$0xff]  ;;  %4796 = vmatpush.bf16.msra.mxu0 %v7885_v54  ;;  %v5981_v54 = vld [vmem:[%s10665_s0 + $0x448] sm:$0xf0] }
 0x24e   :  { %v4399_v52 = vpop.f32.mrf.mxu2  ;;  %v4316_v2 = vpop.f32.mrf.mxu0 }
 0x24f   :  { %v4442_v50 = vpop.f32.mrf.mxu3  ;;  %v4400_v16 = vadd.f32 %v4399_v52, %v4357_v44  ;;  %v4359_v60 = vpop.f32.mrf.mxu1  ;;  %v4317_v62 = vadd.f32 %v4316_v2, %v9281_v15  ;;  %v7894_v15 = vld [vmem:[%s10664_s1 + $0x668] sm:$0xff]  ;;  %v7900_v52 = vld [vmem:[%s10664_s1 + $0x698] sm:$0xff] }
 0x250   :  { %4838 = vmatpush.bf16.msra.mxu1 %v7894_v15  ;;  %v7574_v2 = vld [vmem:[%s10665_s0 + $0x324] sm:$0xf0]  ;;  %4883 = vmatpush.bf16.msra.mxu2 %v7900_v52 }
 0x251   :  { %v9552_v0 = vadd.f32 %v4442_v50, %v4400_v16  ;;  %v4360_v1 = vadd.f32 %v4359_v60, %v4317_v62  ;;  %4629 = vmatmul.bf16.vlgmr.msrb.gmra.mxu0 %v5540_v23  ;;  %v7884_v50 = vld [vmem:[%s10664_s1 + $0x618] sm:$0xff]  ;;  %v7555_v23 = vld [vmem:[%s10665_s0 + $0x294] sm:$0xf] }
 0x252   :  { %4672 = vmatmul.bf16.vlgmr.msrb.gmra.mxu1 %v5544_v53  ;;  %v5829_v53 = vld [vmem:[%s10665_s0 + $0x320] sm:$0xf0]  ;;  %v5835_v16 = vld [vmem:[%s10665_s0 + $0x298] sm:$0xf]  ;;  %v7556_v60 = vld [vmem:[%s10665_s0 + $0x29c] sm:$0xf]  ;;  %4797 = vmatpush.bf16.msra.mxu0 %v7884_v50 }
 0x253   :  { %4715 = vmatmul.bf16.vlgmr.msrb.gmra.mxu2 %v5548_v56  ;;  %v5837_v56 = vld [vmem:[%s10665_s0 + $0x328] sm:$0xf0] }
 0x254   :  { %4758 = vmatmul.bf16.vlgmr.msrb.gmra.mxu3 %v5552_v8  ;;  %4839 = vmatpush.bf16.msra.mxu1 %v7893_v40  ;;  %v5972_v40 = vor.u32 %v7609_v46, %v5971_v37 }
 0x256   :  { %v4402_v10 = vpop.f32.mrf.mxu2  ;;  %v4318_v17 = vpop.f32.mrf.mxu0 }
 0x257   :  { %v4445_v14 = vpop.f32.mrf.mxu3  ;;  %v4403_v22 = vadd.f32 %v4402_v10, %v4360_v1  ;;  %v4361_v18 = vpop.f32.mrf.mxu1  ;;  %v5832_v1 = vor.u32 %v7555_v23, %v5829_v53  ;;  %v5836_v10 = vor.u32 %v7574_v2, %v5835_v16 }
 0x258   :  { %v7892_v18 = vld [vmem:[%s10664_s1 + $0x658] sm:$0xff] }
 0x259   :  { %v9566_v19 = vadd.f32 %v4445_v14, %v4403_v22  ;;  %v5840_v14 = vor.u32 %v7556_v60, %v5837_v56  ;;  %4840 = vmatpush.bf16.msra.mxu1 %v7892_v18  ;;  %v7645_v60 = vld [vmem:[%s10665_s0 + $0x55c] sm:$0xf0]  ;;  %v7898_v56 = vld [vmem:[%s10664_s1 + $0x688] sm:$0xff] }
 0x25e   :  { %v4404_v30 = vpop.f32.mrf.mxu2  ;;  %v4458_v3 = vpop.f32.mrf.mxu0 }
 0x25f   :  { %v4447_v31 = vpop.f32.mrf.mxu3  ;;  %v4501_v51 = vpop.f32.mrf.mxu1  ;;  %v4459_v41 = vadd.f32 %v4458_v3, %v9321_v59  ;;  %v7591_v30 = vld [vmem:[%s10665_s0 + $0x3b4] sm:$0xf]  ;;  %v5973_v3 = vld [vmem:[%s10665_s0 + $0x440] sm:$0xf0] }
 0x261   :  { %v4502_v58 = vadd.f32 %v4501_v51, %v4459_v41  ;;  %4634 = vmatmul.bf16.gmra.mxu0 %v5684_v36  ;;  %v7899_v36 = vld [vmem:[%s10664_s1 + $0x690] sm:$0xff]  ;;  %v5979_v51 = vld [vmem:[%s10665_s0 + $0x3b8] sm:$0xf]  ;;  %v7592_v41 = vld [vmem:[%s10665_s0 + $0x3bc] sm:$0xf] }
 0x262   :  { %4677 = vmatmul.bf16.gmra.mxu1 %v5688_v34  ;;  %v7907_v34 = vld [vmem:[%s10664_s1 + $0x6d0] sm:$0xff]  ;;  %4884 = vmatpush.bf16.msra.mxu2 %v7899_v36 }
 0x263   :  { %4720 = vmatmul.bf16.gmra.mxu2 %v5692_v39  ;;  %v7891_v39 = vld [vmem:[%s10664_s1 + $0x650] sm:$0xff] }
 0x264   :  { %4763 = vmatmul.bf16.gmra.mxu3 %v5696_v35  ;;  %v7610_v35 = vld [vmem:[%s10665_s0 + $0x444] sm:$0xf0]  ;;  %4841 = vmatpush.bf16.msra.mxu1 %v7891_v39 }
 0x266   :  { %v4544_v59 = vpop.f32.mrf.mxu2  ;;  %v4460_v25 = vpop.f32.mrf.mxu0  ;;  %4885 = vmatpush.bf16.msra.mxu2 %v7898_v56 }
 0x267   :  { %v4587_v44 = vpop.f32.mrf.mxu3  ;;  %v4545_v45 = vadd.f32 %v4544_v59, %v4502_v58  ;;  %v4503_v47 = vpop.f32.mrf.mxu1  ;;  %v4461_v4 = vadd.f32 %v4460_v25, %v9357_v13  ;;  %v7908_v13 = vld [vmem:[%s10664_s1 + $0x6d8] sm:$0xff]  ;;  %v5976_v59 = vor.u32 %v7591_v30, %v5973_v3 }
 0x268   :  { %4926 = vmatpush.bf16.msra.mxu3 %v7908_v13 }
 0x269   :  { %v9606_v61 = vadd.f32 %v4587_v44, %v4545_v45  ;;  %v4504_v9 = vadd.f32 %v4503_v47, %v4461_v4  ;;  %v5980_v47 = vor.u32 %v7610_v35, %v5979_v51  ;;  %v5984_v4 = vor.u32 %v7592_v41, %v5981_v54  ;;  %v7881_v35 = vld [vmem:[%s10664_s1 + $0x600] sm:$0xff] }
 0x26a   :  { %v7905_v41 = vld [vmem:[%s10664_s1 + $0x6c0] sm:$0xff] }
 0x26c   :  { %4927 = vmatpush.bf16.msra.mxu3 %v7907_v34 }
 0x26e   :  { %v4546_v8 = vpop.f32.mrf.mxu2  ;;  %v4463_v5 = vpop.f32.mrf.mxu0 }
 0x26f   :  { %v4589_v62 = vpop.f32.mrf.mxu3  ;;  %v4547_v11 = vadd.f32 %v4546_v8, %v4504_v9  ;;  %v4506_v15 = vpop.f32.mrf.mxu1  ;;  %v4464_v22 = vadd.f32 %v4463_v5, %v9363_v33  ;;  %v6123_v5 = vld [vmem:[%s10665_s0 + $0x4d8] sm:$0xf] }
 0x271   :  { %v9642_v17 = vadd.f32 %v4589_v62, %v4547_v11  ;;  %v4507_v24 = vadd.f32 %v4506_v15, %v4464_v22  ;;  %4639 = vmatmul.bf16.gmra.mxu0 %v5828_v7  ;;  %v7882_v62 = vld [vmem:[%s10664_s1 + $0x608] sm:$0xff]  ;;  %v6117_v11 = vld [vmem:[%s10665_s0 + $0x560] sm:$0xf0] }
 0x272   :  { %4682 = vmatmul.bf16.gmra.mxu1 %v5832_v1  ;;  %v7890_v7 = vld [vmem:[%s10664_s1 + $0x648] sm:$0xff]  ;;  %v7627_v1 = vld [vmem:[%s10665_s0 + $0x4d4] sm:$0xf] }
 0x273   :  { %4725 = vmatmul.bf16.gmra.mxu2 %v5836_v10  ;;  %v7646_v15 = vld [vmem:[%s10665_s0 + $0x564] sm:$0xf0]  ;;  %v7628_v10 = vld [vmem:[%s10665_s0 + $0x4dc] sm:$0xf]  ;;  %4842 = vmatpush.bf16.msra.mxu1 %v7890_v7 }
 0x274   :  { %4768 = vmatmul.bf16.gmra.mxu3 %v5840_v14  ;;  %v6125_v14 = vld [vmem:[%s10665_s0 + $0x568] sm:$0xf0] }
 0x276   :  { %v4549_v20 = vpop.f32.mrf.mxu2  ;;  %v4465_v29 = vpop.f32.mrf.mxu0 }
 0x277   :  { %v4592_v21 = vpop.f32.mrf.mxu3  ;;  %v4550_v26 = vadd.f32 %v4549_v20, %v4507_v24  ;;  %v4508_v27 = vpop.f32.mrf.mxu1  ;;  %v4466_v28 = vadd.f32 %v4465_v29, %v9402_v48  ;;  %v7883_v48 = vld [vmem:[%s10664_s1 + $0x610] sm:$0xff]  ;;  %v6120_v20 = vor.u32 %v7627_v1, %v6117_v11 }
 0x278   :  { %4798 = vmatpush.bf16.msra.mxu0 %v7883_v48 }
 0x279   :  { %v9648_v33 = vadd.f32 %v4592_v21, %v4550_v26  ;;  %v4509_v31 = vadd.f32 %v4508_v27, %v4466_v28  ;;  %v6124_v27 = vor.u32 %v7646_v15, %v6123_v5  ;;  %v6128_v28 = vor.u32 %v7628_v10, %v6125_v14  ;;  %v243_v15 = vld [vmem:[%s10665_s0 + $0x710] sm:$0x11]  ;;  %v244_v14 = vld [vmem:[%s10665_s0 + $0x718] sm:$0x11] }
 0x27c   :  { %4799 = vmatpush.bf16.msra.mxu0 %v7882_v62  ;;  %v7920_v62 = vld [vmem:[%s10664_s1 + $0x738] sm:$0xff] }
 0x27e   :  { %v4551_v38 = vpop.f32.mrf.mxu2  ;;  %v4468_v45 = vpop.f32.mrf.mxu0 }
 0x27f   :  { %v4594_v58 = vpop.f32.mrf.mxu3  ;;  %v4552_v44 = vadd.f32 %v4551_v38, %v4509_v31  ;;  %v4511_v25 = vpop.f32.mrf.mxu1  ;;  %v4469_v49 = vadd.f32 %v4468_v45, %v9405_v6  ;;  %v6115_v6 = vld [vmem:[%s10665_s0 + $0x4d0] sm:$0xf]  ;;  %v7897_v31 = vld [vmem:[%s10664_s1 + $0x680] sm:$0xff]  ;;  %v7682_v45 = vld [vmem:[%s10665_s0 + $0x684] sm:$0xf0] }
 0x280   :  { %v6116_v24 = vor.u32 %v7645_v60, %v6115_v6  ;;  %4886 = vmatpush.bf16.msra.mxu2 %v7897_v31  ;;  %v6259_v38 = vld [vmem:[%s10665_s0 + $0x5f0] sm:$0xf]  ;;  %4800 = vmatpush.bf16.msra.mxu0 %v7881_v35 }
 0x281   :  { %v9687_v63 = vadd.f32 %v4594_v58, %v4552_v44  ;;  %v4512_v9 = vadd.f32 %v4511_v25, %v4469_v49  ;;  %4644 = vmatmul.bf16.gmra.mxu0 %v5972_v40  ;;  %v7681_v58 = vld [vmem:[%s10665_s0 + $0x67c] sm:$0xf0]  ;;  %v7663_v40 = vld [vmem:[%s10665_s0 + $0x5f4] sm:$0xf]  ;;  %v6267_v44 = vld [vmem:[%s10665_s0 + $0x5f8] sm:$0xf] }
 0x282   :  { %4687 = vmatmul.bf16.gmra.mxu1 %v5976_v59  ;;  %v6261_v59 = vld [vmem:[%s10665_s0 + $0x680] sm:$0xf0]  ;;  %v7664_v25 = vld [vmem:[%s10665_s0 + $0x5fc] sm:$0xf]  ;;  %v7935_v35 = vld [vmem:[%s10664_s1 + $0x7b0] sm:$0xff] }
 0x283   :  { %4730 = vmatmul.bf16.gmra.mxu2 %v5980_v47  ;;  %v6269_v47 = vld [vmem:[%s10665_s0 + $0x688] sm:$0xf0] }
 0x284   :  { %4773 = vmatmul.bf16.gmra.mxu3 %v5984_v4  ;;  %4965 = vmatpush.bf16.msrb.mxu0 %v7920_v62 }
 0x286   :  { %v4554_v52 = vpop.f32.mrf.mxu2  ;;  %v4470_v23 = vpop.f32.mrf.mxu0 }
 0x287   :  { %v4597_v50 = vpop.f32.mrf.mxu3  ;;  %v4555_v13 = vadd.f32 %v4554_v52, %v4512_v9  ;;  %v4513_v53 = vpop.f32.mrf.mxu1  ;;  %v4471_v16 = vadd.f32 %v4470_v23, %v9444_v43  ;;  %v7906_v43 = vld [vmem:[%s10664_s1 + $0x6c8] sm:$0xff]  ;;  %v6260_v9 = vor.u32 %v7681_v58, %v6259_v38  ;;  %v6264_v52 = vor.u32 %v7663_v40, %v6261_v59 }
 0x288   :  { %4928 = vmatpush.bf16.msra.mxu3 %v7906_v43  ;;  %v7944_v43 = vld [vmem:[%s10664_s1 + $0x7f8] sm:$0xff] }
 0x289   :  { %v9690_v2 = vadd.f32 %v4597_v50, %v4555_v13  ;;  %v4514_v8 = vadd.f32 %v4513_v53, %v4471_v16  ;;  %v6268_v53 = vor.u32 %v7682_v45, %v6267_v44  ;;  %v6272_v16 = vor.u32 %v7664_v25, %v6269_v47  ;;  %v5555_v47 = vld [vmem:[%s10665_s0 + $0x60] sm:$0xf] }
 0x28c   :  { %4929 = vmatpush.bf16.msra.mxu3 %v7905_v41  ;;  %v7919_v41 = vld [vmem:[%s10664_s1 + $0x730] sm:$0xff] }
 0x28d   :  { %4966 = vmatpush.bf16.msrb.mxu0 %v7919_v41 }
 0x28e   :  { %v4556_v22 = vpop.f32.mrf.mxu2  ;;  %v4473_v26 = vpop.f32.mrf.mxu0 }
 0x28f   :  { %v4599_v18 = vpop.f32.mrf.mxu3  ;;  %v4557_v21 = vadd.f32 %v4556_v22, %v4514_v8  ;;  %v4516_v29 = vpop.f32.mrf.mxu1  ;;  %v4474_v37 = vadd.f32 %v4473_v26, %v9450_v32  ;;  %v7936_v8 = vld [vmem:[%s10664_s1 + $0x7b8] sm:$0xff]  ;;  %v1515_v26 = vunpack.c.l.b16 %v244_v14 }
 0x290   :  { %5051 = vmatpush.bf16.msrb.mxu2 %v7936_v8  ;;  %5094 = vmatpush.bf16.msrb.mxu3 %v7944_v43 }
 0x291   :  { %v9729_v46 = vadd.f32 %v4599_v18, %v4557_v21  ;;  %v4517_v30 = vadd.f32 %v4516_v29, %v4474_v37  ;;  %4649 = vmatmul.bf16.gmra.mxu0 %v6116_v24  ;;  %v7928_v18 = vld [vmem:[%s10664_s1 + $0x778] sm:$0xff]  ;;  %v1514_v21 = vunpack.c.h.b16 %v243_v15  ;;  %v1516_v29 = vunpack.c.h.b16 %v244_v14 }
 0x292   :  { %4692 = vmatmul.bf16.gmra.mxu1 %v6120_v20  ;;  %v1513_v20 = vunpack.c.l.b16 %v243_v15  ;;  %v7918_v15 = vld [vmem:[%s10664_s1 + $0x728] sm:$0xff] }
 0x293   :  { %4735 = vmatmul.bf16.gmra.mxu2 %v6124_v27  ;;  %4967 = vmatpush.bf16.msrb.mxu0 %v7918_v15 }
 0x294   :  { %4778 = vmatmul.bf16.gmra.mxu3 %v6128_v28  ;;  %v1765_v37 = vpack.c.b16 %v1513_v20, %v1513_v20  ;;  %5052 = vmatpush.bf16.msrb.mxu2 %v7935_v35 }
 0x296   :  { %v4559_v36 = vpop.f32.mrf.mxu2  ;;  %v4475_v3 = vpop.f32.mrf.mxu0 }
 0x297   :  { %v4602_v48 = vpop.f32.mrf.mxu3  ;;  %v4560_v34 = vadd.f32 %v4559_v36, %v4517_v30  ;;  %v4518_v51 = vpop.f32.mrf.mxu1  ;;  %v4476_v39 = vadd.f32 %v4475_v3, %v9486_v57  ;;  %v7889_v57 = vld [vmem:[%s10664_s1 + $0x640] sm:$0xff] }
 0x298   :  { %4843 = vmatpush.bf16.msra.mxu1 %v7889_v57 }
 0x299   :  { %v9735_v32 = vadd.f32 %v4602_v48, %v4560_v34  ;;  %v4519_v54 = vadd.f32 %v4518_v51, %v4476_v39  ;;  %v1767_v48 = vpack.c.b16 %v1515_v26, %v1515_v26  ;;  %v1768_v34 = vpack.c.b16 %v1516_v29, %v1516_v29  ;;  %v5699_v29 = vld [vmem:[%s10665_s0 + $0x180] sm:$0xf] }
 0x29c   :  { %5008 = vmatpush.bf16.msrb.mxu1 %v7928_v18 }
 0x29e   :  { %v4561_v4 = vpop.f32.mrf.mxu2  ;;  %v4478_v13 = vpop.f32.mrf.mxu0 }
 0x29f   :  { %v4604_v49 = vpop.f32.mrf.mxu3  ;;  %v4562_v50 = vadd.f32 %v4561_v4, %v4519_v54  ;;  %v4521_v23 = vpop.f32.mrf.mxu1  ;;  %v4479_v6 = vadd.f32 %v4478_v13, %v9504_v12  ;;  %v7943_v54 = vld [vmem:[%s10664_s1 + $0x7f0] sm:$0xff]  ;;  %v5565_v13 = vld [vmem:[%s10665_s0 + $0xf8] sm:$0xf0] }
 0x2a0   :  { %5095 = vmatpush.bf16.msrb.mxu3 %v7943_v54  ;;  %v7503_v4 = vld [vmem:[%s10665_s0 + $0xec] sm:$0xf0] }
 0x2a1   :  { %v9771_v60 = vadd.f32 %v4604_v49, %v4562_v50  ;;  %v4522_v56 = vadd.f32 %v4521_v23, %v4479_v6  ;;  %4654 = vmatmul.bf16.gmra.mxu0 %v6260_v9  ;;  %v7485_v49 = vld [vmem:[%s10665_s0 + $0x64] sm:$0xf]  ;;  %v5557_v9 = vld [vmem:[%s10665_s0 + $0xf0] sm:$0xf0]  ;;  %v7486_v50 = vld [vmem:[%s10665_s0 + $0x6c] sm:$0xf] }
 0x2a2   :  { %4697 = vmatmul.bf16.gmra.mxu1 %v6264_v52  ;;  %v7504_v52 = vld [vmem:[%s10665_s0 + $0xf4] sm:$0xf0]  ;;  %v5560_v6 = vor.u32 %v7485_v49, %v5557_v9 }
 0x2a3   :  { %4740 = vmatmul.bf16.gmra.mxu2 %v6268_v53 }
 0x2a4   :  { %4783 = vmatmul.bf16.gmra.mxu3 %v6272_v16  ;;  %v5556_v16 = vor.u32 %v7503_v4, %v5555_v47 }
 0x2a6   :  { %v4564_v12 = vpop.f32.mrf.mxu2  ;;  %v4480_v11 = vpop.f32.mrf.mxu0 }
 0x2a7   :  { %v4607_v7 = vpop.f32.mrf.mxu3  ;;  %v4565_v1 = vadd.f32 %v4564_v12, %v4522_v56  ;;  %v4523_v5 = vpop.f32.mrf.mxu1  ;;  %v4481_v10 = vadd.f32 %v4480_v11, %v9510_v55  ;;  %v1766_v55 = vpack.c.b16 %v1514_v21, %v1514_v21  ;;  %v5568_v12 = vor.u32 %v7486_v50, %v5565_v13  ;;  %v7934_v11 = vld [vmem:[%s10664_s1 + $0x7a8] sm:$0xff]  ;;  %v7575_v50 = vld [vmem:[%s10665_s0 + $0x32c] sm:$0xf0] }
 0x2a8   :  { %5053 = vmatpush.bf16.msrb.mxu2 %v7934_v11 }
 0x2a9   :  { %v9789_v22 = vadd.f32 %v4607_v7, %v4565_v1  ;;  %v4524_v24 = vadd.f32 %v4523_v5, %v4481_v10  ;;  %v7942_v10 = vld [vmem:[%s10664_s1 + $0x7e8] sm:$0xff] }
 0x2aa   :  { %5096 = vmatpush.bf16.msrb.mxu3 %v7942_v10 }
 0x2ae   :  { %v4566_v27 = vpop.f32.mrf.mxu2  ;;  %v4483_v31 = vpop.f32.mrf.mxu0 }
 0x2af   :  { %v4609_v28 = vpop.f32.mrf.mxu3  ;;  %v4567_v30 = vadd.f32 %v4566_v27, %v4524_v24  ;;  %v4526_v36 = vpop.f32.mrf.mxu1  ;;  %v4484_v3 = vadd.f32 %v4483_v31, %v9525_v42  ;;  %v7927_v42 = vld [vmem:[%s10664_s1 + $0x770] sm:$0xff]  ;;  %v7540_v31 = vld [vmem:[%s10665_s0 + $0x214] sm:$0xf0] }
 0x2b0   :  { %5009 = vmatpush.bf16.msrb.mxu1 %v7927_v42  ;;  %v7539_v27 = vld [vmem:[%s10665_s0 + $0x20c] sm:$0xf0] }
 0x2b1   :  { %v9795_v51 = vadd.f32 %v4609_v28, %v4567_v30  ;;  %v4527_v39 = vadd.f32 %v4526_v36, %v4484_v3  ;;  %4659 = vmatmul.bf16.gmra.mxu0 %v1765_v37  ;;  %v7933_v28 = vld [vmem:[%s10664_s1 + $0x7a0] sm:$0xff]  ;;  %v5707_v30 = vld [vmem:[%s10665_s0 + $0x188] sm:$0xf]  ;;  %v7522_v36 = vld [vmem:[%s10665_s0 + $0x18c] sm:$0xf] }
 0x2b2   :  { %4702 = vmatmul.bf16.gmra.mxu1 %v1766_v55  ;;  %v7521_v37 = vld [vmem:[%s10665_s0 + $0x184] sm:$0xf]  ;;  %v5701_v55 = vld [vmem:[%s10665_s0 + $0x210] sm:$0xf0]  ;;  %5054 = vmatpush.bf16.msrb.mxu2 %v7933_v28  ;;  %v5708_v42 = vor.u32 %v7540_v31, %v5707_v30 }
 0x2b3   :  { %4745 = vmatmul.bf16.gmra.mxu2 %v1767_v48  ;;  %v5709_v48 = vld [vmem:[%s10665_s0 + $0x218] sm:$0xf0]  ;;  %v5704_v35 = vor.u32 %v7521_v37, %v5701_v55 }
 0x2b4   :  { %4788 = vmatmul.bf16.gmra.mxu3 %v1768_v34 }
 0x2b6   :  { %v4569_v38 = vpop.f32.mrf.mxu2  ;;  %v4485_v40 = vpop.f32.mrf.mxu0 }
 0x2b7   :  { %v4612_v58 = vpop.f32.mrf.mxu3  ;;  %v4570_v57 = vadd.f32 %v4569_v38, %v4527_v39  ;;  %v4528_v59 = vpop.f32.mrf.mxu1  ;;  %v4486_v44 = vadd.f32 %v4485_v40, %v9552_v0  ;;  %v5563_v0 = vld [vmem:[%s10665_s0 + $0x68] sm:$0xf]  ;;  %v5700_v39 = vor.u32 %v7539_v27, %v5699_v29  ;;  %v5712_v38 = vor.u32 %v7522_v36, %v5709_v48  ;;  %v7941_v40 = vld [vmem:[%s10664_s1 + $0x7e0] sm:$0xff]  ;;  %v7611_v48 = vld [vmem:[%s10665_s0 + $0x44c] sm:$0xf0] }
 0x2b8   :  { %v5564_v43 = vor.u32 %v7504_v52, %v5563_v0  ;;  %5097 = vmatpush.bf16.msrb.mxu3 %v7941_v40  ;;  %v5843_v52 = vld [vmem:[%s10665_s0 + $0x2a0] sm:$0xf] }
 0x2b9   :  { %v9810_v45 = vadd.f32 %v4612_v58, %v4570_v57  ;;  %v4529_v25 = vadd.f32 %v4528_v59, %v4486_v44  ;;  %v7917_v57 = vld [vmem:[%s10664_s1 + $0x720] sm:$0xff]  ;;  %v5844_v11 = vor.u32 %v7575_v50, %v5843_v52 }
 0x2ba   :  { %v7925_v44 = vld [vmem:[%s10664_s1 + $0x760] sm:$0xff]  ;;  %4968 = vmatpush.bf16.msrb.mxu0 %v7917_v57  ;;  %v5997_v57 = vld [vmem:[%s10665_s0 + $0x458] sm:$0xf0] }
 0x2bb   :  { %v5987_v36 = vld [vmem:[%s10665_s0 + $0x3c0] sm:$0xf] }
 0x2be   :  { %v4571_v23 = vpop.f32.mrf.mxu2  ;;  %v4488_v8 = vpop.f32.mrf.mxu0 }
 0x2bf   :  { %v4614_v53 = vpop.f32.mrf.mxu3  ;;  %v4572_v56 = vadd.f32 %v4571_v23, %v4529_v25  ;;  %v4531_v62 = vpop.f32.mrf.mxu1  ;;  %v4489_v7 = vadd.f32 %v4488_v8, %v9566_v19  ;;  %v7926_v19 = vld [vmem:[%s10664_s1 + $0x768] sm:$0xff]  ;;  %v7932_v23 = vld [vmem:[%s10664_s1 + $0x798] sm:$0xff] }
 0x2c0   :  { %5010 = vmatpush.bf16.msrb.mxu1 %v7926_v19  ;;  %v7576_v8 = vld [vmem:[%s10665_s0 + $0x334] sm:$0xf0]  ;;  %5055 = vmatpush.bf16.msrb.mxu2 %v7932_v23 }
 0x2c1   :  { %v9837_v1 = vadd.f32 %v4614_v53, %v4572_v56  ;;  %v4532_v5 = vadd.f32 %v4531_v62, %v4489_v7  ;;  %4801 = vmatmul.bf16.vlgmr.msra.gmra.mxu0 %v5556_v16  ;;  %v7916_v53 = vld [vmem:[%s10664_s1 + $0x718] sm:$0xff]  ;;  %v7557_v16 = vld [vmem:[%s10665_s0 + $0x2a4] sm:$0xf]  ;;  %v5851_v56 = vld [vmem:[%s10665_s0 + $0x2a8] sm:$0xf] }
 0x2c2   :  { %4844 = vmatmul.bf16.vlgmr.msra.gmra.mxu1 %v5560_v6  ;;  %v5845_v6 = vld [vmem:[%s10665_s0 + $0x330] sm:$0xf0]  ;;  %v7558_v62 = vld [vmem:[%s10665_s0 + $0x2ac] sm:$0xf]  ;;  %4969 = vmatpush.bf16.msrb.mxu0 %v7916_v53 }
 0x2c3   :  { %4887 = vmatmul.bf16.vlgmr.msra.gmra.mxu2 %v5564_v43  ;;  %v5853_v43 = vld [vmem:[%s10665_s0 + $0x338] sm:$0xf0] }
 0x2c4   :  { %4930 = vmatmul.bf16.vlgmr.msra.gmra.mxu3 %v5568_v12  ;;  %5011 = vmatpush.bf16.msrb.mxu1 %v7925_v44  ;;  %v5988_v44 = vor.u32 %v7611_v48, %v5987_v36 }
 0x2c6   :  { %v4574_v14 = vpop.f32.mrf.mxu2  ;;  %v4490_v20 = vpop.f32.mrf.mxu0 }
 0x2c7   :  { %v4617_v18 = vpop.f32.mrf.mxu3  ;;  %v4575_v24 = vadd.f32 %v4574_v14, %v4532_v5  ;;  %v4533_v21 = vpop.f32.mrf.mxu1  ;;  %v5848_v5 = vor.u32 %v7557_v16, %v5845_v6  ;;  %v5852_v14 = vor.u32 %v7576_v8, %v5851_v56 }
 0x2c8   :  { %v7924_v21 = vld [vmem:[%s10664_s1 + $0x758] sm:$0xff] }
 0x2c9   :  { %v9851_v26 = vadd.f32 %v4617_v18, %v4575_v24  ;;  %v5856_v18 = vor.u32 %v7558_v62, %v5853_v43  ;;  %5012 = vmatpush.bf16.msrb.mxu1 %v7924_v21  ;;  %v7647_v62 = vld [vmem:[%s10665_s0 + $0x56c] sm:$0xf0]  ;;  %v7930_v43 = vld [vmem:[%s10664_s1 + $0x788] sm:$0xff] }
 0x2ce   :  { %v4576_v34 = vpop.f32.mrf.mxu2  ;;  %v4630_v41 = vpop.f32.mrf.mxu0 }
 0x2cf   :  { %v4619_v3 = vpop.f32.mrf.mxu3  ;;  %v4673_v54 = vpop.f32.mrf.mxu1  ;;  %v4631_v58 = vadd.f32 %v4630_v41, %v9606_v61  ;;  %v7593_v34 = vld [vmem:[%s10665_s0 + $0x3c4] sm:$0xf]  ;;  %v5989_v41 = vld [vmem:[%s10665_s0 + $0x450] sm:$0xf0] }
 0x2d1   :  { %v4674_v59 = vadd.f32 %v4673_v54, %v4631_v58  ;;  %4806 = vmatmul.bf16.gmra.mxu0 %v5700_v39  ;;  %v7931_v39 = vld [vmem:[%s10664_s1 + $0x790] sm:$0xff]  ;;  %v5995_v54 = vld [vmem:[%s10665_s0 + $0x3c8] sm:$0xf]  ;;  %v7594_v58 = vld [vmem:[%s10665_s0 + $0x3cc] sm:$0xf] }
 0x2d2   :  { %4849 = vmatmul.bf16.gmra.mxu1 %v5704_v35  ;;  %v7939_v35 = vld [vmem:[%s10664_s1 + $0x7d0] sm:$0xff]  ;;  %5056 = vmatpush.bf16.msrb.mxu2 %v7931_v39 }
 0x2d3   :  { %4892 = vmatmul.bf16.gmra.mxu2 %v5708_v42  ;;  %v7923_v42 = vld [vmem:[%s10664_s1 + $0x750] sm:$0xff] }
 0x2d4   :  { %4935 = vmatmul.bf16.gmra.mxu3 %v5712_v38  ;;  %v7612_v38 = vld [vmem:[%s10665_s0 + $0x454] sm:$0xf0]  ;;  %5013 = vmatpush.bf16.msrb.mxu1 %v7923_v42 }
 0x2d6   :  { %v4716_v61 = vpop.f32.mrf.mxu2  ;;  %v4632_v4 = vpop.f32.mrf.mxu0  ;;  %5057 = vmatpush.bf16.msrb.mxu2 %v7930_v43 }
 0x2d7   :  { %v4759_v25 = vpop.f32.mrf.mxu3  ;;  %v4717_v47 = vadd.f32 %v4716_v61, %v4674_v59  ;;  %v4675_v49 = vpop.f32.mrf.mxu1  ;;  %v4633_v9 = vadd.f32 %v4632_v4, %v9642_v17  ;;  %v7940_v17 = vld [vmem:[%s10664_s1 + $0x7d8] sm:$0xff]  ;;  %v5992_v61 = vor.u32 %v7593_v34, %v5989_v41 }
 0x2d8   :  { %5098 = vmatpush.bf16.msrb.mxu3 %v7940_v17 }
 0x2d9   :  { %v9891_v0 = vadd.f32 %v4759_v25, %v4717_v47  ;;  %v4676_v13 = vadd.f32 %v4675_v49, %v4633_v9  ;;  %v5996_v49 = vor.u32 %v7612_v38, %v5995_v54  ;;  %v6000_v9 = vor.u32 %v7594_v58, %v5997_v57  ;;  %v7913_v38 = vld [vmem:[%s10664_s1 + $0x700] sm:$0xff] }
 0x2da   :  { %v7937_v58 = vld [vmem:[%s10664_s1 + $0x7c0] sm:$0xff] }
 0x2dc   :  { %5099 = vmatpush.bf16.msrb.mxu3 %v7939_v35 }
 0x2de   :  { %v4718_v12 = vpop.f32.mrf.mxu2  ;;  %v4635_v10 = vpop.f32.mrf.mxu0 }
 0x2df   :  { %v4761_v7 = vpop.f32.mrf.mxu3  ;;  %v4719_v15 = vadd.f32 %v4718_v12, %v4676_v13  ;;  %v4678_v19 = vpop.f32.mrf.mxu1  ;;  %v4636_v24 = vadd.f32 %v4635_v10, %v9648_v33  ;;  %v6139_v10 = vld [vmem:[%s10665_s0 + $0x4e8] sm:$0xf] }
 0x2e1   :  { %v9927_v20 = vadd.f32 %v4761_v7, %v4719_v15  ;;  %v4679_v29 = vadd.f32 %v4678_v19, %v4636_v24  ;;  %4811 = vmatmul.bf16.gmra.mxu0 %v5844_v11  ;;  %v7914_v7 = vld [vmem:[%s10664_s1 + $0x708] sm:$0xff]  ;;  %v6133_v15 = vld [vmem:[%s10665_s0 + $0x570] sm:$0xf0]  ;;  %v7648_v19 = vld [vmem:[%s10665_s0 + $0x574] sm:$0xf0] }
 0x2e2   :  { %4854 = vmatmul.bf16.gmra.mxu1 %v5848_v5  ;;  %v7922_v11 = vld [vmem:[%s10664_s1 + $0x748] sm:$0xff]  ;;  %v7629_v5 = vld [vmem:[%s10665_s0 + $0x4e4] sm:$0xf] }
 0x2e3   :  { %4897 = vmatmul.bf16.gmra.mxu2 %v5852_v14  ;;  %v7630_v14 = vld [vmem:[%s10665_s0 + $0x4ec] sm:$0xf]  ;;  %5014 = vmatpush.bf16.msrb.mxu1 %v7922_v11 }
 0x2e4   :  { %4940 = vmatmul.bf16.gmra.mxu3 %v5856_v18  ;;  %v6141_v18 = vld [vmem:[%s10665_s0 + $0x578] sm:$0xf0] }
 0x2e6   :  { %v4721_v27 = vpop.f32.mrf.mxu2  ;;  %v4637_v55 = vpop.f32.mrf.mxu0 }
 0x2e7   :  { %v4764_v28 = vpop.f32.mrf.mxu3  ;;  %v4722_v37 = vadd.f32 %v4721_v27, %v4679_v29  ;;  %v4680_v30 = vpop.f32.mrf.mxu1  ;;  %v4638_v31 = vadd.f32 %v4637_v55, %v9687_v63  ;;  %v7915_v63 = vld [vmem:[%s10664_s1 + $0x710] sm:$0xff]  ;;  %v6136_v27 = vor.u32 %v7629_v5, %v6133_v15 }
 0x2e8   :  { %4970 = vmatpush.bf16.msrb.mxu0 %v7915_v63 }
 0x2e9   :  { %v9933_v33 = vadd.f32 %v4764_v28, %v4722_v37  ;;  %v4681_v3 = vadd.f32 %v4680_v30, %v4638_v31  ;;  %v6140_v30 = vor.u32 %v7648_v19, %v6139_v10  ;;  %v6144_v31 = vor.u32 %v7630_v14, %v6141_v18  ;;  %v245_v19 = vld [vmem:[%s10665_s0 + $0x720] sm:$0x11]  ;;  %v246_v18 = vld [vmem:[%s10665_s0 + $0x728] sm:$0x11] }
 0x2ec   :  { %4971 = vmatpush.bf16.msrb.mxu0 %v7914_v7  ;;  %v7952_v7 = vld [vmem:[%s10664_s1 + $0x838] sm:$0xff] }
 0x2ee   :  { %v4723_v40 = vpop.f32.mrf.mxu2  ;;  %v4640_v47 = vpop.f32.mrf.mxu0 }
 0x2ef   :  { %v4766_v59 = vpop.f32.mrf.mxu3  ;;  %v4724_v25 = vadd.f32 %v4723_v40, %v4681_v3  ;;  %v4683_v4 = vpop.f32.mrf.mxu1  ;;  %v4641_v52 = vadd.f32 %v4640_v47, %v9690_v2  ;;  %v6131_v2 = vld [vmem:[%s10665_s0 + $0x4e0] sm:$0xf]  ;;  %v7684_v47 = vld [vmem:[%s10665_s0 + $0x694] sm:$0xf0] }
 0x2f0   :  { %v6132_v29 = vor.u32 %v7647_v62, %v6131_v2  ;;  %v7929_v3 = vld [vmem:[%s10664_s1 + $0x780] sm:$0xff]  ;;  %4972 = vmatpush.bf16.msrb.mxu0 %v7913_v38  ;;  %v7967_v38 = vld [vmem:[%s10664_s1 + $0x8b0] sm:$0xff] }
 0x2f1   :  { %v9972_v50 = vadd.f32 %v4766_v59, %v4724_v25  ;;  %v4684_v13 = vadd.f32 %v4683_v4, %v4641_v52  ;;  %4816 = vmatmul.bf16.gmra.mxu0 %v5988_v44  ;;  %5058 = vmatpush.bf16.msrb.mxu2 %v7929_v3  ;;  %v6275_v40 = vld [vmem:[%s10665_s0 + $0x600] sm:$0xf]  ;;  %v7683_v59 = vld [vmem:[%s10665_s0 + $0x68c] sm:$0xf0]  ;;  %v7665_v44 = vld [vmem:[%s10665_s0 + $0x604] sm:$0xf] }
 0x2f2   :  { %4859 = vmatmul.bf16.gmra.mxu1 %v5992_v61  ;;  %v6277_v61 = vld [vmem:[%s10665_s0 + $0x690] sm:$0xf0]  ;;  %v6283_v25 = vld [vmem:[%s10665_s0 + $0x608] sm:$0xf]  ;;  %v7666_v4 = vld [vmem:[%s10665_s0 + $0x60c] sm:$0xf] }
 0x2f3   :  { %4902 = vmatmul.bf16.gmra.mxu2 %v5996_v49  ;;  %v6285_v49 = vld [vmem:[%s10665_s0 + $0x698] sm:$0xf0] }
 0x2f4   :  { %4945 = vmatmul.bf16.gmra.mxu3 %v6000_v9  ;;  %5137 = vmatpush.bf16.msra.mxu0 %v7952_v7 }
 0x2f6   :  { %v4726_v23 = vpop.f32.mrf.mxu2  ;;  %v4642_v16 = vpop.f32.mrf.mxu0 }
 0x2f7   :  { %v4769_v53 = vpop.f32.mrf.mxu3  ;;  %v4727_v17 = vadd.f32 %v4726_v23, %v4684_v13  ;;  %v4685_v6 = vpop.f32.mrf.mxu1  ;;  %v4643_v56 = vadd.f32 %v4642_v16, %v9729_v46  ;;  %v7938_v46 = vld [vmem:[%s10664_s1 + $0x7c8] sm:$0xff]  ;;  %v6276_v13 = vor.u32 %v7683_v59, %v6275_v40  ;;  %v6280_v23 = vor.u32 %v7665_v44, %v6277_v61 }
 0x2f8   :  { %5100 = vmatpush.bf16.msrb.mxu3 %v7938_v46  ;;  %v7976_v46 = vld [vmem:[%s10664_s1 + $0x8f8] sm:$0xff] }
 0x2f9   :  { %v9975_v8 = vadd.f32 %v4769_v53, %v4727_v17  ;;  %v4686_v12 = vadd.f32 %v4685_v6, %v4643_v56  ;;  %v6284_v6 = vor.u32 %v7684_v47, %v6283_v25  ;;  %v6288_v56 = vor.u32 %v7666_v4, %v6285_v49  ;;  %v5571_v49 = vld [vmem:[%s10665_s0 + $0x70] sm:$0xf] }
 0x2fc   :  { %5101 = vmatpush.bf16.msrb.mxu3 %v7937_v58  ;;  %v7951_v58 = vld [vmem:[%s10664_s1 + $0x830] sm:$0xff] }
 0x2fd   :  { %5138 = vmatpush.bf16.msra.mxu0 %v7951_v58 }
 0x2fe   :  { %v4728_v24 = vpop.f32.mrf.mxu2  ;;  %v4645_v37 = vpop.f32.mrf.mxu0 }
 0x2ff   :  { %v4771_v21 = vpop.f32.mrf.mxu3  ;;  %v4729_v28 = vadd.f32 %v4728_v24, %v4686_v12  ;;  %v4688_v55 = vpop.f32.mrf.mxu1  ;;  %v4646_v36 = vadd.f32 %v4645_v37, %v9735_v32  ;;  %v7968_v12 = vld [vmem:[%s10664_s1 + $0x8b8] sm:$0xff]  ;;  %v1519_v37 = vunpack.c.l.b16 %v246_v18 }
 0x300   :  { %5223 = vmatpush.bf16.msra.mxu2 %v7968_v12  ;;  %5266 = vmatpush.bf16.msra.mxu3 %v7976_v46 }
 0x301   :  { %v10014_v48 = vadd.f32 %v4771_v21, %v4729_v28  ;;  %v4689_v34 = vadd.f32 %v4688_v55, %v4646_v36  ;;  %4821 = vmatmul.bf16.gmra.mxu0 %v6132_v29  ;;  %v7960_v21 = vld [vmem:[%s10664_s1 + $0x878] sm:$0xff]  ;;  %v1518_v28 = vunpack.c.h.b16 %v245_v19  ;;  %v1520_v55 = vunpack.c.h.b16 %v246_v18 }
 0x302   :  { %4864 = vmatmul.bf16.gmra.mxu1 %v6136_v27  ;;  %v1517_v27 = vunpack.c.l.b16 %v245_v19  ;;  %v7950_v19 = vld [vmem:[%s10664_s1 + $0x828] sm:$0xff] }
 0x303   :  { %4907 = vmatmul.bf16.gmra.mxu2 %v6140_v30  ;;  %5139 = vmatpush.bf16.msra.mxu0 %v7950_v19 }
 0x304   :  { %4950 = vmatmul.bf16.gmra.mxu3 %v6144_v31  ;;  %v1769_v36 = vpack.c.b16 %v1517_v27, %v1517_v27  ;;  %5224 = vmatpush.bf16.msra.mxu2 %v7967_v38 }
 0x306   :  { %v4731_v39 = vpop.f32.mrf.mxu2  ;;  %v4647_v41 = vpop.f32.mrf.mxu0 }
 0x307   :  { %v4774_v63 = vpop.f32.mrf.mxu3  ;;  %v4732_v35 = vadd.f32 %v4731_v39, %v4689_v34  ;;  %v4690_v54 = vpop.f32.mrf.mxu1  ;;  %v4648_v42 = vadd.f32 %v4647_v41, %v9771_v60  ;;  %v7921_v60 = vld [vmem:[%s10664_s1 + $0x740] sm:$0xff] }
 0x308   :  { %5015 = vmatpush.bf16.msrb.mxu1 %v7921_v60 }
 0x309   :  { %v10020_v32 = vadd.f32 %v4774_v63, %v4732_v35  ;;  %v4691_v57 = vadd.f32 %v4690_v54, %v4648_v42  ;;  %v1771_v63 = vpack.c.b16 %v1519_v37, %v1519_v37  ;;  %v1772_v35 = vpack.c.b16 %v1520_v55, %v1520_v55  ;;  %v5715_v55 = vld [vmem:[%s10665_s0 + $0x190] sm:$0xf] }
 0x30c   :  { %5180 = vmatpush.bf16.msra.mxu1 %v7960_v21 }
 0x30e   :  { %v4733_v9 = vpop.f32.mrf.mxu2  ;;  %v4650_v17 = vpop.f32.mrf.mxu0 }
 0x30f   :  { %v4776_v52 = vpop.f32.mrf.mxu3  ;;  %v4734_v53 = vadd.f32 %v4733_v9, %v4691_v57  ;;  %v4693_v16 = vpop.f32.mrf.mxu1  ;;  %v4651_v2 = vadd.f32 %v4650_v17, %v9789_v22  ;;  %v7975_v57 = vld [vmem:[%s10664_s1 + $0x8f0] sm:$0xff]  ;;  %v7505_v9 = vld [vmem:[%s10665_s0 + $0xfc] sm:$0xf0]  ;;  %v5581_v17 = vld [vmem:[%s10665_s0 + $0x108] sm:$0xf0] }
 0x310   :  { %5267 = vmatpush.bf16.msra.mxu3 %v7975_v57 }
 0x311   :  { %v10056_v62 = vadd.f32 %v4776_v52, %v4734_v53  ;;  %v4694_v43 = vadd.f32 %v4693_v16, %v4651_v2  ;;  %4826 = vmatmul.bf16.gmra.mxu0 %v6276_v13  ;;  %v7487_v52 = vld [vmem:[%s10665_s0 + $0x74] sm:$0xf]  ;;  %v5573_v13 = vld [vmem:[%s10665_s0 + $0x100] sm:$0xf0]  ;;  %v7488_v53 = vld [vmem:[%s10665_s0 + $0x7c] sm:$0xf] }
 0x312   :  { %4869 = vmatmul.bf16.gmra.mxu1 %v6280_v23  ;;  %v7506_v23 = vld [vmem:[%s10665_s0 + $0x104] sm:$0xf0]  ;;  %v5576_v2 = vor.u32 %v7487_v52, %v5573_v13 }
 0x313   :  { %4912 = vmatmul.bf16.gmra.mxu2 %v6284_v6 }
 0x314   :  { %4955 = vmatmul.bf16.gmra.mxu3 %v6288_v56  ;;  %v5572_v56 = vor.u32 %v7505_v9, %v5571_v49 }
 0x316   :  { %v4736_v22 = vpop.f32.mrf.mxu2  ;;  %v4652_v15 = vpop.f32.mrf.mxu0 }
 0x317   :  { %v4779_v11 = vpop.f32.mrf.mxu3  ;;  %v4737_v5 = vadd.f32 %v4736_v22, %v4694_v43  ;;  %v4695_v10 = vpop.f32.mrf.mxu1  ;;  %v4653_v14 = vadd.f32 %v4652_v15, %v9795_v51  ;;  %v1770_v51 = vpack.c.b16 %v1518_v28, %v1518_v28  ;;  %v5584_v22 = vor.u32 %v7488_v53, %v5581_v17  ;;  %v7966_v15 = vld [vmem:[%s10664_s1 + $0x8a8] sm:$0xff]  ;;  %v7577_v53 = vld [vmem:[%s10665_s0 + $0x33c] sm:$0xf0] }
 0x318   :  { %5225 = vmatpush.bf16.msra.mxu2 %v7966_v15 }
 0x319   :  { %v10074_v24 = vadd.f32 %v4779_v11, %v4737_v5  ;;  %v4696_v29 = vadd.f32 %v4695_v10, %v4653_v14  ;;  %v7974_v14 = vld [vmem:[%s10664_s1 + $0x8e8] sm:$0xff] }
 0x31a   :  { %5268 = vmatpush.bf16.msra.mxu3 %v7974_v14 }
 0x31e   :  { %v4738_v30 = vpop.f32.mrf.mxu2  ;;  %v4655_v3 = vpop.f32.mrf.mxu0 }
 0x31f   :  { %v4781_v31 = vpop.f32.mrf.mxu3  ;;  %v4739_v34 = vadd.f32 %v4738_v30, %v4696_v29  ;;  %v4698_v39 = vpop.f32.mrf.mxu1  ;;  %v4656_v41 = vadd.f32 %v4655_v3, %v9810_v45  ;;  %v7959_v45 = vld [vmem:[%s10664_s1 + $0x870] sm:$0xff]  ;;  %v7541_v30 = vld [vmem:[%s10665_s0 + $0x21c] sm:$0xf0]  ;;  %v7542_v3 = vld [vmem:[%s10665_s0 + $0x224] sm:$0xf0] }
 0x320   :  { %5181 = vmatpush.bf16.msra.mxu1 %v7959_v45 }
 0x321   :  { %v10080_v54 = vadd.f32 %v4781_v31, %v4739_v34  ;;  %v4699_v42 = vadd.f32 %v4698_v39, %v4656_v41  ;;  %4831 = vmatmul.bf16.gmra.mxu0 %v1769_v36  ;;  %v7965_v31 = vld [vmem:[%s10664_s1 + $0x8a0] sm:$0xff]  ;;  %v7523_v36 = vld [vmem:[%s10665_s0 + $0x194] sm:$0xf]  ;;  %v5723_v34 = vld [vmem:[%s10665_s0 + $0x198] sm:$0xf] }
 0x322   :  { %4874 = vmatmul.bf16.gmra.mxu1 %v1770_v51  ;;  %v5717_v51 = vld [vmem:[%s10665_s0 + $0x220] sm:$0xf0]  ;;  %v7524_v39 = vld [vmem:[%s10665_s0 + $0x19c] sm:$0xf]  ;;  %5226 = vmatpush.bf16.msra.mxu2 %v7965_v31  ;;  %v5724_v45 = vor.u32 %v7542_v3, %v5723_v34 }
 0x323   :  { %4917 = vmatmul.bf16.gmra.mxu2 %v1771_v63  ;;  %v5725_v63 = vld [vmem:[%s10665_s0 + $0x228] sm:$0xf0]  ;;  %v5720_v38 = vor.u32 %v7523_v36, %v5717_v51 }
 0x324   :  { %4960 = vmatmul.bf16.gmra.mxu3 %v1772_v35 }
 0x326   :  { %v4741_v40 = vpop.f32.mrf.mxu2  ;;  %v4657_v44 = vpop.f32.mrf.mxu0 }
 0x327   :  { %v4784_v59 = vpop.f32.mrf.mxu3  ;;  %v4742_v60 = vadd.f32 %v4741_v40, %v4699_v42  ;;  %v4700_v61 = vpop.f32.mrf.mxu1  ;;  %v4658_v25 = vadd.f32 %v4657_v44, %v9837_v1  ;;  %v5579_v1 = vld [vmem:[%s10665_s0 + $0x78] sm:$0xf]  ;;  %v5716_v42 = vor.u32 %v7541_v30, %v5715_v55  ;;  %v5728_v40 = vor.u32 %v7524_v39, %v5725_v63  ;;  %v7973_v44 = vld [vmem:[%s10664_s1 + $0x8e0] sm:$0xff]  ;;  %v6003_v39 = vld [vmem:[%s10665_s0 + $0x3d0] sm:$0xf] }
 0x328   :  { %v5580_v46 = vor.u32 %v7506_v23, %v5579_v1  ;;  %5269 = vmatpush.bf16.msra.mxu3 %v7973_v44  ;;  %v5859_v23 = vld [vmem:[%s10665_s0 + $0x2b0] sm:$0xf]  ;;  %v7613_v63 = vld [vmem:[%s10665_s0 + $0x45c] sm:$0xf0] }
 0x329   :  { %v10095_v47 = vadd.f32 %v4784_v59, %v4742_v60  ;;  %v4701_v4 = vadd.f32 %v4700_v61, %v4658_v25  ;;  %v7949_v60 = vld [vmem:[%s10664_s1 + $0x820] sm:$0xff]  ;;  %v5860_v15 = vor.u32 %v7577_v53, %v5859_v23 }
 0x32a   :  { %v7957_v25 = vld [vmem:[%s10664_s1 + $0x860] sm:$0xff]  ;;  %5140 = vmatpush.bf16.msra.mxu0 %v7949_v60  ;;  %v6013_v60 = vld [vmem:[%s10665_s0 + $0x468] sm:$0xf0] }
 0x32e   :  { %v4743_v16 = vpop.f32.mrf.mxu2  ;;  %v4660_v12 = vpop.f32.mrf.mxu0 }
 0x32f   :  { %v4786_v6 = vpop.f32.mrf.mxu3  ;;  %v4744_v43 = vadd.f32 %v4743_v16, %v4701_v4  ;;  %v4703_v7 = vpop.f32.mrf.mxu1  ;;  %v4661_v11 = vadd.f32 %v4660_v12, %v9851_v26  ;;  %v7958_v26 = vld [vmem:[%s10664_s1 + $0x868] sm:$0xff]  ;;  %v7964_v16 = vld [vmem:[%s10664_s1 + $0x898] sm:$0xff] }
 0x330   :  { %5182 = vmatpush.bf16.msra.mxu1 %v7958_v26  ;;  %v7578_v12 = vld [vmem:[%s10665_s0 + $0x344] sm:$0xf0]  ;;  %5227 = vmatpush.bf16.msra.mxu2 %v7964_v16 }
 0x331   :  { %v10122_v5 = vadd.f32 %v4786_v6, %v4744_v43  ;;  %v4704_v10 = vadd.f32 %v4703_v7, %v4661_v11  ;;  %4973 = vmatmul.bf16.vlgmr.msrb.gmra.mxu0 %v5572_v56  ;;  %v7948_v6 = vld [vmem:[%s10664_s1 + $0x818] sm:$0xff]  ;;  %v7559_v56 = vld [vmem:[%s10665_s0 + $0x2b4] sm:$0xf] }
 0x332   :  { %5016 = vmatmul.bf16.vlgmr.msrb.gmra.mxu1 %v5576_v2  ;;  %v5861_v2 = vld [vmem:[%s10665_s0 + $0x340] sm:$0xf0]  ;;  %v5867_v43 = vld [vmem:[%s10665_s0 + $0x2b8] sm:$0xf]  ;;  %v7560_v7 = vld [vmem:[%s10665_s0 + $0x2bc] sm:$0xf]  ;;  %5141 = vmatpush.bf16.msra.mxu0 %v7948_v6 }
 0x333   :  { %5059 = vmatmul.bf16.vlgmr.msrb.gmra.mxu2 %v5580_v46  ;;  %v5869_v46 = vld [vmem:[%s10665_s0 + $0x348] sm:$0xf0] }
 0x334   :  { %5102 = vmatmul.bf16.vlgmr.msrb.gmra.mxu3 %v5584_v22  ;;  %5183 = vmatpush.bf16.msra.mxu1 %v7957_v25  ;;  %v6004_v25 = vor.u32 %v7613_v63, %v6003_v39 }
 0x336   :  { %v4746_v18 = vpop.f32.mrf.mxu2  ;;  %v4662_v27 = vpop.f32.mrf.mxu0 }
 0x337   :  { %v4789_v21 = vpop.f32.mrf.mxu3  ;;  %v4747_v29 = vadd.f32 %v4746_v18, %v4704_v10  ;;  %v4705_v28 = vpop.f32.mrf.mxu1  ;;  %v5864_v10 = vor.u32 %v7559_v56, %v5861_v2  ;;  %v5868_v18 = vor.u32 %v7578_v12, %v5867_v43 }
 0x338   :  { %v7956_v28 = vld [vmem:[%s10664_s1 + $0x858] sm:$0xff] }
 0x339   :  { %v10136_v37 = vadd.f32 %v4789_v21, %v4747_v29  ;;  %v5872_v21 = vor.u32 %v7560_v7, %v5869_v46  ;;  %5184 = vmatpush.bf16.msra.mxu1 %v7956_v28  ;;  %v7649_v7 = vld [vmem:[%s10665_s0 + $0x57c] sm:$0xf0]  ;;  %v7962_v46 = vld [vmem:[%s10664_s1 + $0x888] sm:$0xff] }
 0x33e   :  { %v4748_v35 = vpop.f32.mrf.mxu2  ;;  %v4802_v58 = vpop.f32.mrf.mxu0 }
 0x33f   :  { %v4791_v41 = vpop.f32.mrf.mxu3  ;;  %v4845_v57 = vpop.f32.mrf.mxu1  ;;  %v4803_v59 = vadd.f32 %v4802_v58, %v9891_v0  ;;  %v7595_v35 = vld [vmem:[%s10665_s0 + $0x3d4] sm:$0xf]  ;;  %v6005_v58 = vld [vmem:[%s10665_s0 + $0x460] sm:$0xf0] }
 0x341   :  { %v4846_v61 = vadd.f32 %v4845_v57, %v4803_v59  ;;  %4978 = vmatmul.bf16.gmra.mxu0 %v5716_v42  ;;  %v7963_v42 = vld [vmem:[%s10664_s1 + $0x890] sm:$0xff]  ;;  %v6011_v57 = vld [vmem:[%s10665_s0 + $0x3d8] sm:$0xf]  ;;  %v7596_v59 = vld [vmem:[%s10665_s0 + $0x3dc] sm:$0xf] }
 0x342   :  { %5021 = vmatmul.bf16.gmra.mxu1 %v5720_v38  ;;  %v7971_v38 = vld [vmem:[%s10664_s1 + $0x8d0] sm:$0xff]  ;;  %5228 = vmatpush.bf16.msra.mxu2 %v7963_v42 }
 0x343   :  { %5064 = vmatmul.bf16.gmra.mxu2 %v5724_v45  ;;  %v7955_v45 = vld [vmem:[%s10664_s1 + $0x850] sm:$0xff] }
 0x344   :  { %5107 = vmatmul.bf16.gmra.mxu3 %v5728_v40  ;;  %v7614_v40 = vld [vmem:[%s10665_s0 + $0x464] sm:$0xf0]  ;;  %5185 = vmatpush.bf16.msra.mxu1 %v7955_v45 }
 0x346   :  { %v4888_v0 = vpop.f32.mrf.mxu2  ;;  %v4804_v9 = vpop.f32.mrf.mxu0  ;;  %5229 = vmatpush.bf16.msra.mxu2 %v7962_v46 }
 0x347   :  { %v4931_v4 = vpop.f32.mrf.mxu3  ;;  %v4889_v49 = vadd.f32 %v4888_v0, %v4846_v61  ;;  %v4847_v52 = vpop.f32.mrf.mxu1  ;;  %v4805_v13 = vadd.f32 %v4804_v9, %v9927_v20  ;;  %v7972_v20 = vld [vmem:[%s10664_s1 + $0x8d8] sm:$0xff]  ;;  %v6008_v0 = vor.u32 %v7595_v35, %v6005_v58 }
 0x348   :  { %5270 = vmatpush.bf16.msra.mxu3 %v7972_v20 }
 0x349   :  { %v10176_v1 = vadd.f32 %v4931_v4, %v4889_v49  ;;  %v4848_v17 = vadd.f32 %v4847_v52, %v4805_v13  ;;  %v6012_v52 = vor.u32 %v7614_v40, %v6011_v57  ;;  %v6016_v13 = vor.u32 %v7596_v59, %v6013_v60  ;;  %v7945_v40 = vld [vmem:[%s10664_s1 + $0x800] sm:$0xff] }
 0x34a   :  { %v7969_v59 = vld [vmem:[%s10664_s1 + $0x8c0] sm:$0xff] }
 0x34c   :  { %5271 = vmatpush.bf16.msra.mxu3 %v7971_v38 }
 0x34e   :  { %v4890_v22 = vpop.f32.mrf.mxu2  ;;  %v4807_v14 = vpop.f32.mrf.mxu0 }
 0x34f   :  { %v4933_v11 = vpop.f32.mrf.mxu3  ;;  %v4891_v19 = vadd.f32 %v4890_v22, %v4848_v17  ;;  %v4850_v26 = vpop.f32.mrf.mxu1  ;;  %v4808_v29 = vadd.f32 %v4807_v14, %v9933_v33  ;;  %v6155_v14 = vld [vmem:[%s10665_s0 + $0x4f8] sm:$0xf] }
 0x351   :  { %v10212_v27 = vadd.f32 %v4933_v11, %v4891_v19  ;;  %v4851_v55 = vadd.f32 %v4850_v26, %v4808_v29  ;;  %4983 = vmatmul.bf16.gmra.mxu0 %v5860_v15  ;;  %v7946_v11 = vld [vmem:[%s10664_s1 + $0x808] sm:$0xff]  ;;  %v6149_v19 = vld [vmem:[%s10665_s0 + $0x580] sm:$0xf0] }
 0x352   :  { %5026 = vmatmul.bf16.gmra.mxu1 %v5864_v10  ;;  %v7954_v15 = vld [vmem:[%s10664_s1 + $0x848] sm:$0xff]  ;;  %v7631_v10 = vld [vmem:[%s10665_s0 + $0x4f4] sm:$0xf] }
 0x353   :  { %5069 = vmatmul.bf16.gmra.mxu2 %v5868_v18  ;;  %v7650_v26 = vld [vmem:[%s10665_s0 + $0x584] sm:$0xf0]  ;;  %v7632_v18 = vld [vmem:[%s10665_s0 + $0x4fc] sm:$0xf]  ;;  %5186 = vmatpush.bf16.msra.mxu1 %v7954_v15 }
 0x354   :  { %5112 = vmatmul.bf16.gmra.mxu3 %v5872_v21  ;;  %v6157_v21 = vld [vmem:[%s10665_s0 + $0x588] sm:$0xf0] }
 0x356   :  { %v4893_v30 = vpop.f32.mrf.mxu2  ;;  %v4809_v51 = vpop.f32.mrf.mxu0 }
 0x357   :  { %v4936_v31 = vpop.f32.mrf.mxu3  ;;  %v4894_v36 = vadd.f32 %v4893_v30, %v4851_v55  ;;  %v4852_v34 = vpop.f32.mrf.mxu1  ;;  %v4810_v3 = vadd.f32 %v4809_v51, %v9972_v50  ;;  %v7947_v50 = vld [vmem:[%s10664_s1 + $0x810] sm:$0xff]  ;;  %v6152_v30 = vor.u32 %v7631_v10, %v6149_v19 }
 0x358   :  { %5142 = vmatpush.bf16.msra.mxu0 %v7947_v50  ;;  %v247_v19 = vld [vmem:[%s10665_s0 + $0x730] sm:$0x11] }
 0x359   :  { %v10218_v33 = vadd.f32 %v4936_v31, %v4894_v36  ;;  %v4853_v41 = vadd.f32 %v4852_v34, %v4810_v3  ;;  %v6156_v34 = vor.u32 %v7650_v26, %v6155_v14  ;;  %v6160_v3 = vor.u32 %v7632_v18, %v6157_v21 }
 0x35a   :  { %v1521_v21 = vunpack.c.l.b16 %v247_v19 }
 0x35c   :  { %5143 = vmatpush.bf16.msra.mxu0 %v7946_v11 }
 0x35e   :  { %v4895_v44 = vpop.f32.mrf.mxu2  ;;  %v4812_v49 = vpop.f32.mrf.mxu0 }
 0x35f   :  { %v4938_v61 = vpop.f32.mrf.mxu3  ;;  %v4896_v4 = vadd.f32 %v4895_v44, %v4853_v41  ;;  %v4855_v9 = vpop.f32.mrf.mxu1  ;;  %v4813_v23 = vadd.f32 %v4812_v49, %v9975_v8  ;;  %v6147_v8 = vld [vmem:[%s10665_s0 + $0x4f0] sm:$0xf]  ;;  %v7961_v41 = vld [vmem:[%s10664_s1 + $0x880] sm:$0xff]  ;;  %v7686_v49 = vld [vmem:[%s10665_s0 + $0x6a4] sm:$0xf0] }
 0x360   :  { %v6148_v55 = vor.u32 %v7649_v7, %v6147_v8  ;;  %5230 = vmatpush.bf16.msra.mxu2 %v7961_v41  ;;  %v6291_v44 = vld [vmem:[%s10665_s0 + $0x610] sm:$0xf]  ;;  %5144 = vmatpush.bf16.msra.mxu0 %v7945_v40 }
 0x361   :  { %v10257_v53 = vadd.f32 %v4938_v61, %v4896_v4  ;;  %v4856_v17 = vadd.f32 %v4855_v9, %v4813_v23  ;;  %4988 = vmatmul.bf16.gmra.mxu0 %v6004_v25  ;;  %v7685_v61 = vld [vmem:[%s10665_s0 + $0x69c] sm:$0xf0]  ;;  %v7667_v25 = vld [vmem:[%s10665_s0 + $0x614] sm:$0xf]  ;;  %v6299_v4 = vld [vmem:[%s10665_s0 + $0x618] sm:$0xf] }
 0x362   :  { %5031 = vmatmul.bf16.gmra.mxu1 %v6008_v0  ;;  %v6293_v0 = vld [vmem:[%s10665_s0 + $0x6a0] sm:$0xf0]  ;;  %v7668_v9 = vld [vmem:[%s10665_s0 + $0x61c] sm:$0xf] }
 0x363   :  { %5074 = vmatmul.bf16.gmra.mxu2 %v6012_v52  ;;  %v6301_v52 = vld [vmem:[%s10665_s0 + $0x6a8] sm:$0xf0] }
 0x364   :  { %5117 = vmatmul.bf16.gmra.mxu3 %v6016_v13 }
 0x366   :  { %v4898_v16 = vpop.f32.mrf.mxu2  ;;  %v4814_v56 = vpop.f32.mrf.mxu0 }
 0x367   :  { %v4941_v6 = vpop.f32.mrf.mxu3  ;;  %v4899_v20 = vadd.f32 %v4898_v16, %v4856_v17  ;;  %v4857_v2 = vpop.f32.mrf.mxu1  ;;  %v4815_v43 = vadd.f32 %v4814_v56, %v10014_v48  ;;  %v7970_v48 = vld [vmem:[%s10664_s1 + $0x8c8] sm:$0xff]  ;;  %v6292_v17 = vor.u32 %v7685_v61, %v6291_v44  ;;  %v6296_v16 = vor.u32 %v7667_v25, %v6293_v0  ;;  %v7507_v61 = vld [vmem:[%s10665_s0 + $0x10c] sm:$0xf0]  ;;  %v5589_v25 = vld [vmem:[%s10665_s0 + $0x110] sm:$0xf0] }
 0x368   :  { %5272 = vmatpush.bf16.msra.mxu3 %v7970_v48  ;;  %v7508_v0 = vld [vmem:[%s10665_s0 + $0x114] sm:$0xf0] }
 0x369   :  { %v10260_v12 = vadd.f32 %v4941_v6, %v4899_v20  ;;  %v4858_v22 = vadd.f32 %v4857_v2, %v4815_v43  ;;  %v6300_v2 = vor.u32 %v7686_v49, %v6299_v4  ;;  %v6304_v43 = vor.u32 %v7668_v9, %v6301_v52  ;;  %v7490_v4 = vld [vmem:[%s10665_s0 + $0x8c] sm:$0xf]  ;;  %v5597_v49 = vld [vmem:[%s10665_s0 + $0x118] sm:$0xf0] }
 0x36c   :  { %5273 = vmatpush.bf16.msra.mxu3 %v7969_v59 }
 0x36e   :  { %v4900_v29 = vpop.f32.mrf.mxu2  ;;  %v4817_v36 = vpop.f32.mrf.mxu0 }
 0x36f   :  { %v4943_v28 = vpop.f32.mrf.mxu3  ;;  %v4901_v31 = vadd.f32 %v4900_v29, %v4858_v22  ;;  %v4860_v51 = vpop.f32.mrf.mxu1  ;;  %v4818_v39 = vadd.f32 %v4817_v36, %v10020_v32  ;;  %v1522_v29 = vunpack.c.h.b16 %v247_v19  ;;  %v1773_v36 = vpack.c.b16 %v1521_v21, %v1521_v21  ;;  %v5731_v19 = vld [vmem:[%s10665_s0 + $0x1a0] sm:$0xf]  ;;  %v7544_v21 = vld [vmem:[%s10665_s0 + $0x234] sm:$0xf0] }
 0x371   :  { %v10299_v63 = vadd.f32 %v4943_v28, %v4901_v31  ;;  %v4861_v35 = vadd.f32 %v4860_v51, %v4818_v39  ;;  %4993 = vmatmul.bf16.gmra.mxu0 %v6148_v55  ;;  %v1774_v51 = vpack.c.b16 %v1522_v29, %v1522_v29  ;;  %v7526_v29 = vld [vmem:[%s10665_s0 + $0x1ac] sm:$0xf] }
 0x372   :  { %5036 = vmatmul.bf16.gmra.mxu1 %v6152_v30 }
 0x373   :  { %5079 = vmatmul.bf16.gmra.mxu2 %v6156_v34 }
 0x374   :  { %5122 = vmatmul.bf16.gmra.mxu3 %v6160_v3 }
 0x376   :  { %v4903_v42 = vpop.f32.mrf.mxu2  ;;  %v4819_v58 = vpop.f32.mrf.mxu0 }
 0x377   :  { %v4946_v50 = vpop.f32.mrf.mxu3  ;;  %v4904_v38 = vadd.f32 %v4903_v42, %v4861_v35  ;;  %v4862_v57 = vpop.f32.mrf.mxu1  ;;  %v4820_v45 = vadd.f32 %v4819_v58, %v10056_v62  ;;  %v7953_v62 = vld [vmem:[%s10664_s1 + $0x840] sm:$0xff] }
 0x378   :  { %5187 = vmatpush.bf16.msra.mxu1 %v7953_v62  ;;  %v7489_v62 = vld [vmem:[%s10665_s0 + $0x84] sm:$0xf] }
 0x379   :  { %v10305_v32 = vadd.f32 %v4946_v50, %v4904_v38  ;;  %v4863_v60 = vadd.f32 %v4862_v57, %v4820_v45 }
 0x37e   :  { %v4905_v13 = vpop.f32.mrf.mxu2  ;;  %v4822_v20 = vpop.f32.mrf.mxu0 }
 0x37f   :  { %v4948_v23 = vpop.f32.mrf.mxu3  ;;  %v4906_v6 = vadd.f32 %v4905_v13, %v4863_v60  ;;  %v4865_v56 = vpop.f32.mrf.mxu1  ;;  %v4823_v8 = vadd.f32 %v4822_v20, %v10074_v24  ;;  %v248_v24 = vld [vmem:[%s10665_s0 + $0x738] sm:$0x11] }
 0x380   :  { %v1523_v28 = vunpack.c.l.b16 %v248_v24  ;;  %v1524_v55 = vunpack.c.h.b16 %v248_v24  ;;  %v5733_v24 = vld [vmem:[%s10665_s0 + $0x230] sm:$0xf0] }
 0x381   :  { %v10341_v7 = vadd.f32 %v4948_v23, %v4906_v6  ;;  %v4866_v46 = vadd.f32 %v4865_v56, %v4823_v8  ;;  %4998 = vmatmul.bf16.gmra.mxu0 %v6292_v17  ;;  %v5592_v23 = vor.u32 %v7489_v62, %v5589_v25  ;;  %v5600_v56 = vor.u32 %v7490_v4, %v5597_v49  ;;  %v7580_v62 = vld [vmem:[%s10665_s0 + $0x354] sm:$0xf0]  ;;  %v7562_v25 = vld [vmem:[%s10665_s0 + $0x2cc] sm:$0xf] }
 0x382   :  { %5041 = vmatmul.bf16.gmra.mxu1 %v6296_v16  ;;  %v1775_v35 = vpack.c.b16 %v1523_v28, %v1523_v28  ;;  %v5741_v28 = vld [vmem:[%s10665_s0 + $0x238] sm:$0xf0] }
 0x383   :  { %5084 = vmatmul.bf16.gmra.mxu2 %v6300_v2 }
 0x384   :  { %5127 = vmatmul.bf16.gmra.mxu3 %v6304_v43 }
 0x386   :  { %v4908_v22 = vpop.f32.mrf.mxu2  ;;  %v4824_v15 = vpop.f32.mrf.mxu0 }
 0x387   :  { %v4951_v11 = vpop.f32.mrf.mxu3  ;;  %v4909_v48 = vadd.f32 %v4908_v22, %v4866_v46  ;;  %v4867_v10 = vpop.f32.mrf.mxu1  ;;  %v4825_v14 = vadd.f32 %v4824_v15, %v10080_v54  ;;  %v1776_v54 = vpack.c.b16 %v1524_v55, %v1524_v55 }
 0x389   :  { %v10350_v26 = vadd.f32 %v4951_v11, %v4909_v48  ;;  %v4868_v18 = vadd.f32 %v4867_v10, %v4825_v14  ;;  %v7525_v14 = vld [vmem:[%s10665_s0 + $0x1a4] sm:$0xf] }
 0x38e   :  { %v4910_v30 = vpop.f32.mrf.mxu2  ;;  %v4827_v3 = vpop.f32.mrf.mxu0 }
 0x38f   :  { %v4953_v31 = vpop.f32.mrf.mxu3  ;;  %v4911_v34 = vadd.f32 %v4910_v30, %v4868_v18  ;;  %v4870_v39 = vpop.f32.mrf.mxu1  ;;  %v4828_v41 = vadd.f32 %v4827_v3, %v10095_v47  ;;  %v5587_v47 = vld [vmem:[%s10665_s0 + $0x80] sm:$0xf]  ;;  %v5739_v18 = vld [vmem:[%s10665_s0 + $0x1a8] sm:$0xf] }
 0x390   :  { %v5588_v13 = vor.u32 %v7507_v61, %v5587_v47  ;;  %v5740_v3 = vor.u32 %v7544_v21, %v5739_v18  ;;  %v7561_v47 = vld [vmem:[%s10665_s0 + $0x2c4] sm:$0xf]  ;;  %v5877_v61 = vld [vmem:[%s10665_s0 + $0x350] sm:$0xf0]  ;;  %v7616_v18 = vld [vmem:[%s10665_s0 + $0x474] sm:$0xf0] }
 0x391   :  { %v10353_v42 = vadd.f32 %v4953_v31, %v4911_v34  ;;  %v4871_v50 = vadd.f32 %v4870_v39, %v4828_v41  ;;  %5003 = vmatmul.bf16.gmra.mxu0 %v1773_v36  ;;  %v5736_v36 = vor.u32 %v7525_v14, %v5733_v24  ;;  %v5744_v39 = vor.u32 %v7526_v29, %v5741_v28  ;;  %v7597_v14 = vld [vmem:[%s10665_s0 + $0x3e4] sm:$0xf]  ;;  %v6021_v24 = vld [vmem:[%s10665_s0 + $0x470] sm:$0xf0]  ;;  %v7598_v21 = vld [vmem:[%s10665_s0 + $0x3ec] sm:$0xf] }
 0x392   :  { %5046 = vmatmul.bf16.gmra.mxu1 %v1774_v51  ;;  %v6029_v29 = vld [vmem:[%s10665_s0 + $0x478] sm:$0xf0] }
 0x393   :  { %5089 = vmatmul.bf16.gmra.mxu2 %v1775_v35 }
 0x394   :  { %5132 = vmatmul.bf16.gmra.mxu3 %v1776_v54 }
 0x396   :  { %v4913_v38 = vpop.f32.mrf.mxu2  ;;  %v4829_v45 = vpop.f32.mrf.mxu0 }
 0x397   :  { %v4956_v58 = vpop.f32.mrf.mxu3  ;;  %v4914_v57 = vadd.f32 %v4913_v38, %v4871_v50  ;;  %v4872_v40 = vpop.f32.mrf.mxu1  ;;  %v4830_v59 = vadd.f32 %v4829_v45, %v10122_v5  ;;  %v5595_v5 = vld [vmem:[%s10665_s0 + $0x88] sm:$0xf] }
 0x398   :  { %v5596_v20 = vor.u32 %v7508_v0, %v5595_v5  ;;  %v5885_v5 = vld [vmem:[%s10665_s0 + $0x358] sm:$0xf0] }
 0x399   :  { %v10356_v60 = vadd.f32 %v4956_v58, %v4914_v57  ;;  %v4873_v44 = vadd.f32 %v4872_v40, %v4830_v59 }
 0x39e   :  { %v4915_v9 = vpop.f32.mrf.mxu2  ;;  %v4832_v16 = vpop.f32.mrf.mxu0 }
 0x39f   :  { %v4958_v52 = vpop.f32.mrf.mxu3  ;;  %v4916_v17 = vadd.f32 %v4915_v9, %v4873_v44  ;;  %v4875_v6 = vpop.f32.mrf.mxu1  ;;  %v4833_v2 = vadd.f32 %v4832_v16, %v10136_v37  ;;  %v7543_v37 = vld [vmem:[%s10665_s0 + $0x22c] sm:$0xf0]  ;;  %v5875_v44 = vld [vmem:[%s10665_s0 + $0x2c0] sm:$0xf]  ;;  %v5880_v9 = vor.u32 %v7561_v47, %v5877_v61  ;;  %v5888_v16 = vor.u32 %v7562_v25, %v5885_v5  ;;  %v7633_v61 = vld [vmem:[%s10665_s0 + $0x504] sm:$0xf] }
 0x3a0   :  { %v5732_v31 = vor.u32 %v7543_v37, %v5731_v19  ;;  %v7615_v37 = vld [vmem:[%s10665_s0 + $0x46c] sm:$0xf0]  ;;  %v7634_v25 = vld [vmem:[%s10665_s0 + $0x50c] sm:$0xf]  ;;  %v6173_v5 = vld [vmem:[%s10665_s0 + $0x598] sm:$0xf0] }
 0x3a1   :  { %v10383_v43 = vadd.f32 %v4958_v52, %v4916_v17  ;;  %v4876_v8 = vadd.f32 %v4875_v6, %v4833_v2  ;;  %5145 = vmatmul.bf16.vlgmr.msra.gmra.mxu0 %v5588_v13  ;;  %v7651_v47 = vld [vmem:[%s10665_s0 + $0x58c] sm:$0xf0] }
 0x3a2   :  { %5188 = vmatmul.bf16.vlgmr.msra.gmra.mxu1 %v5592_v23 }
 0x3a3   :  { %5231 = vmatmul.bf16.vlgmr.msra.gmra.mxu2 %v5596_v20 }
 0x3a4   :  { %5274 = vmatmul.bf16.vlgmr.msra.gmra.mxu3 %v5600_v56 }
 0x3a6   :  { %v4918_v46 = vpop.f32.mrf.mxu2  ;;  %v4834_v48 = vpop.f32.mrf.mxu0 }
 0x3a7   :  { %v4961_v22 = vpop.f32.mrf.mxu3  ;;  %v4919_v11 = vadd.f32 %v4918_v46, %v4876_v8  ;;  %v4877_v15 = vpop.f32.mrf.mxu1 }
 0x3a9   :  { %v10385_v10 = vadd.f32 %v4961_v22, %v4919_v11 }
 0x3ae   :  { %v4920_v55 = vpop.f32.mrf.mxu2  ;;  %v4974_v51 = vpop.f32.mrf.mxu0 }
 0x3af   :  { %v4963_v30 = vpop.f32.mrf.mxu3  ;;  %v5017_v34 = vpop.f32.mrf.mxu1  ;;  %v4975_v35 = vadd.f32 %v4974_v51, %v10176_v1  ;;  %v7579_v1 = vld [vmem:[%s10665_s0 + $0x34c] sm:$0xf0] }
 0x3b0   :  { %v5876_v49 = vor.u32 %v7579_v1, %v5875_v44 }
 0x3b1   :  { %v5018_v54 = vadd.f32 %v5017_v34, %v4975_v35  ;;  %5150 = vmatmul.bf16.gmra.mxu0 %v5732_v31  ;;  %v6024_v31 = vor.u32 %v7597_v14, %v6021_v24  ;;  %v7687_v14 = vld [vmem:[%s10665_s0 + $0x6ac] sm:$0xf0]  ;;  %v7669_v24 = vld [vmem:[%s10665_s0 + $0x624] sm:$0xf] }
 0x3b2   :  { %5193 = vmatmul.bf16.gmra.mxu1 %v5736_v36 }
 0x3b3   :  { %5236 = vmatmul.bf16.gmra.mxu2 %v5740_v3 }
 0x3b4   :  { %5279 = vmatmul.bf16.gmra.mxu3 %v5744_v39  ;;  %v6032_v39 = vor.u32 %v7598_v21, %v6029_v29  ;;  %v7670_v21 = vld [vmem:[%s10665_s0 + $0x62c] sm:$0xf]  ;;  %v6317_v29 = vld [vmem:[%s10665_s0 + $0x6b8] sm:$0xf0] }
 0x3b6   :  { %v5060_v41 = vpop.f32.mrf.mxu2  ;;  %v4976_v58 = vpop.f32.mrf.mxu0 }
 0x3b7   :  { %v5103_v50 = vpop.f32.mrf.mxu3  ;;  %v5061_v38 = vadd.f32 %v5060_v41, %v5018_v54  ;;  %v5019_v57 = vpop.f32.mrf.mxu1  ;;  %v4977_v45 = vadd.f32 %v4976_v58, %v10212_v27  ;;  %v5883_v27 = vld [vmem:[%s10665_s0 + $0x2c8] sm:$0xf] }
 0x3b8   :  { %v5884_v17 = vor.u32 %v7580_v62, %v5883_v27  ;;  %v6165_v27 = vld [vmem:[%s10665_s0 + $0x590] sm:$0xf0]  ;;  %v7652_v62 = vld [vmem:[%s10665_s0 + $0x594] sm:$0xf0] }
 0x3b9   :  { %v10413_v40 = vadd.f32 %v5103_v50, %v5061_v38  ;;  %v5020_v59 = vadd.f32 %v5019_v57, %v4977_v45 }
 0x3be   :  { %v5062_v0 = vpop.f32.mrf.mxu2  ;;  %v4979_v13 = vpop.f32.mrf.mxu0 }
 0x3bf   :  { %v5105_v4 = vpop.f32.mrf.mxu3  ;;  %v5063_v52 = vadd.f32 %v5062_v0, %v5020_v59  ;;  %v5022_v23 = vpop.f32.mrf.mxu1  ;;  %v4980_v6 = vadd.f32 %v4979_v13, %v10218_v33  ;;  %v6019_v33 = vld [vmem:[%s10665_s0 + $0x3e0] sm:$0xf] }
 0x3c0   :  { %v6020_v30 = vor.u32 %v7615_v37, %v6019_v33 }
 0x3c1   :  { %v10440_v20 = vadd.f32 %v5105_v4, %v5063_v52  ;;  %v5023_v56 = vadd.f32 %v5022_v23, %v4980_v6  ;;  %5155 = vmatmul.bf16.gmra.mxu0 %v5876_v49 }
 0x3c2   :  { %5198 = vmatmul.bf16.gmra.mxu1 %v5880_v9  ;;  %v6168_v9 = vor.u32 %v7633_v61, %v6165_v27 }
 0x3c3   :  { %5241 = vmatmul.bf16.gmra.mxu2 %v5884_v17 }
 0x3c4   :  { %5284 = vmatmul.bf16.gmra.mxu3 %v5888_v16  ;;  %v6176_v16 = vor.u32 %v7634_v25, %v6173_v5 }
 0x3c6   :  { %v5065_v2 = vpop.f32.mrf.mxu2  ;;  %v4981_v22 = vpop.f32.mrf.mxu0 }
 0x3c7   :  { %v5108_v8 = vpop.f32.mrf.mxu3  ;;  %v5066_v46 = vadd.f32 %v5065_v2, %v5023_v56  ;;  %v5024_v11 = vpop.f32.mrf.mxu1  ;;  %v4982_v48 = vadd.f32 %v4981_v22, %v10257_v53  ;;  %v6027_v53 = vld [vmem:[%s10665_s0 + $0x3e8] sm:$0xf] }
 0x3c8   :  { %v6028_v3 = vor.u32 %v7616_v18, %v6027_v53  ;;  %v6309_v53 = vld [vmem:[%s10665_s0 + $0x6b0] sm:$0xf0]  ;;  %v7688_v18 = vld [vmem:[%s10665_s0 + $0x6b4] sm:$0xf0] }
 0x3c9   :  { %v10443_v15 = vadd.f32 %v5108_v8, %v5066_v46  ;;  %v5025_v19 = vadd.f32 %v5024_v11, %v4982_v48 }
 0x3ce   :  { %v5067_v28 = vpop.f32.mrf.mxu2  ;;  %v4984_v51 = vpop.f32.mrf.mxu0 }
 0x3cf   :  { %v5110_v55 = vpop.f32.mrf.mxu3  ;;  %v5068_v36 = vadd.f32 %v5067_v28, %v5025_v19  ;;  %v5027_v34 = vpop.f32.mrf.mxu1  ;;  %v4985_v35 = vadd.f32 %v4984_v51, %v10260_v12  ;;  %v6163_v12 = vld [vmem:[%s10665_s0 + $0x500] sm:$0xf] }
 0x3d0   :  { %v6164_v49 = vor.u32 %v7651_v47, %v6163_v12 }
 0x3d1   :  { %v10470_v54 = vadd.f32 %v5110_v55, %v5068_v36  ;;  %v5028_v41 = vadd.f32 %v5027_v34, %v4985_v35  ;;  %5160 = vmatmul.bf16.gmra.mxu0 %v6020_v30 }
 0x3d2   :  { %5203 = vmatmul.bf16.gmra.mxu1 %v6024_v31  ;;  %v6312_v31 = vor.u32 %v7669_v24, %v6309_v53 }
 0x3d3   :  { %5246 = vmatmul.bf16.gmra.mxu2 %v6028_v3 }
 0x3d4   :  { %5289 = vmatmul.bf16.gmra.mxu3 %v6032_v39  ;;  %v6320_v39 = vor.u32 %v7670_v21, %v6317_v29 }
 0x3d6   :  { %v5070_v50 = vpop.f32.mrf.mxu2  ;;  %v4986_v57 = vpop.f32.mrf.mxu0 }
 0x3d7   :  { %v5113_v38 = vpop.f32.mrf.mxu3  ;;  %v5071_v58 = vadd.f32 %v5070_v50, %v5028_v41  ;;  %v5029_v45 = vpop.f32.mrf.mxu1  ;;  %v4987_v59 = vadd.f32 %v4986_v57, %v10299_v63  ;;  %v6171_v63 = vld [vmem:[%s10665_s0 + $0x508] sm:$0xf] }
 0x3d8   :  { %v6172_v17 = vor.u32 %v7652_v62, %v6171_v63 }
 0x3d9   :  { %v10473_v44 = vadd.f32 %v5113_v38, %v5071_v58  ;;  %v5030_v1 = vadd.f32 %v5029_v45, %v4987_v59 }
 0x3de   :  { %v5072_v0 = vpop.f32.mrf.mxu2  ;;  %v4989_v13 = vpop.f32.mrf.mxu0 }
 0x3df   :  { %v5115_v4 = vpop.f32.mrf.mxu3  ;;  %v5073_v52 = vadd.f32 %v5072_v0, %v5030_v1  ;;  %v5032_v23 = vpop.f32.mrf.mxu1  ;;  %v4990_v6 = vadd.f32 %v4989_v13, %v10305_v32  ;;  %v6307_v32 = vld [vmem:[%s10665_s0 + $0x620] sm:$0xf] }
 0x3e0   :  { %v6308_v30 = vor.u32 %v7687_v14, %v6307_v32  ;;  %v249_v1 = vld [vmem:[%s10665_s0 + $0x740] sm:$0x11] }
 0x3e1   :  { %v10500_v56 = vadd.f32 %v5115_v4, %v5073_v52  ;;  %v5033_v2 = vadd.f32 %v5032_v23, %v4990_v6  ;;  %5165 = vmatmul.bf16.gmra.mxu0 %v6164_v49  ;;  %v1525_v27 = vunpack.c.l.b16 %v249_v1  ;;  %v1526_v63 = vunpack.c.h.b16 %v249_v1 }
 0x3e2   :  { %5208 = vmatmul.bf16.gmra.mxu1 %v6168_v9 }
 0x3e3   :  { %5251 = vmatmul.bf16.gmra.mxu2 %v6172_v17  ;;  %v1777_v4 = vpack.c.b16 %v1525_v27, %v1525_v27  ;;  %v1778_v49 = vpack.c.b16 %v1526_v63, %v1526_v63 }
 0x3e4   :  { %5294 = vmatmul.bf16.gmra.mxu3 %v6176_v16 }
 0x3e6   :  { %v5075_v8 = vpop.f32.mrf.mxu2  ;;  %v4991_v11 = vpop.f32.mrf.mxu0 }
 0x3e7   :  { %v5118_v46 = vpop.f32.mrf.mxu3  ;;  %v5076_v22 = vadd.f32 %v5075_v8, %v5033_v2  ;;  %v5034_v48 = vpop.f32.mrf.mxu1  ;;  %v4992_v19 = vadd.f32 %v4991_v11, %v10341_v7  ;;  %v6315_v7 = vld [vmem:[%s10665_s0 + $0x628] sm:$0xf] }
 0x3e8   :  { %v6316_v3 = vor.u32 %v7688_v18, %v6315_v7 }
 0x3e9   :  { %v10503_v33 = vadd.f32 %v5118_v46, %v5076_v22  ;;  %v5035_v37 = vadd.f32 %v5034_v48, %v4992_v19 }
 0x3ee   :  { %v5077_v28 = vpop.f32.mrf.mxu2  ;;  %v4994_v51 = vpop.f32.mrf.mxu0 }
 0x3ef   :  { %v5120_v55 = vpop.f32.mrf.mxu3  ;;  %v5078_v36 = vadd.f32 %v5077_v28, %v5035_v37  ;;  %v5037_v34 = vpop.f32.mrf.mxu1  ;;  %v4995_v35 = vadd.f32 %v4994_v51, %v10350_v26  ;;  %v250_v26 = vld [vmem:[%s10665_s0 + $0x748] sm:$0x11] }
 0x3f0   :  { %v1527_v62 = vunpack.c.l.b16 %v250_v26  ;;  %v1528_v25 = vunpack.c.h.b16 %v250_v26 }
 0x3f1   :  { %v10530_v41 = vadd.f32 %v5120_v55, %v5078_v36  ;;  %v5038_v50 = vadd.f32 %v5037_v34, %v4995_v35  ;;  %5170 = vmatmul.bf16.gmra.mxu0 %v6308_v30 }
 0x3f2   :  { %5213 = vmatmul.bf16.gmra.mxu1 %v6312_v31  ;;  %v1779_v23 = vpack.c.b16 %v1527_v62, %v1527_v62 }
 0x3f3   :  { %5256 = vmatmul.bf16.gmra.mxu2 %v6316_v3 }
 0x3f4   :  { %5299 = vmatmul.bf16.gmra.mxu3 %v6320_v39 }
 0x3f6   :  { %v5080_v38 = vpop.f32.mrf.mxu2  ;;  %v4996_v45 = vpop.f32.mrf.mxu0 }
 0x3f7   :  { %v5123_v58 = vpop.f32.mrf.mxu3  ;;  %v5081_v57 = vadd.f32 %v5080_v38, %v5038_v50  ;;  %v5039_v59 = vpop.f32.mrf.mxu1  ;;  %v4997_v12 = vadd.f32 %v4996_v45, %v10353_v42  ;;  %v1780_v42 = vpack.c.b16 %v1528_v25, %v1528_v25 }
 0x3f9   :  { %v10539_v47 = vadd.f32 %v5123_v58, %v5081_v57  ;;  %v5040_v61 = vadd.f32 %v5039_v59, %v4997_v12 }
 0x3fe   :  { %v5082_v5 = vpop.f32.mrf.mxu2  ;;  %v4999_v52 = vpop.f32.mrf.mxu0 }
 0x3ff   :  { %v5125_v0 = vpop.f32.mrf.mxu3  ;;  %v5083_v9 = vadd.f32 %v5082_v5, %v5040_v61  ;;  %v5042_v13 = vpop.f32.mrf.mxu1  ;;  %v5000_v17 = vadd.f32 %v4999_v52, %v10356_v60 }
 0x401   :  { %v10542_v16 = vadd.f32 %v5125_v0, %v5083_v9  ;;  %v5043_v6 = vadd.f32 %v5042_v13, %v5000_v17  ;;  %5175 = vmatmul.bf16.gmra.mxu0 %v1777_v4 }
 0x402   :  { %5218 = vmatmul.bf16.gmra.mxu1 %v1778_v49 }
 0x403   :  { %5261 = vmatmul.bf16.gmra.mxu2 %v1779_v23 }
 0x404   :  { %5304 = vmatmul.bf16.gmra.mxu3 %v1780_v42 }
 0x406   :  { %v5085_v2 = vpop.f32.mrf.mxu2  ;;  %v5001_v22 = vpop.f32.mrf.mxu0 }
 0x407   :  { %v5128_v8 = vpop.f32.mrf.mxu3  ;;  %v5086_v46 = vadd.f32 %v5085_v2, %v5043_v6  ;;  %v5044_v11 = vpop.f32.mrf.mxu1  ;;  %v5002_v48 = vadd.f32 %v5001_v22, %v10383_v43 }
 0x409   :  { %v10545_v19 = vadd.f32 %v5128_v8, %v5086_v46  ;;  %v5045_v37 = vadd.f32 %v5044_v11, %v5002_v48 }
 0x40e   :  { %v5087_v32 = vpop.f32.mrf.mxu2  ;;  %v5004_v24 = vpop.f32.mrf.mxu0 }
 0x40f   :  { %v5130_v14 = vpop.f32.mrf.mxu3  ;;  %v5088_v60 = vadd.f32 %v5087_v32, %v5045_v37  ;;  %v5047_v53 = vpop.f32.mrf.mxu1  ;;  %v5005_v7 = vadd.f32 %v5004_v24, %v10385_v10 }
 0x411   :  { %v10548_v18 = vadd.f32 %v5130_v14, %v5088_v60  ;;  %v5048_v21 = vadd.f32 %v5047_v53, %v5005_v7 }
 0x416   :  { %v5090_v29 = vpop.f32.mrf.mxu2  ;;  %v5006_v30 = vpop.f32.mrf.mxu0 }
 0x417   :  { %v5133_v28 = vpop.f32.mrf.mxu3  ;;  %v5091_v55 = vadd.f32 %v5090_v29, %v5048_v21  ;;  %v5049_v31 = vpop.f32.mrf.mxu1 }
 0x419   :  { %v10550_v36 = vadd.f32 %v5133_v28, %v5091_v55 }
 0x41e   :  { %v5092_v43 = vpop.f32.mrf.mxu2  ;;  %v5146_v34 = vpop.f32.mrf.mxu0 }
 0x41f   :  { %v5135_v51 = vpop.f32.mrf.mxu3  ;;  %v5189_v3 = vpop.f32.mrf.mxu1  ;;  %v5147_v39 = vadd.f32 %v5146_v34, %v10413_v40 }
 0x421   :  { %v5190_v35 = vadd.f32 %v5189_v3, %v5147_v39 }
 0x426   :  { %v5232_v50 = vpop.f32.mrf.mxu2  ;;  %v5148_v58 = vpop.f32.mrf.mxu0 }
 0x427   :  { %v5275_v38 = vpop.f32.mrf.mxu3  ;;  %v5233_v10 = vadd.f32 %v5232_v50, %v5190_v35  ;;  %v5191_v57 = vpop.f32.mrf.mxu1  ;;  %v5149_v45 = vadd.f32 %v5148_v58, %v10440_v20 }
 0x429   :  { %v10554_v59 = vadd.f32 %v5275_v38, %v5233_v10  ;;  %v5192_v1 = vadd.f32 %v5191_v57, %v5149_v45 }
 0x42e   :  { %v5234_v12 = vpop.f32.mrf.mxu2  ;;  %v5151_v27 = vpop.f32.mrf.mxu0 }
 0x42f   :  { %v5277_v26 = vpop.f32.mrf.mxu3  ;;  %v5235_v61 = vadd.f32 %v5234_v12, %v5192_v1  ;;  %v5194_v63 = vpop.f32.mrf.mxu1  ;;  %v5152_v62 = vadd.f32 %v5151_v27, %v10443_v15 }
 0x431   :  { %v10557_v25 = vadd.f32 %v5277_v26, %v5235_v61  ;;  %v5195_v40 = vadd.f32 %v5194_v63, %v5152_v62 }
 0x433   :  { %v5330_v53 = vmul.f32 %v10557_v25, %v10557_v25 }
 0x436   :  { %v5237_v5 = vpop.f32.mrf.mxu2  ;;  %v5153_v49 = vpop.f32.mrf.mxu0 }
 0x437   :  { %v5280_v0 = vpop.f32.mrf.mxu3  ;;  %v5238_v4 = vadd.f32 %v5237_v5, %v5195_v40  ;;  %v5196_v9 = vpop.f32.mrf.mxu1  ;;  %v5154_v17 = vadd.f32 %v5153_v49, %v10470_v54 }
 0x439   :  { %v10559_v52 = vadd.f32 %v5280_v0, %v5238_v4  ;;  %v5197_v22 = vadd.f32 %v5196_v9, %v5154_v17 }
 0x43b   :  { %v5331_v28 = vmul.f32 %v10559_v52, %v10559_v52 }
 0x43e   :  { %v5239_v20 = vpop.f32.mrf.mxu2  ;;  %v5156_v23 = vpop.f32.mrf.mxu0 }
 0x43f   :  { %v5282_v13 = vpop.f32.mrf.mxu3  ;;  %v5199_v42 = vpop.f32.mrf.mxu1  ;;  %v5157_v15 = vadd.f32 %v5156_v23, %v10473_v44  ;;  %v5240_v48 = vadd.f32 %v5239_v20, %v5197_v22  ;;  %v5329_v44 = vmul.f32 %v10554_v59, %v10554_v59 }
 0x441   :  { %v5200_v37 = vadd.f32 %v5199_v42, %v5157_v15  ;;  %v10566_v7 = vadd.f32 %v5282_v13, %v5240_v48  ;;  %v5342_v31 = vadd.f32 %v5330_v53, %v5329_v44 }
 0x443   :  { %v5332_v51 = vmul.f32 %v10566_v7, %v10566_v7  ;;  %v5343_v3 = vadd.f32 %v5342_v31, %v5331_v28 }
 0x445   :  { %v5344_v58 = vadd.f32 %v5343_v3, %v5332_v51 }
 0x446   :  { %v5242_v6 = vpop.f32.mrf.mxu2  ;;  %v5158_v8 = vpop.f32.mrf.mxu0 }
 0x447   :  { %v5285_v2 = vpop.f32.mrf.mxu3  ;;  %v5201_v46 = vpop.f32.mrf.mxu1  ;;  %v5159_v11 = vadd.f32 %v5158_v8, %v10500_v56  ;;  %v5243_v32 = vadd.f32 %v5242_v6, %v5200_v37  ;;  %v5309_v56 = vadd.f32 %v10557_v25, %v10554_v59 }
 0x449   :  { %v5202_v14 = vadd.f32 %v5201_v46, %v5159_v11  ;;  %v10574_v55 = vadd.f32 %v5285_v2, %v5243_v32  ;;  %v5310_v43 = vadd.f32 %v5309_v56, %v10559_v52 }
 0x44b   :  { %v5311_v39 = vadd.f32 %v5310_v43, %v10566_v7  ;;  %v5333_v35 = vmul.f32 %v10574_v55, %v10574_v55 }
 0x44d   :  { %v5345_v26 = vadd.f32 %v5344_v58, %v5333_v35 }
 0x44e   :  { %v5244_v60 = vpop.f32.mrf.mxu2  ;;  %v5161_v21 = vpop.f32.mrf.mxu0 }
 0x44f   :  { %v5287_v24 = vpop.f32.mrf.mxu3  ;;  %v5245_v54 = vadd.f32 %v5244_v60, %v5202_v14  ;;  %v5204_v29 = vpop.f32.mrf.mxu1  ;;  %v5162_v30 = vadd.f32 %v5161_v21, %v10503_v33  ;;  %v5312_v33 = vadd.f32 %v5311_v39, %v10574_v55 }
 0x451   :  { %v10580_v34 = vadd.f32 %v5287_v24, %v5245_v54  ;;  %v5205_v50 = vadd.f32 %v5204_v29, %v5162_v30 }
 0x453   :  { %v5334_v57 = vmul.f32 %v10580_v34, %v10580_v34  ;;  %v5313_v61 = vadd.f32 %v5312_v33, %v10580_v34 }
 0x455   :  { %v5346_v62 = vadd.f32 %v5345_v26, %v5334_v57 }
 0x456   :  { %v5247_v38 = vpop.f32.mrf.mxu2  ;;  %v5163_v1 = vpop.f32.mrf.mxu0 }
 0x457   :  { %v5290_v10 = vpop.f32.mrf.mxu3  ;;  %v5248_v45 = vadd.f32 %v5247_v38, %v5205_v50  ;;  %v5206_v12 = vpop.f32.mrf.mxu1  ;;  %v5164_v63 = vadd.f32 %v5163_v1, %v10530_v41 }
 0x459   :  { %v10589_v27 = vadd.f32 %v5290_v10, %v5248_v45  ;;  %v5207_v4 = vadd.f32 %v5206_v12, %v5164_v63 }
 0x45b   :  { %v5314_v40 = vadd.f32 %v5313_v61, %v10589_v27  ;;  %v5335_v5 = vmul.f32 %v10589_v27, %v10589_v27 }
 0x45d   :  { %v5347_v0 = vadd.f32 %v5346_v62, %v5335_v5 }
 0x45e   :  { %v5249_v49 = vpop.f32.mrf.mxu2  ;;  %v5166_v13 = vpop.f32.mrf.mxu0 }
 0x45f   :  { %v5292_v9 = vpop.f32.mrf.mxu3  ;;  %v5250_v20 = vadd.f32 %v5249_v49, %v5207_v4  ;;  %v5209_v23 = vpop.f32.mrf.mxu1  ;;  %v5167_v17 = vadd.f32 %v5166_v13, %v10539_v47 }
 0x461   :  { %v10595_v42 = vadd.f32 %v5292_v9, %v5250_v20  ;;  %v5210_v15 = vadd.f32 %v5209_v23, %v5167_v17 }
 0x463   :  { %v5315_v6 = vadd.f32 %v5314_v40, %v10595_v42  ;;  %v5336_v41 = vmul.f32 %v10595_v42, %v10595_v42 }
 0x465   :  { %v5348_v2 = vadd.f32 %v5347_v0, %v5336_v41 }
 0x466   :  { %v5252_v8 = vpop.f32.mrf.mxu2  ;;  %v5168_v11 = vpop.f32.mrf.mxu0 }
 0x467   :  { %v5295_v46 = vpop.f32.mrf.mxu3  ;;  %v5253_v22 = vadd.f32 %v5252_v8, %v5210_v15  ;;  %v5211_v48 = vpop.f32.mrf.mxu1  ;;  %v5169_v32 = vadd.f32 %v5168_v11, %v10542_v16 }
 0x469   :  { %v10601_v37 = vadd.f32 %v5295_v46, %v5253_v22  ;;  %v5212_v24 = vadd.f32 %v5211_v48, %v5169_v32 }
 0x46b   :  { %v5316_v14 = vadd.f32 %v5315_v6, %v10601_v37  ;;  %v5337_v47 = vmul.f32 %v10601_v37, %v10601_v37 }
 0x46d   :  { %v5349_v60 = vadd.f32 %v5348_v2, %v5337_v47 }
 0x46e   :  { %v5254_v53 = vpop.f32.mrf.mxu2  ;;  %v5171_v29 = vpop.f32.mrf.mxu0 }
 0x46f   :  { %v5297_v54 = vpop.f32.mrf.mxu3  ;;  %v5255_v21 = vadd.f32 %v5254_v53, %v5212_v24  ;;  %v5214_v44 = vpop.f32.mrf.mxu1  ;;  %v5172_v28 = vadd.f32 %v5171_v29, %v10545_v19 }
 0x471   :  { %v10607_v56 = vadd.f32 %v5297_v54, %v5255_v21  ;;  %v5215_v43 = vadd.f32 %v5214_v44, %v5172_v28 }
 0x473   :  { %v5317_v30 = vadd.f32 %v5316_v14, %v10607_v56  ;;  %v5338_v16 = vmul.f32 %v10607_v56, %v10607_v56 }
 0x475   :  { %v5350_v31 = vadd.f32 %v5349_v60, %v5338_v16 }
 0x476   :  { %v5257_v51 = vpop.f32.mrf.mxu2  ;;  %v5173_v35 = vpop.f32.mrf.mxu0 }
 0x477   :  { %v5300_v3 = vpop.f32.mrf.mxu3  ;;  %v5258_v39 = vadd.f32 %v5257_v51, %v5215_v43  ;;  %v5216_v50 = vpop.f32.mrf.mxu1  ;;  %v5174_v10 = vadd.f32 %v5173_v35, %v10548_v18 }
 0x479   :  { %v10613_v38 = vadd.f32 %v5300_v3, %v5258_v39  ;;  %v5217_v57 = vadd.f32 %v5216_v50, %v5174_v10  ;;  %v5366_v50 = vld [vmem:[%s10666_s2] sm:$0x1] }
 0x47b   :  { %v5318_v58 = vadd.f32 %v5317_v30, %v10613_v38  ;;  %v5339_v19 = vmul.f32 %v10613_v38, %v10613_v38 }
 0x47d   :  { %v5351_v33 = vadd.f32 %v5350_v31, %v5339_v19 }
 0x47e   :  { %v5259_v45 = vpop.f32.mrf.mxu2  ;;  %v5176_v26 = vpop.f32.mrf.mxu0 }
 0x47f   :  { %v5302_v1 = vpop.f32.mrf.mxu3  ;;  %v5260_v12 = vadd.f32 %v5259_v45, %v5217_v57  ;;  %v5219_v61 = vpop.f32.mrf.mxu1  ;;  %v5177_v62 = vadd.f32 %v5176_v26, %v10550_v36 }
 0x481   :  { %v10619_v63 = vadd.f32 %v5302_v1, %v5260_v12  ;;  %v5220_v0 = vadd.f32 %v5219_v61, %v5177_v62 }
 0x483   :  { %v5319_v40 = vadd.f32 %v5318_v58, %v10619_v63  ;;  %v5340_v18 = vmul.f32 %v10619_v63, %v10619_v63 }
 0x485   :  { %v5352_v5 = vadd.f32 %v5351_v33, %v5340_v18  ;;  %v5379_v33 = vld [vmem:[%s10667_s3] sm:$0x1] }
 0x486   :  { %v5262_v4 = vpop.f32.mrf.mxu2  ;;  %v5178_v20 = vpop.f32.mrf.mxu0 }
 0x487   :  { %v5305_v49 = vpop.f32.mrf.mxu3  ;;  %v5263_v9 = vadd.f32 %v5262_v4, %v5220_v0  ;;  %v5221_v13 = vpop.f32.mrf.mxu1 }
 0x489   :  { %v5306_v23 = vadd.f32 %v5305_v49, %v5263_v9 }
 0x48b   :  { %v5321_v17 = vsel %vm5320_vm0, %v5306_v23, 0.0  ;;  %v5341_v6 = vmul.f32 %v5306_v23, %v5306_v23 }
 0x48c   :  { %v5322_v41 = vadd.f32 %v5321_v17, %v5319_v40 }
 0x48d   :  { %v5353_v2 = vsel %vm5320_vm0, %v5341_v6, 0.0 }
 0x48e   :  { %v5323_v15 = vrot.slane %v5322_v41, 4  ;;  %v5354_v36 = vadd.f32 %v5353_v2, %v5352_v5  ;;  %v5264_v8 = vpop.f32.mrf.mxu2 }
 0x48f   :  { %v5307_v46 = vpop.f32.mrf.mxu3 }
 0x490   :  { %v5324_v22 = vadd.f32 %v5323_v15, %v5322_v41  ;;  %v5355_v11 = vrot.slane %v5354_v36, 4 }
 0x492   :  { %v5325_v48 = vrot.slane %v5324_v22, 2  ;;  %v5356_v32 = vadd.f32 %v5355_v11, %v5354_v36 }
 0x494   :  { %v5326_v14 = vadd.f32 %v5325_v48, %v5324_v22  ;;  %v5357_v47 = vrot.slane %v5356_v32, 2 }
 0x496   :  { %v5327_v60 = vrot.slane %v5326_v14, 1  ;;  %v5358_v24 = vadd.f32 %v5357_v47, %v5356_v32 }
 0x498   :  { %v5328_v53 = vadd.f32 %v5327_v60, %v5326_v14  ;;  %v5359_v54 = vrot.slane %v5358_v24, 1 }
 0x49a   :  { %v5360_v21 = vadd.f32 %v5359_v54, %v5358_v24  ;;  %v5361_v29 = vmul.f32 0.010204081, %v5328_v53 }
 0x49c   :  { %v5362_v44 = vmul.f32 0.010204081, %v5360_v21  ;;  %v5363_v28 = vmul.f32 %v5361_v29, %v5361_v29 }
 0x49e   :  { %v5364_v30 = vsub.f32 %v5362_v44, %v5363_v28 }
 0x4a0   :  { %v5365_v16 = vmax.f32 %v5364_v30, 0.0 }
 0x4a2   :  { %v5367_v31 = vadd.f32 1e-05, %v5365_v16 }
 0x4a4   :  { %8012 = vrsqrt.f32 %v5367_v31  ;;  %vm5374_vm2 = vweird.f32 %v5367_v31 }
 0x4aa   :  { %v8013_v43 = vpop.eup %8012 }
 0x4ab   :  { %v5369_v51 = vmul.f32 %v8013_v43, %v5367_v31  ;;  %vm5375_vm1 = vweird.f32 %v8013_v43 }
 0x4ac   :  { %vm5376_vm3 = vmor %vm5374_vm2, %vm5375_vm1 }
 0x4ad   :  { %v5370_v3 = vmul.f32 %v8013_v43, %v5369_v51 }
 0x4af   :  { %v5371_v39 = vmul.f32 0.5, %v5370_v3 }
 0x4b1   :  { %v5372_v35 = vsub.f32 1.5, %v5371_v39 }
 0x4b3   :  { %v5373_v10 = vmul.f32 %v8013_v43, %v5372_v35 }
 0x4b5   :  { %v5377_v58 = vsel %vm5376_vm3, %v8013_v43, %v5373_v10 }
 0x4b6   :  { %v5378_v19 = vmul.f32 %v5377_v58, %v5366_v50 }
 0x4b8   :  { %v5380_v57 = vmul.f32 %v5378_v19, %v5361_v29  ;;  %v5383_v45 = vperm.slane %v5378_v19, 0 }
 0x4ba   :  { %v5381_v1 = vsub.f32 %v5379_v33, %v5380_v57  ;;  %v5385_v12 = vmul.f32 %v5383_v45, %v10554_v59  ;;  %v5386_v26 = vmul.f32 %v5383_v45, %v10557_v25  ;;  %v5387_v61 = vmul.f32 %v5383_v45, %v10559_v52 }
 0x4bb   :  { %v5390_v62 = vmul.f32 %v5383_v45, %v10580_v34  ;;  %v5391_v40 = vmul.f32 %v5383_v45, %v10589_v27  ;;  %v5392_v18 = vmul.f32 %v5383_v45, %v10595_v42  ;;  %v5393_v5 = vmul.f32 %v5383_v45, %v10601_v37 }
 0x4bc   :  { %v5394_v0 = vmul.f32 %v5383_v45, %v10607_v56  ;;  %v5395_v4 = vmul.f32 %v5383_v45, %v10613_v38  ;;  %v5388_v49 = vmul.f32 %v5383_v45, %v10566_v7  ;;  %v5396_v59 = vmul.f32 %v5383_v45, %v10619_v63 }
 0x4bd   :  { %v5397_v9 = vmul.f32 %v5383_v45, %v5306_v23  ;;  %v5399_v25 = vperm.slane %v5381_v1, 0  ;;  %v5389_v52 = vmul.f32 %v5383_v45, %v10574_v55 }
 0x4bf   :  { %v5401_v20 = vadd.f32 %v5399_v25, %v5385_v12  ;;  %v5402_v34 = vadd.f32 %v5399_v25, %v5386_v26  ;;  %v5403_v13 = vadd.f32 %v5399_v25, %v5387_v61  ;;  %v5404_v27 = vadd.f32 %v5399_v25, %v5388_v49 }
 0x4c0   :  { %v5405_v17 = vadd.f32 %v5399_v25, %v5389_v52  ;;  %v5406_v42 = vadd.f32 %v5399_v25, %v5390_v62  ;;  %v5407_v6 = vadd.f32 %v5399_v25, %v5391_v40  ;;  %v5408_v37 = vadd.f32 %v5399_v25, %v5392_v18 }
 0x4c1   :  { %v5409_v41 = vadd.f32 %v5399_v25, %v5393_v5  ;;  %v5410_v56 = vadd.f32 %v5399_v25, %v5394_v0  ;;  %v5411_v2 = vadd.f32 %v5399_v25, %v5395_v4  ;;  %v5412_v38 = vadd.f32 %v5399_v25, %v5396_v59 }
 0x4c2   :  { %v5413_v15 = vadd.f32 %v5399_v25, %v5397_v9  ;;  %v5414_v7 = vmax.f32 %v5401_v20, 0.0  ;;  %v5415_v36 = vmax.f32 %v5402_v34, 0.0  ;;  %v5416_v63 = vmax.f32 %v5403_v13, 0.0 }
 0x4c3   :  { %v5417_v23 = vmax.f32 %v5404_v27, 0.0  ;;  %v5418_v8 = vmax.f32 %v5405_v17, 0.0  ;;  %v5419_v46 = vmax.f32 %v5406_v42, 0.0  ;;  %v5420_v55 = vmax.f32 %v5407_v6, 0.0 }
 0x4c4   :  { %v5421_v22 = vmax.f32 %v5408_v37, 0.0  ;;  %v5422_v11 = vmax.f32 %v5409_v41, 0.0  ;;  %v5423_v48 = vmax.f32 %v5410_v56, 0.0  ;;  %v5424_v32 = vmax.f32 %v5411_v2, 0.0 }
 0x4c5   :  { %v5425_v14 = vmax.f32 %v5412_v38, 0.0  ;;  %v5426_v47 = vmax.f32 %v5413_v15, 0.0  ;;  %v7980_v60 = vpack.c.bf16 %v5415_v36, %v5414_v7  ;;  %v7985_v24 = vpack.c.bf16 %v5417_v23, %v5416_v63 }
 0x4c6   :  { %v7990_v53 = vpack.c.bf16 %v5419_v46, %v5418_v8  ;;  %v7995_v54 = vpack.c.bf16 %v5421_v22, %v5420_v55  ;;  %v8000_v21 = vpack.c.bf16 %v5423_v48, %v5422_v11 }
 0x4c7   :  { %7981 = vst [vmem:[%s10668_s4] sm:$0xff] %v7980_v60   ;;  %v8005_v29 = vpack.c.bf16 %v5425_v14, %v5424_v32  ;;  %v5439_v44 = vpack.c.bf16 %v5426_v47, %v5426_v47 }
 0x4c8   :  { %8007 = vst [vmem:[%s10668_s4 + $0x8] sm:$0xff] %v7985_v24  }
 0x4c9   :  { %8008 = vst [vmem:[%s10668_s4 + $0x10] sm:$0xff] %v7990_v53  }
 0x4ca   :  { %8009 = vst [vmem:[%s10668_s4 + $0x18] sm:$0xff] %v7995_v54  }
 0x4cb   :  { %8010 = vst [vmem:[%s10668_s4 + $0x20] sm:$0xff] %v8000_v21  }
 0x4cc   :  { %8011 = vst [vmem:[%s10668_s4 + $0x28] sm:$0xff] %v8005_v29  }
 0x4cd   :  { %5452 = vst [vmem:[%s10668_s4 + $0x30] sm:$0x1] %v5439_v44 }

// kernel: infogen_forward.6
= control target key start
LH: loop header
LB: loop body
LE: loop exit
PB: predicated region body
PF: predicated region fallthrough
CT: control target
= control target key end

     0   :  { %vm2868_vm0 = vcmask 523264   ;;  %vm2952_vm1 = vcmask 517120   ;;  %vm3294_vm5 = vcmask 519168   ;;  %vm3337_vm6 = vcmask 516096   ;;  %s7031_s1 = inlined_call_operand.vmem [shape: bf16[1152,64], index: 1, kind: input, shape index: {}]   ;;  %s7032_s0 = inlined_call_operand.vmem [shape: bf16[338,1152], index: 0, kind: input, shape index: {}]   ;;  %s7033_s2 = inlined_call_operand.vmem [shape: f32[1,64], index: 2, kind: input, shape index: {}]   ;;  %s7034_s3 = inlined_call_operand.vmem [shape: f32[1,64], index: 3, kind: input, shape index: {}]   ;;  %s7035_s4 = inlined_call_operand.vmem [shape: bf16[338,64], index: 4, kind: output, shape index: {}]  }
   0x1   :  { %v4583_v0 = vld [vmem:[%s7031_s1 + $0x38] sm:$0xff]  ;;  %v4582_v1 = vld [vmem:[%s7031_s1 + $0x30] sm:$0xff]  ;;  %v4581_v2 = vld [vmem:[%s7031_s1 + $0x28] sm:$0xff] }
   0x2   :  { %4648 = vmatpush.bf16.msra.mxu1 %v4583_v0  ;;  %4649 = vmatpush.bf16.msra.mxu2 %v4583_v0  ;;  %v4580_v3 = vld [vmem:[%s7031_s1 + $0x20] sm:$0xff]  ;;  %v4579_v4 = vld [vmem:[%s7031_s1 + $0x18] sm:$0xff]  ;;  %v4578_v5 = vld [vmem:[%s7031_s1 + $0x10] sm:$0xff] }
   0x3   :  { %1806 = vmatpush.bf16.msra.mxu0 %v4583_v0  ;;  %4650 = vmatpush.bf16.msra.mxu3 %v4583_v0  ;;  %v4577_v6 = vld [vmem:[%s7031_s1 + $0x8] sm:$0xff]  ;;  %v4576_v7 = vld [vmem:[%s7031_s1] sm:$0xff]  ;;  %v3561_v8 = vld [vmem:[%s7032_s0 + $0x1b0] sm:$0xf] }
   0x4   :  { %v4445_v9 = vld [vmem:[%s7032_s0 + $0x1d0] sm:$0xf0]  ;;  %v3777_v10 = vld [vmem:[%s7032_s0 + $0x360] sm:$0xf]  ;;  %v4499_v11 = vld [vmem:[%s7032_s0 + $0x380] sm:$0xf0] }
   0x5   :  { %v4599_v12 = vld [vmem:[%s7031_s1 + $0xb8] sm:$0xff]  ;;  %v3345_v13 = vld [vmem:[%s7032_s0] sm:$0xf]  ;;  %v4391_v14 = vld [vmem:[%s7032_s0 + $0x20] sm:$0xf0]  ;;  %v3562_v17 = vor.u32 %v4445_v9, %v3561_v8  ;;  %v3778_v18 = vor.u32 %v4499_v11, %v3777_v10 }
   0x6   :  { %4651 = vmatpush.bf16.msra.mxu1 %v4582_v1  ;;  %4652 = vmatpush.bf16.msra.mxu2 %v4582_v1  ;;  %v4591_v15 = vld [vmem:[%s7031_s1 + $0x78] sm:$0xff]  ;;  %v3346_v19 = vor.u32 %v4391_v14, %v3345_v13  ;;  %v3993_v20 = vld [vmem:[%s7032_s0 + $0x510] sm:$0xf]  ;;  %v4553_v21 = vld [vmem:[%s7032_s0 + $0x530] sm:$0xf0] }
   0x7   :  { %1807 = vmatpush.bf16.msra.mxu0 %v4582_v1  ;;  %4653 = vmatpush.bf16.msra.mxu3 %v4582_v1  ;;  %v4615_v16 = vld [vmem:[%s7031_s1 + $0x138] sm:$0xff]  ;;  %v4598_v22 = vld [vmem:[%s7031_s1 + $0xb0] sm:$0xff]  ;;  %v3994_v25 = vor.u32 %v4553_v21, %v3993_v20  ;;  %v4597_v27 = vld [vmem:[%s7031_s1 + $0xa8] sm:$0xff] }
   0x8   :  { %v4590_v23 = vld [vmem:[%s7031_s1 + $0x70] sm:$0xff]  ;;  %v4607_v26 = vld [vmem:[%s7031_s1 + $0xf8] sm:$0xff]  ;;  %v4589_v28 = vld [vmem:[%s7031_s1 + $0x68] sm:$0xff] }
   0x9   :  { %v4614_v24 = vld [vmem:[%s7031_s1 + $0x130] sm:$0xff]  ;;  %v4613_v29 = vld [vmem:[%s7031_s1 + $0x128] sm:$0xff]  ;;  %v4596_v31 = vld [vmem:[%s7031_s1 + $0xa0] sm:$0xff] }
   0xa   :  { %4654 = vmatpush.bf16.msra.mxu1 %v4581_v2  ;;  %4655 = vmatpush.bf16.msra.mxu2 %v4581_v2  ;;  %v4606_v30 = vld [vmem:[%s7031_s1 + $0xf0] sm:$0xff]  ;;  %v4588_v32 = vld [vmem:[%s7031_s1 + $0x60] sm:$0xff]  ;;  %v3597_v34 = vld [vmem:[%s7032_s0 + $0x1f8] sm:$0xf] }
   0xb   :  { %1808 = vmatpush.bf16.msra.mxu0 %v4581_v2  ;;  %4656 = vmatpush.bf16.msra.mxu3 %v4581_v2  ;;  %v4612_v33 = vld [vmem:[%s7031_s1 + $0x120] sm:$0xff]  ;;  %v4454_v35 = vld [vmem:[%s7032_s0 + $0x218] sm:$0xf0]  ;;  %v3813_v36 = vld [vmem:[%s7032_s0 + $0x3a8] sm:$0xf] }
   0xc   :  { %v4508_v37 = vld [vmem:[%s7032_s0 + $0x3c8] sm:$0xf0]  ;;  %v3381_v38 = vld [vmem:[%s7032_s0 + $0x48] sm:$0xf]  ;;  %v3598_v40 = vor.u32 %v4454_v35, %v3597_v34  ;;  %v4029_v43 = vld [vmem:[%s7032_s0 + $0x558] sm:$0xf] }
   0xd   :  { %v4400_v39 = vld [vmem:[%s7032_s0 + $0x68] sm:$0xf0]  ;;  %v3814_v41 = vor.u32 %v4508_v37, %v3813_v36  ;;  %v4562_v44 = vld [vmem:[%s7032_s0 + $0x578] sm:$0xf0]  ;;  %v4604_v50 = vld [vmem:[%s7031_s1 + $0xe0] sm:$0xff] }
   0xe   :  { %4657 = vmatpush.bf16.msra.mxu1 %v4580_v3  ;;  %4658 = vmatpush.bf16.msra.mxu2 %v4580_v3  ;;  %v3382_v42 = vor.u32 %v4400_v39, %v3381_v38  ;;  %v4030_v45 = vor.u32 %v4562_v44, %v4029_v43  ;;  %v4595_v46 = vld [vmem:[%s7031_s1 + $0x98] sm:$0xff]  ;;  %v4605_v47 = vld [vmem:[%s7031_s1 + $0xe8] sm:$0xff]  ;;  %v4594_v51 = vld [vmem:[%s7031_s1 + $0x90] sm:$0xff] }
   0xf   :  { %1809 = vmatpush.bf16.msra.mxu0 %v4580_v3  ;;  %4659 = vmatpush.bf16.msra.mxu3 %v4580_v3  ;;  %v4587_v48 = vld [vmem:[%s7031_s1 + $0x58] sm:$0xff]  ;;  %v3633_v52 = vld [vmem:[%s7032_s0 + $0x240] sm:$0xf]  ;;  %v4463_v53 = vld [vmem:[%s7032_s0 + $0x260] sm:$0xf0] }
  0x10   :  { %v4611_v49 = vld [vmem:[%s7031_s1 + $0x118] sm:$0xff]  ;;  %v3849_v54 = vld [vmem:[%s7032_s0 + $0x3f0] sm:$0xf]  ;;  %v4517_v55 = vld [vmem:[%s7032_s0 + $0x410] sm:$0xf0]  ;;  %v3634_v58 = vor.u32 %v4463_v53, %v3633_v52 }
  0x11   :  { %v3417_v56 = vld [vmem:[%s7032_s0 + $0x90] sm:$0xf]  ;;  %v4409_v57 = vld [vmem:[%s7032_s0 + $0xb0] sm:$0xf0]  ;;  %v3850_v59 = vor.u32 %v4517_v55, %v3849_v54  ;;  %v4065_v61 = vld [vmem:[%s7032_s0 + $0x5a0] sm:$0xf] }
  0x12   :  { %4660 = vmatpush.bf16.msra.mxu1 %v4579_v4  ;;  %4661 = vmatpush.bf16.msra.mxu2 %v4579_v4  ;;  %v3418_v60 = vor.u32 %v4409_v57, %v3417_v56  ;;  %v4571_v62 = vld [vmem:[%s7032_s0 + $0x5c0] sm:$0xf0]  ;;  %v4586_v0 = vld [vmem:[%s7031_s1 + $0x50] sm:$0xff]  ;;  %v4603_v1 = vld [vmem:[%s7031_s1 + $0xd8] sm:$0xff] }
  0x13   :  { %1810 = vmatpush.bf16.msra.mxu0 %v4579_v4  ;;  %4662 = vmatpush.bf16.msra.mxu3 %v4579_v4  ;;  %v4066_v63 = vor.u32 %v4571_v62, %v4065_v61  ;;  %v4610_v2 = vld [vmem:[%s7031_s1 + $0x110] sm:$0xff]  ;;  %v4593_v3 = vld [vmem:[%s7031_s1 + $0x88] sm:$0xff]  ;;  %v3885_v8 = vld [vmem:[%s7032_s0 + $0x438] sm:$0xf] }
  0x14   :  { %v4585_v4 = vld [vmem:[%s7031_s1 + $0x48] sm:$0xff]  ;;  %v4526_v9 = vld [vmem:[%s7032_s0 + $0x458] sm:$0xf0]  ;;  %v3453_v11 = vld [vmem:[%s7032_s0 + $0xd8] sm:$0xf] }
  0x15   :  { %v227_v10 = vld [vmem:[%s7032_s0 + $0x5e8] sm:$0x11]  ;;  %v3886_v14 = vor.u32 %v4526_v9, %v3885_v8  ;;  %v4592_v20 = vld [vmem:[%s7031_s1 + $0x80] sm:$0xff]  ;;  %v3355_v34 = vld [vmem:[%s7032_s0 + $0x2c] sm:$0xf0] }
  0x16   :  { %4663 = vmatpush.bf16.msra.mxu1 %v4578_v5  ;;  %4664 = vmatpush.bf16.msra.mxu2 %v4578_v5  ;;  %v4584_v21 = vld [vmem:[%s7031_s1 + $0x40] sm:$0xff]  ;;  %v4631_v36 = vld [vmem:[%s7031_s1 + $0x1b8] sm:$0xff]  ;;  %v4544_v43 = vld [vmem:[%s7032_s0 + $0x4e8] sm:$0xf0] }
  0x17   :  { %1811 = vmatpush.bf16.msra.mxu0 %v4578_v5  ;;  %4665 = vmatpush.bf16.msra.mxu3 %v4578_v5  ;;  %v4602_v5 = vld [vmem:[%s7031_s1 + $0xd0] sm:$0xff]  ;;  %v4639_v37 = vld [vmem:[%s7031_s1 + $0x1f8] sm:$0xff]  ;;  %v3525_v44 = vld [vmem:[%s7032_s0 + $0x168] sm:$0xf] }
  0x18   :  { %v4623_v38 = vld [vmem:[%s7031_s1 + $0x178] sm:$0xff]  ;;  %v4387_v52 = vld [vmem:[%s7032_s0 + $0x4] sm:$0xf]  ;;  %v3347_v53 = vld [vmem:[%s7032_s0 + $0x24] sm:$0xf0] }
  0x19   :  { %v4647_v39 = vld [vmem:[%s7031_s1 + $0x238] sm:$0xff]  ;;  %v3353_v54 = vld [vmem:[%s7032_s0 + $0x8] sm:$0xf]  ;;  %v4392_v55 = vld [vmem:[%s7032_s0 + $0x28] sm:$0xf0] }
  0x1a   :  { %4666 = vmatpush.bf16.msra.mxu1 %v4577_v6  ;;  %4667 = vmatpush.bf16.msra.mxu2 %v4577_v6  ;;  %v3361_v56 = vld [vmem:[%s7032_s0 + $0x10] sm:$0xf]  ;;  %v4393_v57 = vld [vmem:[%s7032_s0 + $0x30] sm:$0xf0]  ;;  %v4406_v61 = vld [vmem:[%s7032_s0 + $0x9c] sm:$0xf] }
  0x1b   :  { %1812 = vmatpush.bf16.msra.mxu0 %v4577_v6  ;;  %4668 = vmatpush.bf16.msra.mxu3 %v4577_v6  ;;  %v3669_v6 = vld [vmem:[%s7032_s0 + $0x288] sm:$0xf]  ;;  %v3427_v62 = vld [vmem:[%s7032_s0 + $0xbc] sm:$0xf0] }
  0x1e   :  { %4669 = vmatpush.bf16.msra.mxu1 %v4576_v7  ;;  %4670 = vmatpush.bf16.msra.mxu2 %v4576_v7 }
  0x1f   :  { %1813 = vmatpush.bf16.msra.mxu0 %v4576_v7  ;;  %4671 = vmatpush.bf16.msra.mxu3 %v4576_v7  ;;  %v4472_v7 = vld [vmem:[%s7032_s0 + $0x2a8] sm:$0xf0] }
  0x20   :  { %v3670_v13 = vor.u32 %v4472_v7, %v3669_v6  ;;  %v4630_v6 = vld [vmem:[%s7031_s1 + $0x1b0] sm:$0xff] }
  0x21   :  { %1844 = vmatmul.bf16.vlgmr.msra.gmra.mxu1 %v3562_v17  ;;  %1874 = vmatmul.bf16.vlgmr.msra.gmra.mxu2 %v3778_v18  ;;  %v4601_v18 = vld [vmem:[%s7031_s1 + $0xc8] sm:$0xff] }
  0x22   :  { %2042 = vmatpush.bf16.msrb.mxu2 %v4599_v12  ;;  %1924 = vmatpush.bf16.msrb.mxu1 %v4591_v15  ;;  %v4418_v12 = vld [vmem:[%s7032_s0 + $0xf8] sm:$0xf0]  ;;  %v969_v15 = vunpack.c.l.b16 %v227_v10  ;;  %v4415_v10 = vld [vmem:[%s7032_s0 + $0xe4] sm:$0xf] }
  0x23   :  { %2278 = vmatpush.bf16.msrb.mxu0 %v4615_v16  ;;  %1904 = vmatmul.bf16.vlgmr.msra.gmra.mxu3 %v3994_v25  ;;  %v3454_v16 = vor.u32 %v4418_v12, %v3453_v11  ;;  %v4481_v25 = vld [vmem:[%s7032_s0 + $0x2f0] sm:$0xf0]  ;;  %v3463_v11 = vld [vmem:[%s7032_s0 + $0x104] sm:$0xf0] }
  0x24   :  { %1814 = vmatmul.bf16.vlgmr.msra.gmra.mxu0 %v3346_v19  ;;  %2160 = vmatpush.bf16.msrb.mxu3 %v4607_v26  ;;  %v1167_v17 = vpack.c.b16 %v969_v15, %v969_v15  ;;  %v4609_v19 = vld [vmem:[%s7031_s1 + $0x108] sm:$0xff]  ;;  %v3921_v26 = vld [vmem:[%s7032_s0 + $0x480] sm:$0xf]  ;;  %v4638_v12 = vld [vmem:[%s7031_s1 + $0x1f0] sm:$0xff] }
  0x25   :  { %v4646_v15 = vld [vmem:[%s7031_s1 + $0x230] sm:$0xff] }
  0x26   :  { %2043 = vmatpush.bf16.msrb.mxu2 %v4598_v22  ;;  %1925 = vmatpush.bf16.msrb.mxu1 %v4590_v23  ;;  %v4600_v22 = vld [vmem:[%s7031_s1 + $0xc0] sm:$0xff] }
  0x27   :  { %2279 = vmatpush.bf16.msrb.mxu0 %v4614_v24  ;;  %v4608_v23 = vld [vmem:[%s7031_s1 + $0x100] sm:$0xff]  ;;  %v3705_v24 = vld [vmem:[%s7032_s0 + $0x2d0] sm:$0xf] }
  0x28   :  { %2161 = vmatpush.bf16.msrb.mxu3 %v4606_v30  ;;  %v3706_v30 = vor.u32 %v4481_v25, %v3705_v24 }
  0x2a   :  { %2044 = vmatpush.bf16.msrb.mxu2 %v4597_v27  ;;  %1926 = vmatpush.bf16.msrb.mxu1 %v4589_v28  ;;  %v4535_v27 = vld [vmem:[%s7032_s0 + $0x4a0] sm:$0xf0]  ;;  %v3489_v28 = vld [vmem:[%s7032_s0 + $0x120] sm:$0xf] }
  0x2b   :  { %2280 = vmatpush.bf16.msrb.mxu0 %v4613_v29  ;;  %v4427_v29 = vld [vmem:[%s7032_s0 + $0x140] sm:$0xf0] }
  0x2c   :  { %2162 = vmatpush.bf16.msrb.mxu3 %v4605_v47 }
  0x2e   :  { %2045 = vmatpush.bf16.msrb.mxu2 %v4596_v31  ;;  %1927 = vmatpush.bf16.msrb.mxu1 %v4588_v32  ;;  %v3922_v31 = vor.u32 %v4535_v27, %v3921_v26  ;;  %v3490_v32 = vor.u32 %v4427_v29, %v3489_v28  ;;  %v4424_v26 = vld [vmem:[%s7032_s0 + $0x12c] sm:$0xf]  ;;  %v3499_v27 = vld [vmem:[%s7032_s0 + $0x14c] sm:$0xf0] }
  0x2f   :  { %2281 = vmatpush.bf16.msrb.mxu0 %v4612_v33  ;;  %v4388_v33 = vld [vmem:[%s7032_s0 + $0xc] sm:$0xf]  ;;  %v3502_v29 = vor.u32 %v4424_v26, %v3499_v27  ;;  %v4451_v26 = vld [vmem:[%s7032_s0 + $0x204] sm:$0xf]  ;;  %v3607_v27 = vld [vmem:[%s7032_s0 + $0x224] sm:$0xf0] }
  0x30   :  { %2163 = vmatpush.bf16.msrb.mxu3 %v4604_v50  ;;  %v3358_v35 = vor.u32 %v4388_v33, %v3355_v34  ;;  %v3391_v50 = vld [vmem:[%s7032_s0 + $0x74] sm:$0xf0]  ;;  %v4414_v34 = vld [vmem:[%s7032_s0 + $0xdc] sm:$0xf] }
  0x31   :  { %1849 = vmatmul.bf16.gmra.mxu1 %v3598_v40  ;;  %1879 = vmatmul.bf16.gmra.mxu2 %v3814_v41  ;;  %v3741_v40 = vld [vmem:[%s7032_s0 + $0x318] sm:$0xf]  ;;  %v4490_v41 = vld [vmem:[%s7032_s0 + $0x338] sm:$0xf0] }
  0x32   :  { %2046 = vmatpush.bf16.msrb.mxu2 %v4595_v46  ;;  %1928 = vmatpush.bf16.msrb.mxu1 %v4587_v48  ;;  %v3742_v46 = vor.u32 %v4490_v41, %v3741_v40 }
  0x33   :  { %1909 = vmatmul.bf16.gmra.mxu3 %v4030_v45  ;;  %2282 = vmatpush.bf16.msrb.mxu0 %v4611_v49  ;;  %v4436_v45 = vld [vmem:[%s7032_s0 + $0x188] sm:$0xf0]  ;;  %v4397_v49 = vld [vmem:[%s7032_s0 + $0x54] sm:$0xf] }
  0x34   :  { %1819 = vmatmul.bf16.gmra.mxu0 %v3382_v42  ;;  %2164 = vmatpush.bf16.msrb.mxu3 %v4603_v1  ;;  %v3957_v42 = vld [vmem:[%s7032_s0 + $0x4c8] sm:$0xf]  ;;  %v3526_v48 = vor.u32 %v4436_v45, %v3525_v44  ;;  %v3383_v1 = vld [vmem:[%s7032_s0 + $0x6c] sm:$0xf0]  ;;  %v4433_v45 = vld [vmem:[%s7032_s0 + $0x174] sm:$0xf] }
  0x35   :  { %v3958_v47 = vor.u32 %v4544_v43, %v3957_v42 }
  0x36   :  { %2047 = vmatpush.bf16.msrb.mxu2 %v4594_v51  ;;  %1929 = vmatpush.bf16.msrb.mxu1 %v4586_v0  ;;  %v3394_v51 = vor.u32 %v4397_v49, %v3391_v50  ;;  %v4396_v0 = vld [vmem:[%s7032_s0 + $0x4c] sm:$0xf] }
  0x37   :  { %2283 = vmatpush.bf16.msrb.mxu0 %v4610_v2  ;;  %v3389_v2 = vld [vmem:[%s7032_s0 + $0x50] sm:$0xf]  ;;  %v3386_v7 = vor.u32 %v4396_v0, %v3383_v1 }
  0x38   :  { %2165 = vmatpush.bf16.msrb.mxu3 %v4602_v5  ;;  %v4402_v5 = vld [vmem:[%s7032_s0 + $0x78] sm:$0xf0] }
  0x3a   :  { %2048 = vmatpush.bf16.msrb.mxu2 %v4593_v3  ;;  %1930 = vmatpush.bf16.msrb.mxu1 %v4585_v4  ;;  %v4401_v3 = vld [vmem:[%s7032_s0 + $0x70] sm:$0xf0]  ;;  %v3397_v4 = vld [vmem:[%s7032_s0 + $0x58] sm:$0xf] }
  0x3b   :  { %2284 = vmatpush.bf16.msrb.mxu0 %v4609_v19  ;;  %v3390_v8 = vor.u32 %v4401_v3, %v3389_v2  ;;  %v3398_v9 = vor.u32 %v4402_v5, %v3397_v4  ;;  %v4410_v19 = vld [vmem:[%s7032_s0 + $0xb8] sm:$0xf0]  ;;  %v3571_v5 = vld [vmem:[%s7032_s0 + $0x1dc] sm:$0xf0] }
  0x3c   :  { %2166 = vmatpush.bf16.msrb.mxu3 %v4601_v18  ;;  %v3425_v18 = vld [vmem:[%s7032_s0 + $0x98] sm:$0xf]  ;;  %v4442_v4 = vld [vmem:[%s7032_s0 + $0x1bc] sm:$0xf] }
  0x3e   :  { %2049 = vmatpush.bf16.msrb.mxu2 %v4592_v20  ;;  %1931 = vmatpush.bf16.msrb.mxu1 %v4584_v21  ;;  %v3433_v20 = vld [vmem:[%s7032_s0 + $0xa0] sm:$0xf]  ;;  %v4411_v21 = vld [vmem:[%s7032_s0 + $0xc0] sm:$0xf0] }
  0x3f   :  { %2285 = vmatpush.bf16.msrb.mxu0 %v4608_v23  ;;  %v3426_v23 = vor.u32 %v4410_v19, %v3425_v18  ;;  %v3434_v25 = vor.u32 %v4411_v21, %v3433_v20  ;;  %v3541_v18 = vld [vmem:[%s7032_s0 + $0x178] sm:$0xf]  ;;  %v4438_v19 = vld [vmem:[%s7032_s0 + $0x198] sm:$0xf0] }
  0x40   :  { %2167 = vmatpush.bf16.msrb.mxu3 %v4600_v22 }
  0x41   :  { %1854 = vmatmul.bf16.gmra.mxu1 %v3634_v58  ;;  %1884 = vmatmul.bf16.gmra.mxu2 %v3850_v59  ;;  %v3350_v58 = vor.u32 %v4387_v52, %v3347_v53  ;;  %v3354_v59 = vor.u32 %v4392_v55, %v3353_v54  ;;  %v4629_v53 = vld [vmem:[%s7031_s1 + $0x1a8] sm:$0xff] }
  0x42   :  { %2514 = vmatpush.bf16.msra.mxu2 %v4631_v36  ;;  %2396 = vmatpush.bf16.msra.mxu1 %v4623_v38  ;;  %v3461_v36 = vld [vmem:[%s7032_s0 + $0xe0] sm:$0xf]  ;;  %v3469_v38 = vld [vmem:[%s7032_s0 + $0xe8] sm:$0xf] }
  0x43   :  { %1914 = vmatmul.bf16.gmra.mxu3 %v4066_v63  ;;  %2750 = vmatpush.bf16.msra.mxu0 %v4647_v39  ;;  %v3430_v63 = vor.u32 %v4406_v61, %v3427_v62  ;;  %v4420_v39 = vld [vmem:[%s7032_s0 + $0x108] sm:$0xf0]  ;;  %v4429_v61 = vld [vmem:[%s7032_s0 + $0x150] sm:$0xf0] }
  0x44   :  { %1824 = vmatmul.bf16.gmra.mxu0 %v3418_v60  ;;  %2632 = vmatpush.bf16.msra.mxu3 %v4639_v37  ;;  %v3362_v60 = vor.u32 %v4393_v57, %v3361_v56  ;;  %v4419_v37 = vld [vmem:[%s7032_s0 + $0x100] sm:$0xf0]  ;;  %v3470_v44 = vor.u32 %v4420_v39, %v3469_v38  ;;  %v4637_v55 = vld [vmem:[%s7031_s1 + $0x1e8] sm:$0xff] }
  0x45   :  { %v3462_v42 = vor.u32 %v4419_v37, %v3461_v36  ;;  %v4423_v56 = vld [vmem:[%s7032_s0 + $0x124] sm:$0xf]  ;;  %v3491_v57 = vld [vmem:[%s7032_s0 + $0x144] sm:$0xf0] }
  0x46   :  { %2515 = vmatpush.bf16.msra.mxu2 %v4630_v6  ;;  %v3494_v0 = vor.u32 %v4423_v56, %v3491_v57 }
  0x47   :  { %2751 = vmatpush.bf16.msra.mxu0 %v4646_v15  ;;  %v3527_v15 = vld [vmem:[%s7032_s0 + $0x18c] sm:$0xf0] }
  0x48   :  { %2633 = vmatpush.bf16.msra.mxu3 %v4638_v12 }
  0x4a   :  { %2516 = vmatpush.bf16.msra.mxu2 %v4629_v53 }
  0x4c   :  { %2634 = vmatpush.bf16.msra.mxu3 %v4637_v55 }
  0x51   :  { %1859 = vmatmul.bf16.gmra.mxu1 %v3670_v13  ;;  %1889 = vmatmul.bf16.gmra.mxu2 %v3886_v14  ;;  %v3466_v13 = vor.u32 %v4415_v10, %v3463_v11  ;;  %v4622_v14 = vld [vmem:[%s7031_s1 + $0x170] sm:$0xff] }
  0x52   :  { %2397 = vmatpush.bf16.msra.mxu1 %v4622_v14  ;;  %v4432_v14 = vld [vmem:[%s7032_s0 + $0x16c] sm:$0xf] }
  0x53   :  { %1919 = vmatmul.bf16.gmra.mxu3 %v1167_v17  ;;  %v3419_v17 = vld [vmem:[%s7032_s0 + $0xb4] sm:$0xf0]  ;;  %v3530_v21 = vor.u32 %v4432_v14, %v3527_v15  ;;  %v4450_v15 = vld [vmem:[%s7032_s0 + $0x1fc] sm:$0xf] }
  0x54   :  { %1829 = vmatmul.bf16.gmra.mxu0 %v3454_v16  ;;  %v4405_v16 = vld [vmem:[%s7032_s0 + $0x94] sm:$0xf] }
  0x55   :  { %v3422_v22 = vor.u32 %v4405_v16, %v3419_v17  ;;  %v3533_v16 = vld [vmem:[%s7032_s0 + $0x170] sm:$0xf]  ;;  %v4437_v17 = vld [vmem:[%s7032_s0 + $0x190] sm:$0xf0] }
  0x61   :  { %1864 = vmatmul.bf16.gmra.mxu1 %v3706_v30  ;;  %1894 = vmatmul.bf16.gmra.mxu2 %v3922_v31 }
  0x63   :  { %2168 = vmatmul.bf16.vlgmr.msrb.gmra.mxu3 %v3358_v35  ;;  %v3455_v35 = vld [vmem:[%s7032_s0 + $0xfc] sm:$0xf0] }
  0x64   :  { %1834 = vmatmul.bf16.gmra.mxu0 %v3490_v32  ;;  %v3458_v41 = vor.u32 %v4414_v34, %v3455_v35  ;;  %v3610_v35 = vor.u32 %v4451_v26, %v3607_v27 }
  0x71   :  { %1869 = vmatmul.bf16.gmra.mxu1 %v3742_v46  ;;  %1899 = vmatmul.bf16.gmra.mxu2 %v3958_v47  ;;  %v3535_v46 = vld [vmem:[%s7032_s0 + $0x194] sm:$0xf0] }
  0x72   :  { %v3538_v49 = vor.u32 %v4433_v45, %v3535_v46  ;;  %v4446_v45 = vld [vmem:[%s7032_s0 + $0x1d8] sm:$0xf0]  ;;  %v3577_v46 = vld [vmem:[%s7032_s0 + $0x1c0] sm:$0xf] }
  0x73   :  { %2173 = vmatmul.bf16.gmra.mxu3 %v3394_v51 }
  0x74   :  { %1839 = vmatmul.bf16.gmra.mxu0 %v3526_v48 }
  0x81   :  { %1932 = vmatmul.bf16.vlgmr.msrb.gmra.mxu1 %v3350_v58  ;;  %2050 = vmatmul.bf16.vlgmr.msrb.gmra.mxu2 %v3354_v59  ;;  %v3497_v58 = vld [vmem:[%s7032_s0 + $0x128] sm:$0xf]  ;;  %v4428_v59 = vld [vmem:[%s7032_s0 + $0x148] sm:$0xf0] }
  0x82   :  { %v3498_v1 = vor.u32 %v4428_v59, %v3497_v58  ;;  %v4460_v59 = vld [vmem:[%s7032_s0 + $0x24c] sm:$0xf] }
  0x83   :  { %2178 = vmatmul.bf16.gmra.mxu3 %v3430_v63  ;;  %v4621_v63 = vld [vmem:[%s7031_s1 + $0x168] sm:$0xff] }
  0x84   :  { %2286 = vmatmul.bf16.vlgmr.msrb.gmra.mxu0 %v3362_v60  ;;  %v3505_v60 = vld [vmem:[%s7032_s0 + $0x130] sm:$0xf]  ;;  %2398 = vmatpush.bf16.msra.mxu1 %v4621_v63 }
  0x85   :  { %v3506_v3 = vor.u32 %v4429_v61, %v3505_v60  ;;  %v3643_v60 = vld [vmem:[%s7032_s0 + $0x26c] sm:$0xf0] }
  0x91   :  { %1937 = vmatmul.bf16.gmra.mxu1 %v3386_v7  ;;  %2055 = vmatmul.bf16.gmra.mxu2 %v3390_v8  ;;  %v3574_v8 = vor.u32 %v4442_v4, %v3571_v5  ;;  %v4628_v5 = vld [vmem:[%s7031_s1 + $0x1a0] sm:$0xff] }
  0x92   :  { %2517 = vmatpush.bf16.msra.mxu2 %v4628_v5  ;;  %v4464_v5 = vld [vmem:[%s7032_s0 + $0x268] sm:$0xf0] }
  0x93   :  { %2183 = vmatmul.bf16.gmra.mxu3 %v3466_v13 }
  0x94   :  { %2291 = vmatmul.bf16.gmra.mxu0 %v3398_v9  ;;  %v4645_v9 = vld [vmem:[%s7031_s1 + $0x228] sm:$0xff] }
  0x95   :  { %2752 = vmatpush.bf16.msra.mxu0 %v4645_v9  ;;  %v4620_v9 = vld [vmem:[%s7031_s1 + $0x160] sm:$0xff] }
  0x96   :  { %2399 = vmatpush.bf16.msra.mxu1 %v4620_v9  ;;  %v4465_v9 = vld [vmem:[%s7032_s0 + $0x270] sm:$0xf0] }
  0x9e   :  { %v5052_v24 = vpop.f32.mrf.mxu1 }
  0xa1   :  { %v5060_v28 = vpop.f32.mrf.mxu0  ;;  %1942 = vmatmul.bf16.gmra.mxu1 %v3422_v22  ;;  %2060 = vmatmul.bf16.gmra.mxu2 %v3426_v23  ;;  %v3534_v22 = vor.u32 %v4437_v17, %v3533_v16  ;;  %v3599_v16 = vld [vmem:[%s7032_s0 + $0x21c] sm:$0xf0] }
  0xa2   :  { %v3605_v17 = vld [vmem:[%s7032_s0 + $0x200] sm:$0xf] }
  0xa3   :  { %2188 = vmatmul.bf16.gmra.mxu3 %v3502_v29 }
  0xa4   :  { %2296 = vmatmul.bf16.gmra.mxu0 %v3434_v25  ;;  %v5062_v30 = vpop.f32.mrf.mxu2  ;;  %v3542_v25 = vor.u32 %v4438_v19, %v3541_v18  ;;  %v4455_v18 = vld [vmem:[%s7032_s0 + $0x220] sm:$0xf0]  ;;  %v3613_v19 = vld [vmem:[%s7032_s0 + $0x208] sm:$0xf] }
  0xa5   :  { %v3606_v26 = vor.u32 %v4455_v18, %v3605_v17 }
  0xa6   :  { %v5064_v31 = vpop.f32.mrf.mxu1  ;;  %v5068_v33 = vpop.f32.mrf.mxu3 }
  0xa9   :  { %v5066_v32 = vpop.f32.mrf.mxu0 }
  0xac   :  { %v5088_v40 = vpop.f32.mrf.mxu2 }
  0xae   :  { %v5090_v43 = vpop.f32.mrf.mxu1  ;;  %v5100_v48 = vpop.f32.mrf.mxu3 }
  0xb1   :  { %v5098_v47 = vpop.f32.mrf.mxu0  ;;  %1947 = vmatmul.bf16.gmra.mxu1 %v3458_v41  ;;  %2065 = vmatmul.bf16.gmra.mxu2 %v3462_v42  ;;  %v4441_v41 = vld [vmem:[%s7032_s0 + $0x1b4] sm:$0xf]  ;;  %v3563_v42 = vld [vmem:[%s7032_s0 + $0x1d4] sm:$0xf0] }
  0xb2   :  { %v3566_v55 = vor.u32 %v4441_v41, %v3563_v42  ;;  %v4469_v41 = vld [vmem:[%s7032_s0 + $0x294] sm:$0xf]  ;;  %v3679_v42 = vld [vmem:[%s7032_s0 + $0x2b4] sm:$0xf0] }
  0xb3   :  { %2193 = vmatmul.bf16.gmra.mxu3 %v3538_v49  ;;  %v4447_v49 = vld [vmem:[%s7032_s0 + $0x1e0] sm:$0xf0] }
  0xb4   :  { %2301 = vmatmul.bf16.gmra.mxu0 %v3470_v44  ;;  %v5102_v50 = vpop.f32.mrf.mxu2  ;;  %v3569_v44 = vld [vmem:[%s7032_s0 + $0x1b8] sm:$0xf]  ;;  %v3578_v58 = vor.u32 %v4447_v49, %v3577_v46  ;;  %v3682_v49 = vor.u32 %v4469_v41, %v3679_v42 }
  0xb5   :  { %v3570_v56 = vor.u32 %v4446_v45, %v3569_v44  ;;  %v4644_v45 = vld [vmem:[%s7031_s1 + $0x220] sm:$0xff] }
  0xb6   :  { %v5104_v51 = vpop.f32.mrf.mxu1  ;;  %v5111_v54 = vpop.f32.mrf.mxu3  ;;  %2753 = vmatpush.bf16.msra.mxu0 %v4644_v45 }
  0xb9   :  { %v5106_v52 = vpop.f32.mrf.mxu0 }
  0xbc   :  { %v5134_v62 = vpop.f32.mrf.mxu2 }
  0xbe   :  { %v5139_v2 = vpop.f32.mrf.mxu1  ;;  %v5149_v7 = vpop.f32.mrf.mxu3 }
  0xc1   :  { %v5147_v6 = vpop.f32.mrf.mxu0  ;;  %1952 = vmatmul.bf16.gmra.mxu1 %v3494_v0  ;;  %2070 = vmatmul.bf16.gmra.mxu2 %v3498_v1  ;;  %v3646_v0 = vor.u32 %v4460_v59, %v3643_v60  ;;  %v4459_v60 = vld [vmem:[%s7032_s0 + $0x244] sm:$0xf] }
  0xc3   :  { %2198 = vmatmul.bf16.gmra.mxu3 %v3574_v8  ;;  %v4636_v8 = vld [vmem:[%s7031_s1 + $0x1e0] sm:$0xff] }
  0xc4   :  { %2306 = vmatmul.bf16.gmra.mxu0 %v3506_v3  ;;  %v5154_v10 = vpop.f32.mrf.mxu2  ;;  %2635 = vmatpush.bf16.msra.mxu3 %v4636_v8  ;;  %v3649_v8 = vld [vmem:[%s7032_s0 + $0x250] sm:$0xf] }
  0xc6   :  { %v5156_v11 = vpop.f32.mrf.mxu1  ;;  %v5160_v13 = vpop.f32.mrf.mxu3 }
  0xc9   :  { %v5158_v12 = vpop.f32.mrf.mxu0 }
  0xcc   :  { %v5180_v20 = vpop.f32.mrf.mxu2 }
  0xce   :  { %v5182_v23 = vpop.f32.mrf.mxu1  ;;  %v5192_v34 = vpop.f32.mrf.mxu3 }
  0xd1   :  { %v5190_v29 = vpop.f32.mrf.mxu0  ;;  %1957 = vmatmul.bf16.gmra.mxu1 %v3530_v21  ;;  %2075 = vmatmul.bf16.gmra.mxu2 %v3534_v22  ;;  %v4456_v21 = vld [vmem:[%s7032_s0 + $0x228] sm:$0xf0] }
  0xd3   :  { %2203 = vmatmul.bf16.gmra.mxu3 %v3610_v35  ;;  %v3614_v35 = vor.u32 %v4456_v21, %v3613_v19  ;;  %v3650_v19 = vor.u32 %v4465_v9, %v3649_v8  ;;  %v4478_v21 = vld [vmem:[%s7032_s0 + $0x2dc] sm:$0xf]  ;;  %v4468_v8 = vld [vmem:[%s7032_s0 + $0x28c] sm:$0xf] }
  0xd4   :  { %2311 = vmatmul.bf16.gmra.mxu0 %v3542_v25  ;;  %v5194_v36 = vpop.f32.mrf.mxu2  ;;  %v3602_v25 = vor.u32 %v4450_v15, %v3599_v16 }
  0xd6   :  { %v5196_v37 = vpop.f32.mrf.mxu1  ;;  %v5200_v39 = vpop.f32.mrf.mxu3 }
  0xd7   :  { %7043 = vst [vmem:[#allocation2_spill] sm:$0xff] %v5200_v39 }
  0xd9   :  { %v5198_v38 = vpop.f32.mrf.mxu0 }
  0xdc   :  { %v5220_v53 = vpop.f32.mrf.mxu2 }
  0xde   :  { %v5222_v57 = vpop.f32.mrf.mxu1  ;;  %v1922_v63 = vpop.f32.mrf.mxu3 }
  0xdf   :  { %v3635_v63 = vld [vmem:[%s7032_s0 + $0x264] sm:$0xf0] }
  0xe0   :  { %v3638_v16 = vor.u32 %v4459_v60, %v3635_v63 }
  0xe1   :  { %v5230_v61 = vpop.f32.mrf.mxu0  ;;  %1962 = vmatmul.bf16.gmra.mxu1 %v3566_v55  ;;  %2080 = vmatmul.bf16.gmra.mxu2 %v3570_v56 }
  0xe3   :  { %2208 = vmatmul.bf16.gmra.mxu3 %v3646_v0  ;;  %v3641_v0 = vld [vmem:[%s7032_s0 + $0x248] sm:$0xf] }
  0xe4   :  { %2316 = vmatmul.bf16.gmra.mxu0 %v3578_v58  ;;  %v5232_v1 = vpop.f32.mrf.mxu2  ;;  %v3642_v17 = vor.u32 %v4464_v5, %v3641_v0 }
  0xe6   :  { %v5234_v3 = vpop.f32.mrf.mxu1  ;;  %v2169_v14 = vpop.f32.mrf.mxu3 }
  0xe9   :  { %v5236_v4 = vpop.f32.mrf.mxu0 }
  0xec   :  { %v5265_v22 = vpop.f32.mrf.mxu2 }
  0xee   :  { %v5267_v27 = vpop.f32.mrf.mxu1  ;;  %v2171_v46 = vpop.f32.mrf.mxu3 }
  0xf1   :  { %v5275_v44 = vpop.f32.mrf.mxu0  ;;  %1967 = vmatmul.bf16.gmra.mxu1 %v3602_v25  ;;  %2085 = vmatmul.bf16.gmra.mxu2 %v3606_v26  ;;  %v3715_v25 = vld [vmem:[%s7032_s0 + $0x2fc] sm:$0xf0] }
  0xf2   :  { %v3718_v41 = vor.u32 %v4478_v21, %v3715_v25 }
  0xf3   :  { %2213 = vmatmul.bf16.gmra.mxu3 %v3682_v49 }
  0xf4   :  { %2321 = vmatmul.bf16.gmra.mxu0 %v3614_v35  ;;  %v5280_v55 = vpop.f32.mrf.mxu2 }
  0xf6   :  { %v5282_v56 = vpop.f32.mrf.mxu1  ;;  %v2174_v59 = vpop.f32.mrf.mxu3 }
  0xf9   :  { %v5284_v58 = vpop.f32.mrf.mxu0 }
  0xfc   :  { %v5304_v15 = vpop.f32.mrf.mxu2 }
  0xfe   :  { %v1933_v18 = vpop.f32.mrf.mxu1  ;;  %v5312_v35 = vpop.f32.mrf.mxu3 }
  0xff   :  { %v1934_v42 = vadd.f32 %v1933_v18, %v5060_v28  ;;  %v3677_v28 = vld [vmem:[%s7032_s0 + $0x290] sm:$0xf]  ;;  %v3685_v18 = vld [vmem:[%s7032_s0 + $0x298] sm:$0xf] }
 0x101   :  { %v2287_v26 = vpop.f32.mrf.mxu0  ;;  %1972 = vmatmul.bf16.gmra.mxu1 %v3638_v16  ;;  %2090 = vmatmul.bf16.gmra.mxu2 %v3642_v17  ;;  %v3671_v16 = vld [vmem:[%s7032_s0 + $0x2ac] sm:$0xf0] }
 0x103   :  { %2218 = vmatmul.bf16.gmra.mxu3 %v3718_v41 }
 0x104   :  { %2326 = vmatmul.bf16.gmra.mxu0 %v3650_v19  ;;  %v2051_v45 = vpop.f32.mrf.mxu2  ;;  %v4474_v19 = vld [vmem:[%s7032_s0 + $0x2b8] sm:$0xf0] }
 0x105   :  { %v2052_v49 = vadd.f32 %v2051_v45, %v1934_v42  ;;  %v3686_v45 = vor.u32 %v4474_v19, %v3685_v18 }
 0x106   :  { %v1935_v60 = vpop.f32.mrf.mxu1  ;;  %v5315_v5 = vpop.f32.mrf.mxu3 }
 0x107   :  { %v2170_v63 = vadd.f32 %v2169_v14, %v2052_v49  ;;  %v4473_v14 = vld [vmem:[%s7032_s0 + $0x2b0] sm:$0xf0]  ;;  %v1936_v17 = vadd.f32 %v1935_v60, %v5066_v32  ;;  %v4487_v49 = vld [vmem:[%s7032_s0 + $0x324] sm:$0xf]  ;;  %v3751_v32 = vld [vmem:[%s7032_s0 + $0x344] sm:$0xf0] }
 0x108   :  { %v3678_v41 = vor.u32 %v4473_v14, %v3677_v28  ;;  %v3754_v39 = vor.u32 %v4487_v49, %v3751_v32  ;;  %v4635_v28 = vld [vmem:[%s7031_s1 + $0x1d8] sm:$0xff]  ;;  %v3721_v49 = vld [vmem:[%s7032_s0 + $0x2e0] sm:$0xf]  ;;  %v4483_v32 = vld [vmem:[%s7032_s0 + $0x300] sm:$0xf0] }
 0x109   :  { %v2289_v0 = vpop.f32.mrf.mxu0  ;;  %v5320_v9 = vadd.f32 %v2287_v26, %v2170_v63  ;;  %v3674_v26 = vor.u32 %v4468_v8, %v3671_v16  ;;  %v4627_v8 = vld [vmem:[%s7031_s1 + $0x198] sm:$0xff]  ;;  %2636 = vmatpush.bf16.msra.mxu3 %v4635_v28 }
 0x10a   :  { %2518 = vmatpush.bf16.msra.mxu2 %v4627_v8 }
 0x10b   :  { %7044 = vst [vmem:[#allocation3_spill] sm:$0xff] %v5320_v9 }
 0x10c   :  { %v2053_v21 = vpop.f32.mrf.mxu2 }
 0x10d   :  { %v2054_v25 = vadd.f32 %v2053_v21, %v1936_v17 }
 0x10e   :  { %v1938_v42 = vpop.f32.mrf.mxu1  ;;  %v5344_v9 = vpop.f32.mrf.mxu3 }
 0x10f   :  { %v2172_v60 = vadd.f32 %v2171_v46, %v2054_v25  ;;  %v1939_v14 = vadd.f32 %v1938_v42, %v5098_v47  ;;  %v4477_v47 = vld [vmem:[%s7032_s0 + $0x2d4] sm:$0xf]  ;;  %v4482_v42 = vld [vmem:[%s7032_s0 + $0x2f8] sm:$0xf0] }
 0x111   :  { %v2292_v63 = vpop.f32.mrf.mxu0  ;;  %1977 = vmatmul.bf16.gmra.mxu1 %v3674_v26  ;;  %2095 = vmatmul.bf16.gmra.mxu2 %v3678_v41  ;;  %v5349_v16 = vadd.f32 %v2289_v0, %v2172_v60  ;;  %v4619_v0 = vld [vmem:[%s7031_s1 + $0x158] sm:$0xff] }
 0x112   :  { %v4643_v26 = vld [vmem:[%s7031_s1 + $0x218] sm:$0xff]  ;;  %2400 = vmatpush.bf16.msra.mxu1 %v4619_v0 }
 0x113   :  { %2223 = vmatmul.bf16.gmra.mxu3 %v3754_v39  ;;  %v3707_v39 = vld [vmem:[%s7032_s0 + $0x2f4] sm:$0xf0]  ;;  %2754 = vmatpush.bf16.msra.mxu0 %v4643_v26 }
 0x114   :  { %2331 = vmatmul.bf16.gmra.mxu0 %v3686_v45  ;;  %v2056_v46 = vpop.f32.mrf.mxu2  ;;  %v3710_v8 = vor.u32 %v4477_v47, %v3707_v39 }
 0x115   :  { %v2057_v17 = vadd.f32 %v2056_v46, %v1939_v14  ;;  %v3722_v46 = vor.u32 %v4483_v32, %v3721_v49 }
 0x116   :  { %v1940_v18 = vpop.f32.mrf.mxu1  ;;  %v5358_v25 = vpop.f32.mrf.mxu3 }
 0x117   :  { %v2175_v19 = vadd.f32 %v2174_v59, %v2057_v17  ;;  %v3713_v59 = vld [vmem:[%s7032_s0 + $0x2d8] sm:$0xf]  ;;  %v1941_v45 = vadd.f32 %v1940_v18, %v5106_v52  ;;  %v4496_v17 = vld [vmem:[%s7032_s0 + $0x36c] sm:$0xf]  ;;  %v3787_v52 = vld [vmem:[%s7032_s0 + $0x38c] sm:$0xf0] }
 0x118   :  { %v3714_v28 = vor.u32 %v4482_v42, %v3713_v59  ;;  %v3790_v26 = vor.u32 %v4496_v17, %v3787_v52 }
 0x119   :  { %v2294_v21 = vpop.f32.mrf.mxu0  ;;  %v5366_v41 = vadd.f32 %v2292_v63, %v2175_v19 }
 0x11c   :  { %v2058_v60 = vpop.f32.mrf.mxu2 }
 0x11d   :  { %v2059_v63 = vadd.f32 %v2058_v60, %v1941_v45 }
 0x11e   :  { %v1943_v14 = vpop.f32.mrf.mxu1  ;;  %v2186_v0 = vpop.f32.mrf.mxu3 }
 0x11f   :  { %v2177_v18 = vadd.f32 %v5312_v35, %v2059_v63  ;;  %v1944_v47 = vadd.f32 %v1943_v14, %v5147_v6  ;;  %v4486_v35 = vld [vmem:[%s7032_s0 + $0x31c] sm:$0xf]  ;;  %v3749_v6 = vld [vmem:[%s7032_s0 + $0x320] sm:$0xf]  ;;  %v4492_v14 = vld [vmem:[%s7032_s0 + $0x348] sm:$0xf0] }
 0x121   :  { %v2297_v19 = vpop.f32.mrf.mxu0  ;;  %1982 = vmatmul.bf16.gmra.mxu1 %v3710_v8  ;;  %2100 = vmatmul.bf16.gmra.mxu2 %v3714_v28  ;;  %v5391_v45 = vadd.f32 %v2294_v21, %v2177_v18  ;;  %v3743_v21 = vld [vmem:[%s7032_s0 + $0x33c] sm:$0xf0]  ;;  %v3757_v28 = vld [vmem:[%s7032_s0 + $0x328] sm:$0xf] }
 0x122   :  { %v3746_v52 = vor.u32 %v4486_v35, %v3743_v21 }
 0x123   :  { %2228 = vmatmul.bf16.gmra.mxu3 %v3790_v26  ;;  %v3758_v26 = vor.u32 %v4492_v14, %v3757_v28 }
 0x124   :  { %2336 = vmatmul.bf16.gmra.mxu0 %v3722_v46  ;;  %v2061_v39 = vpop.f32.mrf.mxu2 }
 0x125   :  { %v2062_v59 = vadd.f32 %v2061_v39, %v1944_v47  ;;  %v4505_v47 = vld [vmem:[%s7032_s0 + $0x3b4] sm:$0xf] }
 0x126   :  { %v1945_v42 = vpop.f32.mrf.mxu1  ;;  %v5395_v60 = vpop.f32.mrf.mxu3 }
 0x127   :  { %v2180_v49 = vadd.f32 %v5315_v5, %v2062_v59  ;;  %v4491_v5 = vld [vmem:[%s7032_s0 + $0x340] sm:$0xf0]  ;;  %v1946_v8 = vadd.f32 %v1945_v42, %v5158_v12  ;;  %v3823_v12 = vld [vmem:[%s7032_s0 + $0x3d4] sm:$0xf0] }
 0x128   :  { %v3750_v18 = vor.u32 %v4491_v5, %v3749_v6 }
 0x129   :  { %v2299_v32 = vpop.f32.mrf.mxu0  ;;  %v5400_v63 = vadd.f32 %v2297_v19, %v2180_v49  ;;  %v3826_v49 = vor.u32 %v4505_v47, %v3823_v12 }
 0x12c   :  { %v2063_v46 = vpop.f32.mrf.mxu2 }
 0x12d   :  { %v2064_v17 = vadd.f32 %v2063_v46, %v1946_v8 }
 0x12e   :  { %v1948_v19 = vpop.f32.mrf.mxu1  ;;  %v5425_v42 = vpop.f32.mrf.mxu3 }
 0x12f   :  { %v2182_v39 = vadd.f32 %v5344_v9, %v2064_v17  ;;  %v1949_v21 = vadd.f32 %v1948_v19, %v5190_v29  ;;  %v4495_v9 = vld [vmem:[%s7032_s0 + $0x364] sm:$0xf]  ;;  %v3785_v29 = vld [vmem:[%s7032_s0 + $0x368] sm:$0xf]  ;;  %v4501_v19 = vld [vmem:[%s7032_s0 + $0x390] sm:$0xf0] }
 0x131   :  { %v2302_v59 = vpop.f32.mrf.mxu0  ;;  %1987 = vmatmul.bf16.gmra.mxu1 %v3746_v52  ;;  %2105 = vmatmul.bf16.gmra.mxu2 %v3750_v18  ;;  %v5427_v35 = vadd.f32 %v2299_v32, %v2182_v39  ;;  %v3779_v32 = vld [vmem:[%s7032_s0 + $0x384] sm:$0xf0]  ;;  %v3793_v18 = vld [vmem:[%s7032_s0 + $0x370] sm:$0xf] }
 0x132   :  { %v3782_v12 = vor.u32 %v4495_v9, %v3779_v32 }
 0x133   :  { %2233 = vmatmul.bf16.gmra.mxu3 %v3826_v49  ;;  %v3794_v49 = vor.u32 %v4501_v19, %v3793_v18 }
 0x134   :  { %2341 = vmatmul.bf16.gmra.mxu0 %v3758_v26  ;;  %v2066_v6 = vpop.f32.mrf.mxu2 }
 0x135   :  { %v2067_v5 = vadd.f32 %v2066_v6, %v1949_v21  ;;  %v4514_v21 = vld [vmem:[%s7032_s0 + $0x3fc] sm:$0xf] }
 0x136   :  { %v1950_v8 = vpop.f32.mrf.mxu1  ;;  %v5431_v46 = vpop.f32.mrf.mxu3 }
 0x137   :  { %v2185_v28 = vadd.f32 %v5358_v25, %v2067_v5  ;;  %v4500_v25 = vld [vmem:[%s7032_s0 + $0x388] sm:$0xf0]  ;;  %v1951_v52 = vadd.f32 %v1950_v8, %v5198_v38  ;;  %v3859_v38 = vld [vmem:[%s7032_s0 + $0x41c] sm:$0xf0]  ;;  %v4626_v8 = vld [vmem:[%s7031_s1 + $0x190] sm:$0xff] }
 0x138   :  { %v3786_v39 = vor.u32 %v4500_v25, %v3785_v29  ;;  %v3862_v32 = vor.u32 %v4514_v21, %v3859_v38  ;;  %v4618_v29 = vld [vmem:[%s7031_s1 + $0x150] sm:$0xff]  ;;  %2519 = vmatpush.bf16.msra.mxu2 %v4626_v8  ;;  %v3829_v38 = vld [vmem:[%s7032_s0 + $0x3b8] sm:$0xf] }
 0x139   :  { %v2304_v14 = vpop.f32.mrf.mxu0  ;;  %v5436_v17 = vadd.f32 %v2302_v59, %v2185_v28  ;;  %v4634_v28 = vld [vmem:[%s7031_s1 + $0x1d0] sm:$0xff]  ;;  %2401 = vmatpush.bf16.msra.mxu1 %v4618_v29 }
 0x13a   :  { %2637 = vmatpush.bf16.msra.mxu3 %v4634_v28 }
 0x13c   :  { %v2068_v26 = vpop.f32.mrf.mxu2 }
 0x13d   :  { %v2069_v47 = vadd.f32 %v2068_v26, %v1951_v52 }
 0x13e   :  { %v1953_v59 = vpop.f32.mrf.mxu1  ;;  %v5466_v9 = vpop.f32.mrf.mxu3 }
 0x13f   :  { %v2187_v6 = vadd.f32 %v2186_v0, %v2069_v47  ;;  %v1954_v0 = vadd.f32 %v1953_v59, %v5230_v61  ;;  %v3815_v59 = vld [vmem:[%s7032_s0 + $0x3cc] sm:$0xf0] }
 0x141   :  { %v2307_v5 = vpop.f32.mrf.mxu0  ;;  %1992 = vmatmul.bf16.gmra.mxu1 %v3782_v12  ;;  %2110 = vmatmul.bf16.gmra.mxu2 %v3786_v39  ;;  %v5471_v25 = vadd.f32 %v2304_v14, %v2187_v6  ;;  %v4642_v12 = vld [vmem:[%s7031_s1 + $0x210] sm:$0xff]  ;;  %v4504_v14 = vld [vmem:[%s7032_s0 + $0x3ac] sm:$0xf]  ;;  %v4510_v6 = vld [vmem:[%s7032_s0 + $0x3d8] sm:$0xf0] }
 0x142   :  { %2755 = vmatpush.bf16.msra.mxu0 %v4642_v12  ;;  %v3818_v28 = vor.u32 %v4504_v14, %v3815_v59 }
 0x143   :  { %2238 = vmatmul.bf16.gmra.mxu3 %v3862_v32 }
 0x144   :  { %2346 = vmatmul.bf16.gmra.mxu0 %v3794_v49  ;;  %v2071_v52 = vpop.f32.mrf.mxu2  ;;  %v4509_v49 = vld [vmem:[%s7032_s0 + $0x3d0] sm:$0xf0] }
 0x145   :  { %v2072_v18 = vadd.f32 %v2071_v52, %v1954_v0  ;;  %v3830_v0 = vor.u32 %v4510_v6, %v3829_v38  ;;  %v4523_v52 = vld [vmem:[%s7032_s0 + $0x444] sm:$0xf] }
 0x146   :  { %v1955_v19 = vpop.f32.mrf.mxu1  ;;  %v5478_v39 = vpop.f32.mrf.mxu3 }
 0x147   :  { %v2190_v26 = vadd.f32 %v5395_v60, %v2072_v18  ;;  %v3821_v60 = vld [vmem:[%s7032_s0 + $0x3b0] sm:$0xf]  ;;  %v1956_v21 = vadd.f32 %v1955_v19, %v5236_v4  ;;  %v3895_v4 = vld [vmem:[%s7032_s0 + $0x464] sm:$0xf0] }
 0x148   :  { %v3822_v32 = vor.u32 %v4509_v49, %v3821_v60  ;;  %v3898_v12 = vor.u32 %v4523_v52, %v3895_v4 }
 0x149   :  { %v2309_v47 = vpop.f32.mrf.mxu0  ;;  %v5483_v61 = vadd.f32 %v2307_v5, %v2190_v26 }
 0x14c   :  { %v2073_v5 = vpop.f32.mrf.mxu2 }
 0x14d   :  { %v2074_v8 = vadd.f32 %v2073_v5, %v1956_v21 }
 0x14e   :  { %v1958_v29 = vpop.f32.mrf.mxu1  ;;  %v5508_v26 = vpop.f32.mrf.mxu3 }
 0x14f   :  { %v2192_v18 = vadd.f32 %v5425_v42, %v2074_v8  ;;  %v1959_v59 = vadd.f32 %v1958_v29, %v5275_v44  ;;  %v4513_v42 = vld [vmem:[%s7032_s0 + $0x3f4] sm:$0xf]  ;;  %v3857_v44 = vld [vmem:[%s7032_s0 + $0x3f8] sm:$0xf]  ;;  %v4519_v29 = vld [vmem:[%s7032_s0 + $0x420] sm:$0xf0] }
 0x151   :  { %v2312_v19 = vpop.f32.mrf.mxu0  ;;  %1997 = vmatmul.bf16.gmra.mxu1 %v3818_v28  ;;  %2115 = vmatmul.bf16.gmra.mxu2 %v3822_v32  ;;  %v5510_v14 = vadd.f32 %v2309_v47, %v2192_v18  ;;  %v3851_v47 = vld [vmem:[%s7032_s0 + $0x414] sm:$0xf0]  ;;  %v3865_v32 = vld [vmem:[%s7032_s0 + $0x400] sm:$0xf] }
 0x152   :  { %v3854_v4 = vor.u32 %v4513_v42, %v3851_v47 }
 0x153   :  { %2243 = vmatmul.bf16.gmra.mxu3 %v3898_v12  ;;  %v3866_v12 = vor.u32 %v4519_v29, %v3865_v32 }
 0x154   :  { %2351 = vmatmul.bf16.gmra.mxu0 %v3830_v0  ;;  %v2076_v60 = vpop.f32.mrf.mxu2 }
 0x155   :  { %v2077_v49 = vadd.f32 %v2076_v60, %v1959_v59  ;;  %v4532_v59 = vld [vmem:[%s7032_s0 + $0x48c] sm:$0xf] }
 0x156   :  { %v1960_v21 = vpop.f32.mrf.mxu1  ;;  %v5514_v5 = vpop.f32.mrf.mxu3 }
 0x157   :  { %v2195_v38 = vadd.f32 %v5431_v46, %v2077_v49  ;;  %v4518_v46 = vld [vmem:[%s7032_s0 + $0x418] sm:$0xf0]  ;;  %v1961_v28 = vadd.f32 %v1960_v21, %v5284_v58  ;;  %v3931_v58 = vld [vmem:[%s7032_s0 + $0x4ac] sm:$0xf0] }
 0x158   :  { %v3858_v18 = vor.u32 %v4518_v46, %v3857_v44 }
 0x159   :  { %v2314_v6 = vpop.f32.mrf.mxu0  ;;  %v5519_v8 = vadd.f32 %v2312_v19, %v2195_v38  ;;  %v3934_v38 = vor.u32 %v4532_v59, %v3931_v58  ;;  %v4528_v59 = vld [vmem:[%s7032_s0 + $0x468] sm:$0xf0] }
 0x15c   :  { %v2078_v0 = vpop.f32.mrf.mxu2 }
 0x15d   :  { %v2079_v52 = vadd.f32 %v2078_v0, %v1961_v28 }
 0x15e   :  { %v1963_v19 = vpop.f32.mrf.mxu1  ;;  %v5544_v21 = vpop.f32.mrf.mxu3 }
 0x15f   :  { %v2197_v60 = vadd.f32 %v5466_v9, %v2079_v52  ;;  %v1964_v47 = vadd.f32 %v1963_v19, %v5052_v24  ;;  %v4625_v9 = vld [vmem:[%s7031_s1 + $0x188] sm:$0xff]  ;;  %v4522_v24 = vld [vmem:[%s7032_s0 + $0x43c] sm:$0xf] }
 0x160   :  { %2520 = vmatpush.bf16.msra.mxu2 %v4625_v9  ;;  %v4617_v9 = vld [vmem:[%s7031_s1 + $0x148] sm:$0xff] }
 0x161   :  { %v2317_v49 = vpop.f32.mrf.mxu0  ;;  %2002 = vmatmul.bf16.gmra.mxu1 %v3854_v4  ;;  %2120 = vmatmul.bf16.gmra.mxu2 %v3858_v18  ;;  %v5546_v42 = vadd.f32 %v2314_v6, %v2197_v60  ;;  %v4633_v6 = vld [vmem:[%s7031_s1 + $0x1c8] sm:$0xff]  ;;  %v3893_v4 = vld [vmem:[%s7032_s0 + $0x440] sm:$0xf]  ;;  %v4527_v18 = vld [vmem:[%s7032_s0 + $0x460] sm:$0xf0] }
 0x162   :  { %2638 = vmatpush.bf16.msra.mxu3 %v4633_v6  ;;  %2402 = vmatpush.bf16.msra.mxu1 %v4617_v9 }
 0x163   :  { %2248 = vmatmul.bf16.gmra.mxu3 %v3934_v38  ;;  %v3894_v38 = vor.u32 %v4527_v18, %v3893_v4  ;;  %v4641_v4 = vld [vmem:[%s7031_s1 + $0x208] sm:$0xff] }
 0x164   :  { %2356 = vmatmul.bf16.gmra.mxu0 %v3866_v12  ;;  %v2081_v44 = vpop.f32.mrf.mxu2  ;;  %v3901_v12 = vld [vmem:[%s7032_s0 + $0x448] sm:$0xf] }
 0x165   :  { %v2082_v46 = vadd.f32 %v2081_v44, %v1964_v47  ;;  %v3902_v44 = vor.u32 %v4528_v59, %v3901_v12  ;;  %2756 = vmatpush.bf16.msra.mxu0 %v4641_v4 }
 0x166   :  { %v1965_v28 = vpop.f32.mrf.mxu1  ;;  %v5553_v0 = vpop.f32.mrf.mxu3 }
 0x167   :  { %v2200_v32 = vadd.f32 %v5478_v39, %v2082_v46  ;;  %v3887_v39 = vld [vmem:[%s7032_s0 + $0x45c] sm:$0xf0]  ;;  %v1966_v19 = vadd.f32 %v1965_v28, %v5064_v31  ;;  %v4541_v46 = vld [vmem:[%s7032_s0 + $0x4d4] sm:$0xf]  ;;  %v3967_v31 = vld [vmem:[%s7032_s0 + $0x4f4] sm:$0xf0] }
 0x169   :  { %v2319_v29 = vpop.f32.mrf.mxu0  ;;  %v5561_v52 = vadd.f32 %v2317_v49, %v2200_v32  ;;  %v3890_v49 = vor.u32 %v4522_v24, %v3887_v39  ;;  %v3970_v24 = vor.u32 %v4541_v46, %v3967_v31  ;;  %v4537_v46 = vld [vmem:[%s7032_s0 + $0x4b0] sm:$0xf0] }
 0x16c   :  { %v2083_v58 = vpop.f32.mrf.mxu2 }
 0x16d   :  { %v2084_v60 = vadd.f32 %v2083_v58, %v1966_v19 }
 0x16e   :  { %v1968_v47 = vpop.f32.mrf.mxu1  ;;  %v5589_v6 = vpop.f32.mrf.mxu3 }
 0x16f   :  { %v2202_v28 = vadd.f32 %v5508_v26, %v2084_v60  ;;  %v1969_v26 = vadd.f32 %v1968_v47, %v5090_v43  ;;  %v3929_v43 = vld [vmem:[%s7032_s0 + $0x488] sm:$0xf] }
 0x171   :  { %v2322_v32 = vpop.f32.mrf.mxu0  ;;  %2007 = vmatmul.bf16.gmra.mxu1 %v3890_v49  ;;  %2125 = vmatmul.bf16.gmra.mxu2 %v3894_v38  ;;  %v5591_v39 = vadd.f32 %v2319_v29, %v2202_v28  ;;  %v4531_v29 = vld [vmem:[%s7032_s0 + $0x484] sm:$0xf]  ;;  %v3923_v38 = vld [vmem:[%s7032_s0 + $0x4a4] sm:$0xf0] }
 0x173   :  { %2253 = vmatmul.bf16.gmra.mxu3 %v3970_v24 }
 0x174   :  { %2361 = vmatmul.bf16.gmra.mxu0 %v3902_v44  ;;  %v2086_v18 = vpop.f32.mrf.mxu2  ;;  %v3937_v44 = vld [vmem:[%s7032_s0 + $0x490] sm:$0xf] }
 0x175   :  { %v2087_v19 = vadd.f32 %v2086_v18, %v1969_v26  ;;  %v3938_v4 = vor.u32 %v4537_v46, %v3937_v44  ;;  %v4550_v26 = vld [vmem:[%s7032_s0 + $0x51c] sm:$0xf] }
 0x176   :  { %v1970_v12 = vpop.f32.mrf.mxu1  ;;  %v2214_v60 = vpop.f32.mrf.mxu3 }
 0x177   :  { %v2205_v59 = vadd.f32 %v5514_v5, %v2087_v19  ;;  %v4536_v5 = vld [vmem:[%s7032_s0 + $0x4a8] sm:$0xf0]  ;;  %v1971_v47 = vadd.f32 %v1970_v12, %v5104_v51  ;;  %v4003_v51 = vld [vmem:[%s7032_s0 + $0x53c] sm:$0xf0] }
 0x178   :  { %v3930_v9 = vor.u32 %v4536_v5, %v3929_v43 }
 0x179   :  { %v2324_v58 = vpop.f32.mrf.mxu0  ;;  %v5601_v49 = vadd.f32 %v2322_v32, %v2205_v59  ;;  %v3926_v32 = vor.u32 %v4531_v29, %v3923_v38  ;;  %v4006_v59 = vor.u32 %v4550_v26, %v4003_v51 }
 0x17c   :  { %v2088_v31 = vpop.f32.mrf.mxu2 }
 0x17d   :  { %v2089_v28 = vadd.f32 %v2088_v31, %v1971_v47 }
 0x17e   :  { %v1973_v24 = vpop.f32.mrf.mxu1  ;;  %v5626_v12 = vpop.f32.mrf.mxu3 }
 0x17f   :  { %v2207_v18 = vadd.f32 %v5544_v21, %v2089_v28  ;;  %v1974_v38 = vadd.f32 %v1973_v24, %v5139_v2  ;;  %v4540_v21 = vld [vmem:[%s7032_s0 + $0x4cc] sm:$0xf]  ;;  %v3965_v2 = vld [vmem:[%s7032_s0 + $0x4d0] sm:$0xf]  ;;  %v4546_v24 = vld [vmem:[%s7032_s0 + $0x4f8] sm:$0xf0] }
 0x181   :  { %v2327_v19 = vpop.f32.mrf.mxu0  ;;  %2012 = vmatmul.bf16.gmra.mxu1 %v3926_v32  ;;  %2130 = vmatmul.bf16.gmra.mxu2 %v3930_v9  ;;  %v5628_v29 = vadd.f32 %v2324_v58, %v2207_v18  ;;  %v3959_v58 = vld [vmem:[%s7032_s0 + $0x4ec] sm:$0xf0]  ;;  %v3973_v9 = vld [vmem:[%s7032_s0 + $0x4d8] sm:$0xf] }
 0x182   :  { %v3962_v51 = vor.u32 %v4540_v21, %v3959_v58 }
 0x183   :  { %2258 = vmatmul.bf16.gmra.mxu3 %v4006_v59  ;;  %v3974_v59 = vor.u32 %v4546_v24, %v3973_v9 }
 0x184   :  { %2366 = vmatmul.bf16.gmra.mxu0 %v3938_v4  ;;  %v2091_v43 = vpop.f32.mrf.mxu2 }
 0x185   :  { %v2092_v5 = vadd.f32 %v2091_v43, %v1974_v38  ;;  %v4559_v38 = vld [vmem:[%s7032_s0 + $0x564] sm:$0xf] }
 0x186   :  { %v1975_v47 = vpop.f32.mrf.mxu1  ;;  %v5632_v31 = vpop.f32.mrf.mxu3 }
 0x187   :  { %v2210_v44 = vadd.f32 %v5553_v0, %v2092_v5  ;;  %v4545_v0 = vld [vmem:[%s7032_s0 + $0x4f0] sm:$0xf0]  ;;  %v1976_v32 = vadd.f32 %v1975_v47, %v5156_v11  ;;  %v4039_v11 = vld [vmem:[%s7032_s0 + $0x584] sm:$0xf0] }
 0x188   :  { %v3966_v18 = vor.u32 %v4545_v0, %v3965_v2 }
 0x189   :  { %v2329_v46 = vpop.f32.mrf.mxu0  ;;  %v5637_v28 = vadd.f32 %v2327_v19, %v2210_v44  ;;  %v4042_v44 = vor.u32 %v4559_v38, %v4039_v11  ;;  %v4009_v38 = vld [vmem:[%s7032_s0 + $0x520] sm:$0xf]  ;;  %v4555_v11 = vld [vmem:[%s7032_s0 + $0x540] sm:$0xf0] }
 0x18c   :  { %v2093_v4 = vpop.f32.mrf.mxu2 }
 0x18d   :  { %v2094_v26 = vadd.f32 %v2093_v4, %v1976_v32  ;;  %v4632_v4 = vld [vmem:[%s7031_s1 + $0x1c0] sm:$0xff] }
 0x18e   :  { %v1978_v19 = vpop.f32.mrf.mxu1  ;;  %v5662_v47 = vpop.f32.mrf.mxu3  ;;  %2639 = vmatpush.bf16.msra.mxu3 %v4632_v4  ;;  %v4640_v4 = vld [vmem:[%s7031_s1 + $0x200] sm:$0xff] }
 0x18f   :  { %v2212_v43 = vadd.f32 %v5589_v6, %v2094_v26  ;;  %v1979_v58 = vadd.f32 %v1978_v19, %v5182_v23  ;;  %v4624_v6 = vld [vmem:[%s7031_s1 + $0x180] sm:$0xff]  ;;  %v4549_v23 = vld [vmem:[%s7032_s0 + $0x514] sm:$0xf]  ;;  %v4554_v19 = vld [vmem:[%s7032_s0 + $0x538] sm:$0xf0]  ;;  %2757 = vmatpush.bf16.msra.mxu0 %v4640_v4 }
 0x190   :  { %2521 = vmatpush.bf16.msra.mxu2 %v4624_v6 }
 0x191   :  { %v2332_v5 = vpop.f32.mrf.mxu0  ;;  %2017 = vmatmul.bf16.gmra.mxu1 %v3962_v51  ;;  %2135 = vmatmul.bf16.gmra.mxu2 %v3966_v18  ;;  %v5664_v21 = vadd.f32 %v2329_v46, %v2212_v43  ;;  %v4616_v46 = vld [vmem:[%s7031_s1 + $0x140] sm:$0xff]  ;;  %v3995_v51 = vld [vmem:[%s7032_s0 + $0x534] sm:$0xf0] }
 0x192   :  { %v4001_v18 = vld [vmem:[%s7032_s0 + $0x518] sm:$0xf]  ;;  %2403 = vmatpush.bf16.msra.mxu1 %v4616_v46 }
 0x193   :  { %2263 = vmatmul.bf16.gmra.mxu3 %v4042_v44  ;;  %v3998_v44 = vor.u32 %v4549_v23, %v3995_v51 }
 0x194   :  { %2371 = vmatmul.bf16.gmra.mxu0 %v3974_v59  ;;  %v2096_v2 = vpop.f32.mrf.mxu2 }
 0x195   :  { %v2097_v0 = vadd.f32 %v2096_v2, %v1979_v58  ;;  %v4002_v58 = vor.u32 %v4554_v19, %v4001_v18 }
 0x196   :  { %v1980_v32 = vpop.f32.mrf.mxu1  ;;  %v5676_v26 = vpop.f32.mrf.mxu3 }
 0x197   :  { %v2215_v9 = vadd.f32 %v2214_v60, %v2097_v0  ;;  %v1981_v59 = vadd.f32 %v1980_v32, %v5196_v37  ;;  %v4010_v0 = vor.u32 %v4555_v11, %v4009_v38  ;;  %v4075_v37 = vld [vmem:[%s7032_s0 + $0x5cc] sm:$0xf0] }
 0x199   :  { %v2334_v24 = vpop.f32.mrf.mxu0  ;;  %v5681_v60 = vadd.f32 %v2332_v5, %v2215_v9  ;;  %v4568_v9 = vld [vmem:[%s7032_s0 + $0x5ac] sm:$0xf] }
 0x19a   :  { %v4078_v23 = vor.u32 %v4568_v9, %v4075_v37  ;;  %v4564_v9 = vld [vmem:[%s7032_s0 + $0x588] sm:$0xf0] }
 0x19b   :  { %7045 = vst [vmem:[#allocation4_spill] sm:$0xff] %v5681_v60 }
 0x19c   :  { %v2098_v43 = vpop.f32.mrf.mxu2 }
 0x19d   :  { %v2099_v5 = vadd.f32 %v2098_v43, %v1981_v59 }
 0x19e   :  { %v1983_v2 = vpop.f32.mrf.mxu1  ;;  %v5709_v46 = vpop.f32.mrf.mxu3 }
 0x19f   :  { %v2217_v32 = vadd.f32 %v5626_v12, %v2099_v5  ;;  %v1984_v18 = vadd.f32 %v1983_v2, %v5222_v57  ;;  %v4558_v5 = vld [vmem:[%s7032_s0 + $0x55c] sm:$0xf]  ;;  %v4037_v57 = vld [vmem:[%s7032_s0 + $0x560] sm:$0xf] }
 0x1a1   :  { %v2337_v6 = vpop.f32.mrf.mxu0  ;;  %2022 = vmatmul.bf16.gmra.mxu1 %v3998_v44  ;;  %2140 = vmatmul.bf16.gmra.mxu2 %v4002_v58  ;;  %v5711_v51 = vadd.f32 %v2334_v24, %v2217_v32  ;;  %v4031_v24 = vld [vmem:[%s7032_s0 + $0x57c] sm:$0xf0]  ;;  %v5732_v58 = vld [vmem:[%s7032_s0 + $0x5f0] sm:$0x11] }
 0x1a3   :  { %7046 = vst [vmem:[#allocation5_spill] sm:$0xff] %v5711_v51  ;;  %2268 = vmatmul.bf16.gmra.mxu3 %v4078_v23  ;;  %v972_v23 = vunpack.c.h.b16 %v5732_v58 }
 0x1a4   :  { %2376 = vmatmul.bf16.gmra.mxu0 %v4010_v0  ;;  %v2101_v19 = vpop.f32.mrf.mxu2  ;;  %v4045_v0 = vld [vmem:[%s7032_s0 + $0x568] sm:$0xf] }
 0x1a5   :  { %v2102_v59 = vadd.f32 %v2101_v19, %v1984_v18  ;;  %v4046_v19 = vor.u32 %v4564_v9, %v4045_v0  ;;  %v4573_v9 = vld [vmem:[%s7032_s0 + $0x5d0] sm:$0xf0] }
 0x1a6   :  { %v1985_v12 = vpop.f32.mrf.mxu1  ;;  %v2229_v43 = vpop.f32.mrf.mxu3 }
 0x1a7   :  { %v2220_v38 = vadd.f32 %v5632_v31, %v2102_v59  ;;  %v4563_v31 = vld [vmem:[%s7032_s0 + $0x580] sm:$0xf0]  ;;  %v1986_v2 = vadd.f32 %v1985_v12, %v5234_v3  ;;  %v1170_v12 = vpack.c.b16 %v972_v23, %v972_v23 }
 0x1a8   :  { %v4038_v4 = vor.u32 %v4563_v31, %v4037_v57 }
 0x1a9   :  { %v2339_v11 = vpop.f32.mrf.mxu0  ;;  %v5721_v44 = vadd.f32 %v2337_v6, %v2220_v38  ;;  %v4034_v6 = vor.u32 %v4558_v5, %v4031_v24 }
 0x1ab   :  { %7047 = vst [vmem:[#allocation6_spill] sm:$0xff] %v5721_v44 }
 0x1ac   :  { %v2103_v37 = vpop.f32.mrf.mxu2 }
 0x1ad   :  { %v2104_v32 = vadd.f32 %v2103_v37, %v1986_v2 }
 0x1ae   :  { %v1988_v18 = vpop.f32.mrf.mxu1  ;;  %v2231_v3 = vpop.f32.mrf.mxu3 }
 0x1af   :  { %v2222_v59 = vadd.f32 %v5662_v47, %v2104_v32  ;;  %v1989_v51 = vadd.f32 %v1988_v18, %v5267_v27  ;;  %v4567_v47 = vld [vmem:[%s7032_s0 + $0x5a4] sm:$0xf]  ;;  %v4073_v27 = vld [vmem:[%s7032_s0 + $0x5a8] sm:$0xf] }
 0x1b1   :  { %v2342_v38 = vpop.f32.mrf.mxu0  ;;  %2027 = vmatmul.bf16.gmra.mxu1 %v4034_v6  ;;  %2145 = vmatmul.bf16.gmra.mxu2 %v4038_v4  ;;  %v5743_v44 = vadd.f32 %v2339_v11, %v2222_v59  ;;  %v4067_v11 = vld [vmem:[%s7032_s0 + $0x5c4] sm:$0xf0] }
 0x1b2   :  { %v4070_v6 = vor.u32 %v4567_v47, %v4067_v11 }
 0x1b3   :  { %2273 = vmatmul.bf16.gmra.mxu3 %v1170_v12 }
 0x1b4   :  { %2381 = vmatmul.bf16.gmra.mxu0 %v4046_v19  ;;  %v2106_v60 = vpop.f32.mrf.mxu2  ;;  %v4390_v19 = vld [vmem:[%s7032_s0 + $0x1c] sm:$0xf] }
 0x1b5   :  { %v2107_v2 = vadd.f32 %v2106_v60, %v1989_v51  ;;  %v4081_v51 = vld [vmem:[%s7032_s0 + $0x5b0] sm:$0xf] }
 0x1b6   :  { %v1990_v5 = vpop.f32.mrf.mxu1  ;;  %v2234_v31 = vpop.f32.mrf.mxu3  ;;  %v4082_v18 = vor.u32 %v4573_v9, %v4081_v51  ;;  %v4674_v9 = vld [vmem:[%s7032_s0 + $0x5e8] sm:$0x11] }
 0x1b7   :  { %v2225_v24 = vadd.f32 %v5676_v26, %v2107_v2  ;;  %v4572_v26 = vld [vmem:[%s7032_s0 + $0x5c8] sm:$0xf0]  ;;  %v1991_v60 = vadd.f32 %v1990_v5, %v5282_v56  ;;  %v3371_v56 = vld [vmem:[%s7032_s0 + $0x3c] sm:$0xf0] }
 0x1b8   :  { %v4074_v4 = vor.u32 %v4572_v26, %v4073_v27  ;;  %v3374_v2 = vor.u32 %v4390_v19, %v3371_v56 }
 0x1b9   :  { %v2344_v57 = vpop.f32.mrf.mxu0  ;;  %v5750_v0 = vadd.f32 %v2342_v38, %v2225_v24 }
 0x1bc   :  { %v2108_v37 = vpop.f32.mrf.mxu2 }
 0x1bd   :  { %v2109_v32 = vadd.f32 %v2108_v37, %v1991_v60  ;;  %v971_v37 = vunpack.c.l.b16 %v5732_v58 }
 0x1be   :  { %v1993_v23 = vpop.f32.mrf.mxu1  ;;  %v2236_v12 = vpop.f32.mrf.mxu3 }
 0x1bf   :  { %v2227_v59 = vadd.f32 %v5709_v46, %v2109_v32  ;;  %v1994_v24 = vadd.f32 %v1993_v23, %v5062_v30  ;;  %v229_v46 = vld [vmem:[%s7032_s0 + $0x5f8] sm:$0x11] }
 0x1c0   :  { %v973_v30 = vunpack.c.l.b16 %v229_v46 }
 0x1c1   :  { %v2347_v38 = vpop.f32.mrf.mxu0  ;;  %2032 = vmatmul.bf16.gmra.mxu1 %v4070_v6  ;;  %2150 = vmatmul.bf16.gmra.mxu2 %v4074_v4  ;;  %v5775_v5 = vadd.f32 %v2344_v57, %v2227_v59  ;;  %v970_v57 = vunpack.c.h.b16 %v4674_v9  ;;  %v4399_v59 = vld [vmem:[%s7032_s0 + $0x64] sm:$0xf] }
 0x1c2   :  { %v1171_v56 = vpack.c.b16 %v973_v30, %v973_v30 }
 0x1c3   :  { %2640 = vmatmul.bf16.vlgmr.msra.gmra.mxu3 %v3374_v2  ;;  %v1168_v23 = vpack.c.b16 %v970_v57, %v970_v57  ;;  %v3407_v2 = vld [vmem:[%s7032_s0 + $0x84] sm:$0xf0] }
 0x1c4   :  { %2386 = vmatmul.bf16.gmra.mxu0 %v4082_v18  ;;  %v2111_v47 = vpop.f32.mrf.mxu2  ;;  %v1169_v18 = vpack.c.b16 %v971_v37, %v971_v37 }
 0x1c5   :  { %v2112_v11 = vadd.f32 %v2111_v47, %v1994_v24 }
 0x1c6   :  { %v1995_v27 = vpop.f32.mrf.mxu1  ;;  %v2239_v51 = vpop.f32.mrf.mxu3 }
 0x1c7   :  { %v2230_v26 = vadd.f32 %v2229_v43, %v2112_v11  ;;  %v1996_v6 = vadd.f32 %v1995_v27, %v5088_v40  ;;  %v3410_v40 = vor.u32 %v4399_v59, %v3407_v2 }
 0x1c9   :  { %v2349_v60 = vpop.f32.mrf.mxu0  ;;  %v5785_v32 = vadd.f32 %v2347_v38, %v2230_v26 }
 0x1cc   :  { %v2113_v4 = vpop.f32.mrf.mxu2 }
 0x1cd   :  { %v2114_v43 = vadd.f32 %v2113_v4, %v1996_v6  ;;  %v3377_v4 = vld [vmem:[%s7032_s0 + $0x20] sm:$0xf] }
 0x1ce   :  { %v1998_v19 = vpop.f32.mrf.mxu1  ;;  %v2241_v24 = vpop.f32.mrf.mxu3 }
 0x1cf   :  { %v2232_v58 = vadd.f32 %v2231_v3, %v2114_v43  ;;  %v1999_v11 = vadd.f32 %v1998_v19, %v5102_v50  ;;  %v4389_v3 = vld [vmem:[%s7032_s0 + $0x14] sm:$0xf]  ;;  %v3369_v50 = vld [vmem:[%s7032_s0 + $0x18] sm:$0xf]  ;;  %v4395_v43 = vld [vmem:[%s7032_s0 + $0x40] sm:$0xf0] }
 0x1d0   :  { %v3378_v2 = vor.u32 %v4395_v43, %v3377_v4 }
 0x1d1   :  { %v2352_v38 = vpop.f32.mrf.mxu0  ;;  %2037 = vmatmul.bf16.gmra.mxu1 %v1168_v23  ;;  %2155 = vmatmul.bf16.gmra.mxu2 %v1169_v18  ;;  %v5794_v47 = vadd.f32 %v2349_v60, %v2232_v58  ;;  %v3363_v60 = vld [vmem:[%s7032_s0 + $0x34] sm:$0xf0]  ;;  %v4408_v58 = vld [vmem:[%s7032_s0 + $0xac] sm:$0xf] }
 0x1d2   :  { %v3366_v19 = vor.u32 %v4389_v3, %v3363_v60 }
 0x1d3   :  { %2645 = vmatmul.bf16.gmra.mxu3 %v3410_v40 }
 0x1d4   :  { %2391 = vmatmul.bf16.gmra.mxu0 %v1171_v56  ;;  %v2116_v27 = vpop.f32.mrf.mxu2 }
 0x1d5   :  { %v2117_v26 = vadd.f32 %v2116_v27, %v1999_v11 }
 0x1d6   :  { %v2000_v46 = vpop.f32.mrf.mxu1  ;;  %v2244_v37 = vpop.f32.mrf.mxu3 }
 0x1d7   :  { %v2235_v9 = vadd.f32 %v2234_v31, %v2117_v26  ;;  %v4394_v31 = vld [vmem:[%s7032_s0 + $0x38] sm:$0xf0]  ;;  %v2001_v6 = vadd.f32 %v2000_v46, %v5134_v62  ;;  %v3443_v62 = vld [vmem:[%s7032_s0 + $0xcc] sm:$0xf0] }
 0x1d8   :  { %v3370_v56 = vor.u32 %v4394_v31, %v3369_v50  ;;  %v3446_v27 = vor.u32 %v4408_v58, %v3443_v62 }
 0x1d9   :  { %v2354_v57 = vpop.f32.mrf.mxu0  ;;  %v5800_v30 = vadd.f32 %v2352_v38, %v2235_v9 }
 0x1dc   :  { %v2118_v23 = vpop.f32.mrf.mxu2 }
 0x1dd   :  { %v2119_v18 = vadd.f32 %v2118_v23, %v2001_v6  ;;  %v3413_v23 = vld [vmem:[%s7032_s0 + $0x68] sm:$0xf] }
 0x1de   :  { %v2003_v59 = vpop.f32.mrf.mxu1  ;;  %v2246_v11 = vpop.f32.mrf.mxu3 }
 0x1df   :  { %v2237_v38 = vadd.f32 %v2236_v12, %v2119_v18  ;;  %v2004_v46 = vadd.f32 %v2003_v59, %v5154_v10  ;;  %v4398_v12 = vld [vmem:[%s7032_s0 + $0x5c] sm:$0xf]  ;;  %v3405_v10 = vld [vmem:[%s7032_s0 + $0x60] sm:$0xf]  ;;  %v4404_v18 = vld [vmem:[%s7032_s0 + $0x88] sm:$0xf0] }
 0x1e0   :  { %v3414_v62 = vor.u32 %v4404_v18, %v3413_v23 }
 0x1e1   :  { %v2357_v40 = vpop.f32.mrf.mxu0  ;;  %2404 = vmatmul.bf16.vlgmr.msra.gmra.mxu1 %v3366_v19  ;;  %2522 = vmatmul.bf16.vlgmr.msra.gmra.mxu2 %v3370_v56  ;;  %v5824_v26 = vadd.f32 %v2354_v57, %v2237_v38  ;;  %v3399_v57 = vld [vmem:[%s7032_s0 + $0x7c] sm:$0xf0]  ;;  %v4417_v38 = vld [vmem:[%s7032_s0 + $0xf4] sm:$0xf] }
 0x1e2   :  { %v3402_v59 = vor.u32 %v4398_v12, %v3399_v57 }
 0x1e3   :  { %2650 = vmatmul.bf16.gmra.mxu3 %v3446_v27 }
 0x1e4   :  { %2758 = vmatmul.bf16.vlgmr.msra.gmra.mxu0 %v3378_v2  ;;  %v2121_v9 = vpop.f32.mrf.mxu2 }
 0x1e5   :  { %v2122_v3 = vadd.f32 %v2121_v9, %v2004_v46 }
 0x1e6   :  { %v2005_v60 = vpop.f32.mrf.mxu1  ;;  %v2249_v6 = vpop.f32.mrf.mxu3 }
 0x1e7   :  { %v2240_v50 = vadd.f32 %v2239_v51, %v2122_v3  ;;  %v4403_v51 = vld [vmem:[%s7032_s0 + $0x80] sm:$0xf0]  ;;  %v2006_v43 = vadd.f32 %v2005_v60, %v5180_v20  ;;  %v3479_v20 = vld [vmem:[%s7032_s0 + $0x114] sm:$0xf0] }
 0x1e8   :  { %v3406_v2 = vor.u32 %v4403_v51, %v3405_v10  ;;  %v3482_v9 = vor.u32 %v4417_v38, %v3479_v20 }
 0x1e9   :  { %v2359_v31 = vpop.f32.mrf.mxu0  ;;  %v5830_v4 = vadd.f32 %v2357_v40, %v2240_v50 }
 0x1ec   :  { %v2123_v19 = vpop.f32.mrf.mxu2 }
 0x1ed   :  { %v2124_v56 = vadd.f32 %v2123_v19, %v2006_v43  ;;  %v3449_v19 = vld [vmem:[%s7032_s0 + $0xb0] sm:$0xf] }
 0x1ee   :  { %v2008_v58 = vpop.f32.mrf.mxu1  ;;  %v2251_v46 = vpop.f32.mrf.mxu3 }
 0x1ef   :  { %v2242_v40 = vadd.f32 %v2241_v24, %v2124_v56  ;;  %v2009_v60 = vadd.f32 %v2008_v58, %v5194_v36  ;;  %v4407_v24 = vld [vmem:[%s7032_s0 + $0xa4] sm:$0xf]  ;;  %v3441_v36 = vld [vmem:[%s7032_s0 + $0xa8] sm:$0xf]  ;;  %v4413_v56 = vld [vmem:[%s7032_s0 + $0xd0] sm:$0xf0] }
 0x1f0   :  { %v3450_v20 = vor.u32 %v4413_v56, %v3449_v19 }
 0x1f1   :  { %v2362_v27 = vpop.f32.mrf.mxu0  ;;  %2409 = vmatmul.bf16.gmra.mxu1 %v3402_v59  ;;  %2527 = vmatmul.bf16.gmra.mxu2 %v3406_v2  ;;  %v5854_v3 = vadd.f32 %v2359_v31, %v2242_v40  ;;  %v3435_v31 = vld [vmem:[%s7032_s0 + $0xc4] sm:$0xf0]  ;;  %v4426_v40 = vld [vmem:[%s7032_s0 + $0x13c] sm:$0xf] }
 0x1f2   :  { %v3438_v58 = vor.u32 %v4407_v24, %v3435_v31 }
 0x1f3   :  { %2655 = vmatmul.bf16.gmra.mxu3 %v3482_v9 }
 0x1f4   :  { %2763 = vmatmul.bf16.gmra.mxu0 %v3414_v62  ;;  %v2126_v50 = vpop.f32.mrf.mxu2 }
 0x1f5   :  { %v2127_v12 = vadd.f32 %v2126_v50, %v2009_v60 }
 0x1f6   :  { %v2010_v57 = vpop.f32.mrf.mxu1  ;;  %v2254_v43 = vpop.f32.mrf.mxu3 }
 0x1f7   :  { %v2245_v10 = vadd.f32 %v2244_v37, %v2127_v12  ;;  %v4412_v37 = vld [vmem:[%s7032_s0 + $0xc8] sm:$0xf0]  ;;  %v2011_v18 = vadd.f32 %v2010_v57, %v5220_v53  ;;  %v3515_v53 = vld [vmem:[%s7032_s0 + $0x15c] sm:$0xf0] }
 0x1f8   :  { %v3442_v62 = vor.u32 %v4412_v37, %v3441_v36  ;;  %v3518_v50 = vor.u32 %v4426_v40, %v3515_v53 }
 0x1f9   :  { %v2364_v51 = vpop.f32.mrf.mxu0  ;;  %v5860_v23 = vadd.f32 %v2362_v27, %v2245_v10 }
 0x1fc   :  { %v2128_v59 = vpop.f32.mrf.mxu2 }
 0x1fd   :  { %v2129_v2 = vadd.f32 %v2128_v59, %v2011_v18  ;;  %v3485_v59 = vld [vmem:[%s7032_s0 + $0xf8] sm:$0xf] }
 0x1fe   :  { %v2013_v38 = vpop.f32.mrf.mxu1  ;;  %v2256_v60 = vpop.f32.mrf.mxu3 }
 0x1ff   :  { %v2247_v27 = vadd.f32 %v2246_v11, %v2129_v2  ;;  %v2014_v57 = vadd.f32 %v2013_v38, %v5232_v1  ;;  %v4416_v11 = vld [vmem:[%s7032_s0 + $0xec] sm:$0xf]  ;;  %v3477_v1 = vld [vmem:[%s7032_s0 + $0xf0] sm:$0xf]  ;;  %v4422_v2 = vld [vmem:[%s7032_s0 + $0x118] sm:$0xf0] }
 0x200   :  { %v3486_v53 = vor.u32 %v4422_v2, %v3485_v59 }
 0x201   :  { %v2367_v9 = vpop.f32.mrf.mxu0  ;;  %2414 = vmatmul.bf16.gmra.mxu1 %v3438_v58  ;;  %2532 = vmatmul.bf16.gmra.mxu2 %v3442_v62  ;;  %v5884_v12 = vadd.f32 %v2364_v51, %v2247_v27  ;;  %v3471_v51 = vld [vmem:[%s7032_s0 + $0x10c] sm:$0xf0]  ;;  %v4435_v27 = vld [vmem:[%s7032_s0 + $0x184] sm:$0xf] }
 0x202   :  { %v3474_v38 = vor.u32 %v4416_v11, %v3471_v51 }
 0x203   :  { %2660 = vmatmul.bf16.gmra.mxu3 %v3518_v50 }
 0x204   :  { %2768 = vmatmul.bf16.gmra.mxu0 %v3450_v20  ;;  %v2131_v10 = vpop.f32.mrf.mxu2 }
 0x205   :  { %v2132_v24 = vadd.f32 %v2131_v10, %v2014_v57 }
 0x206   :  { %v2015_v31 = vpop.f32.mrf.mxu1  ;;  %v2259_v18 = vpop.f32.mrf.mxu3 }
 0x207   :  { %v2250_v36 = vadd.f32 %v2249_v6, %v2132_v24  ;;  %v4421_v6 = vld [vmem:[%s7032_s0 + $0x110] sm:$0xf0]  ;;  %v2016_v56 = vadd.f32 %v2015_v31, %v5265_v22  ;;  %v3551_v22 = vld [vmem:[%s7032_s0 + $0x1a4] sm:$0xf0] }
 0x208   :  { %v3478_v20 = vor.u32 %v4421_v6, %v3477_v1  ;;  %v3554_v10 = vor.u32 %v4435_v27, %v3551_v22 }
 0x209   :  { %v2369_v37 = vpop.f32.mrf.mxu0  ;;  %v5890_v19 = vadd.f32 %v2367_v9, %v2250_v36 }
 0x20c   :  { %v2133_v58 = vpop.f32.mrf.mxu2 }
 0x20d   :  { %v2134_v62 = vadd.f32 %v2133_v58, %v2016_v56  ;;  %v3521_v58 = vld [vmem:[%s7032_s0 + $0x140] sm:$0xf] }
 0x20e   :  { %v2018_v40 = vpop.f32.mrf.mxu1  ;;  %v2261_v57 = vpop.f32.mrf.mxu3 }
 0x20f   :  { %v2252_v9 = vadd.f32 %v2251_v46, %v2134_v62  ;;  %v2019_v31 = vadd.f32 %v2018_v40, %v5280_v55  ;;  %v4425_v46 = vld [vmem:[%s7032_s0 + $0x134] sm:$0xf]  ;;  %v3513_v55 = vld [vmem:[%s7032_s0 + $0x138] sm:$0xf]  ;;  %v4431_v62 = vld [vmem:[%s7032_s0 + $0x160] sm:$0xf0] }
 0x210   :  { %v3522_v22 = vor.u32 %v4431_v62, %v3521_v58 }
 0x211   :  { %v2372_v50 = vpop.f32.mrf.mxu0  ;;  %2419 = vmatmul.bf16.gmra.mxu1 %v3474_v38  ;;  %2537 = vmatmul.bf16.gmra.mxu2 %v3478_v20  ;;  %v5914_v24 = vadd.f32 %v2369_v37, %v2252_v9  ;;  %v3507_v37 = vld [vmem:[%s7032_s0 + $0x154] sm:$0xf0]  ;;  %v4444_v9 = vld [vmem:[%s7032_s0 + $0x1cc] sm:$0xf] }
 0x212   :  { %v3510_v40 = vor.u32 %v4425_v46, %v3507_v37 }
 0x213   :  { %2665 = vmatmul.bf16.gmra.mxu3 %v3554_v10 }
 0x214   :  { %2773 = vmatmul.bf16.gmra.mxu0 %v3486_v53  ;;  %v2136_v36 = vpop.f32.mrf.mxu2 }
 0x215   :  { %v2137_v11 = vadd.f32 %v2136_v36, %v2019_v31 }
 0x216   :  { %v2020_v51 = vpop.f32.mrf.mxu1  ;;  %v2264_v56 = vpop.f32.mrf.mxu3 }
 0x217   :  { %v2255_v1 = vadd.f32 %v2254_v43, %v2137_v11  ;;  %v4430_v43 = vld [vmem:[%s7032_s0 + $0x158] sm:$0xf0]  ;;  %v2021_v2 = vadd.f32 %v2020_v51, %v5304_v15  ;;  %v3587_v15 = vld [vmem:[%s7032_s0 + $0x1ec] sm:$0xf0] }
 0x218   :  { %v3514_v53 = vor.u32 %v4430_v43, %v3513_v55  ;;  %v3590_v36 = vor.u32 %v4444_v9, %v3587_v15 }
 0x219   :  { %v2374_v6 = vpop.f32.mrf.mxu0  ;;  %v5920_v59 = vadd.f32 %v2372_v50, %v2255_v1 }
 0x21c   :  { %v2138_v38 = vpop.f32.mrf.mxu2 }
 0x21d   :  { %v2139_v20 = vadd.f32 %v2138_v38, %v2021_v2  ;;  %v3557_v38 = vld [vmem:[%s7032_s0 + $0x188] sm:$0xf] }
 0x21e   :  { %v2023_v27 = vpop.f32.mrf.mxu1  ;;  %v2266_v31 = vpop.f32.mrf.mxu3 }
 0x21f   :  { %v2257_v50 = vadd.f32 %v2256_v60, %v2139_v20  ;;  %v2024_v51 = vadd.f32 %v2023_v27, %v5068_v33  ;;  %v4434_v60 = vld [vmem:[%s7032_s0 + $0x17c] sm:$0xf]  ;;  %v3549_v33 = vld [vmem:[%s7032_s0 + $0x180] sm:$0xf]  ;;  %v4440_v20 = vld [vmem:[%s7032_s0 + $0x1a8] sm:$0xf0] }
 0x220   :  { %v3558_v15 = vor.u32 %v4440_v20, %v3557_v38 }
 0x221   :  { %v2377_v10 = vpop.f32.mrf.mxu0  ;;  %2424 = vmatmul.bf16.gmra.mxu1 %v3510_v40  ;;  %2542 = vmatmul.bf16.gmra.mxu2 %v3514_v53  ;;  %v5944_v11 = vadd.f32 %v2374_v6, %v2257_v50  ;;  %v3543_v6 = vld [vmem:[%s7032_s0 + $0x19c] sm:$0xf0]  ;;  %v4453_v50 = vld [vmem:[%s7032_s0 + $0x214] sm:$0xf] }
 0x222   :  { %v3546_v27 = vor.u32 %v4434_v60, %v3543_v6 }
 0x223   :  { %2670 = vmatmul.bf16.gmra.mxu3 %v3590_v36 }
 0x224   :  { %2778 = vmatmul.bf16.gmra.mxu0 %v3522_v22  ;;  %v2141_v1 = vpop.f32.mrf.mxu2 }
 0x225   :  { %v2142_v46 = vadd.f32 %v2141_v1, %v2024_v51 }
 0x226   :  { %v2025_v37 = vpop.f32.mrf.mxu1  ;;  %v2269_v2 = vpop.f32.mrf.mxu3 }
 0x227   :  { %v2260_v55 = vadd.f32 %v2259_v18, %v2142_v46  ;;  %v4439_v18 = vld [vmem:[%s7032_s0 + $0x1a0] sm:$0xf0]  ;;  %v2026_v62 = vadd.f32 %v2025_v37, %v5100_v48  ;;  %v3623_v48 = vld [vmem:[%s7032_s0 + $0x234] sm:$0xf0] }
 0x228   :  { %v3550_v22 = vor.u32 %v4439_v18, %v3549_v33  ;;  %v3626_v1 = vor.u32 %v4453_v50, %v3623_v48 }
 0x229   :  { %v2379_v43 = vpop.f32.mrf.mxu0  ;;  %v5950_v58 = vadd.f32 %v2377_v10, %v2260_v55 }
 0x22c   :  { %v2143_v40 = vpop.f32.mrf.mxu2 }
 0x22d   :  { %v2144_v53 = vadd.f32 %v2143_v40, %v2026_v62  ;;  %v3593_v40 = vld [vmem:[%s7032_s0 + $0x1d0] sm:$0xf] }
 0x22e   :  { %v2028_v9 = vpop.f32.mrf.mxu1  ;;  %v2271_v51 = vpop.f32.mrf.mxu3 }
 0x22f   :  { %v2262_v10 = vadd.f32 %v2261_v57, %v2144_v53  ;;  %v2029_v37 = vadd.f32 %v2028_v9, %v5111_v54  ;;  %v4443_v57 = vld [vmem:[%s7032_s0 + $0x1c4] sm:$0xf]  ;;  %v3585_v54 = vld [vmem:[%s7032_s0 + $0x1c8] sm:$0xf]  ;;  %v4449_v53 = vld [vmem:[%s7032_s0 + $0x1f0] sm:$0xf0] }
 0x230   :  { %v3594_v48 = vor.u32 %v4449_v53, %v3593_v40 }
 0x231   :  { %v2382_v36 = vpop.f32.mrf.mxu0  ;;  %2429 = vmatmul.bf16.gmra.mxu1 %v3546_v27  ;;  %2547 = vmatmul.bf16.gmra.mxu2 %v3550_v22  ;;  %v5974_v46 = vadd.f32 %v2379_v43, %v2262_v10  ;;  %v3579_v43 = vld [vmem:[%s7032_s0 + $0x1e4] sm:$0xf0]  ;;  %v4462_v10 = vld [vmem:[%s7032_s0 + $0x25c] sm:$0xf] }
 0x232   :  { %v3582_v9 = vor.u32 %v4443_v57, %v3579_v43 }
 0x233   :  { %2675 = vmatmul.bf16.gmra.mxu3 %v3626_v1 }
 0x234   :  { %2783 = vmatmul.bf16.gmra.mxu0 %v3558_v15  ;;  %v2146_v55 = vpop.f32.mrf.mxu2 }
 0x235   :  { %v2147_v60 = vadd.f32 %v2146_v55, %v2029_v37 }
 0x236   :  { %v2030_v6 = vpop.f32.mrf.mxu1  ;;  %v2274_v62 = vpop.f32.mrf.mxu3 }
 0x237   :  { %v2265_v33 = vadd.f32 %v2264_v56, %v2147_v60  ;;  %v4448_v56 = vld [vmem:[%s7032_s0 + $0x1e8] sm:$0xf0]  ;;  %v2031_v20 = vadd.f32 %v2030_v6, %v5149_v7  ;;  %v3659_v7 = vld [vmem:[%s7032_s0 + $0x27c] sm:$0xf0] }
 0x238   :  { %v3586_v15 = vor.u32 %v4448_v56, %v3585_v54  ;;  %v3662_v55 = vor.u32 %v4462_v10, %v3659_v7 }
 0x239   :  { %v2384_v18 = vpop.f32.mrf.mxu0  ;;  %v5980_v38 = vadd.f32 %v2382_v36, %v2265_v33 }
 0x23b   :  { %7048 = vst [vmem:[#allocation7_spill] sm:$0xff] %v5980_v38 }
 0x23c   :  { %v2148_v27 = vpop.f32.mrf.mxu2 }
 0x23d   :  { %v2149_v22 = vadd.f32 %v2148_v27, %v2031_v20  ;;  %v3629_v27 = vld [vmem:[%s7032_s0 + $0x218] sm:$0xf] }
 0x23e   :  { %v2033_v50 = vpop.f32.mrf.mxu1  ;;  %v2276_v37 = vpop.f32.mrf.mxu3 }
 0x23f   :  { %v2267_v36 = vadd.f32 %v2266_v31, %v2149_v22  ;;  %v2034_v6 = vadd.f32 %v2033_v50, %v5160_v13  ;;  %v4452_v31 = vld [vmem:[%s7032_s0 + $0x20c] sm:$0xf]  ;;  %v3621_v13 = vld [vmem:[%s7032_s0 + $0x210] sm:$0xf]  ;;  %v4458_v22 = vld [vmem:[%s7032_s0 + $0x238] sm:$0xf0] }
 0x240   :  { %v3630_v7 = vor.u32 %v4458_v22, %v3629_v27  ;;  %v3657_v22 = vld [vmem:[%s7032_s0 + $0x258] sm:$0xf] }
 0x241   :  { %v2387_v1 = vpop.f32.mrf.mxu0  ;;  %2434 = vmatmul.bf16.gmra.mxu1 %v3582_v9  ;;  %2552 = vmatmul.bf16.gmra.mxu2 %v3586_v15  ;;  %v6004_v60 = vadd.f32 %v2384_v18, %v2267_v36  ;;  %v3615_v18 = vld [vmem:[%s7032_s0 + $0x22c] sm:$0xf0]  ;;  %v4471_v36 = vld [vmem:[%s7032_s0 + $0x2a4] sm:$0xf] }
 0x242   :  { %v3618_v50 = vor.u32 %v4452_v31, %v3615_v18 }
 0x243   :  { %7049 = vst [vmem:[#allocation8_spill] sm:$0xff] %v6004_v60  ;;  %2680 = vmatmul.bf16.gmra.mxu3 %v3662_v55 }
 0x244   :  { %2788 = vmatmul.bf16.gmra.mxu0 %v3594_v48  ;;  %v2151_v33 = vpop.f32.mrf.mxu2 }
 0x245   :  { %v2152_v57 = vadd.f32 %v2151_v33, %v2034_v6 }
 0x246   :  { %v2035_v43 = vpop.f32.mrf.mxu1  ;;  %v2641_v20 = vpop.f32.mrf.mxu3 }
 0x247   :  { %v2270_v54 = vadd.f32 %v2269_v2, %v2152_v57  ;;  %v4457_v2 = vld [vmem:[%s7032_s0 + $0x230] sm:$0xf0]  ;;  %v2036_v53 = vadd.f32 %v2035_v43, %v5192_v34  ;;  %v3695_v34 = vld [vmem:[%s7032_s0 + $0x2c4] sm:$0xf0]  ;;  %v7052_v57 = vld [vmem:[#allocation2_spill] sm:$0xff] }
 0x248   :  { %v3622_v48 = vor.u32 %v4457_v2, %v3621_v13  ;;  %v3698_v6 = vor.u32 %v4471_v36, %v3695_v34  ;;  %v4480_v34 = vld [vmem:[%s7032_s0 + $0x2ec] sm:$0xf] }
 0x249   :  { %v2389_v56 = vpop.f32.mrf.mxu0  ;;  %v6010_v40 = vadd.f32 %v2387_v1, %v2270_v54 }
 0x24b   :  { %7050 = vst [vmem:[#allocation9_spill] sm:$0xff] %v6010_v40 }
 0x24c   :  { %v2153_v9 = vpop.f32.mrf.mxu2 }
 0x24d   :  { %v2154_v15 = vadd.f32 %v2153_v9, %v2036_v53  ;;  %v3665_v9 = vld [vmem:[%s7032_s0 + $0x260] sm:$0xf] }
 0x24e   :  { %v2038_v10 = vpop.f32.mrf.mxu1  ;;  %v2643_v55 = vpop.f32.mrf.mxu3 }
 0x24f   :  { %v2272_v1 = vadd.f32 %v2271_v51, %v2154_v15  ;;  %v2039_v43 = vadd.f32 %v2038_v10, %v7052_v57  ;;  %v4461_v51 = vld [vmem:[%s7032_s0 + $0x254] sm:$0xf]  ;;  %v4467_v15 = vld [vmem:[%s7032_s0 + $0x280] sm:$0xf0] }
 0x250   :  { %v3666_v36 = vor.u32 %v4467_v15, %v3665_v9  ;;  %v4470_v9 = vld [vmem:[%s7032_s0 + $0x29c] sm:$0xf]  ;;  %v3687_v15 = vld [vmem:[%s7032_s0 + $0x2bc] sm:$0xf0] }
 0x251   :  { %v2392_v37 = vpop.f32.mrf.mxu0  ;;  %2439 = vmatmul.bf16.gmra.mxu1 %v3618_v50  ;;  %2557 = vmatmul.bf16.gmra.mxu2 %v3622_v48  ;;  %v6034_v33 = vadd.f32 %v2389_v56, %v2272_v1  ;;  %v3651_v56 = vld [vmem:[%s7032_s0 + $0x274] sm:$0xf0]  ;;  %v3731_v1 = vld [vmem:[%s7032_s0 + $0x30c] sm:$0xf0] }
 0x252   :  { %v3654_v48 = vor.u32 %v4461_v51, %v3651_v56 }
 0x253   :  { %7051 = vst [vmem:[#allocation10_spill] sm:$0xff] %v6034_v33  ;;  %2685 = vmatmul.bf16.gmra.mxu3 %v3698_v6 }
 0x254   :  { %2793 = vmatmul.bf16.gmra.mxu0 %v3630_v7  ;;  %v2156_v54 = vpop.f32.mrf.mxu2 }
 0x255   :  { %v2157_v31 = vadd.f32 %v2156_v54, %v2039_v43  ;;  %v3734_v54 = vor.u32 %v4480_v34, %v3731_v1 }
 0x256   :  { %v2040_v18 = vpop.f32.mrf.mxu1  ;;  %v2646_v53 = vpop.f32.mrf.mxu3 }
 0x257   :  { %v2275_v13 = vadd.f32 %v2274_v62, %v2157_v31  ;;  %v4466_v62 = vld [vmem:[%s7032_s0 + $0x278] sm:$0xf0] }
 0x258   :  { %v3658_v10 = vor.u32 %v4466_v62, %v3657_v22 }
 0x259   :  { %v2394_v2 = vpop.f32.mrf.mxu0  ;;  %v6040_v27 = vadd.f32 %v2392_v37, %v2275_v13  ;;  %v7054_v37 = vld [vmem:[#allocation3_spill] sm:$0xff] }
 0x25b   :  { %7053 = vst [vmem:[#allocation2_spill] sm:$0xff] %v6040_v27 }
 0x25c   :  { %v2158_v50 = vpop.f32.mrf.mxu2 }
 0x25d   :  { %v3693_v50 = vld [vmem:[%s7032_s0 + $0x2a0] sm:$0xf] }
 0x25e   :  { %v2405_v7 = vpop.f32.mrf.mxu1  ;;  %v2648_v43 = vpop.f32.mrf.mxu3 }
 0x25f   :  { %v2406_v6 = vadd.f32 %v2405_v7, %v7054_v37 }
 0x261   :  { %v2759_v57 = vpop.f32.mrf.mxu0  ;;  %2444 = vmatmul.bf16.gmra.mxu1 %v3654_v48  ;;  %2562 = vmatmul.bf16.gmra.mxu2 %v3658_v10  ;;  %v4476_v48 = vld [vmem:[%s7032_s0 + $0x2c8] sm:$0xf0] }
 0x263   :  { %2690 = vmatmul.bf16.gmra.mxu3 %v3734_v54 }
 0x264   :  { %2798 = vmatmul.bf16.gmra.mxu0 %v3666_v36  ;;  %v2523_v31 = vpop.f32.mrf.mxu2  ;;  %v3690_v36 = vor.u32 %v4470_v9, %v3687_v15 }
 0x265   :  { %v2524_v18 = vadd.f32 %v2523_v31, %v2406_v6  ;;  %v4489_v6 = vld [vmem:[%s7032_s0 + $0x334] sm:$0xf] }
 0x266   :  { %v2407_v13 = vpop.f32.mrf.mxu1  ;;  %v2651_v22 = vpop.f32.mrf.mxu3 }
 0x267   :  { %v2642_v2 = vadd.f32 %v2641_v20, %v2524_v18  ;;  %v2408_v51 = vadd.f32 %v2407_v13, %v5349_v16  ;;  %v4475_v16 = vld [vmem:[%s7032_s0 + $0x2c0] sm:$0xf0]  ;;  %v3701_v20 = vld [vmem:[%s7032_s0 + $0x2a8] sm:$0xf] }
 0x268   :  { %v3694_v34 = vor.u32 %v4475_v16, %v3693_v50  ;;  %v3702_v37 = vor.u32 %v4476_v48, %v3701_v20 }
 0x269   :  { %v2761_v56 = vpop.f32.mrf.mxu0  ;;  %v6065_v62 = vadd.f32 %v2759_v57, %v2642_v2  ;;  %v3767_v57 = vld [vmem:[%s7032_s0 + $0x354] sm:$0xf0] }
 0x26c   :  { %v2525_v10 = vpop.f32.mrf.mxu2 }
 0x26d   :  { %v2526_v7 = vadd.f32 %v2525_v10, %v2408_v51  ;;  %v3770_v51 = vor.u32 %v4489_v6, %v3767_v57 }
 0x26e   :  { %v2410_v1 = vpop.f32.mrf.mxu1  ;;  %v2653_v13 = vpop.f32.mrf.mxu3 }
 0x26f   :  { %v2644_v54 = vadd.f32 %v2643_v55, %v2526_v7  ;;  %v2411_v31 = vadd.f32 %v2410_v1, %v5366_v41  ;;  %v4479_v41 = vld [vmem:[%s7032_s0 + $0x2e4] sm:$0xf]  ;;  %v3729_v7 = vld [vmem:[%s7032_s0 + $0x2e8] sm:$0xf] }
 0x271   :  { %v2764_v18 = vpop.f32.mrf.mxu0  ;;  %v6092_v2 = vadd.f32 %v2761_v56, %v2644_v54  ;;  %2449 = vmatmul.bf16.gmra.mxu1 %v3690_v36  ;;  %2567 = vmatmul.bf16.gmra.mxu2 %v3694_v34  ;;  %v3723_v56 = vld [vmem:[%s7032_s0 + $0x304] sm:$0xf0]  ;;  %v4485_v36 = vld [vmem:[%s7032_s0 + $0x310] sm:$0xf0] }
 0x273   :  { %2695 = vmatmul.bf16.gmra.mxu3 %v3770_v51 }
 0x274   :  { %2803 = vmatmul.bf16.gmra.mxu0 %v3702_v37  ;;  %v2528_v9 = vpop.f32.mrf.mxu2  ;;  %v3726_v37 = vor.u32 %v4479_v41, %v3723_v56 }
 0x275   :  { %v2529_v15 = vadd.f32 %v2528_v9, %v2411_v31  ;;  %v4498_v31 = vld [vmem:[%s7032_s0 + $0x37c] sm:$0xf] }
 0x276   :  { %v2412_v50 = vpop.f32.mrf.mxu1  ;;  %v2656_v10 = vpop.f32.mrf.mxu3 }
 0x277   :  { %v2647_v16 = vadd.f32 %v2646_v53, %v2529_v15  ;;  %v2413_v20 = vadd.f32 %v2412_v50, %v5391_v45  ;;  %v4484_v45 = vld [vmem:[%s7032_s0 + $0x308] sm:$0xf0]  ;;  %v3737_v53 = vld [vmem:[%s7032_s0 + $0x2f0] sm:$0xf] }
 0x278   :  { %v3730_v6 = vor.u32 %v4484_v45, %v3729_v7  ;;  %v3738_v54 = vor.u32 %v4485_v36, %v3737_v53 }
 0x279   :  { %v2766_v48 = vpop.f32.mrf.mxu0  ;;  %v6095_v55 = vadd.f32 %v2764_v18, %v2647_v16  ;;  %v3803_v18 = vld [vmem:[%s7032_s0 + $0x39c] sm:$0xf0] }
 0x27c   :  { %v2530_v34 = vpop.f32.mrf.mxu2 }
 0x27d   :  { %v2531_v1 = vadd.f32 %v2530_v34, %v2413_v20  ;;  %v3806_v20 = vor.u32 %v4498_v31, %v3803_v18 }
 0x27e   :  { %v2415_v57 = vpop.f32.mrf.mxu1  ;;  %v2658_v50 = vpop.f32.mrf.mxu3 }
 0x27f   :  { %v2649_v51 = vadd.f32 %v2648_v43, %v2531_v1  ;;  %v2416_v9 = vadd.f32 %v2415_v57, %v5400_v63  ;;  %v4488_v63 = vld [vmem:[%s7032_s0 + $0x32c] sm:$0xf]  ;;  %v3765_v1 = vld [vmem:[%s7032_s0 + $0x330] sm:$0xf] }
 0x281   :  { %v2769_v15 = vpop.f32.mrf.mxu0  ;;  %v6122_v16 = vadd.f32 %v2766_v48, %v2649_v51  ;;  %2454 = vmatmul.bf16.gmra.mxu1 %v3726_v37  ;;  %2572 = vmatmul.bf16.gmra.mxu2 %v3730_v6  ;;  %v3759_v48 = vld [vmem:[%s7032_s0 + $0x34c] sm:$0xf0]  ;;  %v4494_v37 = vld [vmem:[%s7032_s0 + $0x358] sm:$0xf0] }
 0x283   :  { %2700 = vmatmul.bf16.gmra.mxu3 %v3806_v20 }
 0x284   :  { %2808 = vmatmul.bf16.gmra.mxu0 %v3738_v54  ;;  %v2533_v41 = vpop.f32.mrf.mxu2  ;;  %v3762_v54 = vor.u32 %v4488_v63, %v3759_v48 }
 0x285   :  { %v2534_v56 = vadd.f32 %v2533_v41, %v2416_v9  ;;  %v4507_v9 = vld [vmem:[%s7032_s0 + $0x3c4] sm:$0xf] }
 0x286   :  { %v2417_v7 = vpop.f32.mrf.mxu1  ;;  %v2661_v34 = vpop.f32.mrf.mxu3 }
 0x287   :  { %v2652_v45 = vadd.f32 %v2651_v22, %v2534_v56  ;;  %v2418_v53 = vadd.f32 %v2417_v7, %v5427_v35  ;;  %v4493_v35 = vld [vmem:[%s7032_s0 + $0x350] sm:$0xf0]  ;;  %v3773_v22 = vld [vmem:[%s7032_s0 + $0x338] sm:$0xf] }
 0x288   :  { %v3766_v31 = vor.u32 %v4493_v35, %v3765_v1  ;;  %v3774_v51 = vor.u32 %v4494_v37, %v3773_v22 }
 0x289   :  { %v2771_v36 = vpop.f32.mrf.mxu0  ;;  %v6125_v43 = vadd.f32 %v2769_v15, %v2652_v45  ;;  %v3839_v15 = vld [vmem:[%s7032_s0 + $0x3e4] sm:$0xf0] }
 0x28c   :  { %v2535_v6 = vpop.f32.mrf.mxu2 }
 0x28d   :  { %v2536_v57 = vadd.f32 %v2535_v6, %v2418_v53  ;;  %v3842_v53 = vor.u32 %v4507_v9, %v3839_v15 }
 0x28e   :  { %v2420_v18 = vpop.f32.mrf.mxu1  ;;  %v2663_v7 = vpop.f32.mrf.mxu3 }
 0x28f   :  { %v2654_v20 = vadd.f32 %v2653_v13, %v2536_v57  ;;  %v2421_v41 = vadd.f32 %v2420_v18, %v5436_v17  ;;  %v4497_v17 = vld [vmem:[%s7032_s0 + $0x374] sm:$0xf]  ;;  %v3801_v57 = vld [vmem:[%s7032_s0 + $0x378] sm:$0xf] }
 0x291   :  { %v2774_v56 = vpop.f32.mrf.mxu0  ;;  %v6152_v45 = vadd.f32 %v2771_v36, %v2654_v20  ;;  %2459 = vmatmul.bf16.gmra.mxu1 %v3762_v54  ;;  %2577 = vmatmul.bf16.gmra.mxu2 %v3766_v31  ;;  %v3795_v36 = vld [vmem:[%s7032_s0 + $0x394] sm:$0xf0]  ;;  %v4503_v54 = vld [vmem:[%s7032_s0 + $0x3a0] sm:$0xf0] }
 0x293   :  { %2705 = vmatmul.bf16.gmra.mxu3 %v3842_v53 }
 0x294   :  { %2813 = vmatmul.bf16.gmra.mxu0 %v3774_v51  ;;  %v2538_v63 = vpop.f32.mrf.mxu2  ;;  %v3798_v51 = vor.u32 %v4497_v17, %v3795_v36 }
 0x295   :  { %v2539_v48 = vadd.f32 %v2538_v63, %v2421_v41  ;;  %v4516_v41 = vld [vmem:[%s7032_s0 + $0x40c] sm:$0xf] }
 0x296   :  { %v2422_v1 = vpop.f32.mrf.mxu1  ;;  %v2666_v6 = vpop.f32.mrf.mxu3 }
 0x297   :  { %v2657_v35 = vadd.f32 %v2656_v10, %v2539_v48  ;;  %v2423_v22 = vadd.f32 %v2422_v1, %v5471_v25  ;;  %v4502_v25 = vld [vmem:[%s7032_s0 + $0x398] sm:$0xf0]  ;;  %v3809_v10 = vld [vmem:[%s7032_s0 + $0x380] sm:$0xf] }
 0x298   :  { %v3802_v9 = vor.u32 %v4502_v25, %v3801_v57  ;;  %v3810_v20 = vor.u32 %v4503_v54, %v3809_v10 }
 0x299   :  { %v2776_v37 = vpop.f32.mrf.mxu0  ;;  %v6155_v13 = vadd.f32 %v2774_v56, %v2657_v35  ;;  %v3875_v56 = vld [vmem:[%s7032_s0 + $0x42c] sm:$0xf0] }
 0x29c   :  { %v2540_v31 = vpop.f32.mrf.mxu2 }
 0x29d   :  { %v2541_v18 = vadd.f32 %v2540_v31, %v2423_v22  ;;  %v3878_v22 = vor.u32 %v4516_v41, %v3875_v56 }
 0x29e   :  { %v2425_v15 = vpop.f32.mrf.mxu1  ;;  %v2668_v1 = vpop.f32.mrf.mxu3 }
 0x29f   :  { %v2659_v53 = vadd.f32 %v2658_v50, %v2541_v18  ;;  %v2426_v63 = vadd.f32 %v2425_v15, %v5483_v61  ;;  %v4506_v61 = vld [vmem:[%s7032_s0 + $0x3bc] sm:$0xf]  ;;  %v3837_v18 = vld [vmem:[%s7032_s0 + $0x3c0] sm:$0xf] }
 0x2a1   :  { %v2779_v48 = vpop.f32.mrf.mxu0  ;;  %v6182_v35 = vadd.f32 %v2776_v37, %v2659_v53  ;;  %2464 = vmatmul.bf16.gmra.mxu1 %v3798_v51  ;;  %2582 = vmatmul.bf16.gmra.mxu2 %v3802_v9  ;;  %v3831_v37 = vld [vmem:[%s7032_s0 + $0x3dc] sm:$0xf0]  ;;  %v4512_v51 = vld [vmem:[%s7032_s0 + $0x3e8] sm:$0xf0] }
 0x2a3   :  { %2710 = vmatmul.bf16.gmra.mxu3 %v3878_v22 }
 0x2a4   :  { %2818 = vmatmul.bf16.gmra.mxu0 %v3810_v20  ;;  %v2543_v17 = vpop.f32.mrf.mxu2  ;;  %v3834_v20 = vor.u32 %v4506_v61, %v3831_v37 }
 0x2a5   :  { %v2544_v36 = vadd.f32 %v2543_v17, %v2426_v63  ;;  %v4525_v63 = vld [vmem:[%s7032_s0 + $0x454] sm:$0xf] }
 0x2a6   :  { %v2427_v57 = vpop.f32.mrf.mxu1  ;;  %v2671_v31 = vpop.f32.mrf.mxu3 }
 0x2a7   :  { %v2662_v25 = vadd.f32 %v2661_v34, %v2544_v36  ;;  %v2428_v10 = vadd.f32 %v2427_v57, %v5510_v14  ;;  %v4511_v14 = vld [vmem:[%s7032_s0 + $0x3e0] sm:$0xf0]  ;;  %v3845_v34 = vld [vmem:[%s7032_s0 + $0x3c8] sm:$0xf] }
 0x2a8   :  { %v3838_v41 = vor.u32 %v4511_v14, %v3837_v18  ;;  %v3846_v53 = vor.u32 %v4512_v51, %v3845_v34 }
 0x2a9   :  { %v2781_v54 = vpop.f32.mrf.mxu0  ;;  %v6185_v50 = vadd.f32 %v2779_v48, %v2662_v25  ;;  %v3911_v48 = vld [vmem:[%s7032_s0 + $0x474] sm:$0xf0] }
 0x2ac   :  { %v2545_v9 = vpop.f32.mrf.mxu2 }
 0x2ad   :  { %v2546_v15 = vadd.f32 %v2545_v9, %v2428_v10  ;;  %v3914_v10 = vor.u32 %v4525_v63, %v3911_v48 }
 0x2ae   :  { %v2430_v56 = vpop.f32.mrf.mxu1  ;;  %v2673_v57 = vpop.f32.mrf.mxu3 }
 0x2af   :  { %v2664_v22 = vadd.f32 %v2663_v7, %v2546_v15  ;;  %v2431_v17 = vadd.f32 %v2430_v56, %v5519_v8  ;;  %v4515_v8 = vld [vmem:[%s7032_s0 + $0x404] sm:$0xf]  ;;  %v3873_v15 = vld [vmem:[%s7032_s0 + $0x408] sm:$0xf] }
 0x2b1   :  { %v2784_v36 = vpop.f32.mrf.mxu0  ;;  %v6212_v25 = vadd.f32 %v2781_v54, %v2664_v22  ;;  %2469 = vmatmul.bf16.gmra.mxu1 %v3834_v20  ;;  %2587 = vmatmul.bf16.gmra.mxu2 %v3838_v41  ;;  %v3867_v54 = vld [vmem:[%s7032_s0 + $0x424] sm:$0xf0]  ;;  %v4521_v20 = vld [vmem:[%s7032_s0 + $0x430] sm:$0xf0] }
 0x2b3   :  { %2715 = vmatmul.bf16.gmra.mxu3 %v3914_v10 }
 0x2b4   :  { %2823 = vmatmul.bf16.gmra.mxu0 %v3846_v53  ;;  %v2548_v61 = vpop.f32.mrf.mxu2  ;;  %v3870_v53 = vor.u32 %v4515_v8, %v3867_v54 }
 0x2b5   :  { %v2549_v37 = vadd.f32 %v2548_v61, %v2431_v17  ;;  %v4534_v17 = vld [vmem:[%s7032_s0 + $0x49c] sm:$0xf] }
 0x2b6   :  { %v2432_v18 = vpop.f32.mrf.mxu1  ;;  %v2676_v9 = vpop.f32.mrf.mxu3 }
 0x2b7   :  { %v2667_v14 = vadd.f32 %v2666_v6, %v2549_v37  ;;  %v2433_v34 = vadd.f32 %v2432_v18, %v5546_v42  ;;  %v4520_v42 = vld [vmem:[%s7032_s0 + $0x428] sm:$0xf0]  ;;  %v3881_v6 = vld [vmem:[%s7032_s0 + $0x410] sm:$0xf] }
 0x2b8   :  { %v3874_v63 = vor.u32 %v4520_v42, %v3873_v15  ;;  %v3882_v22 = vor.u32 %v4521_v20, %v3881_v6 }
 0x2b9   :  { %v2786_v51 = vpop.f32.mrf.mxu0  ;;  %v6215_v7 = vadd.f32 %v2784_v36, %v2667_v14  ;;  %v3947_v36 = vld [vmem:[%s7032_s0 + $0x4bc] sm:$0xf0] }
 0x2bc   :  { %v2550_v41 = vpop.f32.mrf.mxu2 }
 0x2bd   :  { %v2551_v56 = vadd.f32 %v2550_v41, %v2433_v34  ;;  %v3950_v34 = vor.u32 %v4534_v17, %v3947_v36 }
 0x2be   :  { %v2435_v48 = vpop.f32.mrf.mxu1  ;;  %v2678_v18 = vpop.f32.mrf.mxu3 }
 0x2bf   :  { %v2669_v10 = vadd.f32 %v2668_v1, %v2551_v56  ;;  %v2436_v61 = vadd.f32 %v2435_v48, %v5561_v52  ;;  %v4524_v52 = vld [vmem:[%s7032_s0 + $0x44c] sm:$0xf]  ;;  %v3909_v56 = vld [vmem:[%s7032_s0 + $0x450] sm:$0xf] }
 0x2c1   :  { %v2789_v37 = vpop.f32.mrf.mxu0  ;;  %v6242_v14 = vadd.f32 %v2786_v51, %v2669_v10  ;;  %2474 = vmatmul.bf16.gmra.mxu1 %v3870_v53  ;;  %2592 = vmatmul.bf16.gmra.mxu2 %v3874_v63  ;;  %v3903_v51 = vld [vmem:[%s7032_s0 + $0x46c] sm:$0xf0]  ;;  %v4530_v53 = vld [vmem:[%s7032_s0 + $0x478] sm:$0xf0] }
 0x2c3   :  { %2720 = vmatmul.bf16.gmra.mxu3 %v3950_v34 }
 0x2c4   :  { %2828 = vmatmul.bf16.gmra.mxu0 %v3882_v22  ;;  %v2553_v8 = vpop.f32.mrf.mxu2  ;;  %v3906_v22 = vor.u32 %v4524_v52, %v3903_v51 }
 0x2c5   :  { %v2554_v54 = vadd.f32 %v2553_v8, %v2436_v61  ;;  %v4543_v61 = vld [vmem:[%s7032_s0 + $0x4e4] sm:$0xf] }
 0x2c6   :  { %v2437_v15 = vpop.f32.mrf.mxu1  ;;  %v2681_v41 = vpop.f32.mrf.mxu3 }
 0x2c7   :  { %v2672_v42 = vadd.f32 %v2671_v31, %v2554_v54  ;;  %v2438_v6 = vadd.f32 %v2437_v15, %v5591_v39  ;;  %v4529_v39 = vld [vmem:[%s7032_s0 + $0x470] sm:$0xf0]  ;;  %v3917_v31 = vld [vmem:[%s7032_s0 + $0x458] sm:$0xf] }
 0x2c8   :  { %v3910_v17 = vor.u32 %v4529_v39, %v3909_v56  ;;  %v3918_v10 = vor.u32 %v4530_v53, %v3917_v31 }
 0x2c9   :  { %v2791_v20 = vpop.f32.mrf.mxu0  ;;  %v6245_v1 = vadd.f32 %v2789_v37, %v2672_v42  ;;  %v3983_v37 = vld [vmem:[%s7032_s0 + $0x504] sm:$0xf0] }
 0x2cc   :  { %v2555_v63 = vpop.f32.mrf.mxu2 }
 0x2cd   :  { %v2556_v48 = vadd.f32 %v2555_v63, %v2438_v6  ;;  %v3986_v6 = vor.u32 %v4543_v61, %v3983_v37 }
 0x2ce   :  { %v2440_v36 = vpop.f32.mrf.mxu1  ;;  %v2683_v15 = vpop.f32.mrf.mxu3 }
 0x2cf   :  { %v2674_v34 = vadd.f32 %v2673_v57, %v2556_v48  ;;  %v2441_v8 = vadd.f32 %v2440_v36, %v5601_v49  ;;  %v4533_v49 = vld [vmem:[%s7032_s0 + $0x494] sm:$0xf]  ;;  %v3945_v48 = vld [vmem:[%s7032_s0 + $0x498] sm:$0xf] }
 0x2d1   :  { %v2794_v54 = vpop.f32.mrf.mxu0  ;;  %v6272_v42 = vadd.f32 %v2791_v20, %v2674_v34  ;;  %2479 = vmatmul.bf16.gmra.mxu1 %v3906_v22  ;;  %2597 = vmatmul.bf16.gmra.mxu2 %v3910_v17  ;;  %v3939_v20 = vld [vmem:[%s7032_s0 + $0x4b4] sm:$0xf0]  ;;  %v4539_v22 = vld [vmem:[%s7032_s0 + $0x4c0] sm:$0xf0] }
 0x2d3   :  { %2725 = vmatmul.bf16.gmra.mxu3 %v3986_v6 }
 0x2d4   :  { %2833 = vmatmul.bf16.gmra.mxu0 %v3918_v10  ;;  %v2558_v52 = vpop.f32.mrf.mxu2  ;;  %v3942_v10 = vor.u32 %v4533_v49, %v3939_v20 }
 0x2d5   :  { %v2559_v51 = vadd.f32 %v2558_v52, %v2441_v8  ;;  %v4552_v8 = vld [vmem:[%s7032_s0 + $0x52c] sm:$0xf] }
 0x2d6   :  { %v2442_v56 = vpop.f32.mrf.mxu1  ;;  %v2686_v63 = vpop.f32.mrf.mxu3 }
 0x2d7   :  { %v2677_v39 = vadd.f32 %v2676_v9, %v2559_v51  ;;  %v2443_v31 = vadd.f32 %v2442_v56, %v5628_v29  ;;  %v4538_v29 = vld [vmem:[%s7032_s0 + $0x4b8] sm:$0xf0]  ;;  %v3953_v9 = vld [vmem:[%s7032_s0 + $0x4a0] sm:$0xf] }
 0x2d8   :  { %v3946_v61 = vor.u32 %v4538_v29, %v3945_v48  ;;  %v3954_v34 = vor.u32 %v4539_v22, %v3953_v9 }
 0x2d9   :  { %v2796_v53 = vpop.f32.mrf.mxu0  ;;  %v6275_v57 = vadd.f32 %v2794_v54, %v2677_v39  ;;  %v4019_v54 = vld [vmem:[%s7032_s0 + $0x54c] sm:$0xf0] }
 0x2dc   :  { %v2560_v17 = vpop.f32.mrf.mxu2 }
 0x2dd   :  { %v2561_v36 = vadd.f32 %v2560_v17, %v2443_v31  ;;  %v4022_v31 = vor.u32 %v4552_v8, %v4019_v54 }
 0x2de   :  { %v2445_v37 = vpop.f32.mrf.mxu1  ;;  %v2688_v56 = vpop.f32.mrf.mxu3 }
 0x2df   :  { %v2679_v6 = vadd.f32 %v2678_v18, %v2561_v36  ;;  %v2446_v52 = vadd.f32 %v2445_v37, %v5637_v28  ;;  %v4542_v28 = vld [vmem:[%s7032_s0 + $0x4dc] sm:$0xf]  ;;  %v3981_v36 = vld [vmem:[%s7032_s0 + $0x4e0] sm:$0xf] }
 0x2e1   :  { %v2799_v51 = vpop.f32.mrf.mxu0  ;;  %v6302_v39 = vadd.f32 %v2796_v53, %v2679_v6  ;;  %2484 = vmatmul.bf16.gmra.mxu1 %v3942_v10  ;;  %2602 = vmatmul.bf16.gmra.mxu2 %v3946_v61  ;;  %v3975_v53 = vld [vmem:[%s7032_s0 + $0x4fc] sm:$0xf0]  ;;  %v4548_v10 = vld [vmem:[%s7032_s0 + $0x508] sm:$0xf0] }
 0x2e3   :  { %2730 = vmatmul.bf16.gmra.mxu3 %v4022_v31 }
 0x2e4   :  { %2838 = vmatmul.bf16.gmra.mxu0 %v3954_v34  ;;  %v2563_v49 = vpop.f32.mrf.mxu2  ;;  %v3978_v34 = vor.u32 %v4542_v28, %v3975_v53 }
 0x2e5   :  { %v2564_v20 = vadd.f32 %v2563_v49, %v2446_v52  ;;  %v4561_v52 = vld [vmem:[%s7032_s0 + $0x574] sm:$0xf] }
 0x2e6   :  { %v2447_v48 = vpop.f32.mrf.mxu1  ;;  %v2691_v17 = vpop.f32.mrf.mxu3  ;;  %v7055_v49 = vld [vmem:[#allocation4_spill] sm:$0xff] }
 0x2e7   :  { %v2682_v29 = vadd.f32 %v2681_v41, %v2564_v20  ;;  %v2448_v9 = vadd.f32 %v2447_v48, %v5664_v21  ;;  %v4547_v21 = vld [vmem:[%s7032_s0 + $0x500] sm:$0xf0]  ;;  %v3989_v41 = vld [vmem:[%s7032_s0 + $0x4e8] sm:$0xf] }
 0x2e8   :  { %v3982_v8 = vor.u32 %v4547_v21, %v3981_v36  ;;  %v3990_v6 = vor.u32 %v4548_v10, %v3989_v41  ;;  %v7056_v41 = vld [vmem:[#allocation5_spill] sm:$0xff] }
 0x2e9   :  { %v2801_v22 = vpop.f32.mrf.mxu0  ;;  %v6305_v18 = vadd.f32 %v2799_v51, %v2682_v29  ;;  %v4055_v51 = vld [vmem:[%s7032_s0 + $0x594] sm:$0xf0] }
 0x2ec   :  { %v2565_v61 = vpop.f32.mrf.mxu2 }
 0x2ed   :  { %v2566_v37 = vadd.f32 %v2565_v61, %v2448_v9  ;;  %v4058_v9 = vor.u32 %v4561_v52, %v4055_v51 }
 0x2ee   :  { %v2450_v54 = vpop.f32.mrf.mxu1  ;;  %v2693_v29 = vpop.f32.mrf.mxu3 }
 0x2ef   :  { %v2684_v31 = vadd.f32 %v2683_v15, %v2566_v37  ;;  %v2451_v20 = vadd.f32 %v2450_v54, %v7055_v49  ;;  %v4011_v37 = vld [vmem:[%s7032_s0 + $0x544] sm:$0xf0]  ;;  %v4557_v54 = vld [vmem:[%s7032_s0 + $0x550] sm:$0xf0] }
 0x2f1   :  { %v2804_v48 = vpop.f32.mrf.mxu0  ;;  %v6332_v27 = vadd.f32 %v2801_v22, %v2684_v31  ;;  %2489 = vmatmul.bf16.gmra.mxu1 %v3978_v34  ;;  %2607 = vmatmul.bf16.gmra.mxu2 %v3982_v8  ;;  %v4551_v22 = vld [vmem:[%s7032_s0 + $0x524] sm:$0xf]  ;;  %v4017_v34 = vld [vmem:[%s7032_s0 + $0x528] sm:$0xf]  ;;  %v4025_v8 = vld [vmem:[%s7032_s0 + $0x530] sm:$0xf] }
 0x2f2   :  { %v4014_v51 = vor.u32 %v4551_v22, %v4011_v37 }
 0x2f3   :  { %2735 = vmatmul.bf16.gmra.mxu3 %v4058_v9  ;;  %v4091_v9 = vld [vmem:[%s7032_s0 + $0x5dc] sm:$0xf0] }
 0x2f4   :  { %2843 = vmatmul.bf16.gmra.mxu0 %v3990_v6  ;;  %v2568_v28 = vpop.f32.mrf.mxu2 }
 0x2f5   :  { %v2569_v53 = vadd.f32 %v2568_v28, %v2451_v20  ;;  %v4026_v20 = vor.u32 %v4557_v54, %v4025_v8 }
 0x2f6   :  { %v2452_v36 = vpop.f32.mrf.mxu1  ;;  %v2696_v33 = vpop.f32.mrf.mxu3 }
 0x2f7   :  { %v2687_v21 = vadd.f32 %v2686_v63, %v2569_v53  ;;  %v2453_v10 = vadd.f32 %v2452_v36, %v7056_v41  ;;  %v4556_v63 = vld [vmem:[%s7032_s0 + $0x548] sm:$0xf0]  ;;  %v7057_v53 = vld [vmem:[#allocation6_spill] sm:$0xff] }
 0x2f8   :  { %v4018_v31 = vor.u32 %v4556_v63, %v4017_v34 }
 0x2f9   :  { %v2806_v61 = vpop.f32.mrf.mxu0  ;;  %v6335_v15 = vadd.f32 %v2804_v48, %v2687_v21  ;;  %v4570_v48 = vld [vmem:[%s7032_s0 + $0x5bc] sm:$0xf] }
 0x2fc   :  { %v2570_v6 = vpop.f32.mrf.mxu2 }
 0x2fd   :  { %v2571_v52 = vadd.f32 %v2570_v6, %v2453_v10  ;;  %v4094_v10 = vor.u32 %v4570_v48, %v4091_v9 }
 0x2fe   :  { %v2455_v49 = vpop.f32.mrf.mxu1  ;;  %v2698_v41 = vpop.f32.mrf.mxu3 }
 0x2ff   :  { %v2689_v28 = vadd.f32 %v2688_v56, %v2571_v52  ;;  %v2456_v36 = vadd.f32 %v2455_v49, %v7057_v53  ;;  %v4047_v52 = vld [vmem:[%s7032_s0 + $0x58c] sm:$0xf0]  ;;  %v4566_v49 = vld [vmem:[%s7032_s0 + $0x598] sm:$0xf0] }
 0x301   :  { %v2809_v21 = vpop.f32.mrf.mxu0  ;;  %v6362_v40 = vadd.f32 %v2806_v61, %v2689_v28  ;;  %2494 = vmatmul.bf16.gmra.mxu1 %v4014_v51  ;;  %2612 = vmatmul.bf16.gmra.mxu2 %v4018_v31  ;;  %v4560_v61 = vld [vmem:[%s7032_s0 + $0x56c] sm:$0xf]  ;;  %v4053_v51 = vld [vmem:[%s7032_s0 + $0x570] sm:$0xf]  ;;  %v4061_v31 = vld [vmem:[%s7032_s0 + $0x578] sm:$0xf] }
 0x302   :  { %v4050_v9 = vor.u32 %v4560_v61, %v4047_v52 }
 0x303   :  { %7058 = vst [vmem:[#allocation3_spill] sm:$0xff] %v6362_v40  ;;  %2740 = vmatmul.bf16.gmra.mxu3 %v4094_v10 }
 0x304   :  { %2848 = vmatmul.bf16.gmra.mxu0 %v4026_v20  ;;  %v2573_v22 = vpop.f32.mrf.mxu2 }
 0x305   :  { %v2574_v37 = vadd.f32 %v2573_v22, %v2456_v36 }
 0x306   :  { %v2457_v34 = vpop.f32.mrf.mxu1  ;;  %v2701_v6 = vpop.f32.mrf.mxu3 }
 0x307   :  { %v2692_v63 = vadd.f32 %v2691_v17, %v2574_v37  ;;  %v2458_v8 = vadd.f32 %v2457_v34, %v5743_v44  ;;  %v4565_v44 = vld [vmem:[%s7032_s0 + $0x590] sm:$0xf0]  ;;  %v6382_v17 = vld [vmem:[%s7032_s0 + $0x600] sm:$0x11] }
 0x308   :  { %v4054_v28 = vor.u32 %v4565_v44, %v4053_v51  ;;  %v976_v53 = vunpack.c.h.b16 %v6382_v17 }
 0x309   :  { %v2811_v54 = vpop.f32.mrf.mxu0  ;;  %v6365_v56 = vadd.f32 %v2809_v21, %v2692_v63  ;;  %v4062_v21 = vor.u32 %v4566_v49, %v4061_v31 }
 0x30a   :  { %v1174_v60 = vpack.c.b16 %v976_v53, %v976_v53 }
 0x30b   :  { %7059 = vst [vmem:[#allocation4_spill] sm:$0xff] %v6365_v56 }
 0x30c   :  { %v2575_v20 = vpop.f32.mrf.mxu2 }
 0x30d   :  { %v2576_v48 = vadd.f32 %v2575_v20, %v2458_v8 }
 0x30e   :  { %v2460_v36 = vpop.f32.mrf.mxu1  ;;  %v2703_v34 = vpop.f32.mrf.mxu3 }
 0x30f   :  { %v2694_v10 = vadd.f32 %v2693_v29, %v2576_v48  ;;  %v2461_v22 = vadd.f32 %v2460_v36, %v5750_v0  ;;  %v4569_v0 = vld [vmem:[%s7032_s0 + $0x5b4] sm:$0xf] }
 0x311   :  { %v2814_v37 = vpop.f32.mrf.mxu0  ;;  %v6392_v63 = vadd.f32 %v2811_v54, %v2694_v10  ;;  %2499 = vmatmul.bf16.gmra.mxu1 %v4050_v9  ;;  %2617 = vmatmul.bf16.gmra.mxu2 %v4054_v28  ;;  %v4083_v54 = vld [vmem:[%s7032_s0 + $0x5d4] sm:$0xf0] }
 0x312   :  { %v4086_v49 = vor.u32 %v4569_v0, %v4083_v54 }
 0x313   :  { %2745 = vmatmul.bf16.gmra.mxu3 %v1174_v60  ;;  %v4097_v60 = vld [vmem:[%s7032_s0 + $0x5c0] sm:$0xf] }
 0x314   :  { %2853 = vmatmul.bf16.gmra.mxu0 %v4062_v21  ;;  %v2578_v38 = vpop.f32.mrf.mxu2 }
 0x315   :  { %v2579_v56 = vadd.f32 %v2578_v38, %v2461_v22  ;;  %v4089_v38 = vld [vmem:[%s7032_s0 + $0x5b8] sm:$0xf] }
 0x316   :  { %v2462_v8 = vpop.f32.mrf.mxu1  ;;  %v2706_v44 = vpop.f32.mrf.mxu3 }
 0x317   :  { %v2697_v61 = vadd.f32 %v2696_v33, %v2579_v56  ;;  %v2463_v52 = vadd.f32 %v2462_v8, %v5775_v5  ;;  %v4574_v5 = vld [vmem:[%s7032_s0 + $0x5d8] sm:$0xf0]  ;;  %v4575_v33 = vld [vmem:[%s7032_s0 + $0x5e0] sm:$0xf0] }
 0x318   :  { %v4090_v20 = vor.u32 %v4574_v5, %v4089_v38  ;;  %v4098_v9 = vor.u32 %v4575_v33, %v4097_v60  ;;  %v975_v5 = vunpack.c.l.b16 %v6382_v17 }
 0x319   :  { %v2816_v51 = vpop.f32.mrf.mxu0  ;;  %v6395_v29 = vadd.f32 %v2814_v37, %v2697_v61 }
 0x31c   :  { %v2580_v56 = vpop.f32.mrf.mxu2 }
 0x31d   :  { %v2581_v31 = vadd.f32 %v2580_v56, %v2463_v52 }
 0x31e   :  { %v2465_v48 = vpop.f32.mrf.mxu1  ;;  %v2708_v21 = vpop.f32.mrf.mxu3 }
 0x31f   :  { %v2699_v28 = vadd.f32 %v2698_v41, %v2581_v31  ;;  %v2466_v53 = vadd.f32 %v2465_v48, %v5785_v32  ;;  %v231_v41 = vld [vmem:[%s7032_s0 + $0x608] sm:$0x1] }
 0x320   :  { %v977_v60 = vunpack.c.l.b16 %v231_v41 }
 0x321   :  { %v2819_v36 = vpop.f32.mrf.mxu0  ;;  %v6416_v10 = vadd.f32 %v2816_v51, %v2699_v28  ;;  %2504 = vmatmul.bf16.gmra.mxu1 %v4086_v49  ;;  %2622 = vmatmul.bf16.gmra.mxu2 %v4090_v20  ;;  %v4675_v51 = vld [vmem:[%s7032_s0 + $0x5f8] sm:$0x11] }
 0x322   :  { %v974_v38 = vunpack.c.h.b16 %v4675_v51  ;;  %v1175_v49 = vpack.c.b16 %v977_v60, %v977_v60 }
 0x324   :  { %2858 = vmatmul.bf16.gmra.mxu0 %v4098_v9  ;;  %v2583_v22 = vpop.f32.mrf.mxu2  ;;  %v1172_v56 = vpack.c.b16 %v974_v38, %v974_v38 }
 0x325   :  { %v2584_v37 = vadd.f32 %v2583_v22, %v2466_v53 }
 0x326   :  { %v2467_v8 = vpop.f32.mrf.mxu1  ;;  %v2711_v54 = vpop.f32.mrf.mxu3 }
 0x327   :  { %v2702_v61 = vadd.f32 %v2701_v6, %v2584_v37  ;;  %v2468_v52 = vadd.f32 %v2467_v8, %v5794_v47  ;;  %v1173_v47 = vpack.c.b16 %v975_v5, %v975_v5 }
 0x329   :  { %v2821_v0 = vpop.f32.mrf.mxu0  ;;  %v6422_v32 = vadd.f32 %v2819_v36, %v2702_v61 }
 0x32c   :  { %v2585_v33 = vpop.f32.mrf.mxu2 }
 0x32d   :  { %v2586_v6 = vadd.f32 %v2585_v33, %v2468_v52 }
 0x32e   :  { %v2470_v31 = vpop.f32.mrf.mxu1  ;;  %v2713_v28 = vpop.f32.mrf.mxu3 }
 0x32f   :  { %v2704_v20 = vadd.f32 %v2703_v34, %v2586_v6  ;;  %v2471_v48 = vadd.f32 %v2470_v31, %v5800_v30 }
 0x331   :  { %v2824_v9 = vpop.f32.mrf.mxu0  ;;  %v6429_v53 = vadd.f32 %v2821_v0, %v2704_v20  ;;  %2509 = vmatmul.bf16.gmra.mxu1 %v1172_v56  ;;  %2627 = vmatmul.bf16.gmra.mxu2 %v1173_v47 }
 0x334   :  { %2863 = vmatmul.bf16.gmra.mxu0 %v1175_v49  ;;  %v2588_v36 = vpop.f32.mrf.mxu2 }
 0x335   :  { %v2589_v22 = vadd.f32 %v2588_v36, %v2471_v48 }
 0x336   :  { %v2472_v17 = vpop.f32.mrf.mxu1  ;;  %v2716_v52 = vpop.f32.mrf.mxu3 }
 0x337   :  { %v2707_v37 = vadd.f32 %v2706_v44, %v2589_v22  ;;  %v2473_v8 = vadd.f32 %v2472_v17, %v5824_v26 }
 0x339   :  { %v2826_v61 = vpop.f32.mrf.mxu0  ;;  %v6432_v41 = vadd.f32 %v2824_v9, %v2707_v37 }
 0x33c   :  { %v2590_v34 = vpop.f32.mrf.mxu2 }
 0x33d   :  { %v2591_v51 = vadd.f32 %v2590_v34, %v2473_v8 }
 0x33e   :  { %v2475_v30 = vpop.f32.mrf.mxu1  ;;  %v2718_v60 = vpop.f32.mrf.mxu3 }
 0x33f   :  { %v2709_v38 = vadd.f32 %v2708_v21, %v2591_v51  ;;  %v2476_v0 = vadd.f32 %v2475_v30, %v5830_v4 }
 0x341   :  { %v2829_v5 = vpop.f32.mrf.mxu0  ;;  %v6435_v33 = vadd.f32 %v2826_v61, %v2709_v38 }
 0x344   :  { %v2593_v6 = vpop.f32.mrf.mxu2 }
 0x345   :  { %v2594_v56 = vadd.f32 %v2593_v6, %v2476_v0 }
 0x346   :  { %v2477_v47 = vpop.f32.mrf.mxu1  ;;  %v2721_v49 = vpop.f32.mrf.mxu3 }
 0x347   :  { %v2712_v44 = vadd.f32 %v2711_v54, %v2594_v56  ;;  %v2478_v26 = vadd.f32 %v2477_v47, %v5854_v3 }
 0x349   :  { %v2831_v31 = vpop.f32.mrf.mxu0  ;;  %v6438_v20 = vadd.f32 %v2829_v5, %v2712_v44 }
 0x34b   :  { %7060 = vst [vmem:[#allocation5_spill] sm:$0xff] %v6438_v20 }
 0x34c   :  { %v2595_v48 = vpop.f32.mrf.mxu2 }
 0x34d   :  { %v2596_v9 = vadd.f32 %v2595_v48, %v2478_v26 }
 0x34e   :  { %v2480_v36 = vpop.f32.mrf.mxu1  ;;  %v2723_v17 = vpop.f32.mrf.mxu3 }
 0x34f   :  { %v2714_v21 = vadd.f32 %v2713_v28, %v2596_v9  ;;  %v2481_v4 = vadd.f32 %v2480_v36, %v5860_v23 }
 0x351   :  { %v2834_v22 = vpop.f32.mrf.mxu0  ;;  %v6441_v37 = vadd.f32 %v2831_v31, %v2714_v21  ;;  %v2961_v31 = vmul.f32 %v6065_v62, %v6065_v62 }
 0x354   :  { %v2598_v8 = vpop.f32.mrf.mxu2 }
 0x355   :  { %v2599_v61 = vadd.f32 %v2598_v8, %v2481_v4  ;;  %v2869_v4 = vsel %vm2868_vm0, %v6065_v62, 0.0 }
 0x356   :  { %v2482_v34 = vpop.f32.mrf.mxu1  ;;  %v6444_v30 = vpop.f32.mrf.mxu3 }
 0x357   :  { %v2717_v54 = vadd.f32 %v2716_v52, %v2599_v61  ;;  %v2483_v3 = vadd.f32 %v2482_v34, %v5884_v12  ;;  %v2962_v12 = vmul.f32 %v6092_v2, %v6092_v2  ;;  %v2872_v61 = vsel %vm2868_vm0, %v6095_v55, 0.0 }
 0x358   :  { %v2964_v34 = vmul.f32 %v6122_v16, %v6122_v16 }
 0x359   :  { %v2836_v51 = vpop.f32.mrf.mxu0  ;;  %v6446_v38 = vadd.f32 %v2834_v22, %v2717_v54  ;;  %v3005_v8 = vsel %vm2868_vm0, %v2962_v12, 0.0 }
 0x35c   :  { %v2600_v0 = vpop.f32.mrf.mxu2 }
 0x35d   :  { %v2601_v5 = vadd.f32 %v2600_v0, %v2483_v3  ;;  %v2874_v0 = vsel %vm2868_vm0, %v6122_v16, 0.0 }
 0x35e   :  { %v2485_v28 = vpop.f32.mrf.mxu1  ;;  %v6449_v47 = vpop.f32.mrf.mxu3 }
 0x35f   :  { %v2719_v6 = vadd.f32 %v2718_v60, %v2601_v5  ;;  %v2486_v23 = vadd.f32 %v2485_v28, %v5890_v19  ;;  %v2870_v60 = vsel %vm2868_vm0, %v6092_v2, 0.0  ;;  %v2963_v19 = vmul.f32 %v6095_v55, %v6095_v55 }
 0x360   :  { %v2871_v3 = vadd.f32 %v2870_v60, %v2869_v4 }
 0x361   :  { %v2839_v56 = vpop.f32.mrf.mxu0  ;;  %v6451_v44 = vadd.f32 %v2836_v51, %v2719_v6  ;;  %v3007_v51 = vsel %vm2868_vm0, %v2963_v19, 0.0  ;;  %v2878_v19 = vsel %vm2868_vm0, %v6152_v45, 0.0 }
 0x362   :  { %v2873_v28 = vadd.f32 %v2872_v61, %v2871_v3 }
 0x364   :  { %v2603_v26 = vpop.f32.mrf.mxu2 }
 0x365   :  { %v2604_v52 = vadd.f32 %v2603_v26, %v2486_v23  ;;  %v3009_v23 = vsel %vm2868_vm0, %v2964_v34, 0.0  ;;  %v2966_v26 = vmul.f32 %v6152_v45, %v6152_v45 }
 0x366   :  { %v2487_v48 = vpop.f32.mrf.mxu1  ;;  %v6464_v22 = vpop.f32.mrf.mxu3 }
 0x367   :  { %v2722_v9 = vadd.f32 %v2721_v49, %v2604_v52  ;;  %v2488_v36 = vadd.f32 %v2487_v48, %v5914_v24  ;;  %v2965_v24 = vmul.f32 %v6125_v43, %v6125_v43  ;;  %v3004_v49 = vsel %vm2868_vm0, %v2961_v31, 0.0 }
 0x368   :  { %v3006_v5 = vadd.f32 %v3005_v8, %v3004_v49  ;;  %v2875_v48 = vadd.f32 %v2874_v0, %v2873_v28 }
 0x369   :  { %v2841_v21 = vpop.f32.mrf.mxu0  ;;  %v6471_v54 = vadd.f32 %v2839_v56, %v2722_v9  ;;  %v2876_v56 = vsel %vm2868_vm0, %v6125_v43, 0.0  ;;  %v3011_v31 = vsel %vm2868_vm0, %v2965_v24, 0.0  ;;  %v2967_v9 = vmul.f32 %v6155_v13, %v6155_v13 }
 0x36a   :  { %v3008_v52 = vadd.f32 %v3007_v51, %v3006_v5  ;;  %v2877_v3 = vadd.f32 %v2876_v56, %v2875_v48  ;;  %v2880_v24 = vsel %vm2868_vm0, %v6155_v13, 0.0  ;;  %v2968_v51 = vmul.f32 %v6182_v35, %v6182_v35 }
 0x36c   :  { %v2605_v6 = vpop.f32.mrf.mxu2  ;;  %v3010_v34 = vadd.f32 %v3009_v23, %v3008_v52  ;;  %v2879_v28 = vadd.f32 %v2878_v19, %v2877_v3  ;;  %v2884_v52 = vsel %vm2868_vm0, %v6185_v50, 0.0 }
 0x36d   :  { %v2606_v12 = vadd.f32 %v2605_v6, %v2488_v36  ;;  %v3013_v36 = vsel %vm2868_vm0, %v2966_v26, 0.0  ;;  %v2882_v6 = vsel %vm2868_vm0, %v6182_v35, 0.0 }
 0x36e   :  { %v2490_v60 = vpop.f32.mrf.mxu1  ;;  %v6490_v49 = vpop.f32.mrf.mxu3  ;;  %v3012_v5 = vadd.f32 %v3011_v31, %v3010_v34  ;;  %v2881_v56 = vadd.f32 %v2880_v24, %v2879_v28  ;;  %v2971_v34 = vmul.f32 %v6215_v7, %v6215_v7 }
 0x36f   :  { %v2724_v4 = vadd.f32 %v2723_v17, %v2606_v12  ;;  %v2491_v8 = vadd.f32 %v2490_v60, %v5920_v59  ;;  %v2969_v59 = vmul.f32 %v6185_v50, %v6185_v50  ;;  %v3015_v17 = vsel %vm2868_vm0, %v2967_v9, 0.0 }
 0x370   :  { %v3014_v23 = vadd.f32 %v3013_v36, %v3012_v5  ;;  %v3017_v12 = vsel %vm2868_vm0, %v2968_v51, 0.0  ;;  %v2883_v60 = vadd.f32 %v2882_v6, %v2881_v56 }
 0x371   :  { %v2844_v61 = vpop.f32.mrf.mxu0  ;;  %v6497_v0 = vadd.f32 %v2841_v21, %v2724_v4  ;;  %v2970_v21 = vmul.f32 %v6212_v25, %v6212_v25  ;;  %v3019_v19 = vsel %vm2868_vm0, %v2969_v59, 0.0  ;;  %v2886_v4 = vsel %vm2868_vm0, %v6212_v25, 0.0 }
 0x372   :  { %v3016_v31 = vadd.f32 %v3015_v17, %v3014_v23  ;;  %v2885_v5 = vadd.f32 %v2884_v52, %v2883_v60  ;;  %v2888_v59 = vsel %vm2868_vm0, %v6215_v7, 0.0  ;;  %v2972_v17 = vmul.f32 %v6242_v14, %v6242_v14 }
 0x374   :  { %v2608_v26 = vpop.f32.mrf.mxu2  ;;  %v3018_v51 = vadd.f32 %v3017_v12, %v3016_v31  ;;  %v2887_v56 = vadd.f32 %v2886_v4, %v2885_v5  ;;  %v2892_v31 = vsel %vm2868_vm0, %v6245_v1, 0.0 }
 0x375   :  { %v2609_v48 = vadd.f32 %v2608_v26, %v2491_v8  ;;  %v3021_v8 = vsel %vm2868_vm0, %v2970_v21, 0.0  ;;  %v2890_v26 = vsel %vm2868_vm0, %v6242_v14, 0.0 }
 0x376   :  { %v2492_v9 = vpop.f32.mrf.mxu1  ;;  %v6516_v28 = vpop.f32.mrf.mxu3  ;;  %v3020_v23 = vadd.f32 %v3019_v19, %v3018_v51  ;;  %v2889_v52 = vadd.f32 %v2888_v59, %v2887_v56  ;;  %v2975_v51 = vmul.f32 %v6275_v57, %v6275_v57 }
 0x377   :  { %v2727_v3 = vadd.f32 %v6444_v30, %v2609_v48  ;;  %v2493_v36 = vadd.f32 %v2492_v9, %v5944_v11  ;;  %v2973_v11 = vmul.f32 %v6245_v1, %v6245_v1  ;;  %v3023_v30 = vsel %vm2868_vm0, %v2971_v34, 0.0 }
 0x378   :  { %v3022_v12 = vadd.f32 %v3021_v8, %v3020_v23  ;;  %v3025_v48 = vsel %vm2868_vm0, %v2972_v17, 0.0  ;;  %v2891_v9 = vadd.f32 %v2890_v26, %v2889_v52 }
 0x379   :  { %v2846_v24 = vpop.f32.mrf.mxu0  ;;  %v6523_v6 = vadd.f32 %v2844_v61, %v2727_v3  ;;  %v2974_v61 = vmul.f32 %v6272_v42, %v6272_v42  ;;  %v3027_v4 = vsel %vm2868_vm0, %v2973_v11, 0.0  ;;  %v2894_v3 = vsel %vm2868_vm0, %v6272_v42, 0.0 }
 0x37a   :  { %v3024_v19 = vadd.f32 %v3023_v30, %v3022_v12  ;;  %v2893_v23 = vadd.f32 %v2892_v31, %v2891_v9  ;;  %v2896_v11 = vsel %vm2868_vm0, %v6275_v57, 0.0  ;;  %v2976_v30 = vmul.f32 %v6302_v39, %v6302_v39 }
 0x37c   :  { %v2610_v21 = vpop.f32.mrf.mxu2  ;;  %v3026_v17 = vadd.f32 %v3025_v48, %v3024_v19  ;;  %v2895_v52 = vadd.f32 %v2894_v3, %v2893_v23  ;;  %v2900_v19 = vsel %vm2868_vm0, %v6305_v18, 0.0 }
 0x37d   :  { %v2611_v60 = vadd.f32 %v2610_v21, %v2493_v36  ;;  %v3029_v36 = vsel %vm2868_vm0, %v2974_v61, 0.0  ;;  %v2898_v21 = vsel %vm2868_vm0, %v6302_v39, 0.0 }
 0x37e   :  { %v2495_v34 = vpop.f32.mrf.mxu1  ;;  %v6542_v56 = vpop.f32.mrf.mxu3  ;;  %v3028_v12 = vadd.f32 %v3027_v4, %v3026_v17  ;;  %v2897_v31 = vadd.f32 %v2896_v11, %v2895_v52  ;;  %v2979_v17 = vmul.f32 %v6335_v15, %v6335_v15 }
 0x37f   :  { %v2729_v5 = vadd.f32 %v6449_v47, %v2611_v60  ;;  %v2496_v8 = vadd.f32 %v2495_v34, %v5950_v58  ;;  %v2977_v58 = vmul.f32 %v6305_v18, %v6305_v18  ;;  %v3031_v47 = vsel %vm2868_vm0, %v2975_v51, 0.0 }
 0x380   :  { %v3030_v48 = vadd.f32 %v3029_v36, %v3028_v12  ;;  %v3033_v60 = vsel %vm2868_vm0, %v2976_v30, 0.0  ;;  %v2899_v34 = vadd.f32 %v2898_v21, %v2897_v31 }
 0x381   :  { %v2849_v59 = vpop.f32.mrf.mxu0  ;;  %v6549_v26 = vadd.f32 %v2846_v24, %v2729_v5  ;;  %v2978_v24 = vmul.f32 %v6332_v27, %v6332_v27  ;;  %v3035_v3 = vsel %vm2868_vm0, %v2977_v58, 0.0  ;;  %v2902_v5 = vsel %vm2868_vm0, %v6332_v27, 0.0 }
 0x382   :  { %v3032_v4 = vadd.f32 %v3031_v47, %v3030_v48  ;;  %v2901_v12 = vadd.f32 %v2900_v19, %v2899_v34  ;;  %v2904_v58 = vsel %vm2868_vm0, %v6335_v15, 0.0  ;;  %v2980_v47 = vmul.f32 %v6362_v40, %v6362_v40 }
 0x383   :  { %7061 = vst [vmem:[#allocation6_spill] sm:$0xff] %v6549_v26 }
 0x384   :  { %v2613_v61 = vpop.f32.mrf.mxu2  ;;  %v3034_v30 = vadd.f32 %v3033_v60, %v3032_v4  ;;  %v2903_v31 = vadd.f32 %v2902_v5, %v2901_v12  ;;  %v2906_v60 = vsel %vm2868_vm0, %v6362_v40, 0.0  ;;  %v3041_v4 = vsel %vm2868_vm0, %v2980_v47, 0.0 }
 0x385   :  { %v2614_v9 = vadd.f32 %v2613_v61, %v2496_v8  ;;  %v3037_v8 = vsel %vm2868_vm0, %v2978_v24, 0.0  ;;  %v3039_v61 = vsel %vm2868_vm0, %v2979_v17, 0.0  ;;  %v2983_v12 = vmul.f32 %v6395_v29, %v6395_v29 }
 0x386   :  { %v2497_v51 = vpop.f32.mrf.mxu1  ;;  %v6568_v52 = vpop.f32.mrf.mxu3  ;;  %v3036_v48 = vadd.f32 %v3035_v3, %v3034_v30  ;;  %v2905_v24 = vadd.f32 %v2904_v58, %v2903_v31  ;;  %v2910_v30 = vsel %vm2868_vm0, %v6392_v63, 0.0  ;;  %v7063_v58 = vld [vmem:[#allocation7_spill] sm:$0xff] }
 0x387   :  { %v2732_v23 = vadd.f32 %v6464_v22, %v2614_v9  ;;  %v2498_v36 = vadd.f32 %v2497_v51, %v5974_v46  ;;  %v7062_v22 = vld [vmem:[#allocation4_spill] sm:$0xff] }
 0x388   :  { %v2981_v46 = vmul.f32 %v7062_v22, %v7062_v22  ;;  %v3038_v19 = vadd.f32 %v3037_v8, %v3036_v48  ;;  %v2908_v34 = vsel %vm2868_vm0, %v7062_v22, 0.0  ;;  %v2907_v5 = vadd.f32 %v2906_v60, %v2905_v24 }
 0x389   :  { %v2851_v11 = vpop.f32.mrf.mxu0  ;;  %v6575_v21 = vadd.f32 %v2849_v59, %v2732_v23  ;;  %v2982_v59 = vmul.f32 %v6392_v63, %v6392_v63 }
 0x38a   :  { %v3040_v51 = vadd.f32 %v3039_v61, %v3038_v19  ;;  %v3043_v23 = vsel %vm2868_vm0, %v2981_v46, 0.0  ;;  %v2909_v22 = vadd.f32 %v2908_v34, %v2907_v5  ;;  %v2912_v46 = vsel %vm2868_vm0, %v6395_v29, 0.0 }
 0x38b   :  { %v2984_v61 = vmul.f32 %v6416_v10, %v6416_v10  ;;  %v2916_v5 = vsel %vm2868_vm0, %v6422_v32, 0.0 }
 0x38c   :  { %v2615_v9 = vpop.f32.mrf.mxu2  ;;  %v3042_v31 = vadd.f32 %v3041_v4, %v3040_v51  ;;  %v2911_v24 = vadd.f32 %v2910_v30, %v2909_v22  ;;  %v2985_v4 = vmul.f32 %v6422_v32, %v6422_v32 }
 0x38d   :  { %v2616_v3 = vadd.f32 %v2615_v9, %v2498_v36  ;;  %v3045_v36 = vsel %vm2868_vm0, %v2982_v59, 0.0  ;;  %v2914_v9 = vsel %vm2868_vm0, %v6416_v10, 0.0  ;;  %v3049_v51 = vsel %vm2868_vm0, %v2984_v61, 0.0 }
 0x38e   :  { %v2500_v17 = vpop.f32.mrf.mxu1  ;;  %v6594_v40 = vpop.f32.mrf.mxu3  ;;  %v3044_v19 = vadd.f32 %v3043_v23, %v3042_v31  ;;  %v2913_v59 = vadd.f32 %v2912_v46, %v2911_v24  ;;  %v2920_v24 = vsel %vm2868_vm0, %v6432_v41, 0.0 }
 0x38f   :  { %v2734_v8 = vadd.f32 %v6490_v49, %v2616_v3  ;;  %v2501_v47 = vadd.f32 %v2500_v17, %v7063_v58  ;;  %v3047_v49 = vsel %vm2868_vm0, %v2983_v12, 0.0  ;;  %v3051_v12 = vsel %vm2868_vm0, %v2985_v4, 0.0 }
 0x390   :  { %v3046_v34 = vadd.f32 %v3045_v36, %v3044_v19  ;;  %v2915_v17 = vadd.f32 %v2914_v9, %v2913_v59  ;;  %v2987_v58 = vmul.f32 %v6432_v41, %v6432_v41  ;;  %v2922_v59 = vsel %vm2868_vm0, %v6435_v33, 0.0 }
 0x391   :  { %v2854_v48 = vpop.f32.mrf.mxu0  ;;  %v6601_v60 = vadd.f32 %v2851_v11, %v2734_v8  ;;  %v2986_v11 = vmul.f32 %v6429_v53, %v6429_v53  ;;  %v2918_v8 = vsel %vm2868_vm0, %v6429_v53, 0.0 }
 0x392   :  { %v3048_v23 = vadd.f32 %v3047_v49, %v3046_v34  ;;  %v2917_v61 = vadd.f32 %v2916_v5, %v2915_v17  ;;  %v2988_v49 = vmul.f32 %v6435_v33, %v6435_v33 }
 0x394   :  { %v2618_v3 = vpop.f32.mrf.mxu2  ;;  %v3050_v46 = vadd.f32 %v3049_v51, %v3048_v23  ;;  %v2919_v34 = vadd.f32 %v2918_v8, %v2917_v61  ;;  %v7064_v51 = vld [vmem:[#allocation8_spill] sm:$0xff]  ;;  %v3057_v17 = vsel %vm2868_vm0, %v2988_v49, 0.0 }
 0x395   :  { %v2619_v22 = vadd.f32 %v2618_v3, %v2501_v47  ;;  %v3053_v47 = vsel %vm2868_vm0, %v2986_v11, 0.0  ;;  %v2989_v3 = vmul.f32 %v6438_v20, %v6438_v20 }
 0x396   :  { %v2502_v30 = vpop.f32.mrf.mxu1  ;;  %v6621_v19 = vpop.f32.mrf.mxu3  ;;  %v3052_v4 = vadd.f32 %v3051_v12, %v3050_v46  ;;  %v2990_v12 = vmul.f32 %v6441_v37, %v6441_v37 }
 0x397   :  { %v2737_v31 = vadd.f32 %v6516_v28, %v2619_v22  ;;  %v3055_v28 = vsel %vm2868_vm0, %v2987_v58, 0.0  ;;  %v2503_v5 = vadd.f32 %v2502_v30, %v7064_v51  ;;  %v2921_v22 = vadd.f32 %v2920_v24, %v2919_v34 }
 0x398   :  { %v3054_v11 = vadd.f32 %v3053_v47, %v3052_v4  ;;  %v3059_v61 = vsel %vm2868_vm0, %v2989_v3, 0.0  ;;  %v2926_v30 = vsel %vm2868_vm0, %v6441_v37, 0.0  ;;  %v2991_v47 = vmul.f32 %v6446_v38, %v6446_v38 }
 0x399   :  { %v6619_v36 = vpop.f32.mrf.mxu0  ;;  %v6628_v9 = vadd.f32 %v2854_v48, %v2737_v31  ;;  %v2924_v48 = vsel %vm2868_vm0, %v6438_v20, 0.0  ;;  %v2923_v31 = vadd.f32 %v2922_v59, %v2921_v22  ;;  %v3061_v20 = vsel %vm2868_vm0, %v2990_v12, 0.0 }
 0x39a   :  { %v3056_v58 = vadd.f32 %v3055_v28, %v3054_v11  ;;  %v2928_v28 = vsel %vm2868_vm0, %v6446_v38, 0.0  ;;  %v2992_v59 = vmul.f32 %v6451_v44, %v6451_v44  ;;  %v3063_v11 = vsel %vm2868_vm0, %v2991_v47, 0.0 }
 0x39b   :  { %v2925_v34 = vadd.f32 %v2924_v48, %v2923_v31  ;;  %v2930_v22 = vsel %vm2868_vm0, %v6451_v44, 0.0  ;;  %v2932_v31 = vsel %vm2868_vm0, %v6471_v54, 0.0 }
 0x39c   :  { %v2620_v23 = vpop.f32.mrf.mxu2  ;;  %v3058_v4 = vadd.f32 %v3057_v17, %v3056_v58  ;;  %v3065_v58 = vsel %vm2868_vm0, %v2992_v59, 0.0 }
 0x39d   :  { %v2621_v8 = vadd.f32 %v2620_v23, %v2503_v5  ;;  %v2927_v5 = vadd.f32 %v2926_v30, %v2925_v34  ;;  %v7065_v23 = vld [vmem:[#allocation9_spill] sm:$0xff] }
 0x39e   :  { %v2505_v46 = vpop.f32.mrf.mxu1  ;;  %v2748_v51 = vpop.f32.mrf.mxu3  ;;  %v3060_v3 = vadd.f32 %v3059_v61, %v3058_v4  ;;  %v2994_v61 = vmul.f32 %v6497_v0, %v6497_v0 }
 0x39f   :  { %v2739_v24 = vadd.f32 %v6542_v56, %v2621_v8  ;;  %v2993_v56 = vmul.f32 %v6471_v54, %v6471_v54  ;;  %v2506_v17 = vadd.f32 %v2505_v46, %v7065_v23  ;;  %v2929_v12 = vadd.f32 %v2928_v28, %v2927_v5 }
 0x3a0   :  { %v3062_v48 = vadd.f32 %v3061_v20, %v3060_v3  ;;  %v2934_v46 = vsel %vm2868_vm0, %v6497_v0, 0.0  ;;  %v2995_v20 = vmul.f32 %v6523_v6, %v6523_v6  ;;  %v2996_v23 = vmul.f32 %v6549_v26, %v6549_v26 }
 0x3a1   :  { %v2859_v49 = vpop.f32.mrf.mxu0  ;;  %v2931_v4 = vadd.f32 %v2930_v22, %v2929_v12  ;;  %v3067_v51 = vsel %vm2868_vm0, %v2993_v56, 0.0  ;;  %v2936_v22 = vsel %vm2868_vm0, %v6523_v6, 0.0 }
 0x3a2   :  { %v3064_v47 = vadd.f32 %v3063_v11, %v3062_v48  ;;  %v3069_v11 = vsel %vm2868_vm0, %v2994_v61, 0.0  ;;  %v2997_v48 = vmul.f32 %v6575_v21, %v6575_v21  ;;  %v3071_v12 = vsel %vm2868_vm0, %v2995_v20, 0.0 }
 0x3a3   :  { %v2933_v5 = vadd.f32 %v2932_v31, %v2931_v4  ;;  %v2940_v4 = vsel %vm2868_vm0, %v6575_v21, 0.0 }
 0x3a4   :  { %v2623_v8 = vpop.f32.mrf.mxu2  ;;  %v3066_v3 = vadd.f32 %v3065_v58, %v3064_v47  ;;  %v3073_v47 = vsel %vm2868_vm0, %v2996_v23, 0.0  ;;  %v2999_v23 = vmul.f32 %v6628_v9, %v6628_v9 }
 0x3a5   :  { %v2624_v30 = vadd.f32 %v2623_v8, %v2506_v17  ;;  %v2935_v17 = vadd.f32 %v2934_v46, %v2933_v5  ;;  %v7066_v8 = vld [vmem:[#allocation10_spill] sm:$0xff]  ;;  %v6686_v46 = vadd.f32 %v6619_v36, %v2739_v24 }
 0x3a6   :  { %v2507_v34 = vpop.f32.mrf.mxu1  ;;  %v3068_v56 = vadd.f32 %v3067_v51, %v3066_v3  ;;  %v2998_v51 = vmul.f32 %v6601_v60, %v6601_v60 }
 0x3a7   :  { %v2742_v28 = vadd.f32 %v6568_v52, %v2624_v30  ;;  %v2938_v52 = vsel %vm2868_vm0, %v6549_v26, 0.0  ;;  %v2508_v58 = vadd.f32 %v2507_v34, %v7066_v8  ;;  %v2937_v30 = vadd.f32 %v2936_v22, %v2935_v17 }
 0x3a8   :  { %v3070_v31 = vadd.f32 %v3069_v11, %v3068_v56  ;;  %v3075_v26 = vsel %vm2868_vm0, %v2997_v48, 0.0  ;;  %v2942_v11 = vsel %vm2868_vm0, %v6601_v60, 0.0  ;;  %v3077_v24 = vsel %vm2868_vm0, %v2998_v51, 0.0 }
 0x3a9   :  { %v2861_v59 = vpop.f32.mrf.mxu0  ;;  %v2939_v5 = vadd.f32 %v2938_v52, %v2937_v30  ;;  %v6693_v22 = vadd.f32 %v2859_v49, %v2742_v28  ;;  %v3000_v48 = vmul.f32 %v6686_v46, %v6686_v46  ;;  %v3079_v49 = vsel %vm2868_vm0, %v2999_v23, 0.0  ;;  %v7069_v30 = vld [vmem:[#allocation2_spill] sm:$0xff] }
 0x3aa   :  { %v3072_v3 = vadd.f32 %v3071_v12, %v3070_v31  ;;  %v2944_v12 = vsel %vm2868_vm0, %v6628_v9, 0.0 }
 0x3ab   :  { %7067 = vst [vmem:[#allocation7_spill] sm:$0xff] %v6693_v22  ;;  %v2941_v36 = vadd.f32 %v2940_v4, %v2939_v5  ;;  %v3001_v28 = vmul.f32 %v6693_v22, %v6693_v22 }
 0x3ac   :  { %v2625_v61 = vpop.f32.mrf.mxu2  ;;  %v3074_v8 = vadd.f32 %v3073_v47, %v3072_v3 }
 0x3ad   :  { %v2626_v20 = vadd.f32 %v2625_v61, %v2508_v58  ;;  %v2943_v31 = vadd.f32 %v2942_v11, %v2941_v36 }
 0x3ae   :  { %v2510_v34 = vpop.f32.mrf.mxu1  ;;  %v3076_v58 = vadd.f32 %v3075_v26, %v3074_v8 }
 0x3af   :  { %v2744_v56 = vadd.f32 %v6594_v40, %v2626_v20  ;;  %v2946_v40 = vsel %vm2868_vm0, %v6686_v46, 0.0  ;;  %v2511_v47 = vadd.f32 %v2510_v34, %v7069_v30  ;;  %v2945_v4 = vadd.f32 %v2944_v12, %v2943_v31 }
 0x3b0   :  { %v3078_v61 = vadd.f32 %v3077_v24, %v3076_v58  ;;  %v3081_v20 = vsel %vm2868_vm0, %v3000_v48, 0.0 }
 0x3b1   :  { %v2864_v17 = vpop.f32.mrf.mxu0  ;;  %v6701_v52 = vadd.f32 %v2861_v59, %v2744_v56  ;;  %v2948_v59 = vsel %vm2868_vm0, %v6693_v22, 0.0  ;;  %v2947_v11 = vadd.f32 %v2946_v40, %v2945_v4  ;;  %v3083_v56 = vsel %vm2868_vm0, %v3001_v28, 0.0 }
 0x3b2   :  { %v3080_v5 = vadd.f32 %v3079_v49, %v3078_v61 }
 0x3b3   :  { %7068 = vst [vmem:[#allocation8_spill] sm:$0xff] %v6701_v52  ;;  %v3002_v26 = vmul.f32 %v6701_v52, %v6701_v52  ;;  %v2950_v34 = vsel %vm2868_vm0, %v6701_v52, 0.0  ;;  %v2949_v12 = vadd.f32 %v2948_v59, %v2947_v11 }
 0x3b4   :  { %v2628_v51 = vpop.f32.mrf.mxu2  ;;  %v3082_v24 = vadd.f32 %v3081_v20, %v3080_v5 }
 0x3b5   :  { %v2629_v3 = vadd.f32 %v2628_v51, %v2511_v47  ;;  %v3085_v48 = vsel %vm2868_vm0, %v3002_v26, 0.0  ;;  %v2951_v30 = vadd.f32 %v2950_v34, %v2949_v12 }
 0x3b6   :  { %v2512_v23 = vpop.f32.mrf.mxu1  ;;  %v3084_v31 = vadd.f32 %v3083_v56, %v3082_v24 }
 0x3b7   :  { %v2747_v8 = vadd.f32 %v6621_v19, %v2629_v3 }
 0x3b8   :  { %v3086_v40 = vadd.f32 %v3085_v48, %v3084_v31 }
 0x3b9   :  { %v2866_v36 = vpop.f32.mrf.mxu0  ;;  %v2865_v58 = vadd.f32 %v2864_v17, %v2747_v8 }
 0x3bb   :  { %v2953_v47 = vsel %vm2952_vm1, %v2865_v58, 0.0  ;;  %v3003_v49 = vmul.f32 %v2865_v58, %v2865_v58 }
 0x3bc   :  { %v2954_v61 = vadd.f32 %v2953_v47, %v2951_v30  ;;  %v2630_v4 = vpop.f32.mrf.mxu2 }
 0x3bd   :  { %v3087_v28 = vsel %vm2952_vm1, %v3003_v49, 0.0 }
 0x3be   :  { %v2955_v51 = vrot.slane %v2954_v61, 4  ;;  %v3088_v23 = vadd.f32 %v3087_v28, %v3086_v40 }
 0x3c0   :  { %v2956_v52 = vadd.f32 %v2955_v51, %v2954_v61  ;;  %v3089_v22 = vrot.slane %v3088_v23, 4 }
 0x3c2   :  { %v2957_v19 = vrot.slane %v2956_v52, 2  ;;  %v3090_v3 = vadd.f32 %v3089_v22, %v3088_v23 }
 0x3c4   :  { %v2958_v20 = vadd.f32 %v2957_v19, %v2956_v52  ;;  %v3091_v59 = vrot.slane %v3090_v3, 2  ;;  %v3100_v52 = vld [vmem:[%s7033_s2] sm:$0x1] }
 0x3c5   :  { %v3113_v19 = vld [vmem:[%s7034_s3] sm:$0x1] }
 0x3c6   :  { %v2959_v5 = vrot.slane %v2958_v20, 1  ;;  %v3092_v11 = vadd.f32 %v3091_v59, %v3090_v3 }
 0x3c8   :  { %v2960_v26 = vadd.f32 %v2959_v5, %v2958_v20  ;;  %v3093_v17 = vrot.slane %v3092_v11, 1 }
 0x3ca   :  { %v3094_v56 = vadd.f32 %v3093_v17, %v3092_v11  ;;  %v3095_v34 = vmul.f32 0.00295858, %v2960_v26 }
 0x3cc   :  { %v3096_v8 = vmul.f32 0.00295858, %v3094_v56  ;;  %v3097_v36 = vmul.f32 %v3095_v34, %v3095_v34 }
 0x3ce   :  { %v3098_v24 = vsub.f32 %v3096_v8, %v3097_v36 }
 0x3d0   :  { %v3099_v12 = vmax.f32 %v3098_v24, 0.0 }
 0x3d2   :  { %v3101_v48 = vadd.f32 1e-05, %v3099_v12 }
 0x3d4   :  { %4672 = vrsqrt.f32 %v3101_v48  ;;  %vm3108_vm3 = vweird.f32 %v3101_v48 }
 0x3da   :  { %v4673_v31 = vpop.eup %4672 }
 0x3db   :  { %v3103_v30 = vmul.f32 %v4673_v31, %v3101_v48  ;;  %vm3109_vm2 = vweird.f32 %v4673_v31 }
 0x3dc   :  { %vm3110_vm4 = vmor %vm3108_vm3, %vm3109_vm2 }
 0x3dd   :  { %v3104_v47 = vmul.f32 %v4673_v31, %v3103_v30 }
 0x3df   :  { %v3105_v49 = vmul.f32 0.5, %v3104_v47 }
 0x3e1   :  { %v3106_v40 = vsub.f32 1.5, %v3105_v49 }
 0x3e3   :  { %v3107_v22 = vmul.f32 %v4673_v31, %v3106_v40 }
 0x3e5   :  { %v3111_v61 = vsel %vm3110_vm4, %v4673_v31, %v3107_v22 }
 0x3e6   :  { %v3112_v4 = vmul.f32 %v3111_v61, %v3100_v52 }
 0x3e8   :  { %v6722_v28 = vperm.slane %v3112_v4, 0  ;;  %v3114_v23 = vmul.f32 %v3112_v4, %v3095_v34 }
 0x3ea   :  { %v3161_v51 = vmul.f32 %v6722_v28, %v2865_v58  ;;  %v3115_v3 = vsub.f32 %v3113_v19, %v3114_v23  ;;  %v3119_v5 = vmul.f32 %v6722_v28, %v6065_v62  ;;  %v3120_v11 = vmul.f32 %v6722_v28, %v6092_v2 }
 0x3eb   :  { %v3121_v58 = vmul.f32 %v6722_v28, %v6095_v55  ;;  %v3122_v17 = vmul.f32 %v6722_v28, %v6122_v16  ;;  %v3123_v34 = vmul.f32 %v6722_v28, %v6125_v43  ;;  %v3124_v62 = vmul.f32 %v6722_v28, %v6152_v45 }
 0x3ec   :  { %v6728_v20 = vperm.slane %v3115_v3, 0  ;;  %v3125_v55 = vmul.f32 %v6722_v28, %v6155_v13  ;;  %v3126_v16 = vmul.f32 %v6722_v28, %v6182_v35  ;;  %v3127_v43 = vmul.f32 %v6722_v28, %v6185_v50 }
 0x3ed   :  { %v3128_v30 = vmul.f32 %v6722_v28, %v6212_v25  ;;  %v3129_v13 = vmul.f32 %v6722_v28, %v6215_v7  ;;  %v3130_v35 = vmul.f32 %v6722_v28, %v6242_v14  ;;  %v3131_v50 = vmul.f32 %v6722_v28, %v6245_v1 }
 0x3ee   :  { %v6731_v59 = vadd.f32 %v6728_v20, %v3161_v51  ;;  %v3165_v26 = vadd.f32 %v6728_v20, %v3119_v5  ;;  %v3166_v56 = vadd.f32 %v6728_v20, %v3120_v11  ;;  %v3167_v8 = vadd.f32 %v6728_v20, %v3121_v58 }
 0x3ef   :  { %v3168_v2 = vadd.f32 %v6728_v20, %v3122_v17  ;;  %v3169_v36 = vadd.f32 %v6728_v20, %v3123_v34  ;;  %v3170_v12 = vadd.f32 %v6728_v20, %v3124_v62  ;;  %v3171_v31 = vadd.f32 %v6728_v20, %v3125_v55 }
 0x3f0   :  { %v3208_v24 = vmax.f32 %v3165_v26, 0.0  ;;  %v3209_v48 = vmax.f32 %v3166_v56, 0.0  ;;  %v3210_v45 = vmax.f32 %v3167_v8, 0.0  ;;  %v3172_v47 = vadd.f32 %v6728_v20, %v3126_v16 }
 0x3f1   :  { %v3211_v49 = vmax.f32 %v3168_v2, 0.0  ;;  %v3173_v40 = vadd.f32 %v6728_v20, %v3127_v43  ;;  %v3212_v22 = vmax.f32 %v3169_v36, 0.0  ;;  %v3174_v61 = vadd.f32 %v6728_v20, %v3128_v30 }
 0x3f2   :  { %v3251_v52 = vpack.c.bf16 %v3208_v24, %v3208_v24  ;;  %v3213_v4 = vmax.f32 %v3170_v12, 0.0  ;;  %v3252_v25 = vpack.c.bf16 %v3209_v48, %v3209_v48  ;;  %v3132_v7 = vmul.f32 %v6722_v28, %v6272_v42 }
 0x3f3   :  { %v3175_v51 = vadd.f32 %v6728_v20, %v3129_v13  ;;  %v3214_v23 = vmax.f32 %v3171_v31, 0.0  ;;  %v3253_v19 = vpack.c.bf16 %v3210_v45, %v3210_v45  ;;  %v3176_v14 = vadd.f32 %v6728_v20, %v3130_v35 }
 0x3f4   :  { %v3215_v3 = vmax.f32 %v3172_v47, 0.0  ;;  %v3254_v5 = vpack.c.bf16 %v3211_v49, %v3211_v49  ;;  %v3133_v11 = vmul.f32 %v6722_v28, %v6275_v57  ;;  %v3177_v1 = vadd.f32 %v6728_v20, %v3131_v50  ;;  %3295 = vst.msk [vmem:[%s7035_s4] sm:$0xf] %vm3294_vm5, %v3251_v52 }
 0x3f5   :  { %v3216_v58 = vmax.f32 %v3173_v40, 0.0  ;;  %v3255_v26 = vpack.c.bf16 %v3212_v22, %v3212_v22  ;;  %v3134_v42 = vmul.f32 %v6722_v28, %v6302_v39  ;;  %v3178_v17 = vadd.f32 %v6728_v20, %v3132_v7  ;;  %3296 = vst.msk [vmem:[%s7035_s4 + $0x4] sm:$0xf] %vm3294_vm5, %v3252_v25 }
 0x3f6   :  { %v3217_v56 = vmax.f32 %v3174_v61, 0.0  ;;  %v3256_v34 = vpack.c.bf16 %v3213_v4, %v3213_v4  ;;  %v3135_v57 = vmul.f32 %v6722_v28, %v6305_v18  ;;  %v3179_v8 = vadd.f32 %v6728_v20, %v3133_v11  ;;  %3297 = vst.msk [vmem:[%s7035_s4 + $0x8] sm:$0xf] %vm3294_vm5, %v3253_v19 }
 0x3f7   :  { %v3218_v62 = vmax.f32 %v3175_v51, 0.0  ;;  %v3257_v2 = vpack.c.bf16 %v3214_v23, %v3214_v23  ;;  %v3136_v39 = vmul.f32 %v6722_v28, %v6332_v27  ;;  %v3180_v55 = vadd.f32 %v6728_v20, %v3134_v42  ;;  %3298 = vst.msk [vmem:[%s7035_s4 + $0xc] sm:$0xf] %vm3294_vm5, %v3254_v5  ;;  %v7070_v27 = vld [vmem:[#allocation3_spill] sm:$0xff] }
 0x3f8   :  { %v3219_v36 = vmax.f32 %v3176_v14, 0.0  ;;  %v3258_v24 = vpack.c.bf16 %v3215_v3, %v3215_v3  ;;  %v3137_v18 = vmul.f32 %v6722_v28, %v6335_v15  ;;  %v3181_v16 = vadd.f32 %v6728_v20, %v3135_v57  ;;  %3299 = vst.msk [vmem:[%s7035_s4 + $0x10] sm:$0xf] %vm3294_vm5, %v3255_v26  ;;  %v7071_v15 = vld [vmem:[#allocation4_spill] sm:$0xff] }
 0x3f9   :  { %v3220_v12 = vmax.f32 %v3177_v1, 0.0  ;;  %v3259_v48 = vpack.c.bf16 %v3216_v58, %v3216_v58  ;;  %v3138_v43 = vmul.f32 %v6722_v28, %v7070_v27  ;;  %v3182_v31 = vadd.f32 %v6728_v20, %v3136_v39  ;;  %3300 = vst.msk [vmem:[%s7035_s4 + $0x14] sm:$0xf] %vm3294_vm5, %v3256_v34 }
 0x3fa   :  { %v3221_v45 = vmax.f32 %v3178_v17, 0.0  ;;  %v3260_v30 = vpack.c.bf16 %v3217_v56, %v3217_v56  ;;  %v3139_v13 = vmul.f32 %v6722_v28, %v7071_v15  ;;  %v3183_v47 = vadd.f32 %v6728_v20, %v3137_v18  ;;  %3301 = vst.msk [vmem:[%s7035_s4 + $0x18] sm:$0xf] %vm3294_vm5, %v3257_v2 }
 0x3fb   :  { %v3222_v49 = vmax.f32 %v3179_v8, 0.0  ;;  %v3261_v35 = vpack.c.bf16 %v3218_v62, %v3218_v62  ;;  %v3140_v40 = vmul.f32 %v6722_v28, %v6392_v63  ;;  %v3184_v22 = vadd.f32 %v6728_v20, %v3138_v43  ;;  %3302 = vst.msk [vmem:[%s7035_s4 + $0x1c] sm:$0xf] %vm3294_vm5, %v3258_v24 }
 0x3fc   :  { %v3223_v52 = vmax.f32 %v3180_v55, 0.0  ;;  %v3262_v50 = vpack.c.bf16 %v3219_v36, %v3219_v36  ;;  %v3141_v61 = vmul.f32 %v6722_v28, %v6395_v29  ;;  %v3185_v4 = vadd.f32 %v6728_v20, %v3139_v13  ;;  %3303 = vst.msk [vmem:[%s7035_s4 + $0x20] sm:$0xf] %vm3294_vm5, %v3259_v48 }
 0x3fd   :  { %v3224_v25 = vmax.f32 %v3181_v16, 0.0  ;;  %v3263_v7 = vpack.c.bf16 %v3220_v12, %v3220_v12  ;;  %v3142_v63 = vmul.f32 %v6722_v28, %v6416_v10  ;;  %v3186_v51 = vadd.f32 %v6728_v20, %v3140_v40  ;;  %3304 = vst.msk [vmem:[%s7035_s4 + $0x24] sm:$0xf] %vm3294_vm5, %v3260_v30 }
 0x3fe   :  { %v3225_v23 = vmax.f32 %v3182_v31, 0.0  ;;  %v3264_v19 = vpack.c.bf16 %v3221_v45, %v3221_v45  ;;  %v3143_v29 = vmul.f32 %v6722_v28, %v6422_v32  ;;  %v3187_v14 = vadd.f32 %v6728_v20, %v3141_v61  ;;  %3305 = vst.msk [vmem:[%s7035_s4 + $0x28] sm:$0xf] %vm3294_vm5, %v3261_v35 }
 0x3ff   :  { %v3226_v3 = vmax.f32 %v3183_v47, 0.0  ;;  %v3265_v5 = vpack.c.bf16 %v3222_v49, %v3222_v49  ;;  %v3144_v10 = vmul.f32 %v6722_v28, %v6429_v53  ;;  %v3188_v11 = vadd.f32 %v6728_v20, %v3142_v63  ;;  %3306 = vst.msk [vmem:[%s7035_s4 + $0x2c] sm:$0xf] %vm3294_vm5, %v3262_v50 }
 0x400   :  { %v3227_v1 = vmax.f32 %v3184_v22, 0.0  ;;  %v3266_v58 = vpack.c.bf16 %v3223_v52, %v3223_v52  ;;  %v3145_v32 = vmul.f32 %v6722_v28, %v6432_v41  ;;  %v3189_v26 = vadd.f32 %v6728_v20, %v3143_v29  ;;  %3307 = vst.msk [vmem:[%s7035_s4 + $0x30] sm:$0xf] %vm3294_vm5, %v3263_v7  ;;  %v7072_v41 = vld [vmem:[#allocation5_spill] sm:$0xff] }
 0x401   :  { %v3228_v42 = vmax.f32 %v3185_v4, 0.0  ;;  %v3267_v17 = vpack.c.bf16 %v3224_v25, %v3224_v25  ;;  %v3146_v53 = vmul.f32 %v6722_v28, %v6435_v33  ;;  %v3190_v56 = vadd.f32 %v6728_v20, %v3144_v10  ;;  %3308 = vst.msk [vmem:[%s7035_s4 + $0x34] sm:$0xf] %vm3294_vm5, %v3264_v19 }
 0x402   :  { %v3229_v34 = vmax.f32 %v3186_v51, 0.0  ;;  %v3268_v57 = vpack.c.bf16 %v3225_v23, %v3225_v23  ;;  %v3147_v8 = vmul.f32 %v6722_v28, %v7072_v41  ;;  %v3191_v62 = vadd.f32 %v6728_v20, %v3145_v32  ;;  %3309 = vst.msk [vmem:[%s7035_s4 + $0x38] sm:$0xf] %vm3294_vm5, %v3265_v5 }
 0x403   :  { %v3230_v2 = vmax.f32 %v3187_v14, 0.0  ;;  %v3269_v39 = vpack.c.bf16 %v3226_v3, %v3226_v3  ;;  %v3148_v33 = vmul.f32 %v6722_v28, %v6441_v37  ;;  %v3192_v55 = vadd.f32 %v6728_v20, %v3146_v53  ;;  %3310 = vst.msk [vmem:[%s7035_s4 + $0x3c] sm:$0xf] %vm3294_vm5, %v3266_v58 }
 0x404   :  { %v3231_v36 = vmax.f32 %v3188_v11, 0.0  ;;  %v3270_v24 = vpack.c.bf16 %v3227_v1, %v3227_v1  ;;  %v3149_v18 = vmul.f32 %v6722_v28, %v6446_v38  ;;  %v3193_v16 = vadd.f32 %v6728_v20, %v3147_v8  ;;  %3311 = vst.msk [vmem:[%s7035_s4 + $0x40] sm:$0xf] %vm3294_vm5, %v3267_v17 }
 0x405   :  { %v3232_v12 = vmax.f32 %v3189_v26, 0.0  ;;  %v3271_v48 = vpack.c.bf16 %v3228_v42, %v3228_v42  ;;  %v3150_v37 = vmul.f32 %v6722_v28, %v6451_v44  ;;  %v3194_v27 = vadd.f32 %v6728_v20, %v3148_v33  ;;  %3312 = vst.msk [vmem:[%s7035_s4 + $0x44] sm:$0xf] %vm3294_vm5, %v3268_v57 }
 0x406   :  { %v3233_v43 = vmax.f32 %v3190_v56, 0.0  ;;  %v3272_v31 = vpack.c.bf16 %v3229_v34, %v3229_v34  ;;  %v3151_v38 = vmul.f32 %v6722_v28, %v6471_v54  ;;  %v3195_v45 = vadd.f32 %v6728_v20, %v3149_v18  ;;  %3313 = vst.msk [vmem:[%s7035_s4 + $0x48] sm:$0xf] %vm3294_vm5, %v3269_v39 }
 0x407   :  { %v3234_v30 = vmax.f32 %v3191_v62, 0.0  ;;  %v3273_v15 = vpack.c.bf16 %v3230_v2, %v3230_v2  ;;  %v3152_v44 = vmul.f32 %v6722_v28, %v6497_v0  ;;  %v3196_v13 = vadd.f32 %v6728_v20, %v3150_v37  ;;  %3314 = vst.msk [vmem:[%s7035_s4 + $0x4c] sm:$0xf] %vm3294_vm5, %v3270_v24  ;;  %v7073_v0 = vld [vmem:[#allocation6_spill] sm:$0xff] }
 0x408   :  { %v3235_v47 = vmax.f32 %v3192_v55, 0.0  ;;  %v3274_v49 = vpack.c.bf16 %v3231_v36, %v3231_v36  ;;  %v3153_v54 = vmul.f32 %v6722_v28, %v6523_v6  ;;  %v3197_v35 = vadd.f32 %v6728_v20, %v3151_v38  ;;  %3315 = vst.msk [vmem:[%s7035_s4 + $0x50] sm:$0xf] %vm3294_vm5, %v3271_v48 }
 0x409   :  { %v3236_v40 = vmax.f32 %v3193_v16, 0.0  ;;  %v3275_v22 = vpack.c.bf16 %v3232_v12, %v3232_v12  ;;  %v3154_v52 = vmul.f32 %v6722_v28, %v7073_v0  ;;  %v3198_v50 = vadd.f32 %v6728_v20, %v3152_v44  ;;  %3316 = vst.msk [vmem:[%s7035_s4 + $0x54] sm:$0xf] %vm3294_vm5, %v3272_v31 }
 0x40a   :  { %v3237_v61 = vmax.f32 %v3194_v27, 0.0  ;;  %v3276_v4 = vpack.c.bf16 %v3233_v43, %v3233_v43  ;;  %v3155_v6 = vmul.f32 %v6722_v28, %v6575_v21  ;;  %v3199_v25 = vadd.f32 %v6728_v20, %v3153_v54  ;;  %3317 = vst.msk [vmem:[%s7035_s4 + $0x58] sm:$0xf] %vm3294_vm5, %v3273_v15 }
 0x40b   :  { %v3238_v7 = vmax.f32 %v3195_v45, 0.0  ;;  %v3277_v63 = vpack.c.bf16 %v3234_v30, %v3234_v30  ;;  %v3156_v51 = vmul.f32 %v6722_v28, %v6601_v60  ;;  %v3200_v23 = vadd.f32 %v6728_v20, %v3154_v52  ;;  %3318 = vst.msk [vmem:[%s7035_s4 + $0x5c] sm:$0xf] %vm3294_vm5, %v3274_v49 }
 0x40c   :  { %v3239_v19 = vmax.f32 %v3196_v13, 0.0  ;;  %v3278_v29 = vpack.c.bf16 %v3235_v47, %v3235_v47  ;;  %v3157_v21 = vmul.f32 %v6722_v28, %v6628_v9  ;;  %v3201_v14 = vadd.f32 %v6728_v20, %v3155_v6  ;;  %3319 = vst.msk [vmem:[%s7035_s4 + $0x60] sm:$0xf] %vm3294_vm5, %v3275_v22  ;;  %v7074_v9 = vld [vmem:[#allocation7_spill] sm:$0xff] }
 0x40d   :  { %v3240_v3 = vmax.f32 %v3197_v35, 0.0  ;;  %v3279_v5 = vpack.c.bf16 %v3236_v40, %v3236_v40  ;;  %v3158_v60 = vmul.f32 %v6722_v28, %v6686_v46  ;;  %v3202_v10 = vadd.f32 %v6728_v20, %v3156_v51  ;;  %3320 = vst.msk [vmem:[%s7035_s4 + $0x64] sm:$0xf] %vm3294_vm5, %v3276_v4  ;;  %v7075_v46 = vld [vmem:[#allocation8_spill] sm:$0xff] }
 0x40e   :  { %v3241_v11 = vmax.f32 %v3198_v50, 0.0  ;;  %v3280_v1 = vpack.c.bf16 %v3237_v61, %v3237_v61  ;;  %v3159_v58 = vmul.f32 %v6722_v28, %v7074_v9  ;;  %v3203_v32 = vadd.f32 %v6728_v20, %v3157_v21  ;;  %3321 = vst.msk [vmem:[%s7035_s4 + $0x68] sm:$0xf] %vm3294_vm5, %v3277_v63 }
 0x40f   :  { %v3242_v26 = vmax.f32 %v3199_v25, 0.0  ;;  %v3281_v42 = vpack.c.bf16 %v3238_v7, %v3238_v7  ;;  %v3160_v17 = vmul.f32 %v6722_v28, %v7075_v46  ;;  %v3204_v53 = vadd.f32 %v6728_v20, %v3158_v60  ;;  %3322 = vst.msk [vmem:[%s7035_s4 + $0x6c] sm:$0xf] %vm3294_vm5, %v3278_v29 }
 0x410   :  { %v3243_v56 = vmax.f32 %v3200_v23, 0.0  ;;  %v3282_v34 = vpack.c.bf16 %v3239_v19, %v3239_v19  ;;  %v3205_v57 = vadd.f32 %v6728_v20, %v3159_v58  ;;  %v3244_v41 = vmax.f32 %v3201_v14, 0.0  ;;  %3323 = vst.msk [vmem:[%s7035_s4 + $0x70] sm:$0xf] %vm3294_vm5, %v3279_v5 }
 0x411   :  { %v3283_v8 = vpack.c.bf16 %v3240_v3, %v3240_v3  ;;  %v3206_v28 = vadd.f32 %v6728_v20, %v3160_v17  ;;  %v3245_v62 = vmax.f32 %v3202_v10, 0.0  ;;  %v3284_v2 = vpack.c.bf16 %v3241_v11, %v3241_v11  ;;  %3324 = vst.msk [vmem:[%s7035_s4 + $0x74] sm:$0xf] %vm3294_vm5, %v3280_v1 }
 0x412   :  { %v3246_v39 = vmax.f32 %v3203_v32, 0.0  ;;  %v3285_v33 = vpack.c.bf16 %v3242_v26, %v3242_v26  ;;  %3325 = vst.msk [vmem:[%s7035_s4 + $0x78] sm:$0xf] %vm3294_vm5, %v3281_v42  ;;  %v3247_v55 = vmax.f32 %v3204_v53, 0.0  ;;  %v3286_v36 = vpack.c.bf16 %v3243_v56, %v3243_v56 }
 0x413   :  { %3326 = vst.msk [vmem:[%s7035_s4 + $0x7c] sm:$0xf] %vm3294_vm5, %v3282_v34  ;;  %v3248_v20 = vmax.f32 %v3205_v57, 0.0  ;;  %v3287_v24 = vpack.c.bf16 %v3244_v41, %v3244_v41  ;;  %v3249_v18 = vmax.f32 %v3206_v28, 0.0  ;;  %v3288_v16 = vpack.c.bf16 %v3245_v62, %v3245_v62 }
 0x414   :  { %3327 = vst.msk [vmem:[%s7035_s4 + $0x80] sm:$0xf] %vm3294_vm5, %v3283_v8  ;;  %v3250_v12 = vmax.f32 %v6731_v59, 0.0  ;;  %v3289_v48 = vpack.c.bf16 %v3246_v39, %v3246_v39  ;;  %v3290_v37 = vpack.c.bf16 %v3247_v55, %v3247_v55 }
 0x415   :  { %3328 = vst.msk [vmem:[%s7035_s4 + $0x84] sm:$0xf] %vm3294_vm5, %v3284_v2  ;;  %v3291_v27 = vpack.c.bf16 %v3248_v20, %v3248_v20  ;;  %v3292_v43 = vpack.c.bf16 %v3249_v18, %v3249_v18 }
 0x416   :  { %3329 = vst.msk [vmem:[%s7035_s4 + $0x88] sm:$0xf] %vm3294_vm5, %v3285_v33  ;;  %v3293_v59 = vpack.c.bf16 %v3250_v12, %v3250_v12 }
 0x417   :  { %3330 = vst.msk [vmem:[%s7035_s4 + $0x8c] sm:$0xf] %vm3294_vm5, %v3286_v36 }
 0x418   :  { %3331 = vst.msk [vmem:[%s7035_s4 + $0x90] sm:$0xf] %vm3294_vm5, %v3287_v24 }
 0x419   :  { %3332 = vst.msk [vmem:[%s7035_s4 + $0x94] sm:$0xf] %vm3294_vm5, %v3288_v16 }
 0x41a   :  { %3333 = vst.msk [vmem:[%s7035_s4 + $0x98] sm:$0xf] %vm3294_vm5, %v3289_v48 }
 0x41b   :  { %3334 = vst.msk [vmem:[%s7035_s4 + $0x9c] sm:$0xf] %vm3294_vm5, %v3290_v37 }
 0x41c   :  { %3335 = vst.msk [vmem:[%s7035_s4 + $0xa0] sm:$0xf] %vm3294_vm5, %v3291_v27 }
 0x41d   :  { %3336 = vst.msk [vmem:[%s7035_s4 + $0xa4] sm:$0xf] %vm3294_vm5, %v3292_v43 }
 0x41e   :  { %3338 = vst.msk [vmem:[%s7035_s4 + $0xa8] sm:$0x1] %vm3337_vm6, %v3293_v59 }

// kernel: infogen_forward.7
= control target key start
LH: loop header
LB: loop body
LE: loop exit
PB: predicated region body
PF: predicated region fallthrough
CT: control target
= control target key end

     0   :  { %vm1577_vm0 = vcmask 523264   ;;  %vm2771_vm1 = vcmask 130048   ;;  %vm2933_vm2 = vcmask 123904   ;;  %s7986_s1 = inlined_call_operand.vmem [shape: bf16[576,16], index: 1, kind: input, shape index: {}]   ;;  %s7987_s0 = inlined_call_operand.vmem [shape: bf16[650,576], index: 0, kind: input, shape index: {}]   ;;  %s7988_s2 = inlined_call_operand.vmem [shape: f32[1,16], index: 2, kind: input, shape index: {}]   ;;  %s7989_s3 = inlined_call_operand.vmem [shape: f32[1,16], index: 3, kind: input, shape index: {}]   ;;  %s7990_s4 = inlined_call_operand.vmem [shape: f32[650,16], index: 4, kind: output, shape index: {}]  }
   0x1   :  { %v4769_v0 = vld [vmem:[%s7986_s1 + $0x38] sm:$0xff]  ;;  %v4768_v1 = vld [vmem:[%s7986_s1 + $0x30] sm:$0xff]  ;;  %v4767_v2 = vld [vmem:[%s7986_s1 + $0x28] sm:$0xff] }
   0x2   :  { %4798 = vmatpush.bf16.msra.mxu1 %v4769_v0  ;;  %4799 = vmatpush.bf16.msra.mxu2 %v4769_v0  ;;  %v4766_v3 = vld [vmem:[%s7986_s1 + $0x20] sm:$0xff]  ;;  %v4765_v4 = vld [vmem:[%s7986_s1 + $0x18] sm:$0xff]  ;;  %v4764_v5 = vld [vmem:[%s7986_s1 + $0x10] sm:$0xff] }
   0x3   :  { %1701 = vmatpush.bf16.msra.mxu0 %v4769_v0  ;;  %4800 = vmatpush.bf16.msra.mxu3 %v4769_v0  ;;  %v4763_v6 = vld [vmem:[%s7986_s1 + $0x8] sm:$0xff]  ;;  %v4762_v7 = vld [vmem:[%s7986_s1] sm:$0xff]  ;;  %v3774_v8 = vld [vmem:[%s7987_s0 + $0x1b8] sm:$0xf] }
   0x4   :  { %v4614_v9 = vld [vmem:[%s7987_s0 + $0x1c8] sm:$0xf0]  ;;  %v3994_v10 = vld [vmem:[%s7987_s0 + $0x370] sm:$0xf]  ;;  %v4669_v11 = vld [vmem:[%s7987_s0 + $0x380] sm:$0xf0] }
   0x5   :  { %v4785_v12 = vld [vmem:[%s7986_s1 + $0xb8] sm:$0xff]  ;;  %v3554_v13 = vld [vmem:[%s7987_s0] sm:$0xf]  ;;  %v4559_v14 = vld [vmem:[%s7987_s0 + $0x10] sm:$0xf0]  ;;  %v3775_v17 = vor.u32 %v4614_v9, %v3774_v8  ;;  %v3995_v18 = vor.u32 %v4669_v11, %v3994_v10 }
   0x6   :  { %4801 = vmatpush.bf16.msra.mxu1 %v4768_v1  ;;  %4802 = vmatpush.bf16.msra.mxu2 %v4768_v1  ;;  %v4777_v15 = vld [vmem:[%s7986_s1 + $0x78] sm:$0xff]  ;;  %v3555_v19 = vor.u32 %v4559_v14, %v3554_v13  ;;  %v4784_v20 = vld [vmem:[%s7986_s1 + $0xb0] sm:$0xff]  ;;  %v4214_v22 = vld [vmem:[%s7987_s0 + $0x528] sm:$0xf] }
   0x7   :  { %1702 = vmatpush.bf16.msra.mxu0 %v4768_v1  ;;  %4803 = vmatpush.bf16.msra.mxu3 %v4768_v1  ;;  %v4797_v16 = vld [vmem:[%s7986_s1 + $0x118] sm:$0xff]  ;;  %v4776_v21 = vld [vmem:[%s7986_s1 + $0x70] sm:$0xff]  ;;  %v4783_v25 = vld [vmem:[%s7986_s1 + $0xa8] sm:$0xff] }
   0x8   :  { %v4724_v23 = vld [vmem:[%s7987_s0 + $0x538] sm:$0xf0]  ;;  %v3794_v26 = vld [vmem:[%s7987_s0 + $0x1e0] sm:$0xf]  ;;  %v4619_v27 = vld [vmem:[%s7987_s0 + $0x1f0] sm:$0xf0] }
   0x9   :  { %v4215_v24 = vor.u32 %v4724_v23, %v4214_v22  ;;  %v4014_v28 = vld [vmem:[%s7987_s0 + $0x398] sm:$0xf]  ;;  %v4674_v29 = vld [vmem:[%s7987_s0 + $0x3a8] sm:$0xf0]  ;;  %v3574_v30 = vld [vmem:[%s7987_s0 + $0x28] sm:$0xf]  ;;  %v3795_v32 = vor.u32 %v4619_v27, %v3794_v26 }
   0xa   :  { %4804 = vmatpush.bf16.msra.mxu1 %v4767_v2  ;;  %4805 = vmatpush.bf16.msra.mxu2 %v4767_v2  ;;  %v4564_v31 = vld [vmem:[%s7987_s0 + $0x38] sm:$0xf0]  ;;  %v4015_v33 = vor.u32 %v4674_v29, %v4014_v28  ;;  %v4775_v35 = vld [vmem:[%s7986_s1 + $0x68] sm:$0xff]  ;;  %v4796_v37 = vld [vmem:[%s7986_s1 + $0x110] sm:$0xff] }
   0xb   :  { %1703 = vmatpush.bf16.msra.mxu0 %v4767_v2  ;;  %4806 = vmatpush.bf16.msra.mxu3 %v4767_v2  ;;  %v3575_v34 = vor.u32 %v4564_v31, %v3574_v30  ;;  %v4793_v36 = vld [vmem:[%s7986_s1 + $0xf8] sm:$0xff]  ;;  %v4234_v38 = vld [vmem:[%s7987_s0 + $0x550] sm:$0xf]  ;;  %v4729_v39 = vld [vmem:[%s7987_s0 + $0x560] sm:$0xf0] }
   0xc   :  { %v4235_v40 = vor.u32 %v4729_v39, %v4234_v38  ;;  %v3814_v41 = vld [vmem:[%s7987_s0 + $0x208] sm:$0xf]  ;;  %v4624_v42 = vld [vmem:[%s7987_s0 + $0x218] sm:$0xf0]  ;;  %v4034_v43 = vld [vmem:[%s7987_s0 + $0x3c0] sm:$0xf] }
   0xd   :  { %v4679_v44 = vld [vmem:[%s7987_s0 + $0x3d0] sm:$0xf0]  ;;  %v3594_v45 = vld [vmem:[%s7987_s0 + $0x50] sm:$0xf]  ;;  %v4569_v46 = vld [vmem:[%s7987_s0 + $0x60] sm:$0xf0]  ;;  %v3815_v47 = vor.u32 %v4624_v42, %v3814_v41 }
   0xe   :  { %4807 = vmatpush.bf16.msra.mxu1 %v4766_v3  ;;  %4808 = vmatpush.bf16.msra.mxu2 %v4766_v3  ;;  %v4035_v48 = vor.u32 %v4679_v44, %v4034_v43  ;;  %v3595_v49 = vor.u32 %v4569_v46, %v3594_v45  ;;  %v4782_v50 = vld [vmem:[%s7986_s1 + $0xa0] sm:$0xff]  ;;  %v4792_v51 = vld [vmem:[%s7986_s1 + $0xf0] sm:$0xff]  ;;  %v4254_v53 = vld [vmem:[%s7987_s0 + $0x578] sm:$0xf] }
   0xf   :  { %1704 = vmatpush.bf16.msra.mxu0 %v4766_v3  ;;  %4809 = vmatpush.bf16.msra.mxu3 %v4766_v3  ;;  %v4774_v52 = vld [vmem:[%s7986_s1 + $0x60] sm:$0xff]  ;;  %v4734_v54 = vld [vmem:[%s7987_s0 + $0x588] sm:$0xf0]  ;;  %v3834_v56 = vld [vmem:[%s7987_s0 + $0x230] sm:$0xf] }
  0x10   :  { %v4255_v55 = vor.u32 %v4734_v54, %v4254_v53  ;;  %v4629_v57 = vld [vmem:[%s7987_s0 + $0x240] sm:$0xf0]  ;;  %v4054_v58 = vld [vmem:[%s7987_s0 + $0x3e8] sm:$0xf]  ;;  %v4684_v59 = vld [vmem:[%s7987_s0 + $0x3f8] sm:$0xf0] }
  0x11   :  { %v3614_v60 = vld [vmem:[%s7987_s0 + $0x78] sm:$0xf]  ;;  %v4574_v61 = vld [vmem:[%s7987_s0 + $0x88] sm:$0xf0]  ;;  %v3835_v62 = vor.u32 %v4629_v57, %v3834_v56  ;;  %v4055_v63 = vor.u32 %v4684_v59, %v4054_v58  ;;  %v4274_v3 = vld [vmem:[%s7987_s0 + $0x5a0] sm:$0xf] }
  0x12   :  { %4810 = vmatpush.bf16.msra.mxu1 %v4765_v4  ;;  %4811 = vmatpush.bf16.msra.mxu2 %v4765_v4  ;;  %v3615_v0 = vor.u32 %v4574_v61, %v3614_v60  ;;  %v4791_v1 = vld [vmem:[%s7986_s1 + $0xe8] sm:$0xff]  ;;  %v4781_v2 = vld [vmem:[%s7986_s1 + $0x98] sm:$0xff]  ;;  %v4074_v9 = vld [vmem:[%s7987_s0 + $0x410] sm:$0xf] }
  0x13   :  { %1705 = vmatpush.bf16.msra.mxu0 %v4765_v4  ;;  %4812 = vmatpush.bf16.msra.mxu3 %v4765_v4  ;;  %v4739_v4 = vld [vmem:[%s7987_s0 + $0x5b0] sm:$0xf0]  ;;  %v4634_v8 = vld [vmem:[%s7987_s0 + $0x268] sm:$0xf0]  ;;  %v4689_v10 = vld [vmem:[%s7987_s0 + $0x420] sm:$0xf0] }
  0x14   :  { %v3634_v11 = vld [vmem:[%s7987_s0 + $0xa0] sm:$0xf]  ;;  %v4075_v14 = vor.u32 %v4689_v10, %v4074_v9  ;;  %v4639_v23 = vld [vmem:[%s7987_s0 + $0x290] sm:$0xf0]  ;;  %v3654_v26 = vld [vmem:[%s7987_s0 + $0xc8] sm:$0xf] }
  0x15   :  { %v3874_v22 = vld [vmem:[%s7987_s0 + $0x280] sm:$0xf]  ;;  %v4584_v27 = vld [vmem:[%s7987_s0 + $0xd8] sm:$0xf0]  ;;  %v4772_v31 = vld [vmem:[%s7986_s1 + $0x50] sm:$0xff] }
  0x16   :  { %4813 = vmatpush.bf16.msra.mxu1 %v4764_v5  ;;  %4814 = vmatpush.bf16.msra.mxu2 %v4764_v5  ;;  %v3875_v28 = vor.u32 %v4639_v23, %v3874_v22  ;;  %v3655_v30 = vor.u32 %v4584_v27, %v3654_v26  ;;  %v4114_v38 = vld [vmem:[%s7987_s0 + $0x460] sm:$0xf]  ;;  %v4699_v39 = vld [vmem:[%s7987_s0 + $0x470] sm:$0xf0]  ;;  %v4589_v41 = vld [vmem:[%s7987_s0 + $0x100] sm:$0xf0] }
  0x17   :  { %1706 = vmatpush.bf16.msra.mxu0 %v4764_v5  ;;  %4815 = vmatpush.bf16.msra.mxu3 %v4764_v5  ;;  %v4773_v5 = vld [vmem:[%s7986_s1 + $0x58] sm:$0xff]  ;;  %v4115_v43 = vor.u32 %v4699_v39, %v4114_v38  ;;  %v4788_v45 = vld [vmem:[%s7986_s1 + $0xd0] sm:$0xff]  ;;  %v4779_v46 = vld [vmem:[%s7986_s1 + $0x88] sm:$0xff] }
  0x18   :  { %v4134_v53 = vld [vmem:[%s7987_s0 + $0x488] sm:$0xf]  ;;  %v4704_v54 = vld [vmem:[%s7987_s0 + $0x498] sm:$0xf0]  ;;  %v4594_v56 = vld [vmem:[%s7987_s0 + $0x128] sm:$0xf0] }
  0x19   :  { %v4135_v58 = vor.u32 %v4704_v54, %v4134_v53  ;;  %v4794_v60 = vld [vmem:[%s7986_s1 + $0x100] sm:$0xff]  ;;  %v4787_v61 = vld [vmem:[%s7986_s1 + $0xc8] sm:$0xff]  ;;  %v4659_v22 = vld [vmem:[%s7987_s0 + $0x330] sm:$0xf0] }
  0x1a   :  { %4816 = vmatpush.bf16.msra.mxu1 %v4763_v6  ;;  %4817 = vmatpush.bf16.msra.mxu2 %v4763_v6  ;;  %v4174_v23 = vld [vmem:[%s7987_s0 + $0x4d8] sm:$0xf]  ;;  %v4604_v26 = vld [vmem:[%s7987_s0 + $0x178] sm:$0xf0]  ;;  %v4563_v38 = vld [vmem:[%s7987_s0 + $0x34] sm:$0xf] }
  0x1b   :  { %1707 = vmatpush.bf16.msra.mxu0 %v4763_v6  ;;  %4818 = vmatpush.bf16.msra.mxu3 %v4763_v6  ;;  %v4275_v6 = vor.u32 %v4739_v4, %v4274_v3  ;;  %v4654_v3 = vld [vmem:[%s7987_s0 + $0x308] sm:$0xf0]  ;;  %v4154_v4 = vld [vmem:[%s7987_s0 + $0x4b0] sm:$0xf]  ;;  %v3584_v39 = vld [vmem:[%s7987_s0 + $0x44] sm:$0xf0] }
  0x1e   :  { %4819 = vmatpush.bf16.msra.mxu1 %v4762_v7  ;;  %4820 = vmatpush.bf16.msra.mxu2 %v4762_v7 }
  0x1f   :  { %1708 = vmatpush.bf16.msra.mxu0 %v4762_v7  ;;  %4821 = vmatpush.bf16.msra.mxu3 %v4762_v7  ;;  %v3854_v7 = vld [vmem:[%s7987_s0 + $0x258] sm:$0xf] }
  0x20   :  { %v3855_v13 = vor.u32 %v4634_v8, %v3854_v7  ;;  %v4599_v7 = vld [vmem:[%s7987_s0 + $0x150] sm:$0xf0] }
  0x21   :  { %1764 = vmatmul.bf16.vlgmr.msra.gmra.mxu1 %v3775_v17  ;;  %1819 = vmatmul.bf16.vlgmr.msra.gmra.mxu2 %v3995_v18  ;;  %v4795_v17 = vld [vmem:[%s7986_s1 + $0x108] sm:$0xff] }
  0x22   :  { %2129 = vmatpush.bf16.msrb.mxu2 %v4785_v12  ;;  %1915 = vmatpush.bf16.msrb.mxu1 %v4777_v15  ;;  %v4579_v12 = vld [vmem:[%s7987_s0 + $0xb0] sm:$0xf0]  ;;  %v4294_v18 = vld [vmem:[%s7987_s0 + $0x5c8] sm:$0xf] }
  0x23   :  { %2561 = vmatpush.bf16.msrb.mxu0 %v4797_v16  ;;  %1874 = vmatmul.bf16.vlgmr.msra.gmra.mxu3 %v4215_v24  ;;  %v3635_v15 = vor.u32 %v4579_v12, %v3634_v11  ;;  %v4790_v16 = vld [vmem:[%s7986_s1 + $0xe0] sm:$0xff]  ;;  %v4094_v24 = vld [vmem:[%s7987_s0 + $0x438] sm:$0xf] }
  0x24   :  { %1709 = vmatmul.bf16.vlgmr.msra.gmra.mxu0 %v3555_v19  ;;  %2343 = vmatpush.bf16.msrb.mxu3 %v4793_v36  ;;  %v4744_v19 = vld [vmem:[%s7987_s0 + $0x5d8] sm:$0xf0]  ;;  %v3894_v36 = vld [vmem:[%s7987_s0 + $0x2a8] sm:$0xf]  ;;  %v4770_v12 = vld [vmem:[%s7986_s1 + $0x40] sm:$0xff] }
  0x26   :  { %2130 = vmatpush.bf16.msrb.mxu2 %v4784_v20  ;;  %1916 = vmatpush.bf16.msrb.mxu1 %v4776_v21  ;;  %v4780_v20 = vld [vmem:[%s7986_s1 + $0x90] sm:$0xff]  ;;  %v4295_v21 = vor.u32 %v4744_v19, %v4294_v18  ;;  %v4558_v18 = vld [vmem:[%s7987_s0 + $0xc] sm:$0xf]  ;;  %v3564_v19 = vld [vmem:[%s7987_s0 + $0x1c] sm:$0xf0] }
  0x27   :  { %2562 = vmatpush.bf16.msrb.mxu0 %v4796_v37  ;;  %v4644_v37 = vld [vmem:[%s7987_s0 + $0x2b8] sm:$0xf0] }
  0x28   :  { %2344 = vmatpush.bf16.msrb.mxu3 %v4792_v51  ;;  %v3895_v42 = vor.u32 %v4644_v37, %v3894_v36  ;;  %v3914_v51 = vld [vmem:[%s7987_s0 + $0x2d0] sm:$0xf] }
  0x2a   :  { %2131 = vmatpush.bf16.msrb.mxu2 %v4783_v25  ;;  %1917 = vmatpush.bf16.msrb.mxu1 %v4775_v35  ;;  %v4694_v25 = vld [vmem:[%s7987_s0 + $0x448] sm:$0xf0] }
  0x2b   :  { %2563 = vmatpush.bf16.msrb.mxu0 %v4795_v17  ;;  %v4095_v29 = vor.u32 %v4694_v25, %v4094_v24  ;;  %v4714_v24 = vld [vmem:[%s7987_s0 + $0x4e8] sm:$0xf0]  ;;  %v3734_v25 = vld [vmem:[%s7987_s0 + $0x168] sm:$0xf] }
  0x2c   :  { %2345 = vmatpush.bf16.msrb.mxu3 %v4791_v1 }
  0x2e   :  { %2132 = vmatpush.bf16.msrb.mxu2 %v4782_v50  ;;  %1918 = vmatpush.bf16.msrb.mxu1 %v4774_v52  ;;  %v4649_v52 = vld [vmem:[%s7987_s0 + $0x2e0] sm:$0xf0] }
  0x2f   :  { %v3915_v57 = vor.u32 %v4649_v52, %v3914_v51  ;;  %2564 = vmatpush.bf16.msrb.mxu0 %v4794_v60 }
  0x30   :  { %2346 = vmatpush.bf16.msrb.mxu3 %v4790_v16 }
  0x31   :  { %1769 = vmatmul.bf16.gmra.mxu1 %v3795_v32  ;;  %1824 = vmatmul.bf16.gmra.mxu2 %v4015_v33  ;;  %v4789_v32 = vld [vmem:[%s7986_s1 + $0xd8] sm:$0xff]  ;;  %v4314_v33 = vld [vmem:[%s7987_s0 + $0x5f0] sm:$0xf] }
  0x32   :  { %2133 = vmatpush.bf16.msrb.mxu2 %v4781_v2  ;;  %1919 = vmatpush.bf16.msrb.mxu1 %v4773_v5  ;;  %v3934_v2 = vld [vmem:[%s7987_s0 + $0x2f8] sm:$0xf]  ;;  %v4709_v5 = vld [vmem:[%s7987_s0 + $0x4c0] sm:$0xf0] }
  0x33   :  { %1879 = vmatmul.bf16.gmra.mxu3 %v4235_v40  ;;  %v3674_v40 = vld [vmem:[%s7987_s0 + $0xf0] sm:$0xf]  ;;  %v3935_v8 = vor.u32 %v4654_v3, %v3934_v2  ;;  %v4155_v9 = vor.u32 %v4709_v5, %v4154_v4  ;;  %v4561_v2 = vld [vmem:[%s7987_s0 + $0x20] sm:$0xf0] }
  0x34   :  { %1714 = vmatmul.bf16.gmra.mxu0 %v3575_v34  ;;  %v4749_v34 = vld [vmem:[%s7987_s0 + $0x600] sm:$0xf0]  ;;  %2347 = vmatpush.bf16.msrb.mxu3 %v4789_v32  ;;  %v3675_v44 = vor.u32 %v4589_v41, %v3674_v40  ;;  %v3587_v40 = vor.u32 %v4563_v38, %v3584_v39  ;;  %v3974_v41 = vld [vmem:[%s7987_s0 + $0x348] sm:$0xf] }
  0x35   :  { %v4315_v35 = vor.u32 %v4749_v34, %v4314_v33 }
  0x36   :  { %2134 = vmatpush.bf16.msrb.mxu2 %v4780_v20  ;;  %1920 = vmatpush.bf16.msrb.mxu1 %v4772_v31  ;;  %v3567_v20 = vor.u32 %v4558_v18, %v3564_v19  ;;  %v3735_v31 = vor.u32 %v4604_v26, %v3734_v25  ;;  %v4573_v19 = vld [vmem:[%s7987_s0 + $0x84] sm:$0xf]  ;;  %v3590_v26 = vld [vmem:[%s7987_s0 + $0x38] sm:$0xf] }
  0x37   :  { %v4565_v25 = vld [vmem:[%s7987_s0 + $0x40] sm:$0xf0] }
  0x38   :  { %2348 = vmatpush.bf16.msrb.mxu3 %v4788_v45  ;;  %v3754_v45 = vld [vmem:[%s7987_s0 + $0x190] sm:$0xf] }
  0x3a   :  { %2135 = vmatpush.bf16.msrb.mxu2 %v4779_v46  ;;  %v4609_v46 = vld [vmem:[%s7987_s0 + $0x1a0] sm:$0xf0] }
  0x3b   :  { %v3755_v51 = vor.u32 %v4609_v46, %v3754_v45 }
  0x3c   :  { %2349 = vmatpush.bf16.msrb.mxu3 %v4787_v61  ;;  %v4557_v61 = vld [vmem:[%s7987_s0 + $0x4] sm:$0xf] }
  0x41   :  { %1774 = vmatmul.bf16.gmra.mxu1 %v3815_v47  ;;  %1829 = vmatmul.bf16.gmra.mxu2 %v4035_v48  ;;  %v4771_v47 = vld [vmem:[%s7986_s1 + $0x48] sm:$0xff]  ;;  %v4334_v48 = vld [vmem:[%s7987_s0 + $0x618] sm:$0xf] }
  0x42   :  { %1921 = vmatpush.bf16.msrb.mxu1 %v4771_v47 }
  0x43   :  { %1884 = vmatmul.bf16.gmra.mxu3 %v4255_v55  ;;  %v3694_v55 = vld [vmem:[%s7987_s0 + $0x118] sm:$0xf] }
  0x44   :  { %1719 = vmatmul.bf16.gmra.mxu0 %v3595_v49  ;;  %v4754_v49 = vld [vmem:[%s7987_s0 + $0x628] sm:$0xf0]  ;;  %v3695_v59 = vor.u32 %v4594_v56, %v3694_v55 }
  0x45   :  { %v4335_v50 = vor.u32 %v4754_v49, %v4334_v48 }
  0x46   :  { %1922 = vmatpush.bf16.msrb.mxu1 %v4770_v12 }
  0x51   :  { %1779 = vmatmul.bf16.gmra.mxu1 %v3835_v62  ;;  %1834 = vmatmul.bf16.gmra.mxu2 %v4055_v63  ;;  %v4354_v62 = vld [vmem:[%s7987_s0 + $0x640] sm:$0xf]  ;;  %v4759_v63 = vld [vmem:[%s7987_s0 + $0x650] sm:$0x10] }
  0x52   :  { %v4355_v1 = vor.u32 %v4759_v63, %v4354_v62  ;;  %v3556_v62 = vld [vmem:[%s7987_s0 + $0x14] sm:$0xf0]  ;;  %v3562_v63 = vld [vmem:[%s7987_s0 + $0x8] sm:$0xf] }
  0x53   :  { %1889 = vmatmul.bf16.gmra.mxu3 %v4275_v6  ;;  %v3714_v6 = vld [vmem:[%s7987_s0 + $0x140] sm:$0xf]  ;;  %v3559_v4 = vor.u32 %v4557_v61, %v3556_v62  ;;  %v4570_v61 = vld [vmem:[%s7987_s0 + $0x68] sm:$0xf0] }
  0x54   :  { %1724 = vmatmul.bf16.gmra.mxu0 %v3615_v0  ;;  %v4778_v0 = vld [vmem:[%s7986_s1 + $0x80] sm:$0xff]  ;;  %v3715_v11 = vor.u32 %v4599_v7, %v3714_v6 }
  0x55   :  { %2136 = vmatpush.bf16.msrb.mxu2 %v4778_v0  ;;  %v4560_v0 = vld [vmem:[%s7987_s0 + $0x18] sm:$0xf0]  ;;  %v3610_v62 = vld [vmem:[%s7987_s0 + $0x60] sm:$0xf] }
  0x56   :  { %v3563_v5 = vor.u32 %v4560_v0, %v3562_v63  ;;  %v4571_v63 = vld [vmem:[%s7987_s0 + $0x70] sm:$0xf0] }
  0x61   :  { %1784 = vmatmul.bf16.gmra.mxu1 %v3855_v13  ;;  %1839 = vmatmul.bf16.gmra.mxu2 %v4075_v14  ;;  %v4786_v14 = vld [vmem:[%s7986_s1 + $0xc0] sm:$0xff] }
  0x62   :  { %2350 = vmatpush.bf16.msrb.mxu3 %v4786_v14 }
  0x63   :  { %1894 = vmatmul.bf16.gmra.mxu3 %v4295_v21  ;;  %v3954_v21 = vld [vmem:[%s7987_s0 + $0x320] sm:$0xf] }
  0x64   :  { %1729 = vmatmul.bf16.gmra.mxu0 %v3635_v15 }
  0x71   :  { %1789 = vmatmul.bf16.gmra.mxu1 %v3875_v28  ;;  %1844 = vmatmul.bf16.gmra.mxu2 %v4095_v29  ;;  %v3955_v28 = vor.u32 %v4659_v22, %v3954_v21  ;;  %v4175_v29 = vor.u32 %v4714_v24, %v4174_v23  ;;  %v4562_v22 = vld [vmem:[%s7987_s0 + $0x2c] sm:$0xf]  ;;  %v3576_v23 = vld [vmem:[%s7987_s0 + $0x3c] sm:$0xf0]  ;;  %v3582_v24 = vld [vmem:[%s7987_s0 + $0x30] sm:$0xf] }
  0x72   :  { %v3583_v38 = vor.u32 %v4565_v25, %v3582_v24  ;;  %v4583_v24 = vld [vmem:[%s7987_s0 + $0xd4] sm:$0xf]  ;;  %v3664_v25 = vld [vmem:[%s7987_s0 + $0xe4] sm:$0xf0] }
  0x73   :  { %1899 = vmatmul.bf16.gmra.mxu3 %v4315_v35 }
  0x74   :  { %1734 = vmatmul.bf16.gmra.mxu0 %v3655_v30 }
  0x81   :  { %1794 = vmatmul.bf16.gmra.mxu1 %v3895_v42  ;;  %1849 = vmatmul.bf16.gmra.mxu2 %v4115_v43  ;;  %v4664_v42 = vld [vmem:[%s7987_s0 + $0x358] sm:$0xf0]  ;;  %v4194_v43 = vld [vmem:[%s7987_s0 + $0x500] sm:$0xf] }
  0x82   :  { %v3975_v48 = vor.u32 %v4664_v42, %v3974_v41 }
  0x83   :  { %1904 = vmatmul.bf16.gmra.mxu3 %v4335_v50 }
  0x84   :  { %1739 = vmatmul.bf16.gmra.mxu0 %v3675_v44  ;;  %v4719_v44 = vld [vmem:[%s7987_s0 + $0x510] sm:$0xf0] }
  0x85   :  { %v4195_v49 = vor.u32 %v4719_v44, %v4194_v43 }
  0x91   :  { %1799 = vmatmul.bf16.gmra.mxu1 %v3915_v57  ;;  %1854 = vmatmul.bf16.gmra.mxu2 %v4135_v58  ;;  %v4568_v58 = vld [vmem:[%s7987_s0 + $0x5c] sm:$0xf] }
  0x93   :  { %1909 = vmatmul.bf16.gmra.mxu3 %v4355_v1  ;;  %v3570_v1 = vld [vmem:[%s7987_s0 + $0x10] sm:$0xf] }
  0x94   :  { %1744 = vmatmul.bf16.gmra.mxu0 %v3695_v59  ;;  %v3604_v59 = vld [vmem:[%s7987_s0 + $0x6c] sm:$0xf0]  ;;  %v3571_v7 = vor.u32 %v4561_v2, %v3570_v1 }
  0x95   :  { %v3607_v60 = vor.u32 %v4568_v58, %v3604_v59  ;;  %v4567_v58 = vld [vmem:[%s7987_s0 + $0x54] sm:$0xf]  ;;  %v3596_v59 = vld [vmem:[%s7987_s0 + $0x64] sm:$0xf0] }
  0x96   :  { %v3599_v1 = vor.u32 %v4567_v58, %v3596_v59 }
  0x9e   :  { %v5161_v10 = vpop.f32.mrf.mxu1 }
  0xa1   :  { %v5166_v13 = vpop.f32.mrf.mxu0  ;;  %1804 = vmatmul.bf16.gmra.mxu1 %v3935_v8  ;;  %1859 = vmatmul.bf16.gmra.mxu2 %v4155_v9 }
  0xa3   :  { %2351 = vmatmul.bf16.vlgmr.msrb.gmra.mxu3 %v3567_v20  ;;  %v3624_v20 = vld [vmem:[%s7987_s0 + $0x94] sm:$0xf0] }
  0xa4   :  { %1749 = vmatmul.bf16.gmra.mxu0 %v3715_v11  ;;  %v5171_v15 = vpop.f32.mrf.mxu2  ;;  %v3627_v21 = vor.u32 %v4573_v19, %v3624_v20 }
  0xa5   :  { %8071 = vst [vmem:[#allocation2_spill] sm:$0xff] %v5171_v15 }
  0xa6   :  { %v5173_v16 = vpop.f32.mrf.mxu1  ;;  %v5205_v32 = vpop.f32.mrf.mxu3 }
  0xa7   :  { %8073 = vst [vmem:[#allocation4_spill] sm:$0xff] %v5205_v32 }
  0xa9   :  { %v5175_v17 = vpop.f32.mrf.mxu0 }
  0xac   :  { %v5201_v27 = vpop.f32.mrf.mxu2 }
  0xad   :  { %8072 = vst [vmem:[#allocation3_spill] sm:$0xff] %v5201_v27 }
  0xae   :  { %v5203_v30 = vpop.f32.mrf.mxu1  ;;  %v5213_v36 = vpop.f32.mrf.mxu3 }
  0xaf   :  { %8075 = vst [vmem:[#allocation6_spill] sm:$0xff] %v5213_v36 }
  0xb1   :  { %v5207_v33 = vpop.f32.mrf.mxu0  ;;  %1809 = vmatmul.bf16.gmra.mxu1 %v3955_v28  ;;  %1864 = vmatmul.bf16.gmra.mxu2 %v4175_v29  ;;  %v4566_v28 = vld [vmem:[%s7987_s0 + $0x48] sm:$0xf0] }
  0xb3   :  { %2356 = vmatmul.bf16.gmra.mxu3 %v3587_v40  ;;  %v3591_v40 = vor.u32 %v4566_v28, %v3590_v26  ;;  %v3667_v26 = vor.u32 %v4583_v24, %v3664_v25  ;;  %v4572_v28 = vld [vmem:[%s7987_s0 + $0x7c] sm:$0xf] }
  0xb4   :  { %1754 = vmatmul.bf16.gmra.mxu0 %v3735_v31  ;;  %v5209_v34 = vpop.f32.mrf.mxu2  ;;  %v3579_v31 = vor.u32 %v4562_v22, %v3576_v23  ;;  %v4588_v25 = vld [vmem:[%s7987_s0 + $0xfc] sm:$0xf] }
  0xb5   :  { %8074 = vst [vmem:[#allocation5_spill] sm:$0xff] %v5209_v34 }
  0xb6   :  { %v5211_v35 = vpop.f32.mrf.mxu1  ;;  %v5245_v52 = vpop.f32.mrf.mxu3 }
  0xb7   :  { %8077 = vst [vmem:[#allocation8_spill] sm:$0xff] %v5245_v52 }
  0xb9   :  { %v5215_v37 = vpop.f32.mrf.mxu0 }
  0xbc   :  { %v5241_v47 = vpop.f32.mrf.mxu2 }
  0xbd   :  { %8076 = vst [vmem:[#allocation7_spill] sm:$0xff] %v5241_v47 }
  0xbe   :  { %v5243_v50 = vpop.f32.mrf.mxu1  ;;  %v5253_v56 = vpop.f32.mrf.mxu3 }
  0xbf   :  { %8079 = vst [vmem:[#allocation10_spill] sm:$0xff] %v5253_v56 }
  0xc1   :  { %v5247_v53 = vpop.f32.mrf.mxu0  ;;  %1814 = vmatmul.bf16.gmra.mxu1 %v3975_v48  ;;  %1869 = vmatmul.bf16.gmra.mxu2 %v4195_v49  ;;  %v4578_v48 = vld [vmem:[%s7987_s0 + $0xac] sm:$0xf]  ;;  %v3644_v49 = vld [vmem:[%s7987_s0 + $0xbc] sm:$0xf0] }
  0xc3   :  { %2361 = vmatmul.bf16.gmra.mxu3 %v3607_v60  ;;  %v3602_v60 = vld [vmem:[%s7987_s0 + $0x58] sm:$0xf] }
  0xc4   :  { %1759 = vmatmul.bf16.gmra.mxu0 %v3755_v51  ;;  %v5249_v54 = vpop.f32.mrf.mxu2  ;;  %v3647_v51 = vor.u32 %v4578_v48, %v3644_v49  ;;  %v3603_v2 = vor.u32 %v4570_v61, %v3602_v60  ;;  %v3630_v48 = vld [vmem:[%s7987_s0 + $0x88] sm:$0xf]  ;;  %v4576_v49 = vld [vmem:[%s7987_s0 + $0x98] sm:$0xf0] }
  0xc5   :  { %8078 = vst [vmem:[#allocation9_spill] sm:$0xff] %v5249_v54  ;;  %v3631_v61 = vor.u32 %v4576_v49, %v3630_v48  ;;  %v4580_v48 = vld [vmem:[%s7987_s0 + $0xb8] sm:$0xf0]  ;;  %v3650_v49 = vld [vmem:[%s7987_s0 + $0xb0] sm:$0xf] }
  0xc6   :  { %v5251_v55 = vpop.f32.mrf.mxu1  ;;  %v5285_v8 = vpop.f32.mrf.mxu3 }
  0xc7   :  { %8081 = vst [vmem:[#allocation12_spill] sm:$0xff] %v5285_v8 }
  0xc9   :  { %v5255_v57 = vpop.f32.mrf.mxu0 }
  0xcc   :  { %v5281_v3 = vpop.f32.mrf.mxu2 }
  0xcd   :  { %8080 = vst [vmem:[#allocation11_spill] sm:$0xff] %v5281_v3 }
  0xce   :  { %v5283_v6 = vpop.f32.mrf.mxu1  ;;  %v5294_v14 = vpop.f32.mrf.mxu3 }
  0xcf   :  { %8083 = vst [vmem:[#allocation14_spill] sm:$0xff] %v5294_v14 }
  0xd1   :  { %v5287_v9 = vpop.f32.mrf.mxu0  ;;  %1923 = vmatmul.bf16.vlgmr.msrb.gmra.mxu1 %v3559_v4  ;;  %2137 = vmatmul.bf16.vlgmr.msrb.gmra.mxu2 %v3563_v5  ;;  %v3611_v5 = vor.u32 %v4571_v63, %v3610_v62 }
  0xd3   :  { %2366 = vmatmul.bf16.gmra.mxu3 %v3627_v21 }
  0xd4   :  { %4516 = vmatmul.msk.bf16.vlgmr.msrb.gmra.mxu0 %vm1577_vm0, %v3571_v7  ;;  %v5290_v11 = vpop.f32.mrf.mxu2 }
  0xd5   :  { %8082 = vst [vmem:[#allocation13_spill] sm:$0xff] %v5290_v11 }
  0xd6   :  { %v5292_v12 = vpop.f32.mrf.mxu1  ;;  %v5326_v41 = vpop.f32.mrf.mxu3 }
  0xd7   :  { %8085 = vst [vmem:[#allocation16_spill] sm:$0xff] %v5326_v41 }
  0xd9   :  { %v5296_v18 = vpop.f32.mrf.mxu0 }
  0xdc   :  { %v5322_v29 = vpop.f32.mrf.mxu2 }
  0xdd   :  { %8084 = vst [vmem:[#allocation15_spill] sm:$0xff] %v5322_v29 }
  0xde   :  { %v5324_v39 = vpop.f32.mrf.mxu1  ;;  %v5335_v45 = vpop.f32.mrf.mxu3 }
  0xdf   :  { %8087 = vst [vmem:[#allocation18_spill] sm:$0xff] %v5335_v45 }
  0xe1   :  { %v5328_v42 = vpop.f32.mrf.mxu0  ;;  %1928 = vmatmul.bf16.gmra.mxu1 %v3579_v31  ;;  %2142 = vmatmul.bf16.gmra.mxu2 %v3583_v38  ;;  %v3616_v31 = vld [vmem:[%s7987_s0 + $0x8c] sm:$0xf0]  ;;  %v3622_v38 = vld [vmem:[%s7987_s0 + $0x80] sm:$0xf] }
  0xe2   :  { %v3619_v58 = vor.u32 %v4572_v28, %v3616_v31  ;;  %v4577_v31 = vld [vmem:[%s7987_s0 + $0xa4] sm:$0xf] }
  0xe3   :  { %2371 = vmatmul.bf16.gmra.mxu3 %v3647_v51 }
  0xe4   :  { %4517 = vmatmul.msk.bf16.gmra.mxu0 %vm1577_vm0, %v3591_v40  ;;  %v5331_v43 = vpop.f32.mrf.mxu2  ;;  %v4575_v40 = vld [vmem:[%s7987_s0 + $0x90] sm:$0xf0] }
  0xe5   :  { %8086 = vst [vmem:[#allocation17_spill] sm:$0xff] %v5331_v43  ;;  %v3623_v59 = vor.u32 %v4575_v40, %v3622_v38  ;;  %v3636_v38 = vld [vmem:[%s7987_s0 + $0xb4] sm:$0xf0]  ;;  %v3642_v40 = vld [vmem:[%s7987_s0 + $0xa8] sm:$0xf] }
  0xe6   :  { %v5333_v44 = vpop.f32.mrf.mxu1  ;;  %v5367_v7 = vpop.f32.mrf.mxu3 }
  0xe7   :  { %8089 = vst [vmem:[#allocation20_spill] sm:$0xff] %v5367_v7 }
  0xe9   :  { %v5337_v46 = vpop.f32.mrf.mxu0 }
  0xec   :  { %v5363_v0 = vpop.f32.mrf.mxu2 }
  0xed   :  { %8088 = vst [vmem:[#allocation19_spill] sm:$0xff] %v5363_v0 }
  0xee   :  { %v5365_v4 = vpop.f32.mrf.mxu1  ;;  %v5376_v22 = vpop.f32.mrf.mxu3 }
  0xef   :  { %8091 = vst [vmem:[#allocation22_spill] sm:$0xff] %v5376_v22 }
  0xf1   :  { %v5369_v19 = vpop.f32.mrf.mxu0  ;;  %1933 = vmatmul.bf16.gmra.mxu1 %v3599_v1  ;;  %2147 = vmatmul.bf16.gmra.mxu2 %v3603_v2 }
  0xf3   :  { %2376 = vmatmul.bf16.gmra.mxu3 %v3667_v26  ;;  %v3684_v26 = vld [vmem:[%s7987_s0 + $0x10c] sm:$0xf0] }
  0xf4   :  { %4518 = vmatmul.msk.bf16.gmra.mxu0 %vm1577_vm0, %v3611_v5  ;;  %v5372_v20 = vpop.f32.mrf.mxu2  ;;  %v3687_v28 = vor.u32 %v4588_v25, %v3684_v26  ;;  %v3643_v25 = vor.u32 %v4580_v48, %v3642_v40  ;;  %v3656_v48 = vld [vmem:[%s7987_s0 + $0xdc] sm:$0xf0] }
  0xf5   :  { %8090 = vst [vmem:[#allocation21_spill] sm:$0xff] %v5372_v20 }
  0xf6   :  { %v5374_v21 = vpop.f32.mrf.mxu1  ;;  %v5408_v62 = vpop.f32.mrf.mxu3 }
  0xf7   :  { %8093 = vst [vmem:[#allocation24_spill] sm:$0xff] %v5408_v62 }
  0xf9   :  { %v5378_v23 = vpop.f32.mrf.mxu0 }
  0xfc   :  { %v5404_v51 = vpop.f32.mrf.mxu2 }
  0xfd   :  { %8092 = vst [vmem:[#allocation23_spill] sm:$0xff] %v5404_v51 }
  0xfe   :  { %v5406_v60 = vpop.f32.mrf.mxu1  ;;  %v5417_v5 = vpop.f32.mrf.mxu3 }
  0xff   :  { %8095 = vst [vmem:[#allocation26_spill] sm:$0xff] %v5417_v5 }
 0x101   :  { %v5410_v63 = vpop.f32.mrf.mxu0  ;;  %1938 = vmatmul.bf16.gmra.mxu1 %v3619_v58  ;;  %2152 = vmatmul.bf16.gmra.mxu2 %v3623_v59  ;;  %v4581_v58 = vld [vmem:[%s7987_s0 + $0xc0] sm:$0xf0] }
 0x102   :  { %v3651_v5 = vor.u32 %v4581_v58, %v3650_v49  ;;  %v3662_v49 = vld [vmem:[%s7987_s0 + $0xd0] sm:$0xf]  ;;  %v4585_v58 = vld [vmem:[%s7987_s0 + $0xe0] sm:$0xf0] }
 0x103   :  { %2381 = vmatmul.bf16.gmra.mxu3 %v3687_v28 }
 0x104   :  { %4519 = vmatmul.msk.bf16.gmra.mxu0 %vm1577_vm0, %v3631_v61  ;;  %v5413_v1 = vpop.f32.mrf.mxu2  ;;  %v3639_v61 = vor.u32 %v4577_v31, %v3636_v38  ;;  %v4593_v31 = vld [vmem:[%s7987_s0 + $0x124] sm:$0xf]  ;;  %v3704_v38 = vld [vmem:[%s7987_s0 + $0x134] sm:$0xf0] }
 0x105   :  { %8094 = vst [vmem:[#allocation25_spill] sm:$0xff] %v5413_v1  ;;  %v3707_v40 = vor.u32 %v4593_v31, %v3704_v38 }
 0x106   :  { %v5415_v2 = vpop.f32.mrf.mxu1  ;;  %v5449_v62 = vpop.f32.mrf.mxu3 }
 0x107   :  { %8097 = vst [vmem:[#allocation28_spill] sm:$0xff] %v5449_v62 }
 0x109   :  { %v5419_v24 = vpop.f32.mrf.mxu0 }
 0x10c   :  { %v5445_v59 = vpop.f32.mrf.mxu2 }
 0x10d   :  { %8096 = vst [vmem:[#allocation27_spill] sm:$0xff] %v5445_v59 }
 0x10e   :  { %v5447_v26 = vpop.f32.mrf.mxu1  ;;  %v5458_v45 = vpop.f32.mrf.mxu3 }
 0x10f   :  { %8099 = vst [vmem:[#allocation30_spill] sm:$0xff] %v5458_v45  ;;  %v3663_v45 = vor.u32 %v4585_v58, %v3662_v49  ;;  %v3682_v58 = vld [vmem:[%s7987_s0 + $0xf8] sm:$0xf] }
 0x111   :  { %v5451_v22 = vpop.f32.mrf.mxu0  ;;  %1943 = vmatmul.bf16.gmra.mxu1 %v3639_v61  ;;  %2157 = vmatmul.bf16.gmra.mxu2 %v3643_v25  ;;  %v3670_v61 = vld [vmem:[%s7987_s0 + $0xd8] sm:$0xf]  ;;  %v4586_v25 = vld [vmem:[%s7987_s0 + $0xe8] sm:$0xf0] }
 0x112   :  { %v3671_v14 = vor.u32 %v4586_v25, %v3670_v61  ;;  %v4590_v61 = vld [vmem:[%s7987_s0 + $0x108] sm:$0xf0]  ;;  %v3690_v25 = vld [vmem:[%s7987_s0 + $0x100] sm:$0xf] }
 0x113   :  { %2386 = vmatmul.bf16.gmra.mxu3 %v3707_v40 }
 0x114   :  { %4520 = vmatmul.msk.bf16.gmra.mxu0 %vm1577_vm0, %v3651_v5  ;;  %v5454_v28 = vpop.f32.mrf.mxu2  ;;  %v4582_v5 = vld [vmem:[%s7987_s0 + $0xcc] sm:$0xf] }
 0x115   :  { %8098 = vst [vmem:[#allocation29_spill] sm:$0xff] %v5454_v28  ;;  %v3659_v38 = vor.u32 %v4582_v5, %v3656_v48  ;;  %v4598_v5 = vld [vmem:[%s7987_s0 + $0x14c] sm:$0xf]  ;;  %v3724_v48 = vld [vmem:[%s7987_s0 + $0x15c] sm:$0xf0] }
 0x116   :  { %v5456_v7 = vpop.f32.mrf.mxu1  ;;  %v5490_v8 = vpop.f32.mrf.mxu3  ;;  %v3727_v49 = vor.u32 %v4598_v5, %v3724_v48 }
 0x117   :  { %8101 = vst [vmem:[#allocation32_spill] sm:$0xff] %v5490_v8 }
 0x119   :  { %v5460_v41 = vpop.f32.mrf.mxu0 }
 0x11c   :  { %v5486_v31 = vpop.f32.mrf.mxu2 }
 0x11d   :  { %8100 = vst [vmem:[#allocation31_spill] sm:$0xff] %v5486_v31 }
 0x11e   :  { %v5488_v62 = vpop.f32.mrf.mxu1  ;;  %v5499_v36 = vpop.f32.mrf.mxu3 }
 0x11f   :  { %8103 = vst [vmem:[#allocation34_spill] sm:$0xff] %v5499_v36  ;;  %v3683_v36 = vor.u32 %v4590_v61, %v3682_v58  ;;  %v3696_v58 = vld [vmem:[%s7987_s0 + $0x12c] sm:$0xf0]  ;;  %v3702_v61 = vld [vmem:[%s7987_s0 + $0x120] sm:$0xf] }
 0x121   :  { %v5492_v56 = vpop.f32.mrf.mxu0  ;;  %1948 = vmatmul.bf16.gmra.mxu1 %v3659_v38  ;;  %2162 = vmatmul.bf16.gmra.mxu2 %v3663_v45  ;;  %v3676_v45 = vld [vmem:[%s7987_s0 + $0x104] sm:$0xf0]  ;;  %v4591_v38 = vld [vmem:[%s7987_s0 + $0x110] sm:$0xf0] }
 0x123   :  { %2391 = vmatmul.bf16.gmra.mxu3 %v3727_v49 }
 0x124   :  { %4521 = vmatmul.msk.bf16.gmra.mxu0 %vm1577_vm0, %v3671_v14  ;;  %v5495_v40 = vpop.f32.mrf.mxu2  ;;  %v4587_v14 = vld [vmem:[%s7987_s0 + $0xf4] sm:$0xf] }
 0x125   :  { %8102 = vst [vmem:[#allocation33_spill] sm:$0xff] %v5495_v40  ;;  %v3679_v48 = vor.u32 %v4587_v14, %v3676_v45  ;;  %v3691_v40 = vor.u32 %v4591_v38, %v3690_v25  ;;  %v4603_v14 = vld [vmem:[%s7987_s0 + $0x174] sm:$0xf]  ;;  %v3744_v45 = vld [vmem:[%s7987_s0 + $0x184] sm:$0xf0] }
 0x126   :  { %v5497_v52 = vpop.f32.mrf.mxu1  ;;  %v2352_v31 = vpop.f32.mrf.mxu3  ;;  %v4595_v25 = vld [vmem:[%s7987_s0 + $0x130] sm:$0xf0]  ;;  %v3710_v38 = vld [vmem:[%s7987_s0 + $0x128] sm:$0xf] }
 0x129   :  { %v5501_v32 = vpop.f32.mrf.mxu0 }
 0x12c   :  { %v5527_v5 = vpop.f32.mrf.mxu2 }
 0x12d   :  { %8104 = vst [vmem:[#allocation35_spill] sm:$0xff] %v5527_v5 }
 0x12e   :  { %v5529_v8 = vpop.f32.mrf.mxu1  ;;  %v5538_v1 = vpop.f32.mrf.mxu3 }
 0x12f   :  { %8105 = vst [vmem:[#allocation36_spill] sm:$0xff] %v5529_v8 }
 0x131   :  { %v5531_v28 = vpop.f32.mrf.mxu0  ;;  %1953 = vmatmul.bf16.gmra.mxu1 %v3679_v48  ;;  %2167 = vmatmul.bf16.gmra.mxu2 %v3683_v36  ;;  %v4592_v36 = vld [vmem:[%s7987_s0 + $0x11c] sm:$0xf] }
 0x132   :  { %v4596_v48 = vld [vmem:[%s7987_s0 + $0x138] sm:$0xf0] }
 0x133   :  { %v3711_v20 = vor.u32 %v4596_v48, %v3710_v38  ;;  %v4600_v38 = vld [vmem:[%s7987_s0 + $0x158] sm:$0xf0]  ;;  %v3730_v48 = vld [vmem:[%s7987_s0 + $0x150] sm:$0xf] }
 0x134   :  { %4522 = vmatmul.msk.bf16.gmra.mxu0 %vm1577_vm0, %v3691_v40  ;;  %v5534_v49 = vpop.f32.mrf.mxu2  ;;  %v3747_v40 = vor.u32 %v4603_v14, %v3744_v45  ;;  %v3699_v45 = vor.u32 %v4592_v36, %v3696_v58  ;;  %v4608_v36 = vld [vmem:[%s7987_s0 + $0x19c] sm:$0xf]  ;;  %v3764_v58 = vld [vmem:[%s7987_s0 + $0x1ac] sm:$0xf0] }
 0x135   :  { %8106 = vst [vmem:[#allocation37_spill] sm:$0xff] %v5534_v49  ;;  %v3703_v49 = vor.u32 %v4595_v25, %v3702_v61  ;;  %v3716_v61 = vld [vmem:[%s7987_s0 + $0x154] sm:$0xf0]  ;;  %v3722_v25 = vld [vmem:[%s7987_s0 + $0x148] sm:$0xf] }
 0x136   :  { %v5536_v59 = vpop.f32.mrf.mxu1  ;;  %2396 = vmatmul.bf16.gmra.mxu3 %v3747_v40  ;;  %v5570_v0 = vpop.f32.mrf.mxu3 }
 0x137   :  { %8107 = vst [vmem:[#allocation38_spill] sm:$0xff] %v5536_v59 }
 0x139   :  { %v5540_v51 = vpop.f32.mrf.mxu0 }
 0x13c   :  { %v5566_v14 = vpop.f32.mrf.mxu2 }
 0x13d   :  { %8108 = vst [vmem:[#allocation39_spill] sm:$0xff] %v5566_v14 }
 0x13e   :  { %v5568_v5 = vpop.f32.mrf.mxu1  ;;  %v5579_v40 = vpop.f32.mrf.mxu3 }
 0x13f   :  { %8109 = vst [vmem:[#allocation40_spill] sm:$0xff] %v5568_v5 }
 0x141   :  { %v5572_v43 = vpop.f32.mrf.mxu0  ;;  %1958 = vmatmul.bf16.gmra.mxu1 %v3699_v45  ;;  %2172 = vmatmul.bf16.gmra.mxu2 %v3703_v49  ;;  %v3767_v49 = vor.u32 %v4608_v36, %v3764_v58  ;;  %v4601_v45 = vld [vmem:[%s7987_s0 + $0x160] sm:$0xf0] }
 0x142   :  { %v3731_v54 = vor.u32 %v4601_v45, %v3730_v48 }
 0x144   :  { %4523 = vmatmul.msk.bf16.gmra.mxu0 %vm1577_vm0, %v3711_v20  ;;  %v5575_v29 = vpop.f32.mrf.mxu2  ;;  %v4597_v20 = vld [vmem:[%s7987_s0 + $0x144] sm:$0xf] }
 0x145   :  { %8110 = vst [vmem:[#allocation41_spill] sm:$0xff] %v5575_v29  ;;  %v3719_v58 = vor.u32 %v4597_v20, %v3716_v61  ;;  %v3723_v29 = vor.u32 %v4600_v38, %v3722_v25  ;;  %v4613_v20 = vld [vmem:[%s7987_s0 + $0x1c4] sm:$0xf]  ;;  %v3784_v61 = vld [vmem:[%s7987_s0 + $0x1d4] sm:$0xf0] }
 0x146   :  { %v5577_v11 = vpop.f32.mrf.mxu1  ;;  %2401 = vmatmul.bf16.gmra.mxu3 %v3767_v49  ;;  %v5609_v47 = vpop.f32.mrf.mxu3 }
 0x147   :  { %8111 = vst [vmem:[#allocation42_spill] sm:$0xff] %v5577_v11 }
 0x149   :  { %v5581_v14 = vpop.f32.mrf.mxu0 }
 0x14c   :  { %v5607_v36 = vpop.f32.mrf.mxu2 }
 0x14d   :  { %8112 = vst [vmem:[#allocation43_spill] sm:$0xff] %v5607_v36 }
 0x14e   :  { %v1924_v3 = vpop.f32.mrf.mxu1  ;;  %v5613_v59 = vpop.f32.mrf.mxu3 }
 0x14f   :  { %v1925_v27 = vadd.f32 %v1924_v3, %v5166_v13  ;;  %v4602_v13 = vld [vmem:[%s7987_s0 + $0x16c] sm:$0xf]  ;;  %v4605_v3 = vld [vmem:[%s7987_s0 + $0x180] sm:$0xf0] }
 0x151   :  { %v2566_v34 = vpop.f32.mrf.mxu0  ;;  %1963 = vmatmul.bf16.gmra.mxu1 %v3719_v58  ;;  %2177 = vmatmul.bf16.gmra.mxu2 %v3723_v29 }
 0x154   :  { %4524 = vmatmul.msk.bf16.gmra.mxu0 %vm1577_vm0, %v3731_v54  ;;  %v2138_v15 = vpop.f32.mrf.mxu2  ;;  %v3742_v54 = vld [vmem:[%s7987_s0 + $0x170] sm:$0xf] }
 0x155   :  { %v2139_v11 = vadd.f32 %v2138_v15, %v1925_v27  ;;  %v3787_v15 = vor.u32 %v4613_v20, %v3784_v61  ;;  %v3736_v27 = vld [vmem:[%s7987_s0 + $0x17c] sm:$0xf0]  ;;  %v3743_v45 = vor.u32 %v4605_v3, %v3742_v54 }
 0x156   :  { %v1926_v5 = vpop.f32.mrf.mxu1  ;;  %v3739_v48 = vor.u32 %v4602_v13, %v3736_v27  ;;  %v5642_v20 = vpop.f32.mrf.mxu3 }
 0x157   :  { %v2353_v49 = vadd.f32 %v2352_v31, %v2139_v11  ;;  %v3750_v11 = vld [vmem:[%s7987_s0 + $0x178] sm:$0xf]  ;;  %v4606_v31 = vld [vmem:[%s7987_s0 + $0x188] sm:$0xf0]  ;;  %2406 = vmatmul.bf16.gmra.mxu3 %v3787_v15 }
 0x159   :  { %v2568_v36 = vpop.f32.mrf.mxu0  ;;  %v5621_v29 = vadd.f32 %v2566_v34, %v2353_v49  ;;  %v1927_v34 = vadd.f32 %v1926_v5, %v5175_v17  ;;  %v3751_v49 = vor.u32 %v4606_v31, %v3750_v11  ;;  %v4610_v11 = vld [vmem:[%s7987_s0 + $0x1a8] sm:$0xf0] }
 0x15b   :  { %8113 = vst [vmem:[#allocation44_spill] sm:$0xff] %v5621_v29 }
 0x15c   :  { %v2140_v25 = vpop.f32.mrf.mxu2 }
 0x15d   :  { %v2141_v38 = vadd.f32 %v2140_v25, %v1927_v34  ;;  %v3770_v25 = vld [vmem:[%s7987_s0 + $0x1a0] sm:$0xf] }
 0x15e   :  { %v1929_v58 = vpop.f32.mrf.mxu1  ;;  %v5649_v13 = vpop.f32.mrf.mxu3 }
 0x15f   :  { %v2355_v61 = vadd.f32 %v5538_v1, %v2141_v38  ;;  %v1930_v29 = vadd.f32 %v1929_v58, %v5207_v33  ;;  %v4618_v1 = vld [vmem:[%s7987_s0 + $0x1ec] sm:$0xf]  ;;  %v4607_v33 = vld [vmem:[%s7987_s0 + $0x194] sm:$0xf] }
 0x160   :  { %v4611_v38 = vld [vmem:[%s7987_s0 + $0x1b0] sm:$0xf0] }
 0x161   :  { %v2571_v17 = vpop.f32.mrf.mxu0  ;;  %v5645_v5 = vadd.f32 %v2568_v36, %v2355_v61  ;;  %1968 = vmatmul.bf16.gmra.mxu1 %v3739_v48  ;;  %2182 = vmatmul.bf16.gmra.mxu2 %v3743_v45  ;;  %v3804_v36 = vld [vmem:[%s7987_s0 + $0x1fc] sm:$0xf0] }
 0x163   :  { %8114 = vst [vmem:[#allocation45_spill] sm:$0xff] %v5645_v5 }
 0x164   :  { %4525 = vmatmul.msk.bf16.gmra.mxu0 %vm1577_vm0, %v3751_v49  ;;  %v2143_v15 = vpop.f32.mrf.mxu2 }
 0x165   :  { %v2144_v8 = vadd.f32 %v2143_v15, %v1930_v29  ;;  %v3807_v29 = vor.u32 %v4618_v1, %v3804_v36 }
 0x166   :  { %v1931_v34 = vpop.f32.mrf.mxu1  ;;  %v5679_v15 = vpop.f32.mrf.mxu3 }
 0x167   :  { %v2358_v27 = vadd.f32 %v5570_v0, %v2144_v8  ;;  %v3756_v8 = vld [vmem:[%s7987_s0 + $0x1a4] sm:$0xf0]  ;;  %v3762_v0 = vld [vmem:[%s7987_s0 + $0x198] sm:$0xf]  ;;  %v1932_v31 = vadd.f32 %v1931_v34, %v5215_v37  ;;  %2411 = vmatmul.bf16.gmra.mxu3 %v3807_v29 }
 0x168   :  { %v3759_v58 = vor.u32 %v4607_v33, %v3756_v8  ;;  %v3763_v49 = vor.u32 %v4610_v11, %v3762_v0 }
 0x169   :  { %v2573_v54 = vpop.f32.mrf.mxu0  ;;  %v5658_v3 = vadd.f32 %v2571_v17, %v2358_v27  ;;  %v3771_v17 = vor.u32 %v4611_v38, %v3770_v25  ;;  %v3782_v38 = vld [vmem:[%s7987_s0 + $0x1c0] sm:$0xf] }
 0x16b   :  { %8115 = vst [vmem:[#allocation46_spill] sm:$0xff] %v5658_v3 }
 0x16c   :  { %v2145_v48 = vpop.f32.mrf.mxu2 }
 0x16d   :  { %v2146_v45 = vadd.f32 %v2145_v48, %v1932_v31  ;;  %v4615_v48 = vld [vmem:[%s7987_s0 + $0x1d0] sm:$0xf0] }
 0x16e   :  { %v1934_v61 = vpop.f32.mrf.mxu1  ;;  %v5686_v33 = vpop.f32.mrf.mxu3 }
 0x16f   :  { %v2360_v27 = vadd.f32 %v5579_v40, %v2146_v45  ;;  %v1935_v1 = vadd.f32 %v1934_v61, %v5247_v53  ;;  %v4623_v40 = vld [vmem:[%s7987_s0 + $0x214] sm:$0xf]  ;;  %v4612_v53 = vld [vmem:[%s7987_s0 + $0x1bc] sm:$0xf] }
 0x171   :  { %v2576_v37 = vpop.f32.mrf.mxu0  ;;  %v5682_v34 = vadd.f32 %v2573_v54, %v2360_v27  ;;  %1973 = vmatmul.bf16.gmra.mxu1 %v3759_v58  ;;  %2187 = vmatmul.bf16.gmra.mxu2 %v3763_v49  ;;  %v3824_v54 = vld [vmem:[%s7987_s0 + $0x224] sm:$0xf0]  ;;  %v4616_v49 = vld [vmem:[%s7987_s0 + $0x1d8] sm:$0xf0] }
 0x172   :  { %v3827_v25 = vor.u32 %v4623_v40, %v3824_v54  ;;  %v3790_v58 = vld [vmem:[%s7987_s0 + $0x1c8] sm:$0xf] }
 0x173   :  { %8116 = vst [vmem:[#allocation47_spill] sm:$0xff] %v5682_v34 }
 0x174   :  { %4526 = vmatmul.msk.bf16.gmra.mxu0 %vm1577_vm0, %v3771_v17  ;;  %v2148_v36 = vpop.f32.mrf.mxu2 }
 0x175   :  { %v2149_v29 = vadd.f32 %v2148_v36, %v1935_v1  ;;  %v3791_v36 = vor.u32 %v4616_v49, %v3790_v58  ;;  %v3802_v49 = vld [vmem:[%s7987_s0 + $0x1e8] sm:$0xf] }
 0x176   :  { %v1936_v31 = vpop.f32.mrf.mxu1 }
 0x177   :  { %v2363_v8 = vadd.f32 %v5609_v47, %v2149_v29  ;;  %v3776_v47 = vld [vmem:[%s7987_s0 + $0x1cc] sm:$0xf0]  ;;  %v1937_v45 = vadd.f32 %v1936_v31, %v5255_v57  ;;  %2416 = vmatmul.bf16.gmra.mxu3 %v3827_v25  ;;  %v5716_v29 = vpop.f32.mrf.mxu3 }
 0x178   :  { %v3779_v27 = vor.u32 %v4612_v53, %v3776_v47 }
 0x179   :  { %v2578_v0 = vpop.f32.mrf.mxu0  ;;  %v5695_v11 = vadd.f32 %v2576_v37, %v2363_v8  ;;  %v3783_v37 = vor.u32 %v4615_v48, %v3782_v38 }
 0x17b   :  { %8117 = vst [vmem:[#allocation48_spill] sm:$0xff] %v5695_v11 }
 0x17c   :  { %v2150_v61 = vpop.f32.mrf.mxu2 }
 0x17d   :  { %v2151_v17 = vadd.f32 %v2150_v61, %v1937_v45  ;;  %v4620_v61 = vld [vmem:[%s7987_s0 + $0x1f8] sm:$0xf0] }
 0x17e   :  { %v1939_v1 = vpop.f32.mrf.mxu1 }
 0x17f   :  { %v2365_v8 = vadd.f32 %v5613_v59, %v2151_v17  ;;  %v1940_v40 = vadd.f32 %v1939_v1, %v5287_v9  ;;  %v5723_v53 = vpop.f32.mrf.mxu3  ;;  %v4628_v59 = vld [vmem:[%s7987_s0 + $0x23c] sm:$0xf]  ;;  %v4617_v9 = vld [vmem:[%s7987_s0 + $0x1e4] sm:$0xf] }
 0x181   :  { %v2581_v57 = vpop.f32.mrf.mxu0  ;;  %v5719_v31 = vadd.f32 %v2578_v0, %v2365_v8  ;;  %1978 = vmatmul.bf16.gmra.mxu1 %v3779_v27  ;;  %2192 = vmatmul.bf16.gmra.mxu2 %v3783_v37  ;;  %v3844_v0 = vld [vmem:[%s7987_s0 + $0x24c] sm:$0xf0]  ;;  %v4621_v37 = vld [vmem:[%s7987_s0 + $0x200] sm:$0xf0] }
 0x182   :  { %v3847_v58 = vor.u32 %v4628_v59, %v3844_v0  ;;  %v3810_v27 = vld [vmem:[%s7987_s0 + $0x1f0] sm:$0xf] }
 0x183   :  { %8118 = vst [vmem:[#allocation49_spill] sm:$0xff] %v5719_v31 }
 0x184   :  { %4527 = vmatmul.msk.bf16.gmra.mxu0 %vm1577_vm0, %v3791_v36  ;;  %v2153_v54 = vpop.f32.mrf.mxu2 }
 0x185   :  { %v2154_v25 = vadd.f32 %v2153_v54, %v1940_v40  ;;  %v3811_v54 = vor.u32 %v4621_v37, %v3810_v27  ;;  %v3822_v37 = vld [vmem:[%s7987_s0 + $0x210] sm:$0xf] }
 0x186   :  { %v1941_v45 = vpop.f32.mrf.mxu1 }
 0x187   :  { %v2368_v47 = vadd.f32 %v5642_v20, %v2154_v25  ;;  %v3796_v20 = vld [vmem:[%s7987_s0 + $0x1f4] sm:$0xf0]  ;;  %v1942_v17 = vadd.f32 %v1941_v45, %v5296_v18  ;;  %2421 = vmatmul.bf16.gmra.mxu3 %v3847_v58  ;;  %v5753_v25 = vpop.f32.mrf.mxu3 }
 0x188   :  { %v3799_v8 = vor.u32 %v4617_v9, %v3796_v20 }
 0x189   :  { %v2583_v38 = vpop.f32.mrf.mxu0  ;;  %v5732_v48 = vadd.f32 %v2581_v57, %v2368_v47  ;;  %v3803_v57 = vor.u32 %v4620_v61, %v3802_v49 }
 0x18b   :  { %8119 = vst [vmem:[#allocation50_spill] sm:$0xff] %v5732_v48 }
 0x18c   :  { %v2155_v1 = vpop.f32.mrf.mxu2 }
 0x18d   :  { %v2156_v36 = vadd.f32 %v2155_v1, %v1942_v17  ;;  %v4625_v1 = vld [vmem:[%s7987_s0 + $0x220] sm:$0xf0] }
 0x18e   :  { %v1944_v40 = vpop.f32.mrf.mxu1 }
 0x18f   :  { %v2370_v47 = vadd.f32 %v5649_v13, %v2156_v36  ;;  %v1945_v59 = vadd.f32 %v1944_v40, %v5328_v42  ;;  %v5760_v9 = vpop.f32.mrf.mxu3  ;;  %v4633_v13 = vld [vmem:[%s7987_s0 + $0x264] sm:$0xf]  ;;  %v4622_v42 = vld [vmem:[%s7987_s0 + $0x20c] sm:$0xf] }
 0x191   :  { %v2586_v18 = vpop.f32.mrf.mxu0  ;;  %v5756_v45 = vadd.f32 %v2583_v38, %v2370_v47  ;;  %1983 = vmatmul.bf16.gmra.mxu1 %v3799_v8  ;;  %2197 = vmatmul.bf16.gmra.mxu2 %v3803_v57  ;;  %v3864_v38 = vld [vmem:[%s7987_s0 + $0x274] sm:$0xf0]  ;;  %v4626_v57 = vld [vmem:[%s7987_s0 + $0x228] sm:$0xf0] }
 0x192   :  { %v3867_v27 = vor.u32 %v4633_v13, %v3864_v38  ;;  %v3830_v8 = vld [vmem:[%s7987_s0 + $0x218] sm:$0xf] }
 0x193   :  { %8120 = vst [vmem:[#allocation51_spill] sm:$0xff] %v5756_v45 }
 0x194   :  { %4528 = vmatmul.msk.bf16.gmra.mxu0 %vm1577_vm0, %v3811_v54  ;;  %v2158_v0 = vpop.f32.mrf.mxu2 }
 0x195   :  { %v2159_v58 = vadd.f32 %v2158_v0, %v1945_v59  ;;  %v3831_v0 = vor.u32 %v4626_v57, %v3830_v8  ;;  %v3842_v57 = vld [vmem:[%s7987_s0 + $0x238] sm:$0xf] }
 0x196   :  { %v1946_v17 = vpop.f32.mrf.mxu1 }
 0x197   :  { %v2373_v20 = vadd.f32 %v5679_v15, %v2159_v58  ;;  %v3816_v15 = vld [vmem:[%s7987_s0 + $0x21c] sm:$0xf0]  ;;  %v1947_v36 = vadd.f32 %v1946_v17, %v5337_v46  ;;  %2426 = vmatmul.bf16.gmra.mxu3 %v3867_v27  ;;  %v5790_v58 = vpop.f32.mrf.mxu3 }
 0x198   :  { %v3819_v47 = vor.u32 %v4622_v42, %v3816_v15 }
 0x199   :  { %v2588_v49 = vpop.f32.mrf.mxu0  ;;  %v5769_v61 = vadd.f32 %v2586_v18, %v2373_v20  ;;  %v3823_v18 = vor.u32 %v4625_v1, %v3822_v37 }
 0x19c   :  { %v2160_v40 = vpop.f32.mrf.mxu2 }
 0x19d   :  { %v2161_v54 = vadd.f32 %v2160_v40, %v1947_v36  ;;  %v4630_v40 = vld [vmem:[%s7987_s0 + $0x248] sm:$0xf0] }
 0x19e   :  { %v1949_v59 = vpop.f32.mrf.mxu1 }
 0x19f   :  { %v2375_v20 = vadd.f32 %v5686_v33, %v2161_v54  ;;  %v1950_v13 = vadd.f32 %v1949_v59, %v5369_v19  ;;  %v5797_v42 = vpop.f32.mrf.mxu3  ;;  %v4638_v33 = vld [vmem:[%s7987_s0 + $0x28c] sm:$0xf]  ;;  %v4627_v19 = vld [vmem:[%s7987_s0 + $0x234] sm:$0xf] }
 0x1a1   :  { %v2591_v46 = vpop.f32.mrf.mxu0  ;;  %v5793_v17 = vadd.f32 %v2588_v49, %v2375_v20  ;;  %1988 = vmatmul.bf16.gmra.mxu1 %v3819_v47  ;;  %2202 = vmatmul.bf16.gmra.mxu2 %v3823_v18  ;;  %v3884_v49 = vld [vmem:[%s7987_s0 + $0x29c] sm:$0xf0]  ;;  %v4631_v18 = vld [vmem:[%s7987_s0 + $0x250] sm:$0xf0] }
 0x1a2   :  { %v3887_v8 = vor.u32 %v4638_v33, %v3884_v49  ;;  %v3850_v47 = vld [vmem:[%s7987_s0 + $0x240] sm:$0xf] }
 0x1a4   :  { %4529 = vmatmul.msk.bf16.gmra.mxu0 %vm1577_vm0, %v3831_v0  ;;  %v2163_v38 = vpop.f32.mrf.mxu2 }
 0x1a5   :  { %v2164_v27 = vadd.f32 %v2163_v38, %v1950_v13  ;;  %v3851_v38 = vor.u32 %v4631_v18, %v3850_v47  ;;  %v3862_v18 = vld [vmem:[%s7987_s0 + $0x260] sm:$0xf] }
 0x1a6   :  { %v1951_v36 = vpop.f32.mrf.mxu1 }
 0x1a7   :  { %v2378_v15 = vadd.f32 %v5716_v29, %v2164_v27  ;;  %v3836_v29 = vld [vmem:[%s7987_s0 + $0x244] sm:$0xf0]  ;;  %v1952_v54 = vadd.f32 %v1951_v36, %v5378_v23  ;;  %2431 = vmatmul.bf16.gmra.mxu3 %v3887_v8  ;;  %v5827_v27 = vpop.f32.mrf.mxu3 }
 0x1a8   :  { %v3839_v20 = vor.u32 %v4627_v19, %v3836_v29 }
 0x1a9   :  { %v2593_v37 = vpop.f32.mrf.mxu0  ;;  %v5806_v1 = vadd.f32 %v2591_v46, %v2378_v15  ;;  %v3843_v46 = vor.u32 %v4630_v40, %v3842_v57 }
 0x1ac   :  { %v2165_v59 = vpop.f32.mrf.mxu2 }
 0x1ad   :  { %v2166_v0 = vadd.f32 %v2165_v59, %v1952_v54  ;;  %v4635_v59 = vld [vmem:[%s7987_s0 + $0x270] sm:$0xf0] }
 0x1ae   :  { %v1954_v13 = vpop.f32.mrf.mxu1 }
 0x1af   :  { %v2380_v15 = vadd.f32 %v5723_v53, %v2166_v0  ;;  %v1955_v33 = vadd.f32 %v1954_v13, %v5410_v63  ;;  %v5834_v19 = vpop.f32.mrf.mxu3  ;;  %v4643_v53 = vld [vmem:[%s7987_s0 + $0x2b4] sm:$0xf]  ;;  %v4632_v63 = vld [vmem:[%s7987_s0 + $0x25c] sm:$0xf] }
 0x1b1   :  { %v2596_v23 = vpop.f32.mrf.mxu0  ;;  %v5830_v36 = vadd.f32 %v2593_v37, %v2380_v15  ;;  %1993 = vmatmul.bf16.gmra.mxu1 %v3839_v20  ;;  %2207 = vmatmul.bf16.gmra.mxu2 %v3843_v46  ;;  %v3904_v37 = vld [vmem:[%s7987_s0 + $0x2c4] sm:$0xf0]  ;;  %v4636_v46 = vld [vmem:[%s7987_s0 + $0x278] sm:$0xf0] }
 0x1b2   :  { %v3907_v47 = vor.u32 %v4643_v53, %v3904_v37  ;;  %v3870_v20 = vld [vmem:[%s7987_s0 + $0x268] sm:$0xf] }
 0x1b4   :  { %4530 = vmatmul.msk.bf16.gmra.mxu0 %vm1577_vm0, %v3851_v38  ;;  %v2168_v49 = vpop.f32.mrf.mxu2 }
 0x1b5   :  { %v2169_v8 = vadd.f32 %v2168_v49, %v1955_v33  ;;  %v3871_v49 = vor.u32 %v4636_v46, %v3870_v20  ;;  %v3882_v46 = vld [vmem:[%s7987_s0 + $0x288] sm:$0xf] }
 0x1b6   :  { %v1956_v54 = vpop.f32.mrf.mxu1 }
 0x1b7   :  { %v2383_v29 = vadd.f32 %v5753_v25, %v2169_v8  ;;  %v3856_v25 = vld [vmem:[%s7987_s0 + $0x26c] sm:$0xf0]  ;;  %v1957_v0 = vadd.f32 %v1956_v54, %v5419_v24  ;;  %2436 = vmatmul.bf16.gmra.mxu3 %v3907_v47 }
 0x1b8   :  { %v3859_v15 = vor.u32 %v4632_v63, %v3856_v25 }
 0x1b9   :  { %v2598_v57 = vpop.f32.mrf.mxu0  ;;  %v5843_v40 = vadd.f32 %v2596_v23, %v2383_v29  ;;  %v3863_v23 = vor.u32 %v4635_v59, %v3862_v18  ;;  %v5864_v8 = vpop.f32.mrf.mxu3 }
 0x1bc   :  { %v2170_v13 = vpop.f32.mrf.mxu2 }
 0x1bd   :  { %v2171_v38 = vadd.f32 %v2170_v13, %v1957_v0  ;;  %v4640_v13 = vld [vmem:[%s7987_s0 + $0x298] sm:$0xf0] }
 0x1be   :  { %v1959_v33 = vpop.f32.mrf.mxu1 }
 0x1bf   :  { %v2385_v29 = vadd.f32 %v5760_v9, %v2171_v38  ;;  %v1960_v53 = vadd.f32 %v1959_v33, %v5451_v22  ;;  %v4648_v9 = vld [vmem:[%s7987_s0 + $0x2dc] sm:$0xf]  ;;  %v4637_v22 = vld [vmem:[%s7987_s0 + $0x284] sm:$0xf] }
 0x1c1   :  { %v2601_v24 = vpop.f32.mrf.mxu0  ;;  %v5867_v54 = vadd.f32 %v2598_v57, %v2385_v29  ;;  %1998 = vmatmul.bf16.gmra.mxu1 %v3859_v15  ;;  %2212 = vmatmul.bf16.gmra.mxu2 %v3863_v23  ;;  %v5871_v63 = vpop.f32.mrf.mxu3  ;;  %v3924_v57 = vld [vmem:[%s7987_s0 + $0x2ec] sm:$0xf0]  ;;  %v4641_v23 = vld [vmem:[%s7987_s0 + $0x2a0] sm:$0xf0] }
 0x1c2   :  { %v3927_v20 = vor.u32 %v4648_v9, %v3924_v57  ;;  %v3890_v15 = vld [vmem:[%s7987_s0 + $0x290] sm:$0xf] }
 0x1c4   :  { %4531 = vmatmul.msk.bf16.gmra.mxu0 %vm1577_vm0, %v3871_v49  ;;  %v2173_v37 = vpop.f32.mrf.mxu2 }
 0x1c5   :  { %v2174_v47 = vadd.f32 %v2173_v37, %v1960_v53  ;;  %v3891_v37 = vor.u32 %v4641_v23, %v3890_v15  ;;  %v3902_v23 = vld [vmem:[%s7987_s0 + $0x2b0] sm:$0xf] }
 0x1c6   :  { %v1961_v0 = vpop.f32.mrf.mxu1 }
 0x1c7   :  { %v2388_v25 = vadd.f32 %v5790_v58, %v2174_v47  ;;  %v3876_v58 = vld [vmem:[%s7987_s0 + $0x294] sm:$0xf0]  ;;  %v1962_v38 = vadd.f32 %v1961_v0, %v5460_v41  ;;  %2441 = vmatmul.bf16.gmra.mxu3 %v3927_v20 }
 0x1c8   :  { %v3879_v29 = vor.u32 %v4637_v22, %v3876_v58 }
 0x1c9   :  { %v2603_v18 = vpop.f32.mrf.mxu0  ;;  %v5880_v59 = vadd.f32 %v2601_v24, %v2388_v25  ;;  %v3883_v24 = vor.u32 %v4640_v13, %v3882_v46  ;;  %v5901_v47 = vpop.f32.mrf.mxu3 }
 0x1cc   :  { %v2175_v33 = vpop.f32.mrf.mxu2 }
 0x1cd   :  { %v2176_v49 = vadd.f32 %v2175_v33, %v1962_v38  ;;  %v4645_v33 = vld [vmem:[%s7987_s0 + $0x2c0] sm:$0xf0] }
 0x1ce   :  { %v1964_v53 = vpop.f32.mrf.mxu1 }
 0x1cf   :  { %v2390_v25 = vadd.f32 %v5797_v42, %v2176_v49  ;;  %v1965_v9 = vadd.f32 %v1964_v53, %v5492_v56  ;;  %v4653_v42 = vld [vmem:[%s7987_s0 + $0x304] sm:$0xf]  ;;  %v4642_v56 = vld [vmem:[%s7987_s0 + $0x2ac] sm:$0xf] }
 0x1d1   :  { %v2606_v41 = vpop.f32.mrf.mxu0  ;;  %v5904_v0 = vadd.f32 %v2603_v18, %v2390_v25  ;;  %2003 = vmatmul.bf16.gmra.mxu1 %v3879_v29  ;;  %2217 = vmatmul.bf16.gmra.mxu2 %v3883_v24  ;;  %v5908_v22 = vpop.f32.mrf.mxu3  ;;  %v3944_v18 = vld [vmem:[%s7987_s0 + $0x314] sm:$0xf0]  ;;  %v4646_v24 = vld [vmem:[%s7987_s0 + $0x2c8] sm:$0xf0] }
 0x1d2   :  { %v3947_v15 = vor.u32 %v4653_v42, %v3944_v18  ;;  %v3910_v29 = vld [vmem:[%s7987_s0 + $0x2b8] sm:$0xf] }
 0x1d4   :  { %4532 = vmatmul.msk.bf16.gmra.mxu0 %vm1577_vm0, %v3891_v37  ;;  %v2178_v57 = vpop.f32.mrf.mxu2 }
 0x1d5   :  { %v2179_v20 = vadd.f32 %v2178_v57, %v1965_v9  ;;  %v3911_v57 = vor.u32 %v4646_v24, %v3910_v29  ;;  %v3922_v24 = vld [vmem:[%s7987_s0 + $0x2d8] sm:$0xf] }
 0x1d6   :  { %v1966_v38 = vpop.f32.mrf.mxu1 }
 0x1d7   :  { %v2393_v58 = vadd.f32 %v5827_v27, %v2179_v20  ;;  %v3896_v27 = vld [vmem:[%s7987_s0 + $0x2bc] sm:$0xf0]  ;;  %v1967_v49 = vadd.f32 %v1966_v38, %v5501_v32  ;;  %2446 = vmatmul.bf16.gmra.mxu3 %v3947_v15 }
 0x1d8   :  { %v3899_v25 = vor.u32 %v4642_v56, %v3896_v27 }
 0x1d9   :  { %v2608_v46 = vpop.f32.mrf.mxu0  ;;  %v5917_v13 = vadd.f32 %v2606_v41, %v2393_v58  ;;  %v3903_v41 = vor.u32 %v4645_v33, %v3902_v23 }
 0x1da   :  { %v5938_v20 = vpop.f32.mrf.mxu3 }
 0x1db   :  { %8121 = vst [vmem:[#allocation52_spill] sm:$0xff] %v5917_v13 }
 0x1dc   :  { %v2180_v53 = vpop.f32.mrf.mxu2 }
 0x1dd   :  { %v2181_v37 = vadd.f32 %v2180_v53, %v1967_v49  ;;  %v4650_v53 = vld [vmem:[%s7987_s0 + $0x2e8] sm:$0xf0] }
 0x1de   :  { %v1969_v9 = vpop.f32.mrf.mxu1 }
 0x1df   :  { %v2395_v58 = vadd.f32 %v5834_v19, %v2181_v37  ;;  %v1970_v42 = vadd.f32 %v1969_v9, %v5531_v28  ;;  %v4658_v19 = vld [vmem:[%s7987_s0 + $0x32c] sm:$0xf]  ;;  %v4647_v28 = vld [vmem:[%s7987_s0 + $0x2d4] sm:$0xf] }
 0x1e1   :  { %v2611_v32 = vpop.f32.mrf.mxu0  ;;  %v5941_v38 = vadd.f32 %v2608_v46, %v2395_v58  ;;  %2008 = vmatmul.bf16.gmra.mxu1 %v3899_v25  ;;  %2222 = vmatmul.bf16.gmra.mxu2 %v3903_v41  ;;  %v3964_v46 = vld [vmem:[%s7987_s0 + $0x33c] sm:$0xf0]  ;;  %v4651_v41 = vld [vmem:[%s7987_s0 + $0x2f0] sm:$0xf0] }
 0x1e2   :  { %v5945_v56 = vpop.f32.mrf.mxu3  ;;  %v3967_v29 = vor.u32 %v4658_v19, %v3964_v46  ;;  %v3930_v25 = vld [vmem:[%s7987_s0 + $0x2e0] sm:$0xf] }
 0x1e3   :  { %8122 = vst [vmem:[#allocation53_spill] sm:$0xff] %v5941_v38 }
 0x1e4   :  { %4533 = vmatmul.msk.bf16.gmra.mxu0 %vm1577_vm0, %v3911_v57  ;;  %v2183_v18 = vpop.f32.mrf.mxu2 }
 0x1e5   :  { %v2184_v15 = vadd.f32 %v2183_v18, %v1970_v42  ;;  %v3931_v18 = vor.u32 %v4651_v41, %v3930_v25  ;;  %v3942_v41 = vld [vmem:[%s7987_s0 + $0x300] sm:$0xf] }
 0x1e6   :  { %v1971_v49 = vpop.f32.mrf.mxu1 }
 0x1e7   :  { %v2398_v27 = vadd.f32 %v5864_v8, %v2184_v15  ;;  %v3916_v8 = vld [vmem:[%s7987_s0 + $0x2e4] sm:$0xf0]  ;;  %v1972_v37 = vadd.f32 %v1971_v49, %v5540_v51  ;;  %2451 = vmatmul.bf16.gmra.mxu3 %v3967_v29 }
 0x1e8   :  { %v3919_v58 = vor.u32 %v4647_v28, %v3916_v8 }
 0x1e9   :  { %v2613_v23 = vpop.f32.mrf.mxu0  ;;  %v5954_v33 = vadd.f32 %v2611_v32, %v2398_v27  ;;  %v3923_v32 = vor.u32 %v4650_v53, %v3922_v24 }
 0x1ea   :  { %v5975_v15 = vpop.f32.mrf.mxu3 }
 0x1eb   :  { %8123 = vst [vmem:[#allocation54_spill] sm:$0xff] %v5954_v33 }
 0x1ec   :  { %v2185_v9 = vpop.f32.mrf.mxu2 }
 0x1ed   :  { %v2186_v57 = vadd.f32 %v2185_v9, %v1972_v37  ;;  %v4655_v9 = vld [vmem:[%s7987_s0 + $0x310] sm:$0xf0] }
 0x1ee   :  { %v1974_v42 = vpop.f32.mrf.mxu1 }
 0x1ef   :  { %v2400_v27 = vadd.f32 %v5871_v63, %v2186_v57  ;;  %v1975_v19 = vadd.f32 %v1974_v42, %v5572_v43  ;;  %v4663_v63 = vld [vmem:[%s7987_s0 + $0x354] sm:$0xf]  ;;  %v4652_v43 = vld [vmem:[%s7987_s0 + $0x2fc] sm:$0xf] }
 0x1f1   :  { %v2616_v51 = vpop.f32.mrf.mxu0  ;;  %v5978_v49 = vadd.f32 %v2613_v23, %v2400_v27  ;;  %2013 = vmatmul.bf16.gmra.mxu1 %v3919_v58  ;;  %2227 = vmatmul.bf16.gmra.mxu2 %v3923_v32  ;;  %v3984_v23 = vld [vmem:[%s7987_s0 + $0x364] sm:$0xf0]  ;;  %v4656_v32 = vld [vmem:[%s7987_s0 + $0x318] sm:$0xf0] }
 0x1f2   :  { %v5982_v28 = vpop.f32.mrf.mxu3  ;;  %v3987_v25 = vor.u32 %v4663_v63, %v3984_v23  ;;  %v3950_v58 = vld [vmem:[%s7987_s0 + $0x308] sm:$0xf] }
 0x1f3   :  { %8124 = vst [vmem:[#allocation55_spill] sm:$0xff] %v5978_v49 }
 0x1f4   :  { %4534 = vmatmul.msk.bf16.gmra.mxu0 %vm1577_vm0, %v3931_v18  ;;  %v2188_v46 = vpop.f32.mrf.mxu2 }
 0x1f5   :  { %v2189_v29 = vadd.f32 %v2188_v46, %v1975_v19  ;;  %v3951_v46 = vor.u32 %v4656_v32, %v3950_v58  ;;  %v3962_v32 = vld [vmem:[%s7987_s0 + $0x328] sm:$0xf] }
 0x1f6   :  { %v1976_v37 = vpop.f32.mrf.mxu1 }
 0x1f7   :  { %v2403_v8 = vadd.f32 %v5901_v47, %v2189_v29  ;;  %v3936_v47 = vld [vmem:[%s7987_s0 + $0x30c] sm:$0xf0]  ;;  %v1977_v57 = vadd.f32 %v1976_v37, %v5581_v14  ;;  %2456 = vmatmul.bf16.gmra.mxu3 %v3987_v25 }
 0x1f8   :  { %v3939_v27 = vor.u32 %v4652_v43, %v3936_v47 }
 0x1f9   :  { %v2618_v24 = vpop.f32.mrf.mxu0  ;;  %v5991_v53 = vadd.f32 %v2616_v51, %v2403_v8  ;;  %v3943_v51 = vor.u32 %v4655_v9, %v3942_v41 }
 0x1fa   :  { %v6012_v29 = vpop.f32.mrf.mxu3 }
 0x1fb   :  { %8125 = vst [vmem:[#allocation56_spill] sm:$0xff] %v5991_v53 }
 0x1fc   :  { %v2190_v42 = vpop.f32.mrf.mxu2 }
 0x1fd   :  { %v2191_v18 = vadd.f32 %v2190_v42, %v1977_v57  ;;  %v4660_v42 = vld [vmem:[%s7987_s0 + $0x338] sm:$0xf0] }
 0x1fe   :  { %v1979_v19 = vpop.f32.mrf.mxu1 }
 0x1ff   :  { %v2405_v8 = vadd.f32 %v5908_v22, %v2191_v18  ;;  %v1980_v63 = vadd.f32 %v1979_v19, %v5161_v10  ;;  %v4668_v22 = vld [vmem:[%s7987_s0 + $0x37c] sm:$0xf]  ;;  %v4657_v10 = vld [vmem:[%s7987_s0 + $0x324] sm:$0xf] }
 0x201   :  { %v2621_v14 = vpop.f32.mrf.mxu0  ;;  %v6015_v37 = vadd.f32 %v2618_v24, %v2405_v8  ;;  %2018 = vmatmul.bf16.gmra.mxu1 %v3939_v27  ;;  %2232 = vmatmul.bf16.gmra.mxu2 %v3943_v51  ;;  %v4004_v24 = vld [vmem:[%s7987_s0 + $0x38c] sm:$0xf0]  ;;  %v4661_v51 = vld [vmem:[%s7987_s0 + $0x340] sm:$0xf0] }
 0x202   :  { %v6019_v43 = vpop.f32.mrf.mxu3  ;;  %v4007_v58 = vor.u32 %v4668_v22, %v4004_v24  ;;  %v3970_v27 = vld [vmem:[%s7987_s0 + $0x330] sm:$0xf] }
 0x203   :  { %8126 = vst [vmem:[#allocation57_spill] sm:$0xff] %v6015_v37 }
 0x204   :  { %4535 = vmatmul.msk.bf16.gmra.mxu0 %vm1577_vm0, %v3951_v46  ;;  %v2193_v23 = vpop.f32.mrf.mxu2 }
 0x205   :  { %v2194_v25 = vadd.f32 %v2193_v23, %v1980_v63  ;;  %v3971_v23 = vor.u32 %v4661_v51, %v3970_v27  ;;  %v3982_v51 = vld [vmem:[%s7987_s0 + $0x350] sm:$0xf] }
 0x206   :  { %v1981_v57 = vpop.f32.mrf.mxu1 }
 0x207   :  { %v2408_v47 = vadd.f32 %v5938_v20, %v2194_v25  ;;  %v3956_v20 = vld [vmem:[%s7987_s0 + $0x334] sm:$0xf0]  ;;  %v1982_v18 = vadd.f32 %v1981_v57, %v5173_v16  ;;  %2461 = vmatmul.bf16.gmra.mxu3 %v4007_v58 }
 0x208   :  { %v3959_v8 = vor.u32 %v4657_v10, %v3956_v20 }
 0x209   :  { %v2623_v41 = vpop.f32.mrf.mxu0  ;;  %v6028_v9 = vadd.f32 %v2621_v14, %v2408_v47  ;;  %v3963_v14 = vor.u32 %v4660_v42, %v3962_v32 }
 0x20a   :  { %v6049_v25 = vpop.f32.mrf.mxu3 }
 0x20b   :  { %8127 = vst [vmem:[#allocation58_spill] sm:$0xff] %v6028_v9 }
 0x20c   :  { %v2195_v19 = vpop.f32.mrf.mxu2 }
 0x20d   :  { %v2196_v46 = vadd.f32 %v2195_v19, %v1982_v18  ;;  %v4665_v19 = vld [vmem:[%s7987_s0 + $0x360] sm:$0xf0] }
 0x20e   :  { %v1984_v63 = vpop.f32.mrf.mxu1 }
 0x20f   :  { %v2410_v47 = vadd.f32 %v5945_v56, %v2196_v46  ;;  %v1985_v22 = vadd.f32 %v1984_v63, %v5203_v30  ;;  %v4673_v56 = vld [vmem:[%s7987_s0 + $0x3a4] sm:$0xf]  ;;  %v4662_v30 = vld [vmem:[%s7987_s0 + $0x34c] sm:$0xf] }
 0x211   :  { %v2626_v16 = vpop.f32.mrf.mxu0  ;;  %v6052_v57 = vadd.f32 %v2623_v41, %v2410_v47  ;;  %2023 = vmatmul.bf16.gmra.mxu1 %v3959_v8  ;;  %2237 = vmatmul.bf16.gmra.mxu2 %v3963_v14  ;;  %v4024_v41 = vld [vmem:[%s7987_s0 + $0x3b4] sm:$0xf0]  ;;  %v4666_v14 = vld [vmem:[%s7987_s0 + $0x368] sm:$0xf0] }
 0x212   :  { %v6056_v10 = vpop.f32.mrf.mxu3  ;;  %v4027_v27 = vor.u32 %v4673_v56, %v4024_v41  ;;  %v3990_v8 = vld [vmem:[%s7987_s0 + $0x358] sm:$0xf] }
 0x213   :  { %8128 = vst [vmem:[#allocation59_spill] sm:$0xff] %v6052_v57 }
 0x214   :  { %4536 = vmatmul.msk.bf16.gmra.mxu0 %vm1577_vm0, %v3971_v23  ;;  %v2198_v24 = vpop.f32.mrf.mxu2 }
 0x215   :  { %v2199_v58 = vadd.f32 %v2198_v24, %v1985_v22  ;;  %v3991_v24 = vor.u32 %v4666_v14, %v3990_v8  ;;  %v4002_v14 = vld [vmem:[%s7987_s0 + $0x378] sm:$0xf] }
 0x216   :  { %v1986_v18 = vpop.f32.mrf.mxu1 }
 0x217   :  { %v2413_v20 = vadd.f32 %v5975_v15, %v2199_v58  ;;  %v3976_v15 = vld [vmem:[%s7987_s0 + $0x35c] sm:$0xf0]  ;;  %v1987_v46 = vadd.f32 %v1986_v18, %v5211_v35  ;;  %2466 = vmatmul.bf16.gmra.mxu3 %v4027_v27 }
 0x218   :  { %v3979_v47 = vor.u32 %v4662_v30, %v3976_v15 }
 0x219   :  { %v2628_v32 = vpop.f32.mrf.mxu0  ;;  %v6065_v42 = vadd.f32 %v2626_v16, %v2413_v20  ;;  %v3983_v16 = vor.u32 %v4665_v19, %v3982_v51 }
 0x21a   :  { %v6086_v58 = vpop.f32.mrf.mxu3 }
 0x21b   :  { %8129 = vst [vmem:[#allocation60_spill] sm:$0xff] %v6065_v42 }
 0x21c   :  { %v2200_v63 = vpop.f32.mrf.mxu2 }
 0x21d   :  { %v2201_v23 = vadd.f32 %v2200_v63, %v1987_v46  ;;  %v4670_v63 = vld [vmem:[%s7987_s0 + $0x388] sm:$0xf0] }
 0x21e   :  { %v1989_v22 = vpop.f32.mrf.mxu1 }
 0x21f   :  { %v2415_v20 = vadd.f32 %v5982_v28, %v2201_v23  ;;  %v1990_v56 = vadd.f32 %v1989_v22, %v5243_v50  ;;  %v4678_v28 = vld [vmem:[%s7987_s0 + $0x3cc] sm:$0xf]  ;;  %v4667_v50 = vld [vmem:[%s7987_s0 + $0x374] sm:$0xf] }
 0x221   :  { %v2631_v35 = vpop.f32.mrf.mxu0  ;;  %v6089_v18 = vadd.f32 %v2628_v32, %v2415_v20  ;;  %2028 = vmatmul.bf16.gmra.mxu1 %v3979_v47  ;;  %2242 = vmatmul.bf16.gmra.mxu2 %v3983_v16  ;;  %v4044_v32 = vld [vmem:[%s7987_s0 + $0x3dc] sm:$0xf0]  ;;  %v4671_v16 = vld [vmem:[%s7987_s0 + $0x390] sm:$0xf0] }
 0x222   :  { %v6093_v30 = vpop.f32.mrf.mxu3  ;;  %v4047_v8 = vor.u32 %v4678_v28, %v4044_v32  ;;  %v4010_v47 = vld [vmem:[%s7987_s0 + $0x380] sm:$0xf] }
 0x223   :  { %8130 = vst [vmem:[#allocation61_spill] sm:$0xff] %v6089_v18 }
 0x224   :  { %4537 = vmatmul.msk.bf16.gmra.mxu0 %vm1577_vm0, %v3991_v24  ;;  %v2203_v41 = vpop.f32.mrf.mxu2 }
 0x225   :  { %v2204_v27 = vadd.f32 %v2203_v41, %v1990_v56  ;;  %v4011_v41 = vor.u32 %v4671_v16, %v4010_v47  ;;  %v4022_v16 = vld [vmem:[%s7987_s0 + $0x3a0] sm:$0xf] }
 0x226   :  { %v1991_v46 = vpop.f32.mrf.mxu1 }
 0x227   :  { %v2418_v15 = vadd.f32 %v6012_v29, %v2204_v27  ;;  %v3996_v29 = vld [vmem:[%s7987_s0 + $0x384] sm:$0xf0]  ;;  %v1992_v23 = vadd.f32 %v1991_v46, %v5251_v55  ;;  %2471 = vmatmul.bf16.gmra.mxu3 %v4047_v8 }
 0x228   :  { %v3999_v20 = vor.u32 %v4667_v50, %v3996_v29 }
 0x229   :  { %v2633_v51 = vpop.f32.mrf.mxu0  ;;  %v6102_v19 = vadd.f32 %v2631_v35, %v2418_v15  ;;  %v4003_v35 = vor.u32 %v4670_v63, %v4002_v14 }
 0x22a   :  { %v6123_v27 = vpop.f32.mrf.mxu3 }
 0x22b   :  { %8131 = vst [vmem:[#allocation62_spill] sm:$0xff] %v6102_v19 }
 0x22c   :  { %v2205_v22 = vpop.f32.mrf.mxu2 }
 0x22d   :  { %v2206_v24 = vadd.f32 %v2205_v22, %v1992_v23  ;;  %v4675_v22 = vld [vmem:[%s7987_s0 + $0x3b0] sm:$0xf0] }
 0x22e   :  { %v1994_v56 = vpop.f32.mrf.mxu1 }
 0x22f   :  { %v2420_v15 = vadd.f32 %v6019_v43, %v2206_v24  ;;  %v1995_v28 = vadd.f32 %v1994_v56, %v5283_v6  ;;  %v4683_v43 = vld [vmem:[%s7987_s0 + $0x3f4] sm:$0xf]  ;;  %v4672_v6 = vld [vmem:[%s7987_s0 + $0x39c] sm:$0xf] }
 0x231   :  { %v2636_v55 = vpop.f32.mrf.mxu0  ;;  %v6126_v46 = vadd.f32 %v2633_v51, %v2420_v15  ;;  %2033 = vmatmul.bf16.gmra.mxu1 %v3999_v20  ;;  %2247 = vmatmul.bf16.gmra.mxu2 %v4003_v35  ;;  %v4064_v51 = vld [vmem:[%s7987_s0 + $0x404] sm:$0xf0]  ;;  %v4676_v35 = vld [vmem:[%s7987_s0 + $0x3b8] sm:$0xf0] }
 0x232   :  { %v6130_v50 = vpop.f32.mrf.mxu3  ;;  %v4067_v47 = vor.u32 %v4683_v43, %v4064_v51  ;;  %v4030_v20 = vld [vmem:[%s7987_s0 + $0x3a8] sm:$0xf] }
 0x233   :  { %8132 = vst [vmem:[#allocation63_spill] sm:$0xff] %v6126_v46 }
 0x234   :  { %4538 = vmatmul.msk.bf16.gmra.mxu0 %vm1577_vm0, %v4011_v41  ;;  %v2208_v32 = vpop.f32.mrf.mxu2 }
 0x235   :  { %v2209_v8 = vadd.f32 %v2208_v32, %v1995_v28  ;;  %v4031_v32 = vor.u32 %v4676_v35, %v4030_v20  ;;  %v4042_v35 = vld [vmem:[%s7987_s0 + $0x3c8] sm:$0xf] }
 0x236   :  { %v1996_v23 = vpop.f32.mrf.mxu1 }
 0x237   :  { %v2423_v29 = vadd.f32 %v6049_v25, %v2209_v8  ;;  %v4016_v25 = vld [vmem:[%s7987_s0 + $0x3ac] sm:$0xf0]  ;;  %v1997_v24 = vadd.f32 %v1996_v23, %v5292_v12  ;;  %2476 = vmatmul.bf16.gmra.mxu3 %v4067_v47 }
 0x238   :  { %v4019_v15 = vor.u32 %v4672_v6, %v4016_v25 }
 0x239   :  { %v2638_v14 = vpop.f32.mrf.mxu0  ;;  %v6139_v63 = vadd.f32 %v2636_v55, %v2423_v29  ;;  %v4023_v55 = vor.u32 %v4675_v22, %v4022_v16 }
 0x23a   :  { %v6160_v8 = vpop.f32.mrf.mxu3 }
 0x23b   :  { %8133 = vst [vmem:[#allocation64_spill] sm:$0xff] %v6139_v63 }
 0x23c   :  { %v2210_v56 = vpop.f32.mrf.mxu2 }
 0x23d   :  { %v2211_v41 = vadd.f32 %v2210_v56, %v1997_v24  ;;  %v4680_v56 = vld [vmem:[%s7987_s0 + $0x3d8] sm:$0xf0] }
 0x23e   :  { %v1999_v28 = vpop.f32.mrf.mxu1 }
 0x23f   :  { %v2425_v29 = vadd.f32 %v6056_v10, %v2211_v41  ;;  %v2000_v43 = vadd.f32 %v1999_v28, %v5324_v39  ;;  %v4688_v10 = vld [vmem:[%s7987_s0 + $0x41c] sm:$0xf]  ;;  %v4677_v39 = vld [vmem:[%s7987_s0 + $0x3c4] sm:$0xf] }
 0x241   :  { %v2641_v12 = vpop.f32.mrf.mxu0  ;;  %v6163_v23 = vadd.f32 %v2638_v14, %v2425_v29  ;;  %2038 = vmatmul.bf16.gmra.mxu1 %v4019_v15  ;;  %2252 = vmatmul.bf16.gmra.mxu2 %v4023_v55  ;;  %v4084_v14 = vld [vmem:[%s7987_s0 + $0x42c] sm:$0xf0]  ;;  %v4681_v55 = vld [vmem:[%s7987_s0 + $0x3e0] sm:$0xf0] }
 0x242   :  { %v6167_v6 = vpop.f32.mrf.mxu3  ;;  %v4087_v20 = vor.u32 %v4688_v10, %v4084_v14  ;;  %v4050_v15 = vld [vmem:[%s7987_s0 + $0x3d0] sm:$0xf] }
 0x243   :  { %8134 = vst [vmem:[#allocation65_spill] sm:$0xff] %v6163_v23 }
 0x244   :  { %4539 = vmatmul.msk.bf16.gmra.mxu0 %vm1577_vm0, %v4031_v32  ;;  %v2213_v51 = vpop.f32.mrf.mxu2 }
 0x245   :  { %v2214_v47 = vadd.f32 %v2213_v51, %v2000_v43  ;;  %v4051_v51 = vor.u32 %v4681_v55, %v4050_v15  ;;  %v4062_v55 = vld [vmem:[%s7987_s0 + $0x3f0] sm:$0xf] }
 0x246   :  { %v2001_v24 = vpop.f32.mrf.mxu1 }
 0x247   :  { %v2428_v25 = vadd.f32 %v6086_v58, %v2214_v47  ;;  %v4036_v58 = vld [vmem:[%s7987_s0 + $0x3d4] sm:$0xf0]  ;;  %v2002_v41 = vadd.f32 %v2001_v24, %v5333_v44  ;;  %2481 = vmatmul.bf16.gmra.mxu3 %v4087_v20 }
 0x248   :  { %v4039_v29 = vor.u32 %v4677_v39, %v4036_v58 }
 0x249   :  { %v2643_v16 = vpop.f32.mrf.mxu0  ;;  %v6176_v22 = vadd.f32 %v2641_v12, %v2428_v25  ;;  %v4043_v12 = vor.u32 %v4680_v56, %v4042_v35 }
 0x24a   :  { %v6197_v47 = vpop.f32.mrf.mxu3 }
 0x24b   :  { %8135 = vst [vmem:[#allocation66_spill] sm:$0xff] %v6176_v22 }
 0x24c   :  { %v2215_v28 = vpop.f32.mrf.mxu2 }
 0x24d   :  { %v2216_v32 = vadd.f32 %v2215_v28, %v2002_v41  ;;  %v4685_v28 = vld [vmem:[%s7987_s0 + $0x400] sm:$0xf0] }
 0x24e   :  { %v2004_v43 = vpop.f32.mrf.mxu1 }
 0x24f   :  { %v2430_v25 = vadd.f32 %v6093_v30, %v2216_v32  ;;  %v2005_v10 = vadd.f32 %v2004_v43, %v5365_v4  ;;  %v4693_v30 = vld [vmem:[%s7987_s0 + $0x444] sm:$0xf]  ;;  %v4682_v4 = vld [vmem:[%s7987_s0 + $0x3ec] sm:$0xf] }
 0x251   :  { %v2646_v44 = vpop.f32.mrf.mxu0  ;;  %v6200_v24 = vadd.f32 %v2643_v16, %v2430_v25  ;;  %2043 = vmatmul.bf16.gmra.mxu1 %v4039_v29  ;;  %2257 = vmatmul.bf16.gmra.mxu2 %v4043_v12  ;;  %v4104_v16 = vld [vmem:[%s7987_s0 + $0x454] sm:$0xf0]  ;;  %v4686_v12 = vld [vmem:[%s7987_s0 + $0x408] sm:$0xf0] }
 0x252   :  { %v6204_v39 = vpop.f32.mrf.mxu3  ;;  %v4107_v15 = vor.u32 %v4693_v30, %v4104_v16  ;;  %v4070_v29 = vld [vmem:[%s7987_s0 + $0x3f8] sm:$0xf] }
 0x253   :  { %8136 = vst [vmem:[#allocation67_spill] sm:$0xff] %v6200_v24 }
 0x254   :  { %4540 = vmatmul.msk.bf16.gmra.mxu0 %vm1577_vm0, %v4051_v51  ;;  %v2218_v14 = vpop.f32.mrf.mxu2 }
 0x255   :  { %v2219_v20 = vadd.f32 %v2218_v14, %v2005_v10  ;;  %v4071_v14 = vor.u32 %v4686_v12, %v4070_v29  ;;  %v4082_v12 = vld [vmem:[%s7987_s0 + $0x418] sm:$0xf] }
 0x256   :  { %v2006_v41 = vpop.f32.mrf.mxu1 }
 0x257   :  { %v2433_v58 = vadd.f32 %v6123_v27, %v2219_v20  ;;  %v4056_v27 = vld [vmem:[%s7987_s0 + $0x3fc] sm:$0xf0]  ;;  %v2007_v32 = vadd.f32 %v2006_v41, %v5374_v21  ;;  %2486 = vmatmul.bf16.gmra.mxu3 %v4107_v15 }
 0x258   :  { %v4059_v25 = vor.u32 %v4682_v4, %v4056_v27 }
 0x259   :  { %v2648_v35 = vpop.f32.mrf.mxu0  ;;  %v6213_v56 = vadd.f32 %v2646_v44, %v2433_v58  ;;  %v4063_v44 = vor.u32 %v4685_v28, %v4062_v55 }
 0x25a   :  { %v6234_v20 = vpop.f32.mrf.mxu3 }
 0x25b   :  { %8137 = vst [vmem:[#allocation68_spill] sm:$0xff] %v6213_v56 }
 0x25c   :  { %v2220_v43 = vpop.f32.mrf.mxu2 }
 0x25d   :  { %v2221_v51 = vadd.f32 %v2220_v43, %v2007_v32  ;;  %v4690_v43 = vld [vmem:[%s7987_s0 + $0x428] sm:$0xf0] }
 0x25e   :  { %v2009_v10 = vpop.f32.mrf.mxu1 }
 0x25f   :  { %v2435_v58 = vadd.f32 %v6130_v50, %v2221_v51  ;;  %v2010_v30 = vadd.f32 %v2009_v10, %v5406_v60  ;;  %v4698_v50 = vld [vmem:[%s7987_s0 + $0x46c] sm:$0xf]  ;;  %v4687_v60 = vld [vmem:[%s7987_s0 + $0x414] sm:$0xf] }
 0x261   :  { %v2651_v21 = vpop.f32.mrf.mxu0  ;;  %v6237_v41 = vadd.f32 %v2648_v35, %v2435_v58  ;;  %2048 = vmatmul.bf16.gmra.mxu1 %v4059_v25  ;;  %2262 = vmatmul.bf16.gmra.mxu2 %v4063_v44  ;;  %v4124_v35 = vld [vmem:[%s7987_s0 + $0x47c] sm:$0xf0]  ;;  %v4691_v44 = vld [vmem:[%s7987_s0 + $0x430] sm:$0xf0] }
 0x262   :  { %v6241_v4 = vpop.f32.mrf.mxu3  ;;  %v4127_v29 = vor.u32 %v4698_v50, %v4124_v35  ;;  %v4090_v25 = vld [vmem:[%s7987_s0 + $0x420] sm:$0xf] }
 0x263   :  { %8138 = vst [vmem:[#allocation69_spill] sm:$0xff] %v6237_v41 }
 0x264   :  { %4541 = vmatmul.msk.bf16.gmra.mxu0 %vm1577_vm0, %v4071_v14  ;;  %v2223_v16 = vpop.f32.mrf.mxu2 }
 0x265   :  { %v2224_v15 = vadd.f32 %v2223_v16, %v2010_v30  ;;  %v4091_v16 = vor.u32 %v4691_v44, %v4090_v25  ;;  %v4102_v44 = vld [vmem:[%s7987_s0 + $0x440] sm:$0xf] }
 0x266   :  { %v2011_v32 = vpop.f32.mrf.mxu1 }
 0x267   :  { %v2438_v27 = vadd.f32 %v6160_v8, %v2224_v15  ;;  %v4076_v8 = vld [vmem:[%s7987_s0 + $0x424] sm:$0xf0]  ;;  %v2012_v51 = vadd.f32 %v2011_v32, %v5415_v2  ;;  %2491 = vmatmul.bf16.gmra.mxu3 %v4127_v29 }
 0x268   :  { %v4079_v58 = vor.u32 %v4687_v60, %v4076_v8 }
 0x269   :  { %v2653_v55 = vpop.f32.mrf.mxu0  ;;  %v6250_v28 = vadd.f32 %v2651_v21, %v2438_v27  ;;  %v4083_v21 = vor.u32 %v4690_v43, %v4082_v12 }
 0x26a   :  { %v6271_v15 = vpop.f32.mrf.mxu3 }
 0x26b   :  { %8139 = vst [vmem:[#allocation70_spill] sm:$0xff] %v6250_v28 }
 0x26c   :  { %v2225_v10 = vpop.f32.mrf.mxu2 }
 0x26d   :  { %v2226_v14 = vadd.f32 %v2225_v10, %v2012_v51  ;;  %v4695_v10 = vld [vmem:[%s7987_s0 + $0x450] sm:$0xf0] }
 0x26e   :  { %v2014_v30 = vpop.f32.mrf.mxu1 }
 0x26f   :  { %v2440_v27 = vadd.f32 %v6167_v6, %v2226_v14  ;;  %v2015_v50 = vadd.f32 %v2014_v30, %v5447_v26  ;;  %v4703_v6 = vld [vmem:[%s7987_s0 + $0x494] sm:$0xf]  ;;  %v4692_v26 = vld [vmem:[%s7987_s0 + $0x43c] sm:$0xf] }
 0x271   :  { %v2656_v2 = vpop.f32.mrf.mxu0  ;;  %v6274_v32 = vadd.f32 %v2653_v55, %v2440_v27  ;;  %2053 = vmatmul.bf16.gmra.mxu1 %v4079_v58  ;;  %2267 = vmatmul.bf16.gmra.mxu2 %v4083_v21  ;;  %v4144_v55 = vld [vmem:[%s7987_s0 + $0x4a4] sm:$0xf0]  ;;  %v4696_v21 = vld [vmem:[%s7987_s0 + $0x458] sm:$0xf0] }
 0x272   :  { %v6278_v60 = vpop.f32.mrf.mxu3  ;;  %v4147_v25 = vor.u32 %v4703_v6, %v4144_v55  ;;  %v4110_v58 = vld [vmem:[%s7987_s0 + $0x448] sm:$0xf] }
 0x273   :  { %8140 = vst [vmem:[#allocation71_spill] sm:$0xff] %v6274_v32 }
 0x274   :  { %4542 = vmatmul.msk.bf16.gmra.mxu0 %vm1577_vm0, %v4091_v16  ;;  %v2228_v35 = vpop.f32.mrf.mxu2 }
 0x275   :  { %v2229_v29 = vadd.f32 %v2228_v35, %v2015_v50  ;;  %v4111_v35 = vor.u32 %v4696_v21, %v4110_v58  ;;  %v4122_v21 = vld [vmem:[%s7987_s0 + $0x468] sm:$0xf] }
 0x276   :  { %v2016_v51 = vpop.f32.mrf.mxu1 }
 0x277   :  { %v2443_v8 = vadd.f32 %v6197_v47, %v2229_v29  ;;  %v4096_v47 = vld [vmem:[%s7987_s0 + $0x44c] sm:$0xf0]  ;;  %v2017_v14 = vadd.f32 %v2016_v51, %v5456_v7  ;;  %2496 = vmatmul.bf16.gmra.mxu3 %v4147_v25 }
 0x278   :  { %v4099_v27 = vor.u32 %v4692_v26, %v4096_v47 }
 0x279   :  { %v2658_v12 = vpop.f32.mrf.mxu0  ;;  %v6287_v43 = vadd.f32 %v2656_v2, %v2443_v8  ;;  %v4103_v2 = vor.u32 %v4695_v10, %v4102_v44 }
 0x27a   :  { %v6308_v29 = vpop.f32.mrf.mxu3 }
 0x27b   :  { %8141 = vst [vmem:[#allocation72_spill] sm:$0xff] %v6287_v43 }
 0x27c   :  { %v2230_v30 = vpop.f32.mrf.mxu2 }
 0x27d   :  { %v2231_v16 = vadd.f32 %v2230_v30, %v2017_v14  ;;  %v4700_v30 = vld [vmem:[%s7987_s0 + $0x478] sm:$0xf0] }
 0x27e   :  { %v2019_v50 = vpop.f32.mrf.mxu1 }
 0x27f   :  { %v2445_v8 = vadd.f32 %v6204_v39, %v2231_v16  ;;  %v2020_v6 = vadd.f32 %v2019_v50, %v5488_v62  ;;  %v4708_v39 = vld [vmem:[%s7987_s0 + $0x4bc] sm:$0xf]  ;;  %v4697_v62 = vld [vmem:[%s7987_s0 + $0x464] sm:$0xf] }
 0x281   :  { %v2661_v7 = vpop.f32.mrf.mxu0  ;;  %v6311_v51 = vadd.f32 %v2658_v12, %v2445_v8  ;;  %2058 = vmatmul.bf16.gmra.mxu1 %v4099_v27  ;;  %2272 = vmatmul.bf16.gmra.mxu2 %v4103_v2  ;;  %v4164_v12 = vld [vmem:[%s7987_s0 + $0x4cc] sm:$0xf0]  ;;  %v4701_v2 = vld [vmem:[%s7987_s0 + $0x480] sm:$0xf0] }
 0x282   :  { %v6315_v26 = vpop.f32.mrf.mxu3  ;;  %v4167_v58 = vor.u32 %v4708_v39, %v4164_v12  ;;  %v4130_v27 = vld [vmem:[%s7987_s0 + $0x470] sm:$0xf] }
 0x283   :  { %8142 = vst [vmem:[#allocation73_spill] sm:$0xff] %v6311_v51  ;;  %v8145_v39 = vld [vmem:[#allocation36_spill] sm:$0xff] }
 0x284   :  { %4543 = vmatmul.msk.bf16.gmra.mxu0 %vm1577_vm0, %v4111_v35  ;;  %v2233_v55 = vpop.f32.mrf.mxu2 }
 0x285   :  { %v2234_v25 = vadd.f32 %v2233_v55, %v2020_v6  ;;  %v4131_v55 = vor.u32 %v4701_v2, %v4130_v27  ;;  %v4702_v27 = vld [vmem:[%s7987_s0 + $0x48c] sm:$0xf] }
 0x286   :  { %v2021_v14 = vpop.f32.mrf.mxu1 }
 0x287   :  { %v2448_v47 = vadd.f32 %v6234_v20, %v2234_v25  ;;  %v4116_v20 = vld [vmem:[%s7987_s0 + $0x474] sm:$0xf0]  ;;  %v2022_v16 = vadd.f32 %v2021_v14, %v5497_v52  ;;  %2501 = vmatmul.bf16.gmra.mxu3 %v4167_v58 }
 0x288   :  { %v4119_v8 = vor.u32 %v4697_v62, %v4116_v20 }
 0x289   :  { %v2663_v44 = vpop.f32.mrf.mxu0  ;;  %v6324_v10 = vadd.f32 %v2661_v7, %v2448_v47  ;;  %v4123_v7 = vor.u32 %v4700_v30, %v4122_v21 }
 0x28a   :  { %v6345_v25 = vpop.f32.mrf.mxu3 }
 0x28b   :  { %8143 = vst [vmem:[#allocation74_spill] sm:$0xff] %v6324_v10 }
 0x28c   :  { %v2235_v50 = vpop.f32.mrf.mxu2 }
 0x28d   :  { %v2236_v35 = vadd.f32 %v2235_v50, %v2022_v16  ;;  %v4705_v50 = vld [vmem:[%s7987_s0 + $0x4a0] sm:$0xf0] }
 0x28e   :  { %v2024_v6 = vpop.f32.mrf.mxu1 }
 0x28f   :  { %v2450_v47 = vadd.f32 %v6241_v4, %v2236_v35  ;;  %v2025_v12 = vadd.f32 %v2024_v6, %v8145_v39  ;;  %v4713_v4 = vld [vmem:[%s7987_s0 + $0x4e4] sm:$0xf]  ;;  %v4706_v6 = vld [vmem:[%s7987_s0 + $0x4a8] sm:$0xf0] }
 0x290   :  { %v8147_v35 = vld [vmem:[#allocation38_spill] sm:$0xff] }
 0x291   :  { %v2666_v52 = vpop.f32.mrf.mxu0  ;;  %v6348_v14 = vadd.f32 %v2663_v44, %v2450_v47  ;;  %2063 = vmatmul.bf16.gmra.mxu1 %v4119_v8  ;;  %2277 = vmatmul.bf16.gmra.mxu2 %v4123_v7  ;;  %v4184_v44 = vld [vmem:[%s7987_s0 + $0x4f4] sm:$0xf0] }
 0x292   :  { %v6352_v62 = vpop.f32.mrf.mxu3  ;;  %v4187_v2 = vor.u32 %v4713_v4, %v4184_v44  ;;  %v4150_v7 = vld [vmem:[%s7987_s0 + $0x498] sm:$0xf] }
 0x293   :  { %8144 = vst [vmem:[#allocation75_spill] sm:$0xff] %v6348_v14 }
 0x294   :  { %4544 = vmatmul.msk.bf16.gmra.mxu0 %vm1577_vm0, %v4131_v55  ;;  %v2238_v58 = vpop.f32.mrf.mxu2 }
 0x295   :  { %v2239_v10 = vadd.f32 %v2238_v58, %v2025_v12  ;;  %v4151_v58 = vor.u32 %v4706_v6, %v4150_v7  ;;  %v4710_v6 = vld [vmem:[%s7987_s0 + $0x4c8] sm:$0xf0] }
 0x296   :  { %v2026_v16 = vpop.f32.mrf.mxu1 }
 0x297   :  { %v2453_v20 = vadd.f32 %v6271_v15, %v2239_v10  ;;  %v4136_v15 = vld [vmem:[%s7987_s0 + $0x49c] sm:$0xf0]  ;;  %v4142_v10 = vld [vmem:[%s7987_s0 + $0x490] sm:$0xf]  ;;  %v2027_v8 = vadd.f32 %v2026_v16, %v8147_v35  ;;  %2506 = vmatmul.bf16.gmra.mxu3 %v4187_v2 }
 0x298   :  { %v4143_v39 = vor.u32 %v4705_v50, %v4142_v10  ;;  %v8149_v35 = vld [vmem:[#allocation40_spill] sm:$0xff] }
 0x299   :  { %v2668_v21 = vpop.f32.mrf.mxu0  ;;  %v6361_v30 = vadd.f32 %v2666_v52, %v2453_v20  ;;  %v4139_v52 = vor.u32 %v4702_v27, %v4136_v15 }
 0x29a   :  { %v6382_v20 = vpop.f32.mrf.mxu3 }
 0x29b   :  { %8146 = vst [vmem:[#allocation36_spill] sm:$0xff] %v6361_v30 }
 0x29c   :  { %v2240_v55 = vpop.f32.mrf.mxu2 }
 0x29d   :  { %v2241_v47 = vadd.f32 %v2240_v55, %v2027_v8  ;;  %v8151_v55 = vld [vmem:[#allocation42_spill] sm:$0xff] }
 0x29e   :  { %v2029_v12 = vpop.f32.mrf.mxu1 }
 0x29f   :  { %v2455_v4 = vadd.f32 %v6278_v60, %v2241_v47  ;;  %v2030_v30 = vadd.f32 %v2029_v12, %v8149_v35  ;;  %v4718_v60 = vld [vmem:[%s7987_s0 + $0x50c] sm:$0xf] }
 0x2a1   :  { %v2671_v16 = vpop.f32.mrf.mxu0  ;;  %v6385_v44 = vadd.f32 %v2668_v21, %v2455_v4  ;;  %2068 = vmatmul.bf16.gmra.mxu1 %v4139_v52  ;;  %2282 = vmatmul.bf16.gmra.mxu2 %v4143_v39  ;;  %v4204_v21 = vld [vmem:[%s7987_s0 + $0x51c] sm:$0xf0]  ;;  %v4711_v39 = vld [vmem:[%s7987_s0 + $0x4d0] sm:$0xf0] }
 0x2a2   :  { %v6389_v27 = vpop.f32.mrf.mxu3  ;;  %v4207_v7 = vor.u32 %v4718_v60, %v4204_v21  ;;  %v4170_v52 = vld [vmem:[%s7987_s0 + $0x4c0] sm:$0xf] }
 0x2a3   :  { %8148 = vst [vmem:[#allocation38_spill] sm:$0xff] %v6385_v44 }
 0x2a4   :  { %4545 = vmatmul.msk.bf16.gmra.mxu0 %vm1577_vm0, %v4151_v58  ;;  %v2243_v2 = vpop.f32.mrf.mxu2 }
 0x2a5   :  { %v2244_v14 = vadd.f32 %v2243_v2, %v2030_v30  ;;  %v4707_v30 = vld [vmem:[%s7987_s0 + $0x4b4] sm:$0xf]  ;;  %v4171_v2 = vor.u32 %v4711_v39, %v4170_v52 }
 0x2a6   :  { %v2031_v8 = vpop.f32.mrf.mxu1  ;;  %v4715_v39 = vld [vmem:[%s7987_s0 + $0x4f0] sm:$0xf0] }
 0x2a7   :  { %v2458_v15 = vadd.f32 %v6308_v29, %v2244_v14  ;;  %v4156_v29 = vld [vmem:[%s7987_s0 + $0x4c4] sm:$0xf0]  ;;  %v4162_v14 = vld [vmem:[%s7987_s0 + $0x4b8] sm:$0xf]  ;;  %v2032_v47 = vadd.f32 %v2031_v8, %v8151_v55  ;;  %2511 = vmatmul.bf16.gmra.mxu3 %v4207_v7  ;;  %v8153_v55 = vld [vmem:[#allocation2_spill] sm:$0xff] }
 0x2a8   :  { %v4159_v4 = vor.u32 %v4707_v30, %v4156_v29 }
 0x2a9   :  { %v2673_v10 = vpop.f32.mrf.mxu0  ;;  %v6398_v50 = vadd.f32 %v2671_v16, %v2458_v15  ;;  %v4163_v16 = vor.u32 %v4710_v6, %v4162_v14 }
 0x2aa   :  { %v6419_v15 = vpop.f32.mrf.mxu3 }
 0x2ab   :  { %8150 = vst [vmem:[#allocation40_spill] sm:$0xff] %v6398_v50 }
 0x2ac   :  { %v2245_v12 = vpop.f32.mrf.mxu2 }
 0x2ad   :  { %v2246_v58 = vadd.f32 %v2245_v12, %v2032_v47  ;;  %v8155_v12 = vld [vmem:[#allocation3_spill] sm:$0xff] }
 0x2ae   :  { %v2034_v35 = vpop.f32.mrf.mxu1 }
 0x2af   :  { %v2460_v60 = vadd.f32 %v6315_v26, %v2246_v58  ;;  %v2035_v50 = vadd.f32 %v2034_v35, %v8153_v55  ;;  %v4723_v26 = vld [vmem:[%s7987_s0 + $0x534] sm:$0xf] }
 0x2b1   :  { %v2676_v8 = vpop.f32.mrf.mxu0  ;;  %v6422_v21 = vadd.f32 %v2673_v10, %v2460_v60  ;;  %2073 = vmatmul.bf16.gmra.mxu1 %v4159_v4  ;;  %2287 = vmatmul.bf16.gmra.mxu2 %v4163_v16  ;;  %v4224_v10 = vld [vmem:[%s7987_s0 + $0x544] sm:$0xf0]  ;;  %v4716_v16 = vld [vmem:[%s7987_s0 + $0x4f8] sm:$0xf0] }
 0x2b2   :  { %v6426_v30 = vpop.f32.mrf.mxu3  ;;  %v4227_v52 = vor.u32 %v4723_v26, %v4224_v10  ;;  %v4190_v4 = vld [vmem:[%s7987_s0 + $0x4e8] sm:$0xf] }
 0x2b3   :  { %8152 = vst [vmem:[#allocation42_spill] sm:$0xff] %v6422_v21 }
 0x2b4   :  { %4546 = vmatmul.msk.bf16.gmra.mxu0 %vm1577_vm0, %v4171_v2  ;;  %v2248_v7 = vpop.f32.mrf.mxu2 }
 0x2b5   :  { %v2249_v44 = vadd.f32 %v2248_v7, %v2035_v50  ;;  %v4712_v50 = vld [vmem:[%s7987_s0 + $0x4dc] sm:$0xf]  ;;  %v4191_v7 = vor.u32 %v4716_v16, %v4190_v4 }
 0x2b6   :  { %v2036_v47 = vpop.f32.mrf.mxu1  ;;  %v4720_v16 = vld [vmem:[%s7987_s0 + $0x518] sm:$0xf0] }
 0x2b7   :  { %v2463_v29 = vadd.f32 %v6345_v25, %v2249_v44  ;;  %v4176_v25 = vld [vmem:[%s7987_s0 + $0x4ec] sm:$0xf0]  ;;  %v4182_v44 = vld [vmem:[%s7987_s0 + $0x4e0] sm:$0xf]  ;;  %v2037_v58 = vadd.f32 %v2036_v47, %v8155_v12  ;;  %2516 = vmatmul.bf16.gmra.mxu3 %v4227_v52  ;;  %v8157_v12 = vld [vmem:[#allocation5_spill] sm:$0xff] }
 0x2b8   :  { %v4179_v60 = vor.u32 %v4712_v50, %v4176_v25 }
 0x2b9   :  { %v2678_v14 = vpop.f32.mrf.mxu0  ;;  %v6435_v6 = vadd.f32 %v2676_v8, %v2463_v29  ;;  %v4183_v8 = vor.u32 %v4715_v39, %v4182_v44 }
 0x2ba   :  { %v6456_v29 = vpop.f32.mrf.mxu3 }
 0x2bb   :  { %8154 = vst [vmem:[#allocation2_spill] sm:$0xff] %v6435_v6 }
 0x2bc   :  { %v2250_v35 = vpop.f32.mrf.mxu2 }
 0x2bd   :  { %v2251_v2 = vadd.f32 %v2250_v35, %v2037_v58  ;;  %v8159_v35 = vld [vmem:[#allocation7_spill] sm:$0xff] }
 0x2be   :  { %v2039_v55 = vpop.f32.mrf.mxu1 }
 0x2bf   :  { %v2465_v26 = vadd.f32 %v6352_v62, %v2251_v2  ;;  %v2040_v6 = vadd.f32 %v2039_v55, %v8157_v12  ;;  %v4728_v62 = vld [vmem:[%s7987_s0 + $0x55c] sm:$0xf] }
 0x2c1   :  { %v2681_v47 = vpop.f32.mrf.mxu0  ;;  %v6459_v10 = vadd.f32 %v2678_v14, %v2465_v26  ;;  %2078 = vmatmul.bf16.gmra.mxu1 %v4179_v60  ;;  %2292 = vmatmul.bf16.gmra.mxu2 %v4183_v8  ;;  %v4244_v14 = vld [vmem:[%s7987_s0 + $0x56c] sm:$0xf0]  ;;  %v4721_v8 = vld [vmem:[%s7987_s0 + $0x520] sm:$0xf0] }
 0x2c2   :  { %v6463_v50 = vpop.f32.mrf.mxu3  ;;  %v4247_v4 = vor.u32 %v4728_v62, %v4244_v14  ;;  %v4210_v60 = vld [vmem:[%s7987_s0 + $0x510] sm:$0xf] }
 0x2c3   :  { %8156 = vst [vmem:[#allocation3_spill] sm:$0xff] %v6459_v10 }
 0x2c4   :  { %4547 = vmatmul.msk.bf16.gmra.mxu0 %vm1577_vm0, %v4191_v7  ;;  %v2253_v52 = vpop.f32.mrf.mxu2 }
 0x2c5   :  { %v2254_v21 = vadd.f32 %v2253_v52, %v2040_v6  ;;  %v4717_v6 = vld [vmem:[%s7987_s0 + $0x504] sm:$0xf]  ;;  %v4211_v52 = vor.u32 %v4721_v8, %v4210_v60 }
 0x2c6   :  { %v2041_v58 = vpop.f32.mrf.mxu1  ;;  %v4725_v8 = vld [vmem:[%s7987_s0 + $0x540] sm:$0xf0] }
 0x2c7   :  { %v2468_v25 = vadd.f32 %v6382_v20, %v2254_v21  ;;  %v4196_v20 = vld [vmem:[%s7987_s0 + $0x514] sm:$0xf0]  ;;  %v4202_v21 = vld [vmem:[%s7987_s0 + $0x508] sm:$0xf]  ;;  %v2042_v2 = vadd.f32 %v2041_v58, %v8159_v35  ;;  %2521 = vmatmul.bf16.gmra.mxu3 %v4247_v4 }
 0x2c8   :  { %v4199_v26 = vor.u32 %v4717_v6, %v4196_v20  ;;  %v8161_v35 = vld [vmem:[#allocation9_spill] sm:$0xff] }
 0x2c9   :  { %v2683_v44 = vpop.f32.mrf.mxu0  ;;  %v6472_v39 = vadd.f32 %v2681_v47, %v2468_v25  ;;  %v4203_v47 = vor.u32 %v4720_v16, %v4202_v21 }
 0x2ca   :  { %v6493_v25 = vpop.f32.mrf.mxu3 }
 0x2cb   :  { %8158 = vst [vmem:[#allocation5_spill] sm:$0xff] %v6472_v39 }
 0x2cc   :  { %v2255_v55 = vpop.f32.mrf.mxu2 }
 0x2cd   :  { %v2256_v7 = vadd.f32 %v2255_v55, %v2042_v2  ;;  %v8163_v55 = vld [vmem:[#allocation11_spill] sm:$0xff] }
 0x2ce   :  { %v2044_v12 = vpop.f32.mrf.mxu1 }
 0x2cf   :  { %v2470_v62 = vadd.f32 %v6389_v27, %v2256_v7  ;;  %v2045_v39 = vadd.f32 %v2044_v12, %v8161_v35  ;;  %v4733_v27 = vld [vmem:[%s7987_s0 + $0x584] sm:$0xf] }
 0x2d1   :  { %v2686_v58 = vpop.f32.mrf.mxu0  ;;  %v6496_v14 = vadd.f32 %v2683_v44, %v2470_v62  ;;  %2083 = vmatmul.bf16.gmra.mxu1 %v4199_v26  ;;  %2297 = vmatmul.bf16.gmra.mxu2 %v4203_v47  ;;  %v4264_v44 = vld [vmem:[%s7987_s0 + $0x594] sm:$0xf0]  ;;  %v4726_v47 = vld [vmem:[%s7987_s0 + $0x548] sm:$0xf0] }
 0x2d2   :  { %v6500_v6 = vpop.f32.mrf.mxu3  ;;  %v4267_v60 = vor.u32 %v4733_v27, %v4264_v44  ;;  %v4230_v26 = vld [vmem:[%s7987_s0 + $0x538] sm:$0xf] }
 0x2d3   :  { %8160 = vst [vmem:[#allocation7_spill] sm:$0xff] %v6496_v14 }
 0x2d4   :  { %4548 = vmatmul.msk.bf16.gmra.mxu0 %vm1577_vm0, %v4211_v52  ;;  %v2258_v4 = vpop.f32.mrf.mxu2 }
 0x2d5   :  { %v2259_v10 = vadd.f32 %v2258_v4, %v2045_v39  ;;  %v4722_v39 = vld [vmem:[%s7987_s0 + $0x52c] sm:$0xf]  ;;  %v4231_v4 = vor.u32 %v4726_v47, %v4230_v26 }
 0x2d6   :  { %v2046_v2 = vpop.f32.mrf.mxu1  ;;  %v4730_v47 = vld [vmem:[%s7987_s0 + $0x568] sm:$0xf0] }
 0x2d7   :  { %v2473_v20 = vadd.f32 %v6419_v15, %v2259_v10  ;;  %v4216_v15 = vld [vmem:[%s7987_s0 + $0x53c] sm:$0xf0]  ;;  %v4222_v10 = vld [vmem:[%s7987_s0 + $0x530] sm:$0xf]  ;;  %v2047_v7 = vadd.f32 %v2046_v2, %v8163_v55  ;;  %2526 = vmatmul.bf16.gmra.mxu3 %v4267_v60  ;;  %v8165_v55 = vld [vmem:[#allocation13_spill] sm:$0xff] }
 0x2d8   :  { %v4219_v62 = vor.u32 %v4722_v39, %v4216_v15 }
 0x2d9   :  { %v2688_v21 = vpop.f32.mrf.mxu0  ;;  %v6509_v16 = vadd.f32 %v2686_v58, %v2473_v20  ;;  %v4223_v58 = vor.u32 %v4725_v8, %v4222_v10 }
 0x2da   :  { %v6530_v20 = vpop.f32.mrf.mxu3 }
 0x2db   :  { %8162 = vst [vmem:[#allocation9_spill] sm:$0xff] %v6509_v16 }
 0x2dc   :  { %v2260_v12 = vpop.f32.mrf.mxu2 }
 0x2dd   :  { %v2261_v52 = vadd.f32 %v2260_v12, %v2047_v7  ;;  %v8167_v12 = vld [vmem:[#allocation15_spill] sm:$0xff] }
 0x2de   :  { %v2049_v35 = vpop.f32.mrf.mxu1 }
 0x2df   :  { %v2475_v27 = vadd.f32 %v6426_v30, %v2261_v52  ;;  %v2050_v16 = vadd.f32 %v2049_v35, %v8165_v55  ;;  %v4738_v30 = vld [vmem:[%s7987_s0 + $0x5ac] sm:$0xf] }
 0x2e1   :  { %v2691_v2 = vpop.f32.mrf.mxu0  ;;  %v6533_v44 = vadd.f32 %v2688_v21, %v2475_v27  ;;  %2088 = vmatmul.bf16.gmra.mxu1 %v4219_v62  ;;  %2302 = vmatmul.bf16.gmra.mxu2 %v4223_v58  ;;  %v4284_v21 = vld [vmem:[%s7987_s0 + $0x5bc] sm:$0xf0]  ;;  %v4731_v58 = vld [vmem:[%s7987_s0 + $0x570] sm:$0xf0] }
 0x2e2   :  { %v6537_v39 = vpop.f32.mrf.mxu3  ;;  %v4287_v26 = vor.u32 %v4738_v30, %v4284_v21  ;;  %v4250_v62 = vld [vmem:[%s7987_s0 + $0x560] sm:$0xf] }
 0x2e3   :  { %8164 = vst [vmem:[#allocation11_spill] sm:$0xff] %v6533_v44 }
 0x2e4   :  { %4549 = vmatmul.msk.bf16.gmra.mxu0 %vm1577_vm0, %v4231_v4  ;;  %v2263_v60 = vpop.f32.mrf.mxu2 }
 0x2e5   :  { %v2264_v14 = vadd.f32 %v2263_v60, %v2050_v16  ;;  %v4727_v16 = vld [vmem:[%s7987_s0 + $0x554] sm:$0xf]  ;;  %v4251_v60 = vor.u32 %v4731_v58, %v4250_v62 }
 0x2e6   :  { %v2051_v7 = vpop.f32.mrf.mxu1  ;;  %v4735_v58 = vld [vmem:[%s7987_s0 + $0x590] sm:$0xf0] }
 0x2e7   :  { %v2478_v15 = vadd.f32 %v6456_v29, %v2264_v14  ;;  %v4236_v29 = vld [vmem:[%s7987_s0 + $0x564] sm:$0xf0]  ;;  %v4242_v14 = vld [vmem:[%s7987_s0 + $0x558] sm:$0xf]  ;;  %v2052_v52 = vadd.f32 %v2051_v7, %v8167_v12  ;;  %2531 = vmatmul.bf16.gmra.mxu3 %v4287_v26 }
 0x2e8   :  { %v4239_v27 = vor.u32 %v4727_v16, %v4236_v29  ;;  %v8169_v12 = vld [vmem:[#allocation17_spill] sm:$0xff] }
 0x2e9   :  { %v2693_v10 = vpop.f32.mrf.mxu0  ;;  %v6546_v8 = vadd.f32 %v2691_v2, %v2478_v15  ;;  %v4243_v2 = vor.u32 %v4730_v47, %v4242_v14 }
 0x2ea   :  { %v6567_v15 = vpop.f32.mrf.mxu3 }
 0x2eb   :  { %8166 = vst [vmem:[#allocation13_spill] sm:$0xff] %v6546_v8 }
 0x2ec   :  { %v2265_v35 = vpop.f32.mrf.mxu2 }
 0x2ed   :  { %v2266_v4 = vadd.f32 %v2265_v35, %v2052_v52  ;;  %v8171_v35 = vld [vmem:[#allocation19_spill] sm:$0xff] }
 0x2ee   :  { %v2054_v55 = vpop.f32.mrf.mxu1 }
 0x2ef   :  { %v2480_v30 = vadd.f32 %v6463_v50, %v2266_v4  ;;  %v2055_v8 = vadd.f32 %v2054_v55, %v8169_v12  ;;  %v4743_v50 = vld [vmem:[%s7987_s0 + $0x5d4] sm:$0xf] }
 0x2f1   :  { %v2696_v7 = vpop.f32.mrf.mxu0  ;;  %v6570_v21 = vadd.f32 %v2693_v10, %v2480_v30  ;;  %2093 = vmatmul.bf16.gmra.mxu1 %v4239_v27  ;;  %2307 = vmatmul.bf16.gmra.mxu2 %v4243_v2  ;;  %v4304_v10 = vld [vmem:[%s7987_s0 + $0x5e4] sm:$0xf0]  ;;  %v4736_v2 = vld [vmem:[%s7987_s0 + $0x598] sm:$0xf0] }
 0x2f2   :  { %v6574_v16 = vpop.f32.mrf.mxu3  ;;  %v4307_v62 = vor.u32 %v4743_v50, %v4304_v10  ;;  %v4270_v27 = vld [vmem:[%s7987_s0 + $0x588] sm:$0xf] }
 0x2f3   :  { %8168 = vst [vmem:[#allocation15_spill] sm:$0xff] %v6570_v21 }
 0x2f4   :  { %4550 = vmatmul.msk.bf16.gmra.mxu0 %vm1577_vm0, %v4251_v60  ;;  %v2268_v26 = vpop.f32.mrf.mxu2 }
 0x2f5   :  { %v2269_v44 = vadd.f32 %v2268_v26, %v2055_v8  ;;  %v4732_v8 = vld [vmem:[%s7987_s0 + $0x57c] sm:$0xf]  ;;  %v4271_v26 = vor.u32 %v4736_v2, %v4270_v27 }
 0x2f6   :  { %v2056_v52 = vpop.f32.mrf.mxu1  ;;  %v4740_v2 = vld [vmem:[%s7987_s0 + $0x5b8] sm:$0xf0] }
 0x2f7   :  { %v2483_v29 = vadd.f32 %v6493_v25, %v2269_v44  ;;  %v4256_v25 = vld [vmem:[%s7987_s0 + $0x58c] sm:$0xf0]  ;;  %v4262_v44 = vld [vmem:[%s7987_s0 + $0x580] sm:$0xf]  ;;  %v2057_v4 = vadd.f32 %v2056_v52, %v8171_v35  ;;  %2536 = vmatmul.bf16.gmra.mxu3 %v4307_v62  ;;  %v8173_v35 = vld [vmem:[#allocation21_spill] sm:$0xff] }
 0x2f8   :  { %v4259_v30 = vor.u32 %v4732_v8, %v4256_v25 }
 0x2f9   :  { %v2698_v14 = vpop.f32.mrf.mxu0  ;;  %v6583_v47 = vadd.f32 %v2696_v7, %v2483_v29  ;;  %v4263_v7 = vor.u32 %v4735_v58, %v4262_v44 }
 0x2fa   :  { %v6604_v29 = vpop.f32.mrf.mxu3 }
 0x2fb   :  { %8170 = vst [vmem:[#allocation17_spill] sm:$0xff] %v6583_v47 }
 0x2fc   :  { %v2270_v55 = vpop.f32.mrf.mxu2 }
 0x2fd   :  { %v2271_v60 = vadd.f32 %v2270_v55, %v2057_v4  ;;  %v8175_v55 = vld [vmem:[#allocation23_spill] sm:$0xff] }
 0x2fe   :  { %v2059_v12 = vpop.f32.mrf.mxu1 }
 0x2ff   :  { %v2485_v50 = vadd.f32 %v6500_v6, %v2271_v60  ;;  %v2060_v47 = vadd.f32 %v2059_v12, %v8173_v35  ;;  %v4748_v6 = vld [vmem:[%s7987_s0 + $0x5fc] sm:$0xf] }
 0x301   :  { %v2701_v52 = vpop.f32.mrf.mxu0  ;;  %v6607_v10 = vadd.f32 %v2698_v14, %v2485_v50  ;;  %2098 = vmatmul.bf16.gmra.mxu1 %v4259_v30  ;;  %2312 = vmatmul.bf16.gmra.mxu2 %v4263_v7  ;;  %v4324_v14 = vld [vmem:[%s7987_s0 + $0x60c] sm:$0xf0]  ;;  %v4741_v7 = vld [vmem:[%s7987_s0 + $0x5c0] sm:$0xf0] }
 0x302   :  { %v6611_v8 = vpop.f32.mrf.mxu3  ;;  %v4327_v27 = vor.u32 %v4748_v6, %v4324_v14  ;;  %v4290_v30 = vld [vmem:[%s7987_s0 + $0x5b0] sm:$0xf] }
 0x303   :  { %8172 = vst [vmem:[#allocation19_spill] sm:$0xff] %v6607_v10 }
 0x304   :  { %4551 = vmatmul.msk.bf16.gmra.mxu0 %vm1577_vm0, %v4271_v26  ;;  %v2273_v62 = vpop.f32.mrf.mxu2 }
 0x305   :  { %v2274_v21 = vadd.f32 %v2273_v62, %v2060_v47  ;;  %v4737_v47 = vld [vmem:[%s7987_s0 + $0x5a4] sm:$0xf]  ;;  %v4291_v62 = vor.u32 %v4741_v7, %v4290_v30 }
 0x306   :  { %v2061_v4 = vpop.f32.mrf.mxu1  ;;  %v4745_v7 = vld [vmem:[%s7987_s0 + $0x5e0] sm:$0xf0] }
 0x307   :  { %v2488_v25 = vadd.f32 %v6530_v20, %v2274_v21  ;;  %v4276_v20 = vld [vmem:[%s7987_s0 + $0x5b4] sm:$0xf0]  ;;  %v4282_v21 = vld [vmem:[%s7987_s0 + $0x5a8] sm:$0xf]  ;;  %v2062_v60 = vadd.f32 %v2061_v4, %v8175_v55  ;;  %2541 = vmatmul.bf16.gmra.mxu3 %v4327_v27 }
 0x308   :  { %v4279_v50 = vor.u32 %v4737_v47, %v4276_v20  ;;  %v8177_v55 = vld [vmem:[#allocation25_spill] sm:$0xff] }
 0x309   :  { %v2703_v44 = vpop.f32.mrf.mxu0  ;;  %v6620_v58 = vadd.f32 %v2701_v52, %v2488_v25  ;;  %v4283_v52 = vor.u32 %v4740_v2, %v4282_v21 }
 0x30a   :  { %v6641_v25 = vpop.f32.mrf.mxu3 }
 0x30b   :  { %8174 = vst [vmem:[#allocation21_spill] sm:$0xff] %v6620_v58 }
 0x30c   :  { %v2275_v12 = vpop.f32.mrf.mxu2 }
 0x30d   :  { %v2276_v26 = vadd.f32 %v2275_v12, %v2062_v60  ;;  %v8179_v12 = vld [vmem:[#allocation27_spill] sm:$0xff] }
 0x30e   :  { %v2064_v35 = vpop.f32.mrf.mxu1 }
 0x30f   :  { %v2490_v6 = vadd.f32 %v6537_v39, %v2276_v26  ;;  %v2065_v58 = vadd.f32 %v2064_v35, %v8177_v55  ;;  %v4753_v39 = vld [vmem:[%s7987_s0 + $0x624] sm:$0xf] }
 0x311   :  { %v2706_v4 = vpop.f32.mrf.mxu0  ;;  %v6644_v14 = vadd.f32 %v2703_v44, %v2490_v6  ;;  %2103 = vmatmul.bf16.gmra.mxu1 %v4279_v50  ;;  %2317 = vmatmul.bf16.gmra.mxu2 %v4283_v52  ;;  %v4344_v44 = vld [vmem:[%s7987_s0 + $0x634] sm:$0xf0]  ;;  %v4746_v52 = vld [vmem:[%s7987_s0 + $0x5e8] sm:$0xf0] }
 0x312   :  { %v6648_v47 = vpop.f32.mrf.mxu3  ;;  %v4347_v30 = vor.u32 %v4753_v39, %v4344_v44  ;;  %v4310_v50 = vld [vmem:[%s7987_s0 + $0x5d8] sm:$0xf] }
 0x313   :  { %8176 = vst [vmem:[#allocation23_spill] sm:$0xff] %v6644_v14 }
 0x314   :  { %4552 = vmatmul.msk.bf16.gmra.mxu0 %vm1577_vm0, %v4291_v62  ;;  %v2278_v27 = vpop.f32.mrf.mxu2 }
 0x315   :  { %v2279_v10 = vadd.f32 %v2278_v27, %v2065_v58  ;;  %v4742_v58 = vld [vmem:[%s7987_s0 + $0x5cc] sm:$0xf]  ;;  %v4311_v27 = vor.u32 %v4746_v52, %v4310_v50 }
 0x316   :  { %v2066_v60 = vpop.f32.mrf.mxu1 }
 0x317   :  { %v2493_v20 = vadd.f32 %v6567_v15, %v2279_v10  ;;  %v4296_v15 = vld [vmem:[%s7987_s0 + $0x5dc] sm:$0xf0]  ;;  %v4302_v10 = vld [vmem:[%s7987_s0 + $0x5d0] sm:$0xf]  ;;  %v2067_v26 = vadd.f32 %v2066_v60, %v8179_v12  ;;  %2546 = vmatmul.bf16.gmra.mxu3 %v4347_v30  ;;  %v8181_v12 = vld [vmem:[#allocation29_spill] sm:$0xff] }
 0x318   :  { %v4299_v6 = vor.u32 %v4742_v58, %v4296_v15 }
 0x319   :  { %v2708_v21 = vpop.f32.mrf.mxu0  ;;  %v6657_v2 = vadd.f32 %v2706_v4, %v2493_v20  ;;  %v4303_v4 = vor.u32 %v4745_v7, %v4302_v10  ;;  %v4747_v7 = vld [vmem:[%s7987_s0 + $0x5f4] sm:$0xf] }
 0x31a   :  { %v6679_v44 = vpop.f32.mrf.mxu3 }
 0x31b   :  { %8178 = vst [vmem:[#allocation25_spill] sm:$0xff] %v6657_v2 }
 0x31c   :  { %v2280_v35 = vpop.f32.mrf.mxu2 }
 0x31d   :  { %v2281_v62 = vadd.f32 %v2280_v35, %v2067_v26  ;;  %v8183_v35 = vld [vmem:[#allocation31_spill] sm:$0xff] }
 0x31e   :  { %v2069_v55 = vpop.f32.mrf.mxu1 }
 0x31f   :  { %v2495_v20 = vadd.f32 %v6574_v16, %v2281_v62  ;;  %v2070_v2 = vadd.f32 %v2069_v55, %v8181_v12  ;;  %v4758_v16 = vld [vmem:[%s7987_s0 + $0x64c] sm:$0xf] }
 0x321   :  { %v2711_v39 = vpop.f32.mrf.mxu0  ;;  %v6681_v60 = vadd.f32 %v2708_v21, %v2495_v20  ;;  %2108 = vmatmul.bf16.gmra.mxu1 %v4299_v6  ;;  %2322 = vmatmul.bf16.gmra.mxu2 %v4303_v4  ;;  %v4364_v21 = vld [vmem:[%s7987_s0 + $0x65c] sm:$0x10]  ;;  %v4751_v4 = vld [vmem:[%s7987_s0 + $0x610] sm:$0xf0] }
 0x322   :  { %v4367_v50 = vor.u32 %v4758_v16, %v4364_v21  ;;  %v6706_v52 = vpop.f32.mrf.mxu3  ;;  %v4330_v6 = vld [vmem:[%s7987_s0 + $0x600] sm:$0xf] }
 0x323   :  { %8180 = vst [vmem:[#allocation27_spill] sm:$0xff] %v6681_v60 }
 0x324   :  { %4553 = vmatmul.msk.bf16.gmra.mxu0 %vm1577_vm0, %v4311_v27  ;;  %v2283_v30 = vpop.f32.mrf.mxu2 }
 0x325   :  { %v2284_v14 = vadd.f32 %v2283_v30, %v2070_v2  ;;  %v4750_v2 = vld [vmem:[%s7987_s0 + $0x608] sm:$0xf0]  ;;  %v4331_v30 = vor.u32 %v4751_v4, %v4330_v6 }
 0x326   :  { %v2071_v26 = vpop.f32.mrf.mxu1  ;;  %v8187_v6 = vld [vmem:[#allocation35_spill] sm:$0xff] }
 0x327   :  { %v2498_v58 = vadd.f32 %v6604_v29, %v2284_v14  ;;  %v4316_v29 = vld [vmem:[%s7987_s0 + $0x604] sm:$0xf0]  ;;  %v4322_v14 = vld [vmem:[%s7987_s0 + $0x5f8] sm:$0xf]  ;;  %v2072_v62 = vadd.f32 %v2071_v26, %v8183_v35  ;;  %2551 = vmatmul.bf16.gmra.mxu3 %v4367_v50 }
 0x328   :  { %v4319_v20 = vor.u32 %v4747_v7, %v4316_v29  ;;  %v8185_v26 = vld [vmem:[#allocation33_spill] sm:$0xff] }
 0x329   :  { %v2713_v15 = vpop.f32.mrf.mxu0  ;;  %v6692_v10 = vadd.f32 %v2711_v39, %v2498_v58  ;;  %v4323_v39 = vor.u32 %v4750_v2, %v4322_v14  ;;  %v4342_v2 = vld [vmem:[%s7987_s0 + $0x620] sm:$0xf] }
 0x32a   :  { %v6720_v60 = vpop.f32.mrf.mxu3 }
 0x32b   :  { %8182 = vst [vmem:[#allocation29_spill] sm:$0xff] %v6692_v10 }
 0x32c   :  { %v2285_v55 = vpop.f32.mrf.mxu2 }
 0x32d   :  { %v2286_v27 = vadd.f32 %v2285_v55, %v2072_v62  ;;  %v4350_v55 = vld [vmem:[%s7987_s0 + $0x628] sm:$0xf] }
 0x32e   :  { %v2074_v12 = vpop.f32.mrf.mxu1 }
 0x32f   :  { %v2500_v58 = vadd.f32 %v6611_v8, %v2286_v27  ;;  %v2075_v35 = vadd.f32 %v2074_v12, %v8185_v26  ;;  %v4752_v8 = vld [vmem:[%s7987_s0 + $0x61c] sm:$0xf] }
 0x330   :  { %v4756_v27 = vld [vmem:[%s7987_s0 + $0x638] sm:$0xf0] }
 0x331   :  { %v2716_v16 = vpop.f32.mrf.mxu0  ;;  %v6716_v21 = vadd.f32 %v2713_v15, %v2500_v58  ;;  %2113 = vmatmul.bf16.gmra.mxu1 %v4319_v20  ;;  %2327 = vmatmul.bf16.gmra.mxu2 %v4323_v39  ;;  %v4336_v15 = vld [vmem:[%s7987_s0 + $0x62c] sm:$0xf0] }
 0x332   :  { %v8188_v20 = vld [vmem:[#allocation44_spill] sm:$0xff] }
 0x333   :  { %8184 = vst [vmem:[#allocation31_spill] sm:$0xff] %v6716_v21  ;;  %v2942_v39 = vmul.f32 %v8188_v20, %v8188_v20 }
 0x334   :  { %4554 = vmatmul.msk.bf16.gmra.mxu0 %vm1577_vm0, %v4331_v30  ;;  %v2288_v10 = vpop.f32.mrf.mxu2  ;;  %v2944_v30 = vmul.f32 %v5658_v3, %v5658_v3 }
 0x335   :  { %v2289_v50 = vadd.f32 %v2288_v10, %v2075_v35  ;;  %v4755_v10 = vld [vmem:[%s7987_s0 + $0x630] sm:$0xf0] }
 0x336   :  { %v2076_v62 = vpop.f32.mrf.mxu1  ;;  %v4343_v26 = vor.u32 %v4755_v10, %v4342_v2  ;;  %v3027_v2 = vsel %vm2771_vm1, %v2944_v30, 0.0  ;;  %v2946_v10 = vmul.f32 %v5695_v11, %v5695_v11  ;;  %v8190_v30 = vld [vmem:[#allocation37_spill] sm:$0xff] }
 0x337   :  { %v2503_v7 = vadd.f32 %v6641_v25, %v2289_v50  ;;  %v2943_v25 = vmul.f32 %v5645_v5, %v5645_v5  ;;  %v2077_v4 = vadd.f32 %v2076_v62, %v8187_v6  ;;  %v4351_v50 = vor.u32 %v4756_v27, %v4350_v55  ;;  %v6750_v62 = vpop.f32.mrf.mxu3 }
 0x338   :  { %v2777_v27 = vsel %vm2771_vm1, %v5682_v34, 0.0 }
 0x339   :  { %v2718_v29 = vpop.f32.mrf.mxu0  ;;  %v6723_v14 = vadd.f32 %v2716_v16, %v2503_v7  ;;  %v4339_v16 = vor.u32 %v4752_v8, %v4336_v15  ;;  %v2773_v7 = vsel %vm2771_vm1, %v5645_v5, 0.0  ;;  %v3025_v6 = vsel %vm2771_vm1, %v2943_v25, 0.0 }
 0x33a   :  { %v3024_v8 = vsel %vm2771_vm1, %v2942_v39, 0.0  ;;  %v2775_v15 = vsel %vm2771_vm1, %v5658_v3, 0.0 }
 0x33b   :  { %8186 = vst [vmem:[#allocation33_spill] sm:$0xff] %v6723_v14  ;;  %v2945_v14 = vmul.f32 %v5682_v34, %v5682_v34 }
 0x33c   :  { %v2290_v12 = vpop.f32.mrf.mxu2 }
 0x33d   :  { %v2291_v58 = vadd.f32 %v2290_v12, %v2077_v4  ;;  %v2772_v4 = vsel %vm2771_vm1, %v8188_v20, 0.0  ;;  %v3029_v39 = vsel %vm2771_vm1, %v2945_v14, 0.0  ;;  %v2947_v12 = vmul.f32 %v5719_v31, %v5719_v31 }
 0x33e   :  { %v2079_v35 = vpop.f32.mrf.mxu1  ;;  %v2774_v55 = vadd.f32 %v2773_v7, %v2772_v4  ;;  %v2781_v4 = vsel %vm2771_vm1, %v5719_v31, 0.0 }
 0x33f   :  { %v2505_v21 = vadd.f32 %v6648_v47, %v2291_v58  ;;  %v3026_v47 = vadd.f32 %v3025_v6, %v3024_v8  ;;  %v2080_v58 = vadd.f32 %v2079_v35, %v8190_v30  ;;  %v3033_v35 = vsel %vm2771_vm1, %v2947_v12, 0.0 }
 0x340   :  { %v2776_v3 = vadd.f32 %v2775_v15, %v2774_v55  ;;  %v2950_v30 = vmul.f32 %v5769_v61, %v5769_v61 }
 0x341   :  { %v2721_v51 = vpop.f32.mrf.mxu0  ;;  %v6766_v25 = vadd.f32 %v2718_v29, %v2505_v21  ;;  %2118 = vmatmul.bf16.gmra.mxu1 %v4339_v16  ;;  %2332 = vmatmul.bf16.gmra.mxu2 %v4343_v26  ;;  %v3028_v5 = vadd.f32 %v3027_v2, %v3026_v47  ;;  %v2779_v29 = vsel %vm2771_vm1, %v5695_v11, 0.0  ;;  %v3031_v16 = vsel %vm2771_vm1, %v2946_v10, 0.0  ;;  %v6786_v47 = vpop.f32.mrf.mxu3 }
 0x342   :  { %v2948_v26 = vmul.f32 %v5732_v48, %v5732_v48  ;;  %v2778_v7 = vadd.f32 %v2777_v27, %v2776_v3  ;;  %v2949_v10 = vmul.f32 %v5756_v45, %v5756_v45  ;;  %v2783_v3 = vsel %vm2771_vm1, %v5732_v48, 0.0 }
 0x343   :  { %8189 = vst [vmem:[#allocation35_spill] sm:$0xff] %v6766_v25  ;;  %v3030_v6 = vadd.f32 %v3029_v39, %v3028_v5  ;;  %v4757_v39 = vld [vmem:[%s7987_s0 + $0x644] sm:$0xf]  ;;  %v3039_v31 = vsel %vm2771_vm1, %v2950_v30, 0.0  ;;  %v2952_v11 = vmul.f32 %v5806_v1, %v5806_v1  ;;  %v2791_v30 = vsel %vm2771_vm1, %v5806_v1, 0.0 }
 0x344   :  { %4555 = vmatmul.msk.bf16.gmra.mxu0 %vm1577_vm0, %v4351_v50  ;;  %v2293_v21 = vpop.f32.mrf.mxu2  ;;  %v2780_v2 = vadd.f32 %v2779_v29, %v2778_v7  ;;  %v3035_v5 = vsel %vm2771_vm1, %v2948_v26, 0.0  ;;  %v2785_v29 = vsel %vm2771_vm1, %v5756_v45, 0.0  ;;  %v4761_v7 = vld [vmem:[%s7987_s0 + $0x660] sm:$0x10] }
 0x345   :  { %v2294_v50 = vadd.f32 %v2293_v21, %v2080_v58  ;;  %v3032_v55 = vadd.f32 %v3031_v16, %v3030_v6  ;;  %v4356_v58 = vld [vmem:[%s7987_s0 + $0x654] sm:$0x10]  ;;  %v4362_v21 = vld [vmem:[%s7987_s0 + $0x648] sm:$0xf] }
 0x346   :  { %v2081_v14 = vpop.f32.mrf.mxu1  ;;  %v8192_v16 = vld [vmem:[#allocation39_spill] sm:$0xff] }
 0x347   :  { %v2508_v8 = vadd.f32 %v6679_v44, %v2294_v50  ;;  %v2782_v44 = vadd.f32 %v2781_v4, %v2780_v2  ;;  %v3034_v12 = vadd.f32 %v3033_v35, %v3032_v55  ;;  %v2082_v26 = vadd.f32 %v2081_v14, %v8192_v16  ;;  %v4370_v50 = vld [vmem:[%s7987_s0 + $0x650] sm:$0xf] }
 0x348   :  { %v3037_v35 = vsel %vm2771_vm1, %v2949_v10, 0.0  ;;  %v2787_v55 = vsel %vm2771_vm1, %v5769_v61, 0.0  ;;  %v4359_v16 = vor.u32 %v4757_v39, %v4356_v58  ;;  %v2789_v10 = vsel %vm2771_vm1, %v5793_v17, 0.0 }
 0x349   :  { %v2723_v15 = vpop.f32.mrf.mxu0  ;;  %v6791_v27 = vadd.f32 %v2721_v51, %v2508_v8  ;;  %v4760_v51 = vld [vmem:[%s7987_s0 + $0x658] sm:$0x10]  ;;  %v2784_v6 = vadd.f32 %v2783_v3, %v2782_v44  ;;  %v3036_v4 = vadd.f32 %v3035_v5, %v3034_v12  ;;  %v2951_v8 = vmul.f32 %v5793_v17, %v5793_v17 }
 0x34a   :  { %v4363_v45 = vor.u32 %v4760_v51, %v4362_v21  ;;  %v4371_v5 = vor.u32 %v4761_v7, %v4370_v50  ;;  %v2953_v39 = vmul.f32 %v5830_v36, %v5830_v36  ;;  %v8193_v7 = vld [vmem:[#allocation41_spill] sm:$0xff] }
 0x34b   :  { %8191 = vst [vmem:[#allocation37_spill] sm:$0xff] %v6791_v27  ;;  %v2786_v48 = vadd.f32 %v2785_v29, %v2784_v6  ;;  %v3038_v44 = vadd.f32 %v3037_v35, %v3036_v4  ;;  %v3043_v29 = vsel %vm2771_vm1, %v2952_v11, 0.0  ;;  %v2795_v35 = vsel %vm2771_vm1, %v5843_v40, 0.0 }
 0x34c   :  { %v2295_v2 = vpop.f32.mrf.mxu2  ;;  %v3045_v4 = vsel %vm2771_vm1, %v2953_v39, 0.0  ;;  %v2957_v39 = vmul.f32 %v5904_v0, %v5904_v0 }
 0x34d   :  { %v2296_v14 = vadd.f32 %v2295_v2, %v2082_v26  ;;  %v2788_v20 = vadd.f32 %v2787_v55, %v2786_v48  ;;  %v3041_v26 = vsel %vm2771_vm1, %v2951_v8, 0.0  ;;  %v3040_v58 = vadd.f32 %v3039_v31, %v3038_v44  ;;  %v6838_v48 = vpop.f32.mrf.mxu3 }
 0x34e   :  { %v2084_v3 = vpop.f32.mrf.mxu1  ;;  %v2793_v31 = vsel %vm2771_vm1, %v5830_v36, 0.0 }
 0x34f   :  { %v2510_v12 = vadd.f32 %v6706_v52, %v2296_v14  ;;  %v2790_v51 = vadd.f32 %v2789_v10, %v2788_v20  ;;  %v2954_v52 = vmul.f32 %v5843_v40, %v5843_v40  ;;  %v3042_v50 = vadd.f32 %v3041_v26, %v3040_v58 }
 0x350   :  { %v2085_v6 = vadd.f32 %v2084_v3, %v8193_v7  ;;  %v2956_v14 = vmul.f32 %v5880_v59, %v5880_v59  ;;  %v8194_v7 = vld [vmem:[#allocation43_spill] sm:$0xff] }
 0x351   :  { %v2726_v34 = vpop.f32.mrf.mxu0  ;;  %v6832_v21 = vadd.f32 %v2723_v15, %v2510_v12  ;;  %2123 = vmatmul.bf16.gmra.mxu1 %v4359_v16  ;;  %2337 = vmatmul.bf16.gmra.mxu2 %v4363_v45  ;;  %v2792_v15 = vadd.f32 %v2791_v30, %v2790_v51  ;;  %v2955_v45 = vmul.f32 %v5867_v54, %v5867_v54  ;;  %v3047_v55 = vsel %vm2771_vm1, %v2954_v52, 0.0 }
 0x352   :  { %v3044_v20 = vadd.f32 %v3043_v29, %v3042_v50  ;;  %v2799_v30 = vsel %vm2771_vm1, %v5880_v59, 0.0  ;;  %v3051_v52 = vsel %vm2771_vm1, %v2956_v14, 0.0  ;;  %v2958_v50 = vmul.f32 %v5917_v13, %v5917_v13 }
 0x353   :  { %v2794_v2 = vadd.f32 %v2793_v31, %v2792_v15  ;;  %v3049_v26 = vsel %vm2771_vm1, %v2955_v45, 0.0  ;;  %v2801_v31 = vsel %vm2771_vm1, %v5904_v0, 0.0  ;;  %v2959_v45 = vmul.f32 %v5941_v38, %v5941_v38 }
 0x354   :  { %4556 = vmatmul.msk.bf16.gmra.mxu0 %vm1577_vm0, %v4371_v5  ;;  %v2298_v11 = vpop.f32.mrf.mxu2  ;;  %v3046_v3 = vadd.f32 %v3045_v4, %v3044_v20  ;;  %v2797_v5 = vsel %vm2771_vm1, %v5867_v54, 0.0  ;;  %v3053_v4 = vsel %vm2771_vm1, %v2957_v39, 0.0  ;;  %v2960_v14 = vmul.f32 %v5954_v33, %v5954_v33 }
 0x355   :  { %v2299_v8 = vadd.f32 %v2298_v11, %v2085_v6  ;;  %v2796_v12 = vadd.f32 %v2795_v35, %v2794_v2  ;;  %v6870_v11 = vpop.f32.mrf.mxu3  ;;  %v2803_v35 = vsel %vm2771_vm1, %v5917_v13, 0.0  ;;  %v3057_v39 = vsel %vm2771_vm1, %v2959_v45, 0.0 }
 0x356   :  { %v2086_v16 = vpop.f32.mrf.mxu1  ;;  %v3048_v58 = vadd.f32 %v3047_v55, %v3046_v3  ;;  %v3055_v55 = vsel %vm2771_vm1, %v2958_v50, 0.0 }
 0x357   :  { %v2513_v44 = vadd.f32 %v6720_v60, %v2299_v8  ;;  %v2798_v29 = vadd.f32 %v2797_v5, %v2796_v12  ;;  %v2087_v6 = vadd.f32 %v2086_v16, %v8194_v7  ;;  %v2805_v5 = vsel %vm2771_vm1, %v5941_v38, 0.0 }
 0x358   :  { %v3050_v60 = vadd.f32 %v3049_v26, %v3048_v58  ;;  %v2961_v58 = vmul.f32 %v5978_v49, %v5978_v49  ;;  %v2809_v7 = vsel %vm2771_vm1, %v5978_v49, 0.0  ;;  %v8223_v49 = vld [vmem:[#allocation33_spill] sm:$0xff] }
 0x359   :  { %v2728_v10 = vpop.f32.mrf.mxu0  ;;  %v6859_v51 = vadd.f32 %v2726_v34, %v2513_v44  ;;  %v2800_v15 = vadd.f32 %v2799_v30, %v2798_v29  ;;  %v2807_v29 = vsel %vm2771_vm1, %v5954_v33, 0.0 }
 0x35a   :  { %v3052_v20 = vadd.f32 %v3051_v52, %v3050_v60  ;;  %v3059_v60 = vsel %vm2771_vm1, %v2960_v14, 0.0  ;;  %v3061_v45 = vsel %vm2771_vm1, %v2961_v58, 0.0  ;;  %v2964_v14 = vmul.f32 %v6028_v9, %v6028_v9 }
 0x35b   :  { %v2802_v2 = vadd.f32 %v2801_v31, %v2800_v15  ;;  %v2962_v31 = vmul.f32 %v5991_v53, %v5991_v53 }
 0x35c   :  { %v2300_v34 = vpop.f32.mrf.mxu2  ;;  %v3054_v3 = vadd.f32 %v3053_v4, %v3052_v20 }
 0x35d   :  { %v2301_v8 = vadd.f32 %v2300_v34, %v2087_v6  ;;  %v2804_v26 = vadd.f32 %v2803_v35, %v2802_v2  ;;  %v8195_v6 = vld [vmem:[#allocation4_spill] sm:$0xff]  ;;  %v2963_v34 = vmul.f32 %v6015_v37, %v6015_v37  ;;  %v2811_v35 = vsel %vm2771_vm1, %v5991_v53, 0.0 }
 0x35e   :  { %v2089_v16 = vpop.f32.mrf.mxu1  ;;  %v3056_v30 = vadd.f32 %v3055_v55, %v3054_v3  ;;  %v3063_v55 = vsel %vm2771_vm1, %v2962_v31, 0.0 }
 0x35f   :  { %v2515_v44 = vadd.f32 %v6750_v62, %v2301_v8  ;;  %v2806_v50 = vadd.f32 %v2805_v5, %v2804_v26  ;;  %v2090_v15 = vadd.f32 %v2089_v16, %v8195_v6  ;;  %v6901_v16 = vpop.f32.mrf.mxu3  ;;  %v2966_v6 = vmul.f32 %v6065_v42, %v6065_v42 }
 0x360   :  { %v3058_v62 = vadd.f32 %v3057_v39, %v3056_v30  ;;  %v3065_v30 = vsel %vm2771_vm1, %v2963_v34, 0.0 }
 0x361   :  { %v2731_v12 = vpop.f32.mrf.mxu0  ;;  %v6885_v52 = vadd.f32 %v2728_v10, %v2515_v44  ;;  %v2808_v4 = vadd.f32 %v2807_v29, %v2806_v50  ;;  %v2813_v44 = vsel %vm2771_vm1, %v6015_v37, 0.0  ;;  %v2965_v29 = vmul.f32 %v6052_v57, %v6052_v57 }
 0x362   :  { %v3060_v20 = vadd.f32 %v3059_v60, %v3058_v62  ;;  %v2815_v60 = vsel %vm2771_vm1, %v6028_v9, 0.0 }
 0x363   :  { %v2810_v2 = vadd.f32 %v2809_v7, %v2808_v4  ;;  %v3067_v7 = vsel %vm2771_vm1, %v2964_v14, 0.0  ;;  %v8196_v4 = vld [vmem:[#allocation6_spill] sm:$0xff]  ;;  %v3071_v14 = vsel %vm2771_vm1, %v2966_v6, 0.0  ;;  %v2823_v6 = vsel %vm2771_vm1, %v6102_v19, 0.0 }
 0x364   :  { %v2303_v10 = vpop.f32.mrf.mxu2  ;;  %v3062_v5 = vadd.f32 %v3061_v45, %v3060_v20  ;;  %v2967_v20 = vmul.f32 %v6089_v18, %v6089_v18 }
 0x365   :  { %v2304_v8 = vadd.f32 %v2303_v10, %v2090_v15  ;;  %v2812_v58 = vadd.f32 %v2811_v35, %v2810_v2  ;;  %v2817_v15 = vsel %vm2771_vm1, %v6052_v57, 0.0  ;;  %v3069_v10 = vsel %vm2771_vm1, %v2965_v29, 0.0  ;;  %v8219_v57 = vld [vmem:[#allocation25_spill] sm:$0xff] }
 0x366   :  { %v2091_v3 = vpop.f32.mrf.mxu1  ;;  %v3064_v50 = vadd.f32 %v3063_v55, %v3062_v5  ;;  %v2968_v5 = vmul.f32 %v6102_v19, %v6102_v19  ;;  %v8216_v19 = vld [vmem:[#allocation19_spill] sm:$0xff] }
 0x367   :  { %v2518_v26 = vadd.f32 %v6786_v47, %v2304_v8  ;;  %v2814_v62 = vadd.f32 %v2813_v44, %v2812_v58  ;;  %v2092_v45 = vadd.f32 %v2091_v3, %v8196_v4  ;;  %v2819_v8 = vsel %vm2771_vm1, %v6065_v42, 0.0 }
 0x368   :  { %v3066_v47 = vadd.f32 %v3065_v30, %v3064_v50  ;;  %v3073_v50 = vsel %vm2771_vm1, %v2967_v20, 0.0  ;;  %v3075_v4 = vsel %vm2771_vm1, %v2968_v5, 0.0 }
 0x369   :  { %v2733_v39 = vpop.f32.mrf.mxu0  ;;  %v6911_v31 = vadd.f32 %v2731_v12, %v2518_v26  ;;  %v2816_v34 = vadd.f32 %v2815_v60, %v2814_v62  ;;  %v2821_v26 = vsel %vm2771_vm1, %v6089_v18, 0.0  ;;  %v2969_v60 = vmul.f32 %v6126_v46, %v6126_v46  ;;  %v6933_v62 = vpop.f32.mrf.mxu3  ;;  %v8217_v18 = vld [vmem:[#allocation21_spill] sm:$0xff] }
 0x36a   :  { %v3068_v35 = vadd.f32 %v3067_v7, %v3066_v47 }
 0x36b   :  { %v2818_v55 = vadd.f32 %v2817_v15, %v2816_v34  ;;  %v2825_v34 = vsel %vm2771_vm1, %v6126_v46, 0.0  ;;  %v8215_v46 = vld [vmem:[#allocation17_spill] sm:$0xff] }
 0x36c   :  { %v2305_v12 = vpop.f32.mrf.mxu2  ;;  %v3070_v3 = vadd.f32 %v3069_v10, %v3068_v35  ;;  %v8197_v10 = vld [vmem:[#allocation8_spill] sm:$0xff]  ;;  %v3077_v35 = vsel %vm2771_vm1, %v2969_v60, 0.0 }
 0x36d   :  { %v2306_v2 = vadd.f32 %v2305_v12, %v2092_v45  ;;  %v2820_v29 = vadd.f32 %v2819_v8, %v2818_v55  ;;  %v2971_v8 = vmul.f32 %v6163_v23, %v6163_v23  ;;  %v2827_v55 = vsel %vm2771_vm1, %v6139_v63, 0.0 }
 0x36e   :  { %v2094_v44 = vpop.f32.mrf.mxu1  ;;  %v3072_v7 = vadd.f32 %v3071_v14, %v3070_v3 }
 0x36f   :  { %v2520_v58 = vadd.f32 %v6838_v48, %v2306_v2  ;;  %v2822_v15 = vadd.f32 %v2821_v26, %v2820_v29  ;;  %v2970_v48 = vmul.f32 %v6139_v63, %v6139_v63  ;;  %v2095_v20 = vadd.f32 %v2094_v44, %v8197_v10 }
 0x370   :  { %v3074_v45 = vadd.f32 %v3073_v50, %v3072_v7  ;;  %v2972_v26 = vmul.f32 %v6176_v22, %v6176_v22  ;;  %v2829_v29 = vsel %vm2771_vm1, %v6163_v23, 0.0 }
 0x371   :  { %v2736_v30 = vpop.f32.mrf.mxu0  ;;  %v6937_v47 = vadd.f32 %v2733_v39, %v2520_v58  ;;  %v2824_v12 = vadd.f32 %v2823_v6, %v2822_v15  ;;  %v3079_v3 = vsel %vm2771_vm1, %v2970_v48, 0.0  ;;  %v3081_v6 = vsel %vm2771_vm1, %v2971_v8, 0.0  ;;  %v8198_v8 = vld [vmem:[#allocation10_spill] sm:$0xff] }
 0x372   :  { %v3076_v2 = vadd.f32 %v3075_v4, %v3074_v45  ;;  %v2973_v15 = vmul.f32 %v6200_v24, %v6200_v24  ;;  %v2831_v48 = vsel %vm2771_vm1, %v6176_v22, 0.0  ;;  %v3083_v10 = vsel %vm2771_vm1, %v2972_v26, 0.0  ;;  %v8212_v22 = vld [vmem:[#allocation11_spill] sm:$0xff] }
 0x373   :  { %v2826_v5 = vadd.f32 %v2825_v34, %v2824_v12  ;;  %v2991_v23 = vmul.f32 %v8212_v22, %v8212_v22 }
 0x374   :  { %v2308_v39 = vpop.f32.mrf.mxu2  ;;  %v3078_v44 = vadd.f32 %v3077_v35, %v3076_v2  ;;  %v2833_v35 = vsel %vm2771_vm1, %v6200_v24, 0.0 }
 0x375   :  { %v2309_v14 = vadd.f32 %v2308_v39, %v2095_v20  ;;  %v2828_v7 = vadd.f32 %v2827_v55, %v2826_v5  ;;  %v2974_v20 = vmul.f32 %v6213_v56, %v6213_v56  ;;  %v3085_v55 = vsel %vm2771_vm1, %v2973_v15, 0.0 }
 0x376   :  { %v2096_v58 = vpop.f32.mrf.mxu1  ;;  %v3080_v4 = vadd.f32 %v3079_v3, %v3078_v44  ;;  %v2835_v3 = vsel %vm2771_vm1, %v6213_v56, 0.0 }
 0x377   :  { %v2523_v50 = vadd.f32 %v6870_v11, %v2309_v14  ;;  %v2830_v34 = vadd.f32 %v2829_v29, %v2828_v7  ;;  %v6966_v11 = vpop.f32.mrf.mxu3  ;;  %v2097_v39 = vadd.f32 %v2096_v58, %v8198_v8  ;;  %v3087_v29 = vsel %vm2771_vm1, %v2974_v20, 0.0 }
 0x378   :  { %v3082_v12 = vadd.f32 %v3081_v6, %v3080_v4  ;;  %v2837_v6 = vsel %vm2771_vm1, %v6237_v41, 0.0  ;;  %v2839_v20 = vsel %vm2771_vm1, %v6250_v28, 0.0 }
 0x379   :  { %v2738_v60 = vpop.f32.mrf.mxu0  ;;  %v6961_v45 = vadd.f32 %v2736_v30, %v2523_v50  ;;  %v2832_v2 = vadd.f32 %v2831_v48, %v2830_v34  ;;  %v2975_v30 = vmul.f32 %v6237_v41, %v6237_v41  ;;  %v2976_v50 = vmul.f32 %v6250_v28, %v6250_v28  ;;  %v8207_v28 = vld [vmem:[#allocation2_spill] sm:$0xff] }
 0x37a   :  { %v3084_v5 = vadd.f32 %v3083_v10, %v3082_v12  ;;  %v2977_v10 = vmul.f32 %v6274_v32, %v6274_v32 }
 0x37b   :  { %v2834_v44 = vadd.f32 %v2833_v35, %v2832_v2  ;;  %v3089_v34 = vsel %vm2771_vm1, %v2975_v30, 0.0  ;;  %v2978_v2 = vmul.f32 %v6287_v43, %v6287_v43  ;;  %v8199_v30 = vld [vmem:[#allocation12_spill] sm:$0xff] }
 0x37c   :  { %v2310_v14 = vpop.f32.mrf.mxu2  ;;  %v3086_v58 = vadd.f32 %v3085_v55, %v3084_v5  ;;  %v2841_v55 = vsel %vm2771_vm1, %v6274_v32, 0.0 }
 0x37d   :  { %v2311_v26 = vadd.f32 %v2310_v14, %v2097_v39  ;;  %v2836_v48 = vadd.f32 %v2835_v3, %v2834_v44  ;;  %v3091_v39 = vsel %vm2771_vm1, %v2976_v50, 0.0  ;;  %v3093_v3 = vsel %vm2771_vm1, %v2977_v10, 0.0 }
 0x37e   :  { %v2099_v7 = vpop.f32.mrf.mxu1  ;;  %v3088_v12 = vadd.f32 %v3087_v29, %v3086_v58  ;;  %v2843_v50 = vsel %vm2771_vm1, %v6287_v43, 0.0  ;;  %v8204_v43 = vld [vmem:[#allocation38_spill] sm:$0xff] }
 0x37f   :  { %v2525_v15 = vadd.f32 %v6901_v16, %v2311_v26  ;;  %v2838_v8 = vadd.f32 %v2837_v6, %v2836_v48  ;;  %v2100_v14 = vadd.f32 %v2099_v7, %v8199_v30  ;;  %v8200_v26 = vld [vmem:[#allocation73_spill] sm:$0xff]  ;;  %v6998_v29 = vpop.f32.mrf.mxu3  ;;  %v3095_v48 = vsel %vm2771_vm1, %v2978_v2, 0.0 }
 0x380   :  { %v3090_v16 = vadd.f32 %v3089_v34, %v3088_v12  ;;  %v2979_v44 = vmul.f32 %v8200_v26, %v8200_v26  ;;  %v8201_v34 = vld [vmem:[#allocation74_spill] sm:$0xff] }
 0x381   :  { %v2741_v4 = vpop.f32.mrf.mxu0  ;;  %v6987_v35 = vadd.f32 %v2738_v60, %v2525_v15  ;;  %v2840_v5 = vadd.f32 %v2839_v20, %v2838_v8  ;;  %v2980_v7 = vmul.f32 %v8201_v34, %v8201_v34  ;;  %v2845_v20 = vsel %vm2771_vm1, %v8200_v26, 0.0  ;;  %v8203_v26 = vld [vmem:[#allocation36_spill] sm:$0xff] }
 0x382   :  { %v3092_v58 = vadd.f32 %v3091_v39, %v3090_v16  ;;  %v3097_v16 = vsel %vm2771_vm1, %v2979_v44, 0.0 }
 0x383   :  { %v2842_v15 = vadd.f32 %v2841_v55, %v2840_v5  ;;  %v2847_v5 = vsel %vm2771_vm1, %v8201_v34, 0.0 }
 0x384   :  { %v2313_v60 = vpop.f32.mrf.mxu2  ;;  %v3094_v10 = vadd.f32 %v3093_v3, %v3092_v58  ;;  %v3099_v58 = vsel %vm2771_vm1, %v2980_v7, 0.0 }
 0x385   :  { %v2314_v6 = vadd.f32 %v2313_v60, %v2100_v14  ;;  %v2844_v39 = vadd.f32 %v2843_v50, %v2842_v15  ;;  %v8202_v14 = vld [vmem:[#allocation75_spill] sm:$0xff] }
 0x386   :  { %v7005_v12 = vpop.f32.mrf.mxu1  ;;  %v2981_v55 = vmul.f32 %v8202_v14, %v8202_v14  ;;  %v3096_v2 = vadd.f32 %v3095_v48, %v3094_v10  ;;  %v2849_v50 = vsel %vm2771_vm1, %v8202_v14, 0.0  ;;  %v2983_v48 = vmul.f32 %v8204_v43, %v8204_v43 }
 0x387   :  { %v2528_v8 = vadd.f32 %v6933_v62, %v2314_v6  ;;  %v2846_v3 = vadd.f32 %v2845_v20, %v2844_v39  ;;  %v2982_v62 = vmul.f32 %v8203_v26, %v8203_v26  ;;  %v2851_v20 = vsel %vm2771_vm1, %v8203_v26, 0.0  ;;  %v8205_v39 = vld [vmem:[#allocation40_spill] sm:$0xff]  ;;  %v8206_v26 = vld [vmem:[#allocation42_spill] sm:$0xff] }
 0x388   :  { %v3098_v6 = vadd.f32 %v3097_v16, %v3096_v2  ;;  %v3101_v15 = vsel %vm2771_vm1, %v2981_v55, 0.0  ;;  %v2984_v16 = vmul.f32 %v8205_v39, %v8205_v39 }
 0x389   :  { %v7010_v30 = vpop.f32.mrf.mxu0  ;;  %v7017_v60 = vadd.f32 %v2741_v4, %v2528_v8  ;;  %v2848_v44 = vadd.f32 %v2847_v5, %v2846_v3  ;;  %v3103_v8 = vsel %vm2771_vm1, %v2982_v62, 0.0  ;;  %v7036_v5 = vpop.f32.mrf.mxu3  ;;  %v2853_v3 = vsel %vm2771_vm1, %v8204_v43, 0.0 }
 0x38a   :  { %v3100_v4 = vadd.f32 %v3099_v58, %v3098_v6  ;;  %v3105_v6 = vsel %vm2771_vm1, %v2983_v48, 0.0  ;;  %v3107_v32 = vsel %vm2771_vm1, %v2984_v16, 0.0  ;;  %v2857_v43 = vsel %vm2771_vm1, %v8206_v26, 0.0 }
 0x38b   :  { %v2850_v7 = vadd.f32 %v2849_v50, %v2848_v44  ;;  %v2985_v50 = vmul.f32 %v8206_v26, %v8206_v26  ;;  %v2855_v44 = vsel %vm2771_vm1, %v8205_v39, 0.0  ;;  %v8209_v39 = vld [vmem:[#allocation5_spill] sm:$0xff] }
 0x38c   :  { %v7027_v10 = vpop.f32.mrf.mxu2  ;;  %v3102_v55 = vadd.f32 %v3101_v15, %v3100_v4  ;;  %v2986_v15 = vmul.f32 %v8207_v28, %v8207_v28 }
 0x38d   :  { %v2852_v58 = vadd.f32 %v2851_v20, %v2850_v7  ;;  %v3109_v48 = vsel %vm2771_vm1, %v2985_v50, 0.0  ;;  %v8208_v7 = vld [vmem:[#allocation3_spill] sm:$0xff] }
 0x38e   :  { %v7034_v2 = vpop.f32.mrf.mxu1  ;;  %v3104_v62 = vadd.f32 %v3103_v8, %v3102_v55  ;;  %v2987_v41 = vmul.f32 %v8208_v7, %v8208_v7  ;;  %v2861_v50 = vsel %vm2771_vm1, %v8208_v7, 0.0 }
 0x38f   :  { %v2854_v34 = vadd.f32 %v2853_v3, %v2852_v58  ;;  %v2859_v3 = vsel %vm2771_vm1, %v8207_v28, 0.0  ;;  %v3111_v58 = vsel %vm2771_vm1, %v2986_v15, 0.0 }
 0x390   :  { %v3106_v4 = vadd.f32 %v3105_v6, %v3104_v62  ;;  %v2988_v6 = vmul.f32 %v8209_v39, %v8209_v39 }
 0x391   :  { %v7040_v14 = vpop.f32.mrf.mxu0  ;;  %v2856_v20 = vadd.f32 %v2855_v44, %v2854_v34 }
 0x392   :  { %v3108_v55 = vadd.f32 %v3107_v32, %v3106_v4  ;;  %v3113_v32 = vsel %vm2771_vm1, %v2987_v41, 0.0  ;;  %v8210_v4 = vld [vmem:[#allocation7_spill] sm:$0xff] }
 0x393   :  { %v2858_v16 = vadd.f32 %v2857_v43, %v2856_v20  ;;  %v2989_v28 = vmul.f32 %v8210_v4, %v8210_v4  ;;  %v7071_v43 = vpop.f32.mrf.mxu3  ;;  %v2863_v20 = vsel %vm2771_vm1, %v8209_v39, 0.0  ;;  %v8213_v39 = vld [vmem:[#allocation13_spill] sm:$0xff] }
 0x394   :  { %v7055_v8 = vpop.f32.mrf.mxu2  ;;  %v3110_v34 = vadd.f32 %v3109_v48, %v3108_v55  ;;  %v3115_v48 = vsel %vm2771_vm1, %v2988_v6, 0.0  ;;  %v8211_v55 = vld [vmem:[#allocation9_spill] sm:$0xff] }
 0x395   :  { %v2860_v26 = vadd.f32 %v2859_v3, %v2858_v16  ;;  %v2990_v7 = vmul.f32 %v8211_v55, %v8211_v55  ;;  %v2865_v3 = vsel %vm2771_vm1, %v8210_v4, 0.0  ;;  %v3117_v16 = vsel %vm2771_vm1, %v2989_v28, 0.0 }
 0x396   :  { %v7062_v62 = vpop.f32.mrf.mxu1  ;;  %v3112_v15 = vadd.f32 %v3111_v58, %v3110_v34  ;;  %v2869_v28 = vsel %vm2771_vm1, %v8212_v22, 0.0 }
 0x397   :  { %v2862_v56 = vadd.f32 %v2861_v50, %v2860_v26  ;;  %v2867_v26 = vsel %vm2771_vm1, %v8211_v55, 0.0  ;;  %v3119_v50 = vsel %vm2771_vm1, %v2990_v7, 0.0  ;;  %v2871_v7 = vsel %vm2771_vm1, %v8213_v39, 0.0 }
 0x398   :  { %v3114_v24 = vadd.f32 %v3113_v32, %v3112_v15  ;;  %v2992_v32 = vmul.f32 %v8213_v39, %v8213_v39 }
 0x399   :  { %v7066_v44 = vpop.f32.mrf.mxu0  ;;  %v2864_v41 = vadd.f32 %v2863_v20, %v2862_v56 }
 0x39a   :  { %v3116_v34 = vadd.f32 %v3115_v48, %v3114_v24  ;;  %v3121_v24 = vsel %vm2771_vm1, %v2991_v23, 0.0  ;;  %v8214_v48 = vld [vmem:[#allocation15_spill] sm:$0xff]  ;;  %v3123_v63 = vsel %vm2771_vm1, %v2992_v32, 0.0  ;;  %v2875_v32 = vsel %vm2771_vm1, %v8215_v46, 0.0 }
 0x39b   :  { %v2866_v6 = vadd.f32 %v2865_v3, %v2864_v41  ;;  %v2993_v55 = vmul.f32 %v8214_v48, %v8214_v48 }
 0x39c   :  { %v7083_v58 = vpop.f32.mrf.mxu2  ;;  %v3118_v56 = vadd.f32 %v3117_v16, %v3116_v34  ;;  %v2994_v16 = vmul.f32 %v8215_v46, %v8215_v46  ;;  %v7104_v34 = vpop.f32.mrf.mxu3 }
 0x39d   :  { %v2868_v4 = vadd.f32 %v2867_v26, %v2866_v6  ;;  %v2873_v26 = vsel %vm2771_vm1, %v8214_v48, 0.0  ;;  %v3125_v6 = vsel %vm2771_vm1, %v2993_v55, 0.0  ;;  %v2877_v55 = vsel %vm2771_vm1, %v8216_v19, 0.0 }
 0x39e   :  { %v7090_v15 = vpop.f32.mrf.mxu1  ;;  %v3120_v3 = vadd.f32 %v3119_v50, %v3118_v56  ;;  %v2995_v50 = vmul.f32 %v8216_v19, %v8216_v19  ;;  %v3127_v39 = vsel %vm2771_vm1, %v2994_v16, 0.0  ;;  %v2879_v16 = vsel %vm2771_vm1, %v8217_v18, 0.0 }
 0x39f   :  { %v2870_v41 = vadd.f32 %v2869_v28, %v2868_v4 }
 0x3a0   :  { %v3122_v22 = vadd.f32 %v3121_v24, %v3120_v3  ;;  %v2996_v24 = vmul.f32 %v8217_v18, %v8217_v18 }
 0x3a1   :  { %v7094_v20 = vpop.f32.mrf.mxu0  ;;  %v2872_v23 = vadd.f32 %v2871_v7, %v2870_v41 }
 0x3a2   :  { %v3124_v4 = vadd.f32 %v3123_v63, %v3122_v22  ;;  %v3129_v63 = vsel %vm2771_vm1, %v2995_v50, 0.0  ;;  %v8218_v22 = vld [vmem:[#allocation23_spill] sm:$0xff]  ;;  %v3131_v42 = vsel %vm2771_vm1, %v2996_v24, 0.0  ;;  %v2883_v24 = vsel %vm2771_vm1, %v8219_v57, 0.0 }
 0x3a3   :  { %v2874_v28 = vadd.f32 %v2873_v26, %v2872_v23  ;;  %v2997_v46 = vmul.f32 %v8218_v22, %v8218_v22  ;;  %v2881_v19 = vsel %vm2771_vm1, %v8218_v22, 0.0 }
 0x3a4   :  { %v7111_v56 = vpop.f32.mrf.mxu2  ;;  %v3126_v7 = vadd.f32 %v3125_v6, %v3124_v4  ;;  %v2998_v6 = vmul.f32 %v8219_v57, %v8219_v57 }
 0x3a5   :  { %v2876_v48 = vadd.f32 %v2875_v32, %v2874_v28  ;;  %v3133_v50 = vsel %vm2771_vm1, %v2997_v46, 0.0  ;;  %v8220_v28 = vld [vmem:[#allocation27_spill] sm:$0xff] }
 0x3a6   :  { %v7118_v3 = vpop.f32.mrf.mxu1  ;;  %v3128_v26 = vadd.f32 %v3127_v39, %v3126_v7  ;;  %v2999_v9 = vmul.f32 %v8220_v28, %v8220_v28  ;;  %v7139_v7 = vpop.f32.mrf.mxu3 }
 0x3a7   :  { %v2878_v23 = vadd.f32 %v2877_v55, %v2876_v48 }
 0x3a8   :  { %v3130_v4 = vadd.f32 %v3129_v63, %v3128_v26  ;;  %v3135_v63 = vsel %vm2771_vm1, %v2998_v6, 0.0  ;;  %v8221_v26 = vld [vmem:[#allocation29_spill] sm:$0xff] }
 0x3a9   :  { %v7122_v41 = vpop.f32.mrf.mxu0  ;;  %v2880_v32 = vadd.f32 %v2879_v16, %v2878_v23  ;;  %v3000_v22 = vmul.f32 %v8221_v26, %v8221_v26  ;;  %v2885_v23 = vsel %vm2771_vm1, %v8220_v28, 0.0  ;;  %v2887_v6 = vsel %vm2771_vm1, %v8221_v26, 0.0 }
 0x3aa   :  { %v3132_v48 = vadd.f32 %v3131_v42, %v3130_v4  ;;  %v3137_v42 = vsel %vm2771_vm1, %v2999_v9, 0.0  ;;  %v8222_v4 = vld [vmem:[#allocation31_spill] sm:$0xff] }
 0x3ab   :  { %v2882_v55 = vadd.f32 %v2881_v19, %v2880_v32  ;;  %v3001_v57 = vmul.f32 %v8222_v4, %v8222_v4  ;;  %v3139_v53 = vsel %vm2771_vm1, %v3000_v22, 0.0  ;;  %v2889_v28 = vsel %vm2771_vm1, %v8222_v4, 0.0 }
 0x3ac   :  { %v7137_v39 = vpop.f32.mrf.mxu2  ;;  %v3134_v46 = vadd.f32 %v3133_v50, %v3132_v48  ;;  %v3002_v50 = vmul.f32 %v8223_v49, %v8223_v49 }
 0x3ad   :  { %v2884_v37 = vadd.f32 %v2883_v24, %v2882_v55  ;;  %v3141_v9 = vsel %vm2771_vm1, %v3001_v57, 0.0  ;;  %v3003_v55 = vmul.f32 %v6766_v25, %v6766_v25 }
 0x3ae   :  { %v7146_v16 = vpop.f32.mrf.mxu1  ;;  %v3136_v19 = vadd.f32 %v3135_v63, %v3134_v46 }
 0x3af   :  { %v2886_v32 = vadd.f32 %v2885_v23, %v2884_v37  ;;  %v2891_v37 = vsel %vm2771_vm1, %v8223_v49, 0.0  ;;  %v3143_v23 = vsel %vm2771_vm1, %v3002_v50, 0.0 }
 0x3b0   :  { %v3138_v48 = vadd.f32 %v3137_v42, %v3136_v19  ;;  %v3004_v42 = vmul.f32 %v6791_v27, %v6791_v27 }
 0x3b1   :  { %v7150_v18 = vpop.f32.mrf.mxu0  ;;  %v2888_v24 = vadd.f32 %v2887_v6, %v2886_v32  ;;  %v7174_v6 = vpop.f32.mrf.mxu3  ;;  %v2893_v32 = vsel %vm2771_vm1, %v6766_v25, 0.0  ;;  %v3007_v25 = vmul.f32 %v6885_v52, %v6885_v52 }
 0x3b2   :  { %v3140_v46 = vadd.f32 %v3139_v53, %v3138_v48  ;;  %v3145_v53 = vsel %vm2771_vm1, %v3003_v55, 0.0  ;;  %v3005_v48 = vmul.f32 %v6832_v21, %v6832_v21  ;;  %v3147_v26 = vsel %vm2771_vm1, %v3004_v42, 0.0 }
 0x3b3   :  { %v2890_v22 = vadd.f32 %v2889_v28, %v2888_v24  ;;  %v2895_v24 = vsel %vm2771_vm1, %v6791_v27, 0.0  ;;  %v3153_v13 = vsel %vm2771_vm1, %v3007_v25, 0.0  ;;  %v8227_v25 = vld [vmem:[#allocation20_spill] sm:$0xff] }
 0x3b4   :  { %v7165_v63 = vpop.f32.mrf.mxu2  ;;  %v3142_v57 = vadd.f32 %v3141_v9, %v3140_v46  ;;  %v3006_v9 = vmul.f32 %v6859_v51, %v6859_v51 }
 0x3b5   :  { %v2892_v4 = vadd.f32 %v2891_v37, %v2890_v22  ;;  %v2897_v37 = vsel %vm2771_vm1, %v6832_v21, 0.0  ;;  %v3149_v22 = vsel %vm2771_vm1, %v3005_v48, 0.0  ;;  %v2901_v48 = vsel %vm2771_vm1, %v6885_v52, 0.0 }
 0x3b6   :  { %v7172_v19 = vpop.f32.mrf.mxu1  ;;  %v3144_v50 = vadd.f32 %v3143_v23, %v3142_v57 }
 0x3b7   :  { %v2894_v49 = vadd.f32 %v2893_v32, %v2892_v4  ;;  %v2899_v4 = vsel %vm2771_vm1, %v6859_v51, 0.0  ;;  %v8224_v32 = vld [vmem:[#allocation14_spill] sm:$0xff] }
 0x3b8   :  { %v3146_v46 = vadd.f32 %v3145_v53, %v3144_v50  ;;  %v2102_v42 = vadd.f32 %v7005_v12, %v8224_v32  ;;  %v3151_v53 = vsel %vm2771_vm1, %v3006_v9, 0.0  ;;  %v3008_v50 = vmul.f32 %v6911_v31, %v6911_v31  ;;  %v8226_v12 = vld [vmem:[#allocation18_spill] sm:$0xff] }
 0x3b9   :  { %v7181_v28 = vpop.f32.mrf.mxu0  ;;  %v2896_v55 = vadd.f32 %v2895_v24, %v2894_v49  ;;  %v7208_v9 = vpop.f32.mrf.mxu3 }
 0x3ba   :  { %v3148_v57 = vadd.f32 %v3147_v26, %v3146_v46  ;;  %v2316_v33 = vadd.f32 %v7027_v10, %v2102_v42  ;;  %v8225_v26 = vld [vmem:[#allocation16_spill] sm:$0xff] }
 0x3bb   :  { %v2898_v27 = vadd.f32 %v2897_v37, %v2896_v55  ;;  %v2105_v46 = vadd.f32 %v7034_v2, %v8225_v26  ;;  %v2107_v37 = vadd.f32 %v7062_v62, %v8226_v12  ;;  %v3155_v2 = vsel %vm2771_vm1, %v3008_v50, 0.0  ;;  %v8228_v50 = vld [vmem:[#allocation22_spill] sm:$0xff] }
 0x3bc   :  { %v2330_v23 = vpop.f32.mrf.mxu2  ;;  %v3150_v24 = vadd.f32 %v3149_v22, %v3148_v57  ;;  %v2903_v22 = vsel %vm2771_vm1, %v6911_v31, 0.0  ;;  %v3009_v57 = vmul.f32 %v6937_v47, %v6937_v47  ;;  %v2530_v26 = vadd.f32 %v6966_v11, %v2316_v33 }
 0x3bd   :  { %v2900_v38 = vadd.f32 %v2899_v4, %v2898_v27  ;;  %v2319_v10 = vadd.f32 %v7055_v8, %v2105_v46  ;;  %v2321_v27 = vadd.f32 %v7083_v58, %v2107_v37  ;;  %v2110_v4 = vadd.f32 %v7090_v15, %v8227_v25 }
 0x3be   :  { %v2119_v49 = vpop.f32.mrf.mxu1  ;;  %v3152_v55 = vadd.f32 %v3151_v53, %v3150_v24  ;;  %v2905_v53 = vsel %vm2771_vm1, %v6937_v47, 0.0  ;;  %v3010_v24 = vmul.f32 %v6961_v45, %v6961_v45  ;;  %v2112_v58 = vadd.f32 %v7118_v3, %v8228_v50 }
 0x3bf   :  { %v2902_v32 = vadd.f32 %v2901_v48, %v2900_v38  ;;  %v2324_v38 = vadd.f32 %v7111_v56, %v2110_v4  ;;  %v3157_v15 = vsel %vm2771_vm1, %v3009_v57, 0.0  ;;  %v2533_v12 = vadd.f32 %v6998_v29, %v2319_v10  ;;  %v8229_v57 = vld [vmem:[#allocation24_spill] sm:$0xff] }
 0x3c0   :  { %v3154_v42 = vadd.f32 %v3153_v13, %v3152_v55  ;;  %v2907_v13 = vsel %vm2771_vm1, %v6961_v45, 0.0  ;;  %v3011_v55 = vmul.f32 %v6987_v35, %v6987_v35  ;;  %v2535_v33 = vadd.f32 %v7036_v5, %v2321_v27 }
 0x3c1   :  { %v7219_v62 = vpop.f32.mrf.mxu0  ;;  %v2904_v8 = vadd.f32 %v2903_v22, %v2902_v32  ;;  %v2326_v11 = vadd.f32 %v7137_v39, %v2112_v58  ;;  %v3159_v3 = vsel %vm2771_vm1, %v3010_v24, 0.0  ;;  %v7239_v22 = vadd.f32 %v7010_v30, %v2530_v26  ;;  %v8230_v30 = vld [vmem:[#allocation26_spill] sm:$0xff] }
 0x3c2   :  { %v3156_v46 = vadd.f32 %v3155_v2, %v3154_v42  ;;  %v2115_v32 = vadd.f32 %v7146_v16, %v8229_v57  ;;  %v3012_v29 = vmul.f32 %v7017_v60, %v7017_v60  ;;  %v2538_v10 = vadd.f32 %v7071_v43, %v2324_v38  ;;  %v2549_v43 = vpop.f32.mrf.mxu3 }
 0x3c3   :  { %v2906_v37 = vadd.f32 %v2905_v53, %v2904_v8  ;;  %v2909_v5 = vsel %vm2771_vm1, %v6987_v35, 0.0  ;;  %v7249_v39 = vadd.f32 %v7040_v14, %v2533_v12  ;;  %v2117_v4 = vadd.f32 %v7172_v19, %v8230_v30 }
 0x3c4   :  { %v2333_v48 = vpop.f32.mrf.mxu2  ;;  %v3158_v2 = vadd.f32 %v3157_v15, %v3156_v46  ;;  %v2329_v27 = vadd.f32 %v7165_v63, %v2115_v32  ;;  %v3161_v16 = vsel %vm2771_vm1, %v3011_v55, 0.0  ;;  %v7256_v53 = vadd.f32 %v7066_v44, %v2535_v33  ;;  %v8231_v63 = vld [vmem:[#allocation28_spill] sm:$0xff] }
 0x3c5   :  { %v2908_v25 = vadd.f32 %v2907_v13, %v2906_v37  ;;  %v2540_v24 = vadd.f32 %v7104_v34, %v2326_v11  ;;  %v2911_v26 = vsel %vm2771_vm1, %v7017_v60, 0.0  ;;  %v3013_v14 = vmul.f32 %v7239_v22, %v7239_v22 }
 0x3c6   :  { %v2121_v56 = vpop.f32.mrf.mxu1  ;;  %v3160_v42 = vadd.f32 %v3159_v3, %v3158_v2  ;;  %v2331_v8 = vadd.f32 %v2330_v23, %v2117_v4  ;;  %v2120_v38 = vadd.f32 %v2119_v49, %v8231_v63  ;;  %v3163_v19 = vsel %vm2771_vm1, %v3012_v29, 0.0  ;;  %v8232_v23 = vld [vmem:[#allocation30_spill] sm:$0xff] }
 0x3c7   :  { %v2910_v50 = vadd.f32 %v2909_v5, %v2908_v25  ;;  %v2913_v58 = vsel %vm2771_vm1, %v7239_v22, 0.0  ;;  %v7268_v44 = vadd.f32 %v7094_v20, %v2538_v10  ;;  %v3014_v15 = vmul.f32 %v7249_v39, %v7249_v39 }
 0x3c8   :  { %v2543_v13 = vadd.f32 %v7139_v7, %v2329_v27  ;;  %v2334_v12 = vadd.f32 %v2333_v48, %v2120_v38  ;;  %v2122_v37 = vadd.f32 %v2121_v56, %v8232_v23  ;;  %v3162_v49 = vadd.f32 %v3161_v16, %v3160_v42 }
 0x3c9   :  { %v2763_v34 = vpop.f32.mrf.mxu0  ;;  %v2912_v55 = vadd.f32 %v2911_v26, %v2910_v50  ;;  %v3015_v33 = vmul.f32 %v7256_v53, %v7256_v53  ;;  %v7277_v11 = vadd.f32 %v7122_v41, %v2540_v24  ;;  %v3165_v3 = vsel %vm2771_vm1, %v3013_v14, 0.0  ;;  %v8233_v24 = vld [vmem:[#allocation32_spill] sm:$0xff] }
 0x3ca   :  { %v2915_v57 = vsel %vm2771_vm1, %v7249_v39, 0.0  ;;  %v2545_v32 = vadd.f32 %v7174_v6, %v2331_v8  ;;  %v3164_v48 = vadd.f32 %v3163_v19, %v3162_v49  ;;  %v3016_v56 = vmul.f32 %v7268_v44, %v7268_v44  ;;  %v2552_v8 = vpop.f32.mrf.mxu3 }
 0x3cb   :  { %v2914_v2 = vadd.f32 %v2913_v58, %v2912_v55  ;;  %v3167_v25 = vsel %vm2771_vm1, %v3014_v15, 0.0  ;;  %v2917_v41 = vsel %vm2771_vm1, %v7256_v53, 0.0  ;;  %v7289_v29 = vadd.f32 %v7150_v18, %v2543_v13 }
 0x3cc   :  { %v2335_v46 = vpop.f32.mrf.mxu2  ;;  %v2548_v10 = vadd.f32 %v7208_v9, %v2334_v12  ;;  %v3166_v5 = vadd.f32 %v3165_v3, %v3164_v48  ;;  %v3169_v6 = vsel %vm2771_vm1, %v3015_v33, 0.0  ;;  %v3017_v30 = vmul.f32 %v7277_v11, %v7277_v11 }
 0x3cd   :  { %v2336_v7 = vadd.f32 %v2335_v46, %v2122_v37  ;;  %v2916_v27 = vadd.f32 %v2915_v57, %v2914_v2  ;;  %v2919_v4 = vsel %vm2771_vm1, %v7268_v44, 0.0  ;;  %v7298_v42 = vadd.f32 %v7181_v28, %v2545_v32 }
 0x3ce   :  { %v2124_v20 = vpop.f32.mrf.mxu1  ;;  %v3168_v18 = vadd.f32 %v3167_v25, %v3166_v5  ;;  %v3171_v9 = vsel %vm2771_vm1, %v3016_v56, 0.0  ;;  %v2921_v38 = vsel %vm2771_vm1, %v7277_v11, 0.0  ;;  %v3018_v50 = vmul.f32 %v7289_v29, %v7289_v29  ;;  %v8234_v56 = vld [vmem:[#allocation34_spill] sm:$0xff] }
 0x3cf   :  { %v2550_v16 = vadd.f32 %v2549_v43, %v2336_v7  ;;  %v2125_v26 = vadd.f32 %v2124_v20, %v8233_v24  ;;  %v2918_v14 = vadd.f32 %v2917_v41, %v2916_v27  ;;  %v7307_v19 = vadd.f32 %v7219_v62, %v2548_v10 }
 0x3d0   :  { %v3170_v58 = vadd.f32 %v3169_v6, %v3168_v18  ;;  %v3173_v46 = vsel %vm2771_vm1, %v3017_v30, 0.0  ;;  %v2923_v13 = vsel %vm2771_vm1, %v7289_v29, 0.0  ;;  %v3019_v12 = vmul.f32 %v7298_v42, %v7298_v42 }
 0x3d1   :  { %v2920_v43 = vadd.f32 %v2919_v4, %v2918_v14  ;;  %v2766_v15 = vpop.f32.mrf.mxu0  ;;  %v7314_v23 = vadd.f32 %v2763_v34, %v2550_v16  ;;  %v3175_v62 = vsel %vm2771_vm1, %v3018_v50, 0.0  ;;  %v2925_v20 = vsel %vm2771_vm1, %v7298_v42, 0.0 }
 0x3d2   :  { %v3172_v49 = vadd.f32 %v3171_v9, %v3170_v58  ;;  %v3020_v3 = vmul.f32 %v7307_v19, %v7307_v19  ;;  %v3177_v48 = vsel %vm2771_vm1, %v3019_v12, 0.0  ;;  %v2927_v34 = vsel %vm2771_vm1, %v7307_v19, 0.0 }
 0x3d3   :  { %v2922_v55 = vadd.f32 %v2921_v38, %v2920_v43  ;;  %v3021_v2 = vmul.f32 %v7314_v23, %v7314_v23  ;;  %v2929_v6 = vsel %vm2771_vm1, %v7314_v23, 0.0 }
 0x3d4   :  { %v2338_v63 = vpop.f32.mrf.mxu2  ;;  %v3174_v32 = vadd.f32 %v3173_v46, %v3172_v49  ;;  %v3179_v27 = vsel %vm2771_vm1, %v3020_v3, 0.0 }
 0x3d5   :  { %v2339_v28 = vadd.f32 %v2338_v63, %v2125_v26  ;;  %v2924_v7 = vadd.f32 %v2923_v13, %v2922_v55  ;;  %v2554_v26 = vpop.f32.mrf.mxu3  ;;  %v3181_v18 = vsel %vm2771_vm1, %v3021_v2, 0.0 }
 0x3d6   :  { %v2126_v33 = vpop.f32.mrf.mxu1  ;;  %v3176_v41 = vadd.f32 %v3175_v62, %v3174_v32 }
 0x3d7   :  { %v2553_v37 = vadd.f32 %v2552_v8, %v2339_v28  ;;  %v2127_v25 = vadd.f32 %v2126_v33, %v8234_v56  ;;  %v2926_v10 = vadd.f32 %v2925_v20, %v2924_v7 }
 0x3d8   :  { %v3178_v16 = vadd.f32 %v3177_v48, %v3176_v41 }
 0x3d9   :  { %v7321_v57 = vadd.f32 %v2766_v15, %v2553_v37  ;;  %v2928_v24 = vadd.f32 %v2927_v34, %v2926_v10  ;;  %v2768_v38 = vpop.f32.mrf.mxu0 }
 0x3da   :  { %v3180_v8 = vadd.f32 %v3179_v27, %v3178_v16 }
 0x3db   :  { %v3022_v30 = vmul.f32 %v7321_v57, %v7321_v57  ;;  %v2931_v14 = vsel %vm2771_vm1, %v7321_v57, 0.0  ;;  %v2930_v63 = vadd.f32 %v2929_v6, %v2928_v24 }
 0x3dc   :  { %v2340_v5 = vpop.f32.mrf.mxu2  ;;  %v3182_v58 = vadd.f32 %v3181_v18, %v3180_v8 }
 0x3dd   :  { %v2341_v4 = vadd.f32 %v2340_v5, %v2127_v25  ;;  %v3183_v50 = vsel %vm2771_vm1, %v3022_v30, 0.0  ;;  %v2932_v43 = vadd.f32 %v2931_v14, %v2930_v63 }
 0x3de   :  { %v3184_v13 = vadd.f32 %v3183_v50, %v3182_v58  ;;  %v3211_v58 = vld [vmem:[%s7989_s3] sm:$0x1] }
 0x3df   :  { %v2555_v9 = vadd.f32 %v2554_v26, %v2341_v4 }
 0x3e1   :  { %v7338_v28 = vadd.f32 %v2768_v38, %v2555_v9  ;;  %v3198_v9 = vld [vmem:[%s7988_s2] sm:$0x1] }
 0x3e3   :  { %v2934_v46 = vsel %vm2933_vm2, %v7338_v28, 0.0  ;;  %v3023_v15 = vmul.f32 %v7338_v28, %v7338_v28 }
 0x3e4   :  { %v2935_v12 = vadd.f32 %v2934_v46, %v2932_v43  ;;  %v8235_v46 = vld [vmem:[#allocation44_spill] sm:$0xff] }
 0x3e5   :  { %v3185_v37 = vsel %vm2933_vm2, %v3023_v15, 0.0 }
 0x3e6   :  { %v2936_v49 = vrot.slane %v2935_v12, 4  ;;  %v3186_v55 = vadd.f32 %v3185_v37, %v3184_v13  ;;  %v8236_v13 = vld [vmem:[#allocation45_spill] sm:$0xff]  ;;  %v8237_v37 = vld [vmem:[#allocation46_spill] sm:$0xff] }
 0x3e8   :  { %v2937_v33 = vadd.f32 %v2936_v49, %v2935_v12  ;;  %v3187_v62 = vrot.slane %v3186_v55, 4 }
 0x3ea   :  { %v2938_v20 = vrot.slane %v2937_v33, 2  ;;  %v3188_v3 = vadd.f32 %v3187_v62, %v3186_v55  ;;  %v8238_v55 = vld [vmem:[#allocation47_spill] sm:$0xff]  ;;  %v8239_v62 = vld [vmem:[#allocation48_spill] sm:$0xff] }
 0x3ec   :  { %v2939_v32 = vadd.f32 %v2938_v20, %v2937_v33  ;;  %v3189_v7 = vrot.slane %v3188_v3, 2 }
 0x3ee   :  { %v2940_v48 = vrot.slane %v2939_v32, 1  ;;  %v3190_v34 = vadd.f32 %v3189_v7, %v3188_v3  ;;  %v8240_v3 = vld [vmem:[#allocation49_spill] sm:$0xff]  ;;  %v8241_v7 = vld [vmem:[#allocation50_spill] sm:$0xff] }
 0x3f0   :  { %v2941_v2 = vadd.f32 %v2940_v48, %v2939_v32  ;;  %v3191_v56 = vrot.slane %v3190_v34, 1 }
 0x3f2   :  { %v3192_v25 = vadd.f32 %v3191_v56, %v3190_v34  ;;  %v3193_v41 = vmul.f32 0.0015384615, %v2941_v2  ;;  %v8242_v34 = vld [vmem:[#allocation51_spill] sm:$0xff] }
 0x3f4   :  { %v3194_v10 = vmul.f32 0.0015384615, %v3192_v25  ;;  %v3195_v5 = vmul.f32 %v3193_v41, %v3193_v41 }
 0x3f6   :  { %v3196_v27 = vsub.f32 %v3194_v10, %v3195_v5 }
 0x3f8   :  { %v3197_v6 = vmax.f32 %v3196_v27, 0.0 }
 0x3fa   :  { %v3199_v30 = vadd.f32 1e-05, %v3197_v6 }
 0x3fc   :  { %4822 = vrsqrt.f32 %v3199_v30  ;;  %vm3206_vm4 = vweird.f32 %v3199_v30 }
 0x402   :  { %v4823_v4 = vpop.eup %4822 }
 0x403   :  { %v3201_v16 = vmul.f32 %v4823_v4, %v3199_v30  ;;  %vm3207_vm3 = vweird.f32 %v4823_v4 }
 0x404   :  { %vm3208_vm5 = vmor %vm3206_vm4, %vm3207_vm3 }
 0x405   :  { %v3202_v24 = vmul.f32 %v4823_v4, %v3201_v16 }
 0x407   :  { %v3203_v26 = vmul.f32 0.5, %v3202_v24 }
 0x409   :  { %v3204_v18 = vsub.f32 1.5, %v3203_v26 }
 0x40b   :  { %v3205_v14 = vmul.f32 %v4823_v4, %v3204_v18 }
 0x40d   :  { %v3209_v8 = vsel %vm3208_vm5, %v4823_v4, %v3205_v14 }
 0x40e   :  { %v3210_v63 = vmul.f32 %v3209_v8, %v3198_v9 }
 0x410   :  { %v3212_v38 = vmul.f32 %v3210_v63, %v3193_v41  ;;  %v7348_v50 = vperm.slane %v3210_v63, 0 }
 0x412   :  { %v3213_v43 = vsub.f32 %v3211_v58, %v3212_v38  ;;  %v3217_v15 = vmul.f32 %v7348_v50, %v8235_v46  ;;  %v3218_v12 = vmul.f32 %v7348_v50, %v8236_v13  ;;  %v3219_v49 = vmul.f32 %v7348_v50, %v8237_v37 }
 0x413   :  { %v3220_v33 = vmul.f32 %v7348_v50, %v8238_v55  ;;  %v3221_v20 = vmul.f32 %v7348_v50, %v8239_v62  ;;  %v3222_v32 = vmul.f32 %v7348_v50, %v8240_v3  ;;  %v3223_v48 = vmul.f32 %v7348_v50, %v8241_v7 }
 0x414   :  { %v3224_v2 = vmul.f32 %v7348_v50, %v8242_v34  ;;  %v3225_v56 = vmul.f32 %v7348_v50, %v5769_v61  ;;  %v3280_v25 = vmul.f32 %v7348_v50, %v6832_v21  ;;  %v3281_v41 = vmul.f32 %v7348_v50, %v6859_v51 }
 0x415   :  { %v3282_v10 = vmul.f32 %v7348_v50, %v6885_v52  ;;  %v3283_v5 = vmul.f32 %v7348_v50, %v6911_v31  ;;  %v3284_v27 = vmul.f32 %v7348_v50, %v6937_v47  ;;  %v3285_v6 = vmul.f32 %v7348_v50, %v6961_v45 }
 0x416   :  { %v3286_v61 = vmul.f32 %v7348_v50, %v6987_v35  ;;  %v7385_v30 = vperm.slane %v3213_v43, 0  ;;  %v3287_v21 = vmul.f32 %v7348_v50, %v7017_v60  ;;  %v3288_v51 = vmul.f32 %v7348_v50, %v7239_v22 }
 0x417   :  { %v3289_v52 = vmul.f32 %v7348_v50, %v7249_v39  ;;  %v3290_v31 = vmul.f32 %v7348_v50, %v7256_v53  ;;  %v3291_v47 = vmul.f32 %v7348_v50, %v7268_v44  ;;  %v3292_v45 = vmul.f32 %v7348_v50, %v7277_v11 }
 0x418   :  { %v3293_v35 = vmul.f32 %v7348_v50, %v7289_v29  ;;  %v3294_v60 = vmul.f32 %v7348_v50, %v7298_v42  ;;  %v3295_v22 = vmul.f32 %v7348_v50, %v7307_v19  ;;  %v3296_v39 = vmul.f32 %v7348_v50, %v7314_v23 }
 0x419   :  { %v3297_v53 = vmul.f32 %v7348_v50, %v7321_v57  ;;  %v3298_v44 = vmul.f32 %v7348_v50, %v7338_v28  ;;  %v3302_v11 = vadd.f32 %v7385_v30, %v3217_v15  ;;  %v3303_v4 = vadd.f32 %v7385_v30, %v3218_v12 }
 0x41a   :  { %v3304_v29 = vadd.f32 %v7385_v30, %v3219_v49  ;;  %v3305_v42 = vadd.f32 %v7385_v30, %v3220_v33  ;;  %v3306_v16 = vadd.f32 %v7385_v30, %v3221_v20  ;;  %v3307_v19 = vadd.f32 %v7385_v30, %v3222_v32 }
 0x41b   :  { %v3308_v23 = vadd.f32 %v7385_v30, %v3223_v48  ;;  %v7419_v24 = vadd.f32 %v7385_v30, %v3280_v25  ;;  %v7422_v57 = vadd.f32 %v7385_v30, %v3281_v41  ;;  %v7425_v28 = vadd.f32 %v7385_v30, %v3282_v10 }
 0x41c   :  { %v7428_v26 = vadd.f32 %v7385_v30, %v3283_v5  ;;  %v7431_v18 = vadd.f32 %v7385_v30, %v3284_v27  ;;  %v7434_v14 = vadd.f32 %v7385_v30, %v3285_v6  ;;  %v7437_v9 = vadd.f32 %v7385_v30, %v3286_v61 }
 0x41d   :  { %v7440_v8 = vadd.f32 %v7385_v30, %v3287_v21  ;;  %v7443_v63 = vadd.f32 %v7385_v30, %v3288_v51  ;;  %v7446_v38 = vadd.f32 %v7385_v30, %v3289_v52  ;;  %v7449_v58 = vadd.f32 %v7385_v30, %v3290_v31 }
 0x41e   :  { %v7452_v43 = vadd.f32 %v7385_v30, %v3291_v47  ;;  %v7455_v46 = vadd.f32 %v7385_v30, %v3292_v45  ;;  %v7458_v15 = vadd.f32 %v7385_v30, %v3293_v35  ;;  %v7461_v13 = vadd.f32 %v7385_v30, %v3294_v60 }
 0x41f   :  { %v7464_v12 = vadd.f32 %v7385_v30, %v3295_v22  ;;  %v7467_v37 = vadd.f32 %v7385_v30, %v3296_v39  ;;  %v7470_v49 = vadd.f32 %v7385_v30, %v3297_v53  ;;  %v7473_v55 = vadd.f32 %v7385_v30, %v3298_v44  ;;  %v8245_v22 = vld [vmem:[#allocation54_spill] sm:$0xff] }
 0x420   :  { %v3384_v33 = vmax.f32 %v3302_v11, 0.0  ;;  %v3385_v62 = vmax.f32 %v3303_v4, 0.0  ;;  %v3226_v20 = vmul.f32 %v7348_v50, %v5793_v17  ;;  %v3309_v3 = vadd.f32 %v7385_v30, %v3224_v2  ;;  %v8246_v11 = vld [vmem:[#allocation55_spill] sm:$0xff] }
 0x421   :  { %v3386_v32 = vmax.f32 %v3304_v29, 0.0  ;;  %v3387_v7 = vmax.f32 %v3305_v42, 0.0  ;;  %v3227_v48 = vmul.f32 %v7348_v50, %v5806_v1  ;;  %v3310_v34 = vadd.f32 %v7385_v30, %v3225_v56 }
 0x422   :  { %v3388_v25 = vmax.f32 %v3306_v16, 0.0  ;;  %3466 = vst.msk [vmem:[%s7990_s4] sm:$0xff] %vm2771_vm1, %v3384_v33  ;;  %v3228_v41 = vmul.f32 %v7348_v50, %v5830_v36  ;;  %v3311_v17 = vadd.f32 %v7385_v30, %v3226_v20  ;;  %v3389_v10 = vmax.f32 %v3307_v19, 0.0  ;;  %v8247_v16 = vld [vmem:[#allocation56_spill] sm:$0xff] }
 0x423   :  { %3467 = vst.msk [vmem:[%s7990_s4 + $0x8] sm:$0xff] %vm2771_vm1, %v3385_v62  ;;  %v3229_v1 = vmul.f32 %v7348_v50, %v5843_v40  ;;  %v3312_v2 = vadd.f32 %v7385_v30, %v3227_v48  ;;  %v3390_v56 = vmax.f32 %v3308_v23, 0.0  ;;  %v3230_v36 = vmul.f32 %v7348_v50, %v5867_v54  ;;  %v8248_v62 = vld [vmem:[#allocation57_spill] sm:$0xff] }
 0x424   :  { %3468 = vst.msk [vmem:[%s7990_s4 + $0x10] sm:$0xff] %vm2771_vm1, %v3386_v32  ;;  %v3313_v5 = vadd.f32 %v7385_v30, %v3228_v41  ;;  %v3391_v27 = vmax.f32 %v3309_v3, 0.0  ;;  %v3231_v40 = vmul.f32 %v7348_v50, %v5880_v59  ;;  %v3392_v61 = vmax.f32 %v3310_v34, 0.0  ;;  %v8243_v59 = vld [vmem:[#allocation52_spill] sm:$0xff]  ;;  %v8250_v41 = vld [vmem:[#allocation59_spill] sm:$0xff] }
 0x425   :  { %3469 = vst.msk [vmem:[%s7990_s4 + $0x18] sm:$0xff] %vm2771_vm1, %v3387_v7  ;;  %v3314_v6 = vadd.f32 %v7385_v30, %v3229_v1  ;;  %v3232_v54 = vmul.f32 %v7348_v50, %v5904_v0  ;;  %v3315_v21 = vadd.f32 %v7385_v30, %v3230_v36  ;;  %v3393_v51 = vmax.f32 %v3311_v17, 0.0  ;;  %v8244_v0 = vld [vmem:[#allocation53_spill] sm:$0xff]  ;;  %v8249_v7 = vld [vmem:[#allocation58_spill] sm:$0xff] }
 0x426   :  { %3470 = vst.msk [vmem:[%s7990_s4 + $0x20] sm:$0xff] %vm2771_vm1, %v3388_v25  ;;  %v3233_v52 = vmul.f32 %v7348_v50, %v8243_v59  ;;  %v3316_v31 = vadd.f32 %v7385_v30, %v3231_v40  ;;  %v3394_v47 = vmax.f32 %v3312_v2, 0.0  ;;  %v3234_v45 = vmul.f32 %v7348_v50, %v8244_v0  ;;  %v8251_v2 = vld [vmem:[#allocation60_spill] sm:$0xff] }
 0x427   :  { %3471 = vst.msk [vmem:[%s7990_s4 + $0x28] sm:$0xff] %vm2771_vm1, %v3389_v10  ;;  %v3317_v35 = vadd.f32 %v7385_v30, %v3232_v54  ;;  %v3395_v60 = vmax.f32 %v3313_v5, 0.0  ;;  %v3235_v39 = vmul.f32 %v7348_v50, %v8245_v22  ;;  %v3396_v44 = vmax.f32 %v3314_v6, 0.0  ;;  %v8253_v54 = vld [vmem:[#allocation62_spill] sm:$0xff] }
 0x428   :  { %3472 = vst.msk [vmem:[%s7990_s4 + $0x30] sm:$0xff] %vm2771_vm1, %v3390_v56  ;;  %v3318_v53 = vadd.f32 %v7385_v30, %v3233_v52  ;;  %v3236_v4 = vmul.f32 %v7348_v50, %v8246_v11  ;;  %v3319_v29 = vadd.f32 %v7385_v30, %v3234_v45  ;;  %v3397_v42 = vmax.f32 %v3315_v21, 0.0  ;;  %v8254_v52 = vld [vmem:[#allocation63_spill] sm:$0xff]  ;;  %v8255_v45 = vld [vmem:[#allocation64_spill] sm:$0xff] }
 0x429   :  { %3473 = vst.msk [vmem:[%s7990_s4 + $0x38] sm:$0xff] %vm2771_vm1, %v3391_v27  ;;  %v3237_v19 = vmul.f32 %v7348_v50, %v8247_v16  ;;  %v3320_v23 = vadd.f32 %v7385_v30, %v3235_v39  ;;  %v3398_v33 = vmax.f32 %v3316_v31, 0.0  ;;  %v3238_v20 = vmul.f32 %v7348_v50, %v8248_v62  ;;  %v8252_v27 = vld [vmem:[#allocation61_spill] sm:$0xff] }
 0x42a   :  { %3474 = vst.msk [vmem:[%s7990_s4 + $0x40] sm:$0xff] %vm2771_vm1, %v3392_v61  ;;  %v3321_v3 = vadd.f32 %v7385_v30, %v3236_v4  ;;  %v3399_v32 = vmax.f32 %v3317_v35, 0.0  ;;  %v3239_v48 = vmul.f32 %v7348_v50, %v8249_v7  ;;  %v3400_v25 = vmax.f32 %v3318_v53, 0.0  ;;  %v8256_v39 = vld [vmem:[#allocation65_spill] sm:$0xff]  ;;  %v8257_v4 = vld [vmem:[#allocation66_spill] sm:$0xff] }
 0x42b   :  { %3475 = vst.msk [vmem:[%s7990_s4 + $0x48] sm:$0xff] %vm2771_vm1, %v3393_v51  ;;  %v3322_v34 = vadd.f32 %v7385_v30, %v3237_v19  ;;  %v3240_v17 = vmul.f32 %v7348_v50, %v8250_v41  ;;  %v3323_v10 = vadd.f32 %v7385_v30, %v3238_v20  ;;  %v3401_v1 = vmax.f32 %v3319_v29, 0.0  ;;  %v8258_v19 = vld [vmem:[#allocation67_spill] sm:$0xff]  ;;  %v8259_v20 = vld [vmem:[#allocation68_spill] sm:$0xff] }
 0x42c   :  { %3476 = vst.msk [vmem:[%s7990_s4 + $0x50] sm:$0xff] %vm2771_vm1, %v3394_v47  ;;  %v3241_v56 = vmul.f32 %v7348_v50, %v8251_v2  ;;  %v3324_v36 = vadd.f32 %v7385_v30, %v3239_v48  ;;  %v3402_v5 = vmax.f32 %v3320_v23, 0.0  ;;  %v3242_v40 = vmul.f32 %v7348_v50, %v8252_v27  ;;  %v8260_v48 = vld [vmem:[#allocation69_spill] sm:$0xff] }
 0x42d   :  { %3477 = vst.msk [vmem:[%s7990_s4 + $0x58] sm:$0xff] %vm2771_vm1, %v3395_v60  ;;  %v3325_v6 = vadd.f32 %v7385_v30, %v3240_v17  ;;  %v3403_v61 = vmax.f32 %v3321_v3, 0.0  ;;  %v3243_v21 = vmul.f32 %v7348_v50, %v8253_v54  ;;  %v3404_v59 = vmax.f32 %v3322_v34, 0.0  ;;  %v8261_v17 = vld [vmem:[#allocation70_spill] sm:$0xff] }
 0x42e   :  { %3478 = vst.msk [vmem:[%s7990_s4 + $0x60] sm:$0xff] %vm2771_vm1, %v3396_v44  ;;  %v3326_v51 = vadd.f32 %v7385_v30, %v3241_v56  ;;  %v3244_v31 = vmul.f32 %v7348_v50, %v8254_v52  ;;  %v3327_v47 = vadd.f32 %v7385_v30, %v3242_v40  ;;  %v3405_v0 = vmax.f32 %v3323_v10, 0.0  ;;  %v8262_v56 = vld [vmem:[#allocation71_spill] sm:$0xff]  ;;  %v8263_v40 = vld [vmem:[#allocation72_spill] sm:$0xff] }
 0x42f   :  { %3479 = vst.msk [vmem:[%s7990_s4 + $0x68] sm:$0xff] %vm2771_vm1, %v3397_v42  ;;  %v3245_v35 = vmul.f32 %v7348_v50, %v8255_v45  ;;  %v3328_v60 = vadd.f32 %v7385_v30, %v3243_v21  ;;  %v3406_v22 = vmax.f32 %v3324_v36, 0.0  ;;  %v3246_v53 = vmul.f32 %v7348_v50, %v8256_v39  ;;  %v8264_v21 = vld [vmem:[#allocation73_spill] sm:$0xff] }
 0x430   :  { %3480 = vst.msk [vmem:[%s7990_s4 + $0x70] sm:$0xff] %vm2771_vm1, %v3398_v33  ;;  %v3329_v44 = vadd.f32 %v7385_v30, %v3244_v31  ;;  %v3407_v11 = vmax.f32 %v3325_v6, 0.0  ;;  %v3247_v29 = vmul.f32 %v7348_v50, %v8257_v4  ;;  %v3408_v16 = vmax.f32 %v3326_v51, 0.0  ;;  %v8265_v31 = vld [vmem:[#allocation74_spill] sm:$0xff] }
 0x431   :  { %3481 = vst.msk [vmem:[%s7990_s4 + $0x78] sm:$0xff] %vm2771_vm1, %v3399_v32  ;;  %v3330_v42 = vadd.f32 %v7385_v30, %v3245_v35  ;;  %v3248_v23 = vmul.f32 %v7348_v50, %v8258_v19  ;;  %v3331_v33 = vadd.f32 %v7385_v30, %v3246_v53  ;;  %v3409_v62 = vmax.f32 %v3327_v47, 0.0  ;;  %v8266_v35 = vld [vmem:[#allocation75_spill] sm:$0xff]  ;;  %v8267_v53 = vld [vmem:[#allocation36_spill] sm:$0xff] }
 0x432   :  { %3482 = vst.msk [vmem:[%s7990_s4 + $0x80] sm:$0xff] %vm2771_vm1, %v3400_v25  ;;  %v3249_v3 = vmul.f32 %v7348_v50, %v8259_v20  ;;  %v3332_v32 = vadd.f32 %v7385_v30, %v3247_v29  ;;  %v3410_v7 = vmax.f32 %v3328_v60, 0.0  ;;  %v3250_v34 = vmul.f32 %v7348_v50, %v8260_v48  ;;  %v8268_v29 = vld [vmem:[#allocation38_spill] sm:$0xff] }
 0x433   :  { %3483 = vst.msk [vmem:[%s7990_s4 + $0x88] sm:$0xff] %vm2771_vm1, %v3401_v1  ;;  %v3333_v25 = vadd.f32 %v7385_v30, %v3248_v23  ;;  %v3411_v41 = vmax.f32 %v3329_v44, 0.0  ;;  %v3251_v10 = vmul.f32 %v7348_v50, %v8261_v17  ;;  %v3412_v2 = vmax.f32 %v3330_v42, 0.0  ;;  %v8269_v23 = vld [vmem:[#allocation40_spill] sm:$0xff] }
 0x434   :  { %3484 = vst.msk [vmem:[%s7990_s4 + $0x90] sm:$0xff] %vm2771_vm1, %v3402_v5  ;;  %v3334_v1 = vadd.f32 %v7385_v30, %v3249_v3  ;;  %v3252_v36 = vmul.f32 %v7348_v50, %v8262_v56  ;;  %v3335_v5 = vadd.f32 %v7385_v30, %v3250_v34  ;;  %v3413_v27 = vmax.f32 %v3331_v33, 0.0  ;;  %v8270_v3 = vld [vmem:[#allocation42_spill] sm:$0xff] }
 0x435   :  { %3485 = vst.msk [vmem:[%s7990_s4 + $0x98] sm:$0xff] %vm2771_vm1, %v3403_v61  ;;  %v3253_v6 = vmul.f32 %v7348_v50, %v8263_v40  ;;  %v3336_v61 = vadd.f32 %v7385_v30, %v3251_v10  ;;  %v3414_v54 = vmax.f32 %v3332_v32, 0.0  ;;  %v3254_v51 = vmul.f32 %v7348_v50, %v8264_v21  ;;  %v8271_v34 = vld [vmem:[#allocation2_spill] sm:$0xff]  ;;  %v8272_v10 = vld [vmem:[#allocation3_spill] sm:$0xff] }
 0x436   :  { %3486 = vst.msk [vmem:[%s7990_s4 + $0xa0] sm:$0xff] %vm2771_vm1, %v3404_v59  ;;  %v3337_v59 = vadd.f32 %v7385_v30, %v3252_v36  ;;  %v3415_v52 = vmax.f32 %v3333_v25, 0.0  ;;  %v3255_v47 = vmul.f32 %v7348_v50, %v8265_v31  ;;  %v3416_v45 = vmax.f32 %v3334_v1, 0.0  ;;  %v8273_v36 = vld [vmem:[#allocation5_spill] sm:$0xff] }
 0x437   :  { %3487 = vst.msk [vmem:[%s7990_s4 + $0xa8] sm:$0xff] %vm2771_vm1, %v3405_v0  ;;  %v3338_v0 = vadd.f32 %v7385_v30, %v3253_v6  ;;  %v3256_v60 = vmul.f32 %v7348_v50, %v8266_v35  ;;  %v3417_v39 = vmax.f32 %v3335_v5, 0.0  ;;  %v3257_v44 = vmul.f32 %v7348_v50, %v8267_v53  ;;  %v8274_v6 = vld [vmem:[#allocation7_spill] sm:$0xff] }
 0x438   :  { %3488 = vst.msk [vmem:[%s7990_s4 + $0xb0] sm:$0xff] %vm2771_vm1, %v3406_v22  ;;  %v3339_v22 = vadd.f32 %v7385_v30, %v3254_v51  ;;  %v3418_v4 = vmax.f32 %v3336_v61, 0.0  ;;  %v3258_v42 = vmul.f32 %v7348_v50, %v8268_v29  ;;  %v3419_v19 = vmax.f32 %v3337_v59, 0.0  ;;  %v8275_v51 = vld [vmem:[#allocation9_spill] sm:$0xff] }
 0x439   :  { %3489 = vst.msk [vmem:[%s7990_s4 + $0xb8] sm:$0xff] %vm2771_vm1, %v3407_v11  ;;  %v3340_v11 = vadd.f32 %v7385_v30, %v3255_v47  ;;  %v3259_v33 = vmul.f32 %v7348_v50, %v8269_v23  ;;  %v3420_v20 = vmax.f32 %v3338_v0, 0.0  ;;  %v3260_v32 = vmul.f32 %v7348_v50, %v8270_v3  ;;  %v8276_v47 = vld [vmem:[#allocation11_spill] sm:$0xff] }
 0x43a   :  { %3490 = vst.msk [vmem:[%s7990_s4 + $0xc0] sm:$0xff] %vm2771_vm1, %v3408_v16  ;;  %v3341_v16 = vadd.f32 %v7385_v30, %v3256_v60  ;;  %v3421_v48 = vmax.f32 %v3339_v22, 0.0  ;;  %v3261_v25 = vmul.f32 %v7348_v50, %v8271_v34  ;;  %v3262_v1 = vmul.f32 %v7348_v50, %v8272_v10  ;;  %v8277_v60 = vld [vmem:[#allocation13_spill] sm:$0xff] }
 0x43b   :  { %3491 = vst.msk [vmem:[%s7990_s4 + $0xc8] sm:$0xff] %vm2771_vm1, %v3409_v62  ;;  %v3342_v62 = vadd.f32 %v7385_v30, %v3257_v44  ;;  %v3422_v17 = vmax.f32 %v3340_v11, 0.0  ;;  %v3263_v5 = vmul.f32 %v7348_v50, %v8273_v36  ;;  %v3264_v61 = vmul.f32 %v7348_v50, %v8274_v6  ;;  %v8278_v44 = vld [vmem:[#allocation15_spill] sm:$0xff] }
 0x43c   :  { %3492 = vst.msk [vmem:[%s7990_s4 + $0xd0] sm:$0xff] %vm2771_vm1, %v3410_v7  ;;  %v3343_v7 = vadd.f32 %v7385_v30, %v3258_v42  ;;  %v3423_v56 = vmax.f32 %v3341_v16, 0.0  ;;  %v3265_v59 = vmul.f32 %v7348_v50, %v8275_v51  ;;  %v3266_v0 = vmul.f32 %v7348_v50, %v8276_v47  ;;  %v8279_v42 = vld [vmem:[#allocation17_spill] sm:$0xff] }
 0x43d   :  { %3493 = vst.msk [vmem:[%s7990_s4 + $0xd8] sm:$0xff] %vm2771_vm1, %v3411_v41  ;;  %v3344_v41 = vadd.f32 %v7385_v30, %v3259_v33  ;;  %v3424_v40 = vmax.f32 %v3342_v62, 0.0  ;;  %v3267_v22 = vmul.f32 %v7348_v50, %v8277_v60  ;;  %v3268_v11 = vmul.f32 %v7348_v50, %v8278_v44  ;;  %v8280_v33 = vld [vmem:[#allocation19_spill] sm:$0xff] }
 0x43e   :  { %3494 = vst.msk [vmem:[%s7990_s4 + $0xe0] sm:$0xff] %vm2771_vm1, %v3412_v2  ;;  %v3345_v2 = vadd.f32 %v7385_v30, %v3260_v32  ;;  %v3425_v21 = vmax.f32 %v3343_v7, 0.0  ;;  %v3269_v16 = vmul.f32 %v7348_v50, %v8279_v42  ;;  %v3270_v62 = vmul.f32 %v7348_v50, %v8280_v33  ;;  %v8281_v32 = vld [vmem:[#allocation21_spill] sm:$0xff] }
 0x43f   :  { %3495 = vst.msk [vmem:[%s7990_s4 + $0xe8] sm:$0xff] %vm2771_vm1, %v3413_v27  ;;  %v3346_v27 = vadd.f32 %v7385_v30, %v3261_v25  ;;  %v3426_v31 = vmax.f32 %v3344_v41, 0.0  ;;  %v3271_v7 = vmul.f32 %v7348_v50, %v8281_v32  ;;  %v8282_v25 = vld [vmem:[#allocation23_spill] sm:$0xff]  ;;  %v3448_v32 = vmax.f32 %v7422_v57, 0.0 }
 0x440   :  { %3496 = vst.msk [vmem:[%s7990_s4 + $0xf0] sm:$0xff] %vm2771_vm1, %v3414_v54  ;;  %v3347_v54 = vadd.f32 %v7385_v30, %v3262_v1  ;;  %v3427_v35 = vmax.f32 %v3345_v2, 0.0  ;;  %v3272_v41 = vmul.f32 %v7348_v50, %v8282_v25  ;;  %v8283_v1 = vld [vmem:[#allocation25_spill] sm:$0xff]  ;;  %v3451_v57 = vmax.f32 %v7431_v18, 0.0 }
 0x441   :  { %3497 = vst.msk [vmem:[%s7990_s4 + $0xf8] sm:$0xff] %vm2771_vm1, %v3415_v52  ;;  %v3348_v52 = vadd.f32 %v7385_v30, %v3263_v5  ;;  %v3428_v53 = vmax.f32 %v3346_v27, 0.0  ;;  %v3273_v2 = vmul.f32 %v7348_v50, %v8283_v1  ;;  %v8284_v5 = vld [vmem:[#allocation27_spill] sm:$0xff]  ;;  %v3454_v18 = vmax.f32 %v7440_v8, 0.0 }
 0x442   :  { %3498 = vst.msk [vmem:[%s7990_s4 + $0x100] sm:$0xff] %vm2771_vm1, %v3416_v45  ;;  %v3349_v45 = vadd.f32 %v7385_v30, %v3264_v61  ;;  %v3429_v29 = vmax.f32 %v3347_v54, 0.0  ;;  %v3274_v27 = vmul.f32 %v7348_v50, %v8284_v5  ;;  %v8285_v61 = vld [vmem:[#allocation29_spill] sm:$0xff]  ;;  %v3457_v8 = vmax.f32 %v7449_v58, 0.0 }
 0x443   :  { %3499 = vst.msk [vmem:[%s7990_s4 + $0x108] sm:$0xff] %vm2771_vm1, %v3417_v39  ;;  %v3350_v39 = vadd.f32 %v7385_v30, %v3265_v59  ;;  %v3430_v23 = vmax.f32 %v3348_v52, 0.0  ;;  %v3275_v54 = vmul.f32 %v7348_v50, %v8285_v61  ;;  %v8286_v59 = vld [vmem:[#allocation31_spill] sm:$0xff]  ;;  %v3460_v58 = vmax.f32 %v7458_v15, 0.0 }
 0x444   :  { %3500 = vst.msk [vmem:[%s7990_s4 + $0x110] sm:$0xff] %vm2771_vm1, %v3418_v4  ;;  %v3351_v4 = vadd.f32 %v7385_v30, %v3266_v0  ;;  %v3431_v3 = vmax.f32 %v3349_v45, 0.0  ;;  %v3276_v52 = vmul.f32 %v7348_v50, %v8286_v59  ;;  %v8287_v0 = vld [vmem:[#allocation33_spill] sm:$0xff]  ;;  %v3463_v15 = vmax.f32 %v7467_v37, 0.0 }
 0x445   :  { %3501 = vst.msk [vmem:[%s7990_s4 + $0x118] sm:$0xff] %vm2771_vm1, %v3419_v19  ;;  %v3352_v19 = vadd.f32 %v7385_v30, %v3267_v22  ;;  %v3432_v34 = vmax.f32 %v3350_v39, 0.0  ;;  %v3277_v45 = vmul.f32 %v7348_v50, %v8287_v0  ;;  %v8288_v22 = vld [vmem:[#allocation35_spill] sm:$0xff] }
 0x446   :  { %3502 = vst.msk [vmem:[%s7990_s4 + $0x120] sm:$0xff] %vm2771_vm1, %v3420_v20  ;;  %v3353_v20 = vadd.f32 %v7385_v30, %v3268_v11  ;;  %v3433_v10 = vmax.f32 %v3351_v4, 0.0  ;;  %v3278_v39 = vmul.f32 %v7348_v50, %v8288_v22  ;;  %v8289_v11 = vld [vmem:[#allocation37_spill] sm:$0xff] }
 0x447   :  { %3503 = vst.msk [vmem:[%s7990_s4 + $0x128] sm:$0xff] %vm2771_vm1, %v3421_v48  ;;  %v3354_v48 = vadd.f32 %v7385_v30, %v3269_v16  ;;  %v3434_v36 = vmax.f32 %v3352_v19, 0.0  ;;  %v3279_v4 = vmul.f32 %v7348_v50, %v8289_v11 }
 0x448   :  { %3504 = vst.msk [vmem:[%s7990_s4 + $0x130] sm:$0xff] %vm2771_vm1, %v3422_v17  ;;  %v3355_v17 = vadd.f32 %v7385_v30, %v3270_v62  ;;  %v3435_v6 = vmax.f32 %v3353_v20, 0.0  ;;  %v3363_v16 = vadd.f32 %v7385_v30, %v3278_v39 }
 0x449   :  { %3505 = vst.msk [vmem:[%s7990_s4 + $0x138] sm:$0xff] %vm2771_vm1, %v3423_v56  ;;  %v3356_v56 = vadd.f32 %v7385_v30, %v3271_v7  ;;  %v3436_v51 = vmax.f32 %v3354_v48, 0.0  ;;  %v3449_v7 = vmax.f32 %v7425_v28, 0.0  ;;  %v3452_v28 = vmax.f32 %v7434_v14, 0.0 }
 0x44a   :  { %3506 = vst.msk [vmem:[%s7990_s4 + $0x140] sm:$0xff] %vm2771_vm1, %v3424_v40  ;;  %v3357_v40 = vadd.f32 %v7385_v30, %v3272_v41  ;;  %v3437_v47 = vmax.f32 %v3355_v17, 0.0  ;;  %v3445_v20 = vmax.f32 %v3363_v16, 0.0  ;;  %v3455_v14 = vmax.f32 %v7443_v63, 0.0 }
 0x44b   :  { %3507 = vst.msk [vmem:[%s7990_s4 + $0x148] sm:$0xff] %vm2771_vm1, %v3425_v21  ;;  %v3358_v21 = vadd.f32 %v7385_v30, %v3273_v2  ;;  %v3438_v60 = vmax.f32 %v3356_v56, 0.0  ;;  %v3458_v63 = vmax.f32 %v7452_v43, 0.0  ;;  %v3461_v43 = vmax.f32 %v7461_v13, 0.0 }
 0x44c   :  { %3508 = vst.msk [vmem:[%s7990_s4 + $0x150] sm:$0xff] %vm2771_vm1, %v3426_v31  ;;  %v3359_v31 = vadd.f32 %v7385_v30, %v3274_v27  ;;  %v3439_v44 = vmax.f32 %v3357_v40, 0.0  ;;  %v3464_v13 = vmax.f32 %v7470_v49, 0.0 }
 0x44d   :  { %3509 = vst.msk [vmem:[%s7990_s4 + $0x158] sm:$0xff] %vm2771_vm1, %v3427_v35  ;;  %v3360_v35 = vadd.f32 %v7385_v30, %v3275_v54  ;;  %v3440_v42 = vmax.f32 %v3358_v21, 0.0 }
 0x44e   :  { %3510 = vst.msk [vmem:[%s7990_s4 + $0x160] sm:$0xff] %vm2771_vm1, %v3428_v53  ;;  %v3361_v53 = vadd.f32 %v7385_v30, %v3276_v52  ;;  %v3441_v19 = vmax.f32 %v3359_v31, 0.0 }
 0x44f   :  { %3511 = vst.msk [vmem:[%s7990_s4 + $0x168] sm:$0xff] %vm2771_vm1, %v3429_v29  ;;  %v3362_v29 = vadd.f32 %v7385_v30, %v3277_v45  ;;  %v3442_v33 = vmax.f32 %v3360_v35, 0.0 }
 0x450   :  { %3512 = vst.msk [vmem:[%s7990_s4 + $0x170] sm:$0xff] %vm2771_vm1, %v3430_v23  ;;  %v3364_v23 = vadd.f32 %v7385_v30, %v3279_v4  ;;  %v3443_v50 = vmax.f32 %v3361_v53, 0.0 }
 0x451   :  { %3513 = vst.msk [vmem:[%s7990_s4 + $0x178] sm:$0xff] %vm2771_vm1, %v3431_v3  ;;  %v3444_v62 = vmax.f32 %v3362_v29, 0.0  ;;  %v3447_v3 = vmax.f32 %v7419_v24, 0.0  ;;  %v3450_v24 = vmax.f32 %v7428_v26, 0.0  ;;  %v3453_v26 = vmax.f32 %v7437_v9, 0.0 }
 0x452   :  { %3514 = vst.msk [vmem:[%s7990_s4 + $0x180] sm:$0xff] %vm2771_vm1, %v3432_v34  ;;  %v3446_v30 = vmax.f32 %v3364_v23, 0.0  ;;  %v3456_v9 = vmax.f32 %v7446_v38, 0.0  ;;  %v3459_v38 = vmax.f32 %v7455_v46, 0.0  ;;  %v3462_v46 = vmax.f32 %v7464_v12, 0.0 }
 0x453   :  { %3515 = vst.msk [vmem:[%s7990_s4 + $0x188] sm:$0xff] %vm2771_vm1, %v3433_v10  ;;  %v3465_v12 = vmax.f32 %v7473_v55, 0.0 }
 0x454   :  { %3516 = vst.msk [vmem:[%s7990_s4 + $0x190] sm:$0xff] %vm2771_vm1, %v3434_v36 }
 0x455   :  { %3517 = vst.msk [vmem:[%s7990_s4 + $0x198] sm:$0xff] %vm2771_vm1, %v3435_v6 }
 0x456   :  { %3518 = vst.msk [vmem:[%s7990_s4 + $0x1a0] sm:$0xff] %vm2771_vm1, %v3436_v51 }
 0x457   :  { %3519 = vst.msk [vmem:[%s7990_s4 + $0x1a8] sm:$0xff] %vm2771_vm1, %v3437_v47 }
 0x458   :  { %3520 = vst.msk [vmem:[%s7990_s4 + $0x1b0] sm:$0xff] %vm2771_vm1, %v3438_v60 }
 0x459   :  { %3521 = vst.msk [vmem:[%s7990_s4 + $0x1b8] sm:$0xff] %vm2771_vm1, %v3439_v44 }
 0x45a   :  { %3522 = vst.msk [vmem:[%s7990_s4 + $0x1c0] sm:$0xff] %vm2771_vm1, %v3440_v42 }
 0x45b   :  { %3523 = vst.msk [vmem:[%s7990_s4 + $0x1c8] sm:$0xff] %vm2771_vm1, %v3441_v19 }
 0x45c   :  { %3524 = vst.msk [vmem:[%s7990_s4 + $0x1d0] sm:$0xff] %vm2771_vm1, %v3442_v33 }
 0x45d   :  { %3525 = vst.msk [vmem:[%s7990_s4 + $0x1d8] sm:$0xff] %vm2771_vm1, %v3443_v50 }
 0x45e   :  { %3526 = vst.msk [vmem:[%s7990_s4 + $0x1e0] sm:$0xff] %vm2771_vm1, %v3444_v62 }
 0x45f   :  { %3527 = vst.msk [vmem:[%s7990_s4 + $0x1e8] sm:$0xff] %vm2771_vm1, %v3445_v20 }
 0x460   :  { %3528 = vst.msk [vmem:[%s7990_s4 + $0x1f0] sm:$0xff] %vm2771_vm1, %v3446_v30 }
 0x461   :  { %3529 = vst.msk [vmem:[%s7990_s4 + $0x1f8] sm:$0xff] %vm2771_vm1, %v3447_v3 }
 0x462   :  { %3530 = vst.msk [vmem:[%s7990_s4 + $0x200] sm:$0xff] %vm2771_vm1, %v3448_v32 }
 0x463   :  { %3531 = vst.msk [vmem:[%s7990_s4 + $0x208] sm:$0xff] %vm2771_vm1, %v3449_v7 }
 0x464   :  { %3532 = vst.msk [vmem:[%s7990_s4 + $0x210] sm:$0xff] %vm2771_vm1, %v3450_v24 }
 0x465   :  { %3533 = vst.msk [vmem:[%s7990_s4 + $0x218] sm:$0xff] %vm2771_vm1, %v3451_v57 }
 0x466   :  { %3534 = vst.msk [vmem:[%s7990_s4 + $0x220] sm:$0xff] %vm2771_vm1, %v3452_v28 }
 0x467   :  { %3535 = vst.msk [vmem:[%s7990_s4 + $0x228] sm:$0xff] %vm2771_vm1, %v3453_v26 }
 0x468   :  { %3536 = vst.msk [vmem:[%s7990_s4 + $0x230] sm:$0xff] %vm2771_vm1, %v3454_v18 }
 0x469   :  { %3537 = vst.msk [vmem:[%s7990_s4 + $0x238] sm:$0xff] %vm2771_vm1, %v3455_v14 }
 0x46a   :  { %3538 = vst.msk [vmem:[%s7990_s4 + $0x240] sm:$0xff] %vm2771_vm1, %v3456_v9 }
 0x46b   :  { %3539 = vst.msk [vmem:[%s7990_s4 + $0x248] sm:$0xff] %vm2771_vm1, %v3457_v8 }
 0x46c   :  { %3540 = vst.msk [vmem:[%s7990_s4 + $0x250] sm:$0xff] %vm2771_vm1, %v3458_v63 }
 0x46d   :  { %3541 = vst.msk [vmem:[%s7990_s4 + $0x258] sm:$0xff] %vm2771_vm1, %v3459_v38 }
 0x46e   :  { %3542 = vst.msk [vmem:[%s7990_s4 + $0x260] sm:$0xff] %vm2771_vm1, %v3460_v58 }
 0x46f   :  { %3543 = vst.msk [vmem:[%s7990_s4 + $0x268] sm:$0xff] %vm2771_vm1, %v3461_v43 }
 0x470   :  { %3544 = vst.msk [vmem:[%s7990_s4 + $0x270] sm:$0xff] %vm2771_vm1, %v3462_v46 }
 0x471   :  { %3545 = vst.msk [vmem:[%s7990_s4 + $0x278] sm:$0xff] %vm2771_vm1, %v3463_v15 }
 0x472   :  { %3546 = vst.msk [vmem:[%s7990_s4 + $0x280] sm:$0xff] %vm2771_vm1, %v3464_v13 }
 0x473   :  { %3547 = vst.msk [vmem:[%s7990_s4 + $0x288] sm:$0x3] %vm2933_vm2, %v3465_v12 }

</bundles_post_ra>
